<compile_context>
chip_gen: v7x
topology: tpu7x:2x2x1
jax: 0.10.0
libtpu: 0.0.40
codegen_flags: <defaults>
</compile_context>

<pallas_src>
import functools

import jax
import jax.numpy as jnp
from jax.experimental import pallas as pl
from jax.experimental.pallas import tpu as pltpu


def _round_up(x, m):
    return (x + m - 1) // m * m


def _cdiv(a, b):
    return (a + b - 1) // b


def _default_vmem_limit():
    # Generation-aware scoped-VMEM limit: ~half of physical VMEM, clamped to
    # [32 MiB, 96 MiB].  v5e/v6e (128 MiB) -> 64 MiB, v7x (64 MiB) -> 32 MiB.
    try:
        cap = int(pltpu.get_tpu_info().vmem_capacity_bytes)
    except Exception:
        return 32 * 1024 * 1024
    return max(32 * 1024 * 1024, min(96 * 1024 * 1024, cap // 2))


_VMEM_LIMIT = _default_vmem_limit()
_MAX_MM_TILE = 1024 if _VMEM_LIMIT >= 64 * 1024 * 1024 else 512


def _pick_tile(m_pad):
    """Largest row tile dividing m_pad, preferring a grid of >= 2 steps."""
    cands = [t for t in (1024, 512, 256, 128) if t <= _MAX_MM_TILE]
    for c in cands:
        if m_pad % c == 0 and m_pad // c >= 2:
            return c
    for c in cands:
        if m_pad % c == 0:
            return c
    return m_pad


# ---------------------------------------------------------------------------
# Pallas kernels
# ---------------------------------------------------------------------------

def _mm_bn_kernel(a_ref, w_ref, b_ref, o_ref, *, relu):
    """out = maybe_relu(a @ w + shift); BN scale pre-folded into w; f32 accum."""
    y = jnp.dot(a_ref[...], w_ref[...], preferred_element_type=jnp.float32)
    y = y + b_ref[...]
    if relu:
        y = jnp.maximum(y, 0.0)
    o_ref[...] = y.astype(o_ref.dtype)


def _tapconv_body(x_ref, w_ref, b_ref, r_ref, *, offsets, tq, relu, n_q):
    """sum_t x[base+off_t : base+off_t+tq, :] @ w[t] + shift [+res] [ReLU].

    x_ref: (QA, K) bf16 flattened padded activation (whole image resident).
    w_ref: (T*K, cout) bf16, BN scale folded in, tap-major.
    """
    k = x_ref.shape[-1]
    if n_q == 1:
        base = 0                                     # fully static slices
    else:
        base = pl.multiple_of(pl.program_id(1) * tq, 16)
    acc = None
    for t, off in enumerate(offsets):
        a = x_ref[pl.ds(base + off, tq), :]
        part = jnp.dot(a, w_ref[t * k:(t + 1) * k, :],
                       preferred_element_type=jnp.float32)
        acc = part if acc is None else acc + part
    y = acc + b_ref[...]
    if r_ref is not None:
        y = y + r_ref[...].astype(jnp.float32)
    if relu:
        y = jnp.maximum(y, 0.0)
    return y


def _tapconv_kernel(x_ref, w_ref, b_ref, o_ref, *, offsets, tq, relu, n_q):
    y = _tapconv_body(x_ref, w_ref, b_ref, None,
                      offsets=offsets, tq=tq, relu=relu, n_q=n_q)
    o_ref[...] = y.astype(o_ref.dtype)


def _tapconv_res_kernel(x_ref, w_ref, b_ref, r_ref, o_ref, *, offsets, tq, relu, n_q):
    y = _tapconv_body(x_ref, w_ref, b_ref, r_ref,
                      offsets=offsets, tq=tq, relu=relu, n_q=n_q)
    o_ref[...] = y.astype(o_ref.dtype)


def _maxpool_kernel(x_ref, o_ref, *, ho, wo, c):
    """MaxPool2d(3, stride=2, padding=1) on one image.

    x_ref: (ho+1, 2, wo+1, 2c) -- the -inf padded image with both H and W
    paired (rows 2i+j on dims 0/1, cols 2k + (c'//c) on dims 2/channel-half).
    """
    x = x_ref[...].astype(jnp.float32)
    # vertical max over rows {2oh, 2oh+1, 2oh+2}: leading-dim slices only.
    v = jnp.maximum(jnp.maximum(x[:ho, 0], x[:ho, 1]), x[1:, 0])   # (ho, wo+1, 2c)
    # horizontal max over cols {2ow, 2ow+1, 2ow+2}.
    m = jnp.maximum(jnp.maximum(v[:, :wo, :c], v[:, :wo, c:]), v[:, 1:, :c])
    o_ref[...] = m.astype(o_ref.dtype)


# ---------------------------------------------------------------------------
# Pallas wrappers
# ---------------------------------------------------------------------------

def matmul_bn_pallas(a, wmat, shift, relu=True, out_dtype=jnp.bfloat16):
    """a: (M, K), wmat: (K, N) with BN scale folded in, shift: (N,)."""
    M, K = a.shape
    N = wmat.shape[1]
    M_pad = _round_up(M, 128)
    tm = _pick_tile(M_pad)
    if M_pad != M:
        a = jnp.pad(a, ((0, M_pad - M), (0, 0)))
    a = a.astype(jnp.bfloat16)
    wmat = wmat.astype(jnp.bfloat16)
    shift2 = shift.reshape(1, N).astype(jnp.float32)

    out_b = jnp.dtype(out_dtype).itemsize
    cost = pl.CostEstimate(
        flops=2 * M_pad * K * N,
        transcendentals=0,
        bytes_accessed=M_pad * K * 2 + K * N * 2 + M_pad * N * out_b + N * 4,
    )
    out = pl.pallas_call(
        functools.partial(_mm_bn_kernel, relu=relu),
        out_shape=jax.ShapeDtypeStruct((M_pad, N), out_dtype),
        grid=(M_pad // tm,),
        in_specs=[
            pl.BlockSpec((tm, K), lambda i: (i, 0)),
            pl.BlockSpec((K, N), lambda i: (0, 0)),
            pl.BlockSpec((1, N), lambda i: (0, 0)),
        ],
        out_specs=pl.BlockSpec((tm, N), lambda i: (i, 0)),
        compiler_params=pltpu.CompilerParams(
            dimension_semantics=("parallel",),
            vmem_limit_bytes=_VMEM_LIMIT),
        cost_estimate=cost,
    )(a, wmat, shift2)
    return out[:M] if M_pad != M else out


def tap_conv_bn(xflat, wmat, shift, offsets, q_valid, *, residual_flat=None,
                relu=True, out_dtype=jnp.bfloat16):
    """Generic shifted-slab conv: out[b,r,:] = act(sum_t xflat[b, r+off_t, :] @ w_t + shift).

    xflat: (B, QA, K) bf16; wmat: (T*K, cout) bf16 (scale folded); shift: (cout,).
    Output rows are tiled (tq) so the grid has >= 2 steps per core on larger
    images; the xflat block index is constant along the row-tile axis, so it is
    DMA'd once per image.
    """
    B, QA0, K = xflat.shape
    cout = wmat.shape[1]
    T = len(offsets)
    assert wmat.shape[0] == T * K
    max_off = int(max(offsets))

    tq = min(512, _round_up(q_valid, 16))
    n_q = _cdiv(q_valid, tq)
    q_pad = n_q * tq
    qa_need = q_pad + max_off               # last read = q_pad - 1 + max_off
    if QA0 < qa_need:
        xflat = jnp.pad(xflat, ((0, 0), (0, qa_need - QA0), (0, 0)))
    QA = xflat.shape[1]

    xflat = xflat.astype(jnp.bfloat16)
    wmat = wmat.astype(jnp.bfloat16)
    shift2 = shift.reshape(1, cout).astype(jnp.float32)

    in_specs = [
        pl.BlockSpec((None, QA, K), lambda b, q: (b, 0, 0)),      # resident per image
        pl.BlockSpec((T * K, cout), lambda b, q: (0, 0)),
        pl.BlockSpec((1, cout), lambda b, q: (0, 0)),
    ]
    args = [xflat, wmat, shift2]
    res_bytes = 0
    if residual_flat is not None:
        if residual_flat.shape[1] < q_pad:
            residual_flat = jnp.pad(
                residual_flat, ((0, 0), (0, q_pad - residual_flat.shape[1]), (0, 0)))
        in_specs.append(pl.BlockSpec((None, tq, cout), lambda b, q: (b, q, 0)))
        args.append(residual_flat.astype(jnp.bfloat16))
        res_bytes = B * q_pad * cout * 2
        kernel = functools.partial(_tapconv_res_kernel, offsets=tuple(offsets),
                                   tq=tq, relu=relu, n_q=n_q)
    else:
        kernel = functools.partial(_tapconv_kernel, offsets=tuple(offsets),
                                   tq=tq, relu=relu, n_q=n_q)

    out_b = jnp.dtype(out_dtype).itemsize
    cost = pl.CostEstimate(
        flops=2 * B * q_pad * T * K * cout,
        transcendentals=0,
        bytes_accessed=B * QA * K * 2 + T * K * cout * 2
                       + B * q_pad * cout * out_b + res_bytes + cout * 4,
    )
    return pl.pallas_call(
        kernel,
        out_shape=jax.ShapeDtypeStruct((B, q_pad, cout), out_dtype),
        grid=(B, n_q),
        in_specs=in_specs,
        out_specs=pl.BlockSpec((None, tq, cout), lambda b, q: (b, q, 0)),
        compiler_params=pltpu.CompilerParams(
            dimension_semantics=("parallel", "parallel"),
            vmem_limit_bytes=_VMEM_LIMIT),
        cost_estimate=cost,
    )(*args)


# ---------------------------------------------------------------------------
# BN folding / weight packing
# ---------------------------------------------------------------------------

def _fold_bn(p):
    scale = p["gamma"] / jnp.sqrt(p["var"] + 1e-5)
    shift = p["beta"] - p["mean"] * scale
    return scale, shift


def _weight_matrix(w_oihw):
    """(OC, IC, KH, KW) -> (KH*KW*IC, OC), tap-major (kh, kw, ic)."""
    oc = w_oihw.shape[0]
    return jnp.transpose(w_oihw, (2, 3, 1, 0)).reshape(-1, oc)


def _folded_weight_taps(p):
    """3x3 stride-1 conv weights, BN scale folded: (9*ic, oc) bf16 + shift."""
    scale, shift = _fold_bn(p)
    oc = p["w"].shape[0]
    wmat = (_weight_matrix(p["w"]) * scale[None, :]).astype(jnp.bfloat16)
    return wmat, shift.reshape(1, oc).astype(jnp.float32)


def _folded_weight_s2(p):
    """3x3 stride-2 conv weights for the W-paired (2*ic channel) layout.

    6 tap groups per dh: A = [w(dh,0); w(dh,1)] (even/odd column halves),
    B = [w(dh,2); 0] (next even column, upper half unused)  ->  (12*ic, oc).
    """
    scale, shift = _fold_bn(p)
    oc, ic, _, _ = p["w"].shape
    wt = jnp.transpose(p["w"], (2, 3, 1, 0))            # (3, 3, ic, oc)
    zeros = jnp.zeros((ic, oc), jnp.float32)
    blocks = []
    for dh in range(3):
        blocks.extend([wt[dh, 0], wt[dh, 1]])           # group A (K = 2*ic)
        blocks.extend([wt[dh, 2], zeros])               # group B (K = 2*ic)
    wmat = (jnp.concatenate(blocks, axis=0) * scale[None, :]).astype(jnp.bfloat16)
    return wmat, shift.reshape(1, oc).astype(jnp.float32)


# ---------------------------------------------------------------------------
# Layer wrappers
# ---------------------------------------------------------------------------

def conv3x3_bn_s1(x_nhwc, p, relu=True, residual_nhwc=None, out_dtype=jnp.bfloat16):
    """Stride-1 pad-1 3x3 conv + folded BN [+ residual] [+ ReLU], no im2col."""
    B, H, W, cin = x_nhwc.shape
    cout = p["w"].shape[0]
    Wp = W + 2
    Q = H * Wp                                           # padded-column output rows
    xp = jnp.pad(x_nhwc.astype(jnp.bfloat16), ((0, 0), (1, 1), (1, 1), (0, 0)))
    xflat = xp.reshape(B, (H + 2) * Wp, cin)
    offsets = [dh * Wp + dw for dh in range(3) for dw in range(3)]
    wmat, shift = _folded_weight_taps(p)
    resflat = None
    if residual_nhwc is not None:
        # same (H, W+2) padded-column flat layout as the output (garbage cols dropped).
        resflat = jnp.pad(residual_nhwc.astype(jnp.bfloat16),
                          ((0, 0), (0, 0), (0, 2), (0, 0))).reshape(B, Q, cout)
    y = tap_conv_bn(xflat, wmat, shift, offsets, Q,
                    residual_flat=resflat, relu=relu, out_dtype=out_dtype)
    return y[:, :Q, :].reshape(B, H, Wp, cout)[:, :, :W, :]


def conv3x3_bn_s2(x_nhwc, p, relu=True, out_dtype=jnp.bfloat16):
    """Stride-2 pad-1 3x3 conv + folded BN [+ ReLU] without XLA im2col.

    Pairs of W columns are folded into the channel axis by a free reshape
    (2*cin lanes); the kernel accumulates 6 shifted-slab matmuls of K = 2*cin.
    """
    B, H, W, cin = x_nhwc.shape
    cout = p["w"].shape[0]
    assert H % 2 == 0 and W % 2 == 0, "stride-2 conv expects even H, W"
    Ho, Wo = H // 2, W // 2
    Wpair = Wo + 1                                        # (W + 2) // 2
    xp = jnp.pad(x_nhwc.astype(jnp.bfloat16), ((0, 0), (1, 1), (1, 1), (0, 0)))
    xflat = xp.reshape(B, (H + 2) * Wpair, 2 * cin)
    offsets = [dh * Wpair + g for dh in range(3) for g in range(2)]
    wmat, shift = _folded_weight_s2(p)
    q_valid = Ho * 2 * Wpair                              # valid rows: oh*2*Wpair + ow, ow < Wo
    y = tap_conv_bn(xflat, wmat, shift, offsets, q_valid,
                    relu=relu, out_dtype=out_dtype)
    return y[:, :q_valid, :].reshape(B, Ho, 2 * Wpair, cout)[:, :, :Wo, :]


def downsample_bn(x_nhwc, p):
    """1x1 stride-2 conv + BN (no ReLU): plain ::2 subsample + fused matmul."""
    B = x_nhwc.shape[0]
    oc, ic = p["w"].shape[0], p["w"].shape[1]
    xs = x_nhwc[:, ::2, ::2, :]
    Ho, Wo = xs.shape[1], xs.shape[2]
    scale, shift = _fold_bn(p)
    wmat = (p["w"].reshape(oc, ic).T * scale[None, :]).astype(jnp.bfloat16)
    out = matmul_bn_pallas(xs.reshape(B * Ho * Wo, ic).astype(jnp.bfloat16),
                           wmat, shift, relu=False)
    return out.reshape(B, Ho, Wo, oc)


def _im2col(x_nhwc, kh, kw, stride, pad):
    x = jnp.pad(x_nhwc, ((0, 0), (pad, pad), (pad, pad), (0, 0)))
    B, H, W, C = x.shape
    Ho = (H - kh) // stride + 1
    Wo = (W - kw) // stride + 1
    cols = [x[:, i:i + stride * Ho:stride, j:j + stride * Wo:stride, :]
            for i in range(kh) for j in range(kw)]
    patches = jnp.stack(cols, axis=3)                     # (B, Ho, Wo, kh*kw, C)
    return patches.reshape(B * Ho * Wo, kh * kw * C), (B, Ho, Wo)


def stem_conv_bn_relu(x_nhwc, p):
    """7x7 stride-2 pad-3 conv + BN + ReLU.  Stays on the (tiny, cin=3) im2col
    path: K=147 gives a far denser MXU shape than 28 K=6 tap matmuls would."""
    cols, (B, Ho, Wo) = _im2col(x_nhwc.astype(jnp.bfloat16), 7, 7, 2, 3)
    scale, shift = _fold_bn(p)
    wmat = (_weight_matrix(p["w"]) * scale[None, :]).astype(jnp.bfloat16)
    out = matmul_bn_pallas(cols, wmat, shift, relu=True)
    return out.reshape(B, Ho, Wo, -1)


def maxpool3x3_s2_p1(x_nhwc):
    """MaxPool2d(3, stride=2, padding=1): one padded/paired input, in-kernel max."""
    B, H, W, C = x_nhwc.shape
    assert H % 2 == 0 and W % 2 == 0, "maxpool expects even H, W"
    Ho, Wo = H // 2, W // 2
    xp = jnp.pad(x_nhwc, ((0, 0), (1, 1), (1, 1), (0, 0)),
                 constant_values=-jnp.inf)
    # Pair rows (leading dims) and columns (into channels): free reshapes.
    xr = xp.reshape(B, Ho + 1, 2, Wo + 1, 2 * C)

    cost = pl.CostEstimate(
        flops=8 * B * Ho * Wo * C,
        transcendentals=0,
        bytes_accessed=(B * (Ho + 1) * 2 * (Wo + 1) * 2 * C + B * Ho * Wo * C) * 2,
    )
    return pl.pallas_call(
        functools.partial(_maxpool_kernel, ho=Ho, wo=Wo, c=C),
        out_shape=jax.ShapeDtypeStruct((B, Ho, Wo, C), x_nhwc.dtype),
        grid=(B,),
        in_specs=[pl.BlockSpec((None, Ho + 1, 2, Wo + 1, 2 * C),
                               lambda b: (b, 0, 0, 0, 0))],
        out_specs=pl.BlockSpec((None, Ho, Wo, C), lambda b: (b, 0, 0, 0)),
        compiler_params=pltpu.CompilerParams(
            dimension_semantics=("parallel",),
            vmem_limit_bytes=_VMEM_LIMIT),
        cost_estimate=cost,
    )(xr)


# ---------------------------------------------------------------------------
# ResNet18 (stem + layer1 + layer2) structure
# ---------------------------------------------------------------------------

def basic_block(x, p_c1, p_c2, p_down=None, stride=1, out_dtype=jnp.bfloat16):
    if stride == 1:
        identity = x
        out = conv3x3_bn_s1(x, p_c1, relu=True)
    else:
        out = conv3x3_bn_s2(x, p_c1, relu=True)
        identity = downsample_bn(x, p_down)
    # conv2 + bn2 + residual add + relu fused in one Pallas call.
    return conv3x3_bn_s1(out, p_c2, relu=True, residual_nhwc=identity,
                         out_dtype=out_dtype)


def pretrained_image_encoding_forward(img_nchw, params):
    x = jnp.transpose(img_nchw, (0, 2, 3, 1)).astype(jnp.bfloat16)   # NCHW -> NHWC
    # stem: conv1(7x7, s2, p3) + bn1 + relu + maxpool(3x3, s2, p1)
    x = stem_conv_bn_relu(x, params["conv1"])
    x = maxpool3x3_s2_p1(x)
    # layer1: 2 x BasicBlock(64 -> 64)
    x = basic_block(x, params["l1b0_c1"], params["l1b0_c2"])
    x = basic_block(x, params["l1b1_c1"], params["l1b1_c2"])
    # layer2: BasicBlock(64 -> 128, stride 2, downsample) + BasicBlock(128 -> 128)
    x = basic_block(x, params["l2b0_c1"], params["l2b0_c2"],
                    p_down=params["l2b0_down"], stride=2)
    x = basic_block(x, params["l2b1_c1"], params["l2b1_c2"],
                    out_dtype=jnp.float32)                 # final layer emits f32 directly
    return jnp.transpose(x, (0, 3, 1, 2))                  # NHWC -> NCHW


# ---------------------------------------------------------------------------
# Deterministic synthetic parameters (shapes match torchvision resnet18)
# ---------------------------------------------------------------------------

def _conv_bn_params(key, oc, ic, kh, kw):
    k1, k2, k3, k4, k5 = jax.random.split(key, 5)
    fan_in = ic * kh * kw
    return dict(
        w=jax.random.normal(k1, (oc, ic, kh, kw), jnp.float32) / jnp.sqrt(fan_in),
        gamma=jax.random.uniform(k2, (oc,), jnp.float32, 0.5, 1.5),
        beta=jax.random.normal(k3, (oc,), jnp.float32) * 0.1,
        mean=jax.random.normal(k4, (oc,), jnp.float32) * 0.1,
        var=jax.random.uniform(k5, (oc,), jnp.float32, 0.5, 1.5),
    )


def make_params(key):
    ks = jax.random.split(key, 10)
    return {
        "conv1":     _conv_bn_params(ks[0], 64, 3, 7, 7),
        "l1b0_c1":   _conv_bn_params(ks[1], 64, 64, 3, 3),
        "l1b0_c2":   _conv_bn_params(ks[2], 64, 64, 3, 3),
        "l1b1_c1":   _conv_bn_params(ks[3], 64, 64, 3, 3),
        "l1b1_c2":   _conv_bn_params(ks[4], 64, 64, 3, 3),
        "l2b0_c1":   _conv_bn_params(ks[5], 128, 64, 3, 3),
        "l2b0_c2":   _conv_bn_params(ks[6], 128, 128, 3, 3),
        "l2b0_down": _conv_bn_params(ks[7], 128, 64, 1, 1),
        "l2b1_c1":   _conv_bn_params(ks[8], 128, 128, 3, 3),
        "l2b1_c2":   _conv_bn_params(ks[9], 128, 128, 3, 3),
    }


# ---------------------------------------------------------------------------

if __name__ == "__main__":
    key = jax.random.PRNGKey(0)
    k_img, k_par = jax.random.split(key)

    # Small input consistent with the module: RGB image, NCHW.
    img = jax.random.normal(k_img, (2, 3, 32, 32), jnp.float32)
    params = make_params(k_par)

    fwd = jax.jit(pretrained_image_encoding_forward)
    out = jax.block_until_ready(fwd(img, params))

    # stem /4 then layer2 /2  ->  32/8 = 4 spatial, 128 channels (= bn2.num_features)
    assert out.shape == (2, 128, 4, 4), out.shape
    assert out.dtype == jnp.float32
    assert bool(jnp.all(jnp.isfinite(out)))
    print("KERNEL_OK")
</pallas_src>

<mosaic_0001>
module attributes {stable_mosaic.version = 11 : i64} {
  func.func @_mm_bn_kernel(%arg0: i32, %arg1: memref<256x147xbf16, #tpu.memory_space<vmem>>, %arg2: memref<147x64xbf16, #tpu.memory_space<vmem>>, %arg3: memref<1x64xf32, #tpu.memory_space<vmem>>, %arg4: memref<256x64xbf16, #tpu.memory_space<vmem>>) attributes {dimension_semantics = [#tpu.dimension_semantics<parallel>], iteration_bounds = array<i64: 2>, scalar_prefetch = 0 : i64, scratch_operands = 0 : i64, tpu.core_type = #tpu.core_type<tc>, window_params = [{transform_indices = @transform_0, window_bounds = array<i64: 256, 147>}, {pipeline_mode = #tpu.pipeline_mode<synchronous>, transform_indices = @transform_1, window_bounds = array<i64: 147, 64>}, {pipeline_mode = #tpu.pipeline_mode<synchronous>, transform_indices = @transform_2, window_bounds = array<i64: 1, 64>}, {transform_indices = @transform_3, window_bounds = array<i64: 256, 64>}]} {
    %c0 = arith.constant 0 : index
    %c0_0 = arith.constant 0 : index
    %0 = vector.load %arg1[%c0, %c0_0] : memref<256x147xbf16, #tpu.memory_space<vmem>>, vector<256x147xbf16>
    %c0_1 = arith.constant 0 : index
    %c0_2 = arith.constant 0 : index
    %1 = vector.load %arg2[%c0_1, %c0_2] : memref<147x64xbf16, #tpu.memory_space<vmem>>, vector<147x64xbf16>
    %cst = arith.constant dense<0.000000e+00> : vector<256x64xf32>
    %2 = tpu.matmul %0, %1, %cst {dimension_numbers = #tpu.dot_dimension_numbers<[1], [0], [0], [1], [0, 0, 1, 1], [], []>} : vector<256x147xbf16>, vector<147x64xbf16>, vector<256x64xf32> -> vector<256x64xf32>
    %c0_3 = arith.constant 0 : index
    %c0_4 = arith.constant 0 : index
    %3 = vector.load %arg3[%c0_3, %c0_4] : memref<1x64xf32, #tpu.memory_space<vmem>>, vector<1x64xf32>
    %4 = vector.broadcast %3 : vector<1x64xf32> to vector<256x64xf32>
    %5 = arith.addf %2, %4 : vector<256x64xf32>
    %cst_5 = arith.constant 0.000000e+00 : f32
    %6 = vector.broadcast %cst_5 : f32 to vector<256x64xf32>
    %7 = arith.maximumf %5, %6 : vector<256x64xf32>
    %8 = arith.truncf %7 : vector<256x64xf32> to vector<256x64xbf16>
    %c0_6 = arith.constant 0 : index
    %c0_7 = arith.constant 0 : index
    %9 = vector.load %arg4[%c0_6, %c0_7] : memref<256x64xbf16, #tpu.memory_space<vmem>>, vector<256x64xbf16>
    tpu.vector_store %arg4[%c0_6, %c0_7], %8 {strides = array<i32>} : memref<256x64xbf16, #tpu.memory_space<vmem>>, vector<256x64xbf16>,
    return
  }
  func.func @transform_0(%arg0: i32) -> (i32, i32) {
    %c0_i32 = arith.constant 0 : i32
    %c0_i32_0 = arith.constant 0 : i32
    return %arg0, %c0_i32 : i32, i32
  }
  func.func @transform_1(%arg0: i32) -> (i32, i32) {
    %c0_i32 = arith.constant 0 : i32
    %c0_i32_0 = arith.constant 0 : i32
    %c0_i32_1 = arith.constant 0 : i32
    return %c0_i32, %c0_i32_0 : i32, i32
  }
  func.func @transform_2(%arg0: i32) -> (i32, i32) {
    %c0_i32 = arith.constant 0 : i32
    %c0_i32_0 = arith.constant 0 : i32
    %c0_i32_1 = arith.constant 0 : i32
    return %c0_i32, %c0_i32_0 : i32, i32
  }
  func.func @transform_3(%arg0: i32) -> (i32, i32) {
    %c0_i32 = arith.constant 0 : i32
    %c0_i32_0 = arith.constant 0 : i32
    return %arg0, %c0_i32 : i32, i32
  }
}

module attributes {stable_mosaic.version = 11 : i64} {
  func.func @_maxpool_kernel(%arg0: i32, %arg1: memref<1x9x2x9x128xbf16, #tpu.memory_space<vmem>>, %arg2: memref<1x8x8x64xbf16, #tpu.memory_space<vmem>>) attributes {dimension_semantics = [#tpu.dimension_semantics<parallel>], iteration_bounds = array<i64: 2>, scalar_prefetch = 0 : i64, scratch_operands = 0 : i64, tpu.core_type = #tpu.core_type<tc>, window_params = [{transform_indices = @transform_0, window_bounds = array<i64: 1, 9, 2, 9, 128>}, {transform_indices = @transform_1, window_bounds = array<i64: 1, 8, 8, 64>}]} {
    %c0 = arith.constant 0 : index
    %c0_0 = arith.constant 0 : index
    %c0_1 = arith.constant 0 : index
    %c0_2 = arith.constant 0 : index
    %c0_3 = arith.constant 0 : index
    %0 = vector.load %arg1[%c0, %c0_0, %c0_1, %c0_2, %c0_3] : memref<1x9x2x9x128xbf16, #tpu.memory_space<vmem>>, vector<1x9x2x9x128xbf16>
    %1 = vector.shape_cast %0 : vector<1x9x2x9x128xbf16> to vector<9x2x9x128xbf16>
    %2 = arith.extf %1 : vector<9x2x9x128xbf16> to vector<9x2x9x128xf32>
    %3 = vector.extract_strided_slice %2 {offsets = [0, 0, 0, 0], sizes = [8, 1, 9, 128], strides = [1, 1, 1, 1]} : vector<9x2x9x128xf32> to vector<8x1x9x128xf32>
    %4 = vector.shape_cast %3 : vector<8x1x9x128xf32> to vector<8x9x128xf32>
    %5 = vector.extract_strided_slice %2 {offsets = [0, 1, 0, 0], sizes = [8, 1, 9, 128], strides = [1, 1, 1, 1]} : vector<9x2x9x128xf32> to vector<8x1x9x128xf32>
    %6 = vector.shape_cast %5 : vector<8x1x9x128xf32> to vector<8x9x128xf32>
    %7 = arith.maximumf %4, %6 : vector<8x9x128xf32>
    %8 = vector.extract_strided_slice %2 {offsets = [1, 0, 0, 0], sizes = [8, 1, 9, 128], strides = [1, 1, 1, 1]} : vector<9x2x9x128xf32> to vector<8x1x9x128xf32>
    %9 = vector.shape_cast %8 : vector<8x1x9x128xf32> to vector<8x9x128xf32>
    %10 = arith.maximumf %7, %9 : vector<8x9x128xf32>
    %11 = vector.extract_strided_slice %10 {offsets = [0, 0, 0], sizes = [8, 8, 64], strides = [1, 1, 1]} : vector<8x9x128xf32> to vector<8x8x64xf32>
    %12 = vector.extract_strided_slice %10 {offsets = [0, 0, 64], sizes = [8, 8, 64], strides = [1, 1, 1]} : vector<8x9x128xf32> to vector<8x8x64xf32>
    %13 = arith.maximumf %11, %12 : vector<8x8x64xf32>
    %14 = vector.extract_strided_slice %10 {offsets = [0, 1, 0], sizes = [8, 8, 64], strides = [1, 1, 1]} : vector<8x9x128xf32> to vector<8x8x64xf32>
    %15 = arith.maximumf %13, %14 : vector<8x8x64xf32>
    %16 = arith.truncf %15 : vector<8x8x64xf32> to vector<8x8x64xbf16>
    %c0_4 = arith.constant 0 : index
    %c0_5 = arith.constant 0 : index
    %c0_6 = arith.constant 0 : index
    %c0_7 = arith.constant 0 : index
    %17 = vector.load %arg2[%c0_4, %c0_5, %c0_6, %c0_7] : memref<1x8x8x64xbf16, #tpu.memory_space<vmem>>, vector<1x8x8x64xbf16>
    %18 = vector.shape_cast %17 : vector<1x8x8x64xbf16> to vector<8x8x64xbf16>
    %19 = vector.shape_cast %16 : vector<8x8x64xbf16> to vector<1x8x8x64xbf16>
    tpu.vector_store %arg2[%c0_4, %c0_5, %c0_6, %c0_7], %19 {strides = array<i32>} : memref<1x8x8x64xbf16, #tpu.memory_space<vmem>>, vector<1x8x8x64xbf16>,
    return
  }
  func.func @transform_0(%arg0: i32) -> (i32, i32, i32, i32, i32) {
    %c0_i32 = arith.constant 0 : i32
    %c0_i32_0 = arith.constant 0 : i32
    %c0_i32_1 = arith.constant 0 : i32
    %c0_i32_2 = arith.constant 0 : i32
    %c0_i32_3 = arith.constant 0 : i32
    return %arg0, %c0_i32, %c0_i32_0, %c0_i32_1, %c0_i32_2 : i32, i32, i32, i32, i32
  }
  func.func @transform_1(%arg0: i32) -> (i32, i32, i32, i32) {
    %c0_i32 = arith.constant 0 : i32
    %c0_i32_0 = arith.constant 0 : i32
    %c0_i32_1 = arith.constant 0 : i32
    %c0_i32_2 = arith.constant 0 : i32
    return %arg0, %c0_i32, %c0_i32_0, %c0_i32_1 : i32, i32, i32, i32
  }
}

module attributes {stable_mosaic.version = 11 : i64} {
  func.func @_tapconv_kernel(%arg0: i32, %arg1: i32, %arg2: memref<1x102x64xbf16, #tpu.memory_space<vmem>>, %arg3: memref<576x64xbf16, #tpu.memory_space<vmem>>, %arg4: memref<1x64xf32, #tpu.memory_space<vmem>>, %arg5: memref<1x80x64xbf16, #tpu.memory_space<vmem>>) attributes {dimension_semantics = [#tpu.dimension_semantics<parallel>, #tpu.dimension_semantics<parallel>], iteration_bounds = array<i64: 2, 1>, scalar_prefetch = 0 : i64, scratch_operands = 0 : i64, tpu.core_type = #tpu.core_type<tc>, window_params = [{transform_indices = @transform_0, window_bounds = array<i64: 1, 102, 64>}, {pipeline_mode = #tpu.pipeline_mode<synchronous>, transform_indices = @transform_1, window_bounds = array<i64: 576, 64>}, {pipeline_mode = #tpu.pipeline_mode<synchronous>, transform_indices = @transform_2, window_bounds = array<i64: 1, 64>}, {transform_indices = @transform_3, window_bounds = array<i64: 1, 80, 64>}]} {
    %c0 = arith.constant 0 : index
    %c0_0 = arith.constant 0 : index
    %c0_1 = arith.constant 0 : index
    %0 = vector.load %arg2[%c0, %c0_0, %c0_1] : memref<1x102x64xbf16, #tpu.memory_space<vmem>>, vector<1x80x64xbf16>
    %1 = vector.shape_cast %0 : vector<1x80x64xbf16> to vector<80x64xbf16>
    %c0_2 = arith.constant 0 : index
    %c0_3 = arith.constant 0 : index
    %2 = vector.load %arg3[%c0_2, %c0_3] : memref<576x64xbf16, #tpu.memory_space<vmem>>, vector<64x64xbf16>
    %cst = arith.constant dense<0.000000e+00> : vector<80x64xf32>
    %3 = tpu.matmul %1, %2, %cst {dimension_numbers = #tpu.dot_dimension_numbers<[1], [0], [0], [1], [0, 0, 1, 1], [], []>} : vector<80x64xbf16>, vector<64x64xbf16>, vector<80x64xf32> -> vector<80x64xf32>
    %c0_4 = arith.constant 0 : index
    %c1 = arith.constant 1 : index
    %c0_5 = arith.constant 0 : index
    %4 = vector.load %arg2[%c0_4, %c1, %c0_5] : memref<1x102x64xbf16, #tpu.memory_space<vmem>>, vector<1x80x64xbf16>
    %5 = vector.shape_cast %4 : vector<1x80x64xbf16> to vector<80x64xbf16>
    %c64 = arith.constant 64 : index
    %c0_6 = arith.constant 0 : index
    %6 = vector.load %arg3[%c64, %c0_6] : memref<576x64xbf16, #tpu.memory_space<vmem>>, vector<64x64xbf16>
    %cst_7 = arith.constant dense<0.000000e+00> : vector<80x64xf32>
    %7 = tpu.matmul %5, %6, %cst_7 {dimension_numbers = #tpu.dot_dimension_numbers<[1], [0], [0], [1], [0, 0, 1, 1], [], []>} : vector<80x64xbf16>, vector<64x64xbf16>, vector<80x64xf32> -> vector<80x64xf32>
    %8 = arith.addf %3, %7 : vector<80x64xf32>
    %c0_8 = arith.constant 0 : index
    %c2 = arith.constant 2 : index
    %c0_9 = arith.constant 0 : index
    %9 = vector.load %arg2[%c0_8, %c2, %c0_9] : memref<1x102x64xbf16, #tpu.memory_space<vmem>>, vector<1x80x64xbf16>
    %10 = vector.shape_cast %9 : vector<1x80x64xbf16> to vector<80x64xbf16>
    %c128 = arith.constant 128 : index
    %c0_10 = arith.constant 0 : index
    %11 = vector.load %arg3[%c128, %c0_10] : memref<576x64xbf16, #tpu.memory_space<vmem>>, vector<64x64xbf16>
    %cst_11 = arith.constant dense<0.000000e+00> : vector<80x64xf32>
    %12 = tpu.matmul %10, %11, %cst_11 {dimension_numbers = #tpu.dot_dimension_numbers<[1], [0], [0], [1], [0, 0, 1, 1], [], []>} : vector<80x64xbf16>, vector<64x64xbf16>, vector<80x64xf32> -> vector<80x64xf32>
    %13 = arith.addf %8, %12 : vector<80x64xf32>
    %c0_12 = arith.constant 0 : index
    %c10 = arith.constant 10 : index
    %c0_13 = arith.constant 0 : index
    %14 = vector.load %arg2[%c0_12, %c10, %c0_13] : memref<1x102x64xbf16, #tpu.memory_space<vmem>>, vector<1x80x64xbf16>
    %15 = vector.shape_cast %14 : vector<1x80x64xbf16> to vector<80x64xbf16>
    %c192 = arith.constant 192 : index
    %c0_14 = arith.constant 0 : index
    %16 = vector.load %arg3[%c192, %c0_14] : memref<576x64xbf16, #tpu.memory_space<vmem>>, vector<64x64xbf16>
    %cst_15 = arith.constant dense<0.000000e+00> : vector<80x64xf32>
    %17 = tpu.matmul %15, %16, %cst_15 {dimension_numbers = #tpu.dot_dimension_numbers<[1], [0], [0], [1], [0, 0, 1, 1], [], []>} : vector<80x64xbf16>, vector<64x64xbf16>, vector<80x64xf32> -> vector<80x64xf32>
    %18 = arith.addf %13, %17 : vector<80x64xf32>
    %c0_16 = arith.constant 0 : index
    %c11 = arith.constant 11 : index
    %c0_17 = arith.constant 0 : index
    %19 = vector.load %arg2[%c0_16, %c11, %c0_17] : memref<1x102x64xbf16, #tpu.memory_space<vmem>>, vector<1x80x64xbf16>
    %20 = vector.shape_cast %19 : vector<1x80x64xbf16> to vector<80x64xbf16>
    %c256 = arith.constant 256 : index
    %c0_18 = arith.constant 0 : index
    %21 = vector.load %arg3[%c256, %c0_18] : memref<576x64xbf16, #tpu.memory_space<vmem>>, vector<64x64xbf16>
    %cst_19 = arith.constant dense<0.000000e+00> : vector<80x64xf32>
    %22 = tpu.matmul %20, %21, %cst_19 {dimension_numbers = #tpu.dot_dimension_numbers<[1], [0], [0], [1], [0, 0, 1, 1], [], []>} : vector<80x64xbf16>, vector<64x64xbf16>, vector<80x64xf32> -> vector<80x64xf32>
    %23 = arith.addf %18, %22 : vector<80x64xf32>
    %c0_20 = arith.constant 0 : index
    %c12 = arith.constant 12 : index
    %c0_21 = arith.constant 0 : index
    %24 = vector.load %arg2[%c0_20, %c12, %c0_21] : memref<1x102x64xbf16, #tpu.memory_space<vmem>>, vector<1x80x64xbf16>
    %25 = vector.shape_cast %24 : vector<1x80x64xbf16> to vector<80x64xbf16>
    %c320 = arith.constant 320 : index
    %c0_22 = arith.constant 0 : index
    %26 = vector.load %arg3[%c320, %c0_22] : memref<576x64xbf16, #tpu.memory_space<vmem>>, vector<64x64xbf16>
    %cst_23 = arith.constant dense<0.000000e+00> : vector<80x64xf32>
    %27 = tpu.matmul %25, %26, %cst_23 {dimension_numbers = #tpu.dot_dimension_numbers<[1], [0], [0], [1], [0, 0, 1, 1], [], []>} : vector<80x64xbf16>, vector<64x64xbf16>, vector<80x64xf32> -> vector<80x64xf32>
    %28 = arith.addf %23, %27 : vector<80x64xf32>
    %c0_24 = arith.constant 0 : index
    %c20 = arith.constant 20 : index
    %c0_25 = arith.constant 0 : index
    %29 = vector.load %arg2[%c0_24, %c20, %c0_25] : memref<1x102x64xbf16, #tpu.memory_space<vmem>>, vector<1x80x64xbf16>
    %30 = vector.shape_cast %29 : vector<1x80x64xbf16> to vector<80x64xbf16>
    %c384 = arith.constant 384 : index
    %c0_26 = arith.constant 0 : index
    %31 = vector.load %arg3[%c384, %c0_26] : memref<576x64xbf16, #tpu.memory_space<vmem>>, vector<64x64xbf16>
    %cst_27 = arith.constant dense<0.000000e+00> : vector<80x64xf32>
    %32 = tpu.matmul %30, %31, %cst_27 {dimension_numbers = #tpu.dot_dimension_numbers<[1], [0], [0], [1], [0, 0, 1, 1], [], []>} : vector<80x64xbf16>, vector<64x64xbf16>, vector<80x64xf32> -> vector<80x64xf32>
    %33 = arith.addf %28, %32 : vector<80x64xf32>
    %c0_28 = arith.constant 0 : index
    %c21 = arith.constant 21 : index
    %c0_29 = arith.constant 0 : index
    %34 = vector.load %arg2[%c0_28, %c21, %c0_29] : memref<1x102x64xbf16, #tpu.memory_space<vmem>>, vector<1x80x64xbf16>
    %35 = vector.shape_cast %34 : vector<1x80x64xbf16> to vector<80x64xbf16>
    %c448 = arith.constant 448 : index
    %c0_30 = arith.constant 0 : index
    %36 = vector.load %arg3[%c448, %c0_30] : memref<576x64xbf16, #tpu.memory_space<vmem>>, vector<64x64xbf16>
    %cst_31 = arith.constant dense<0.000000e+00> : vector<80x64xf32>
    %37 = tpu.matmul %35, %36, %cst_31 {dimension_numbers = #tpu.dot_dimension_numbers<[1], [0], [0], [1], [0, 0, 1, 1], [], []>} : vector<80x64xbf16>, vector<64x64xbf16>, vector<80x64xf32> -> vector<80x64xf32>
    %38 = arith.addf %33, %37 : vector<80x64xf32>
    %c0_32 = arith.constant 0 : index
    %c22 = arith.constant 22 : index
    %c0_33 = arith.constant 0 : index
    %39 = vector.load %arg2[%c0_32, %c22, %c0_33] : memref<1x102x64xbf16, #tpu.memory_space<vmem>>, vector<1x80x64xbf16>
    %40 = vector.shape_cast %39 : vector<1x80x64xbf16> to vector<80x64xbf16>
    %c512 = arith.constant 512 : index
    %c0_34 = arith.constant 0 : index
    %41 = vector.load %arg3[%c512, %c0_34] : memref<576x64xbf16, #tpu.memory_space<vmem>>, vector<64x64xbf16>
    %cst_35 = arith.constant dense<0.000000e+00> : vector<80x64xf32>
    %42 = tpu.matmul %40, %41, %cst_35 {dimension_numbers = #tpu.dot_dimension_numbers<[1], [0], [0], [1], [0, 0, 1, 1], [], []>} : vector<80x64xbf16>, vector<64x64xbf16>, vector<80x64xf32> -> vector<80x64xf32>
    %43 = arith.addf %38, %42 : vector<80x64xf32>
    %c0_36 = arith.constant 0 : index
    %c0_37 = arith.constant 0 : index
    %44 = vector.load %arg4[%c0_36, %c0_37] : memref<1x64xf32, #tpu.memory_space<vmem>>, vector<1x64xf32>
    %45 = vector.broadcast %44 : vector<1x64xf32> to vector<80x64xf32>
    %46 = arith.addf %43, %45 : vector<80x64xf32>
    %cst_38 = arith.constant 0.000000e+00 : f32
    %47 = vector.broadcast %cst_38 : f32 to vector<80x64xf32>
    %48 = arith.maximumf %46, %47 : vector<80x64xf32>
    %49 = arith.truncf %48 : vector<80x64xf32> to vector<80x64xbf16>
    %c0_39 = arith.constant 0 : index
    %c0_40 = arith.constant 0 : index
    %c0_41 = arith.constant 0 : index
    %50 = vector.load %arg5[%c0_39, %c0_40, %c0_41] : memref<1x80x64xbf16, #tpu.memory_space<vmem>>, vector<1x80x64xbf16>
    %51 = vector.shape_cast %50 : vector<1x80x64xbf16> to vector<80x64xbf16>
    %52 = vector.shape_cast %49 : vector<80x64xbf16> to vector<1x80x64xbf16>
    tpu.vector_store %arg5[%c0_39, %c0_40, %c0_41], %52 {strides = array<i32>} : memref<1x80x64xbf16, #tpu.memory_space<vmem>>, vector<1x80x64xbf16>,
    return
  }
  func.func @transform_0(%arg0: i32, %arg1: i32) -> (i32, i32, i32) {
    %c0_i32 = arith.constant 0 : i32
    %c0_i32_0 = arith.constant 0 : i32
    %c0_i32_1 = arith.constant 0 : i32
    return %arg0, %c0_i32, %c0_i32_0 : i32, i32, i32
  }
  func.func @transform_1(%arg0: i32, %arg1: i32) -> (i32, i32) {
    %c0_i32 = arith.constant 0 : i32
    %c0_i32_0 = arith.constant 0 : i32
    %c0_i32_1 = arith.constant 0 : i32
    return %c0_i32, %c0_i32_0 : i32, i32
  }
  func.func @transform_2(%arg0: i32, %arg1: i32) -> (i32, i32) {
    %c0_i32 = arith.constant 0 : i32
    %c0_i32_0 = arith.constant 0 : i32
    %c0_i32_1 = arith.constant 0 : i32
    return %c0_i32, %c0_i32_0 : i32, i32
  }
  func.func @transform_3(%arg0: i32, %arg1: i32) -> (i32, i32, i32) {
    %c0_i32 = arith.constant 0 : i32
    %c0_i32_0 = arith.constant 0 : i32
    return %arg0, %arg1, %c0_i32 : i32, i32, i32
  }
}

module attributes {stable_mosaic.version = 11 : i64} {
  func.func @_tapconv_res_kernel(%arg0: i32, %arg1: i32, %arg2: memref<1x102x64xbf16, #tpu.memory_space<vmem>>, %arg3: memref<576x64xbf16, #tpu.memory_space<vmem>>, %arg4: memref<1x64xf32, #tpu.memory_space<vmem>>, %arg5: memref<1x80x64xbf16, #tpu.memory_space<vmem>>, %arg6: memref<1x80x64xbf16, #tpu.memory_space<vmem>>) attributes {dimension_semantics = [#tpu.dimension_semantics<parallel>, #tpu.dimension_semantics<parallel>], iteration_bounds = array<i64: 2, 1>, scalar_prefetch = 0 : i64, scratch_operands = 0 : i64, tpu.core_type = #tpu.core_type<tc>, window_params = [{transform_indices = @transform_0, window_bounds = array<i64: 1, 102, 64>}, {pipeline_mode = #tpu.pipeline_mode<synchronous>, transform_indices = @transform_1, window_bounds = array<i64: 576, 64>}, {pipeline_mode = #tpu.pipeline_mode<synchronous>, transform_indices = @transform_2, window_bounds = array<i64: 1, 64>}, {transform_indices = @transform_3, window_bounds = array<i64: 1, 80, 64>}, {transform_indices = @transform_4, window_bounds = array<i64: 1, 80, 64>}]} {
    %c0 = arith.constant 0 : index
    %c0_0 = arith.constant 0 : index
    %c0_1 = arith.constant 0 : index
    %0 = vector.load %arg2[%c0, %c0_0, %c0_1] : memref<1x102x64xbf16, #tpu.memory_space<vmem>>, vector<1x80x64xbf16>
    %1 = vector.shape_cast %0 : vector<1x80x64xbf16> to vector<80x64xbf16>
    %c0_2 = arith.constant 0 : index
    %c0_3 = arith.constant 0 : index
    %2 = vector.load %arg3[%c0_2, %c0_3] : memref<576x64xbf16, #tpu.memory_space<vmem>>, vector<64x64xbf16>
    %cst = arith.constant dense<0.000000e+00> : vector<80x64xf32>
    %3 = tpu.matmul %1, %2, %cst {dimension_numbers = #tpu.dot_dimension_numbers<[1], [0], [0], [1], [0, 0, 1, 1], [], []>} : vector<80x64xbf16>, vector<64x64xbf16>, vector<80x64xf32> -> vector<80x64xf32>
    %c0_4 = arith.constant 0 : index
    %c1 = arith.constant 1 : index
    %c0_5 = arith.constant 0 : index
    %4 = vector.load %arg2[%c0_4, %c1, %c0_5] : memref<1x102x64xbf16, #tpu.memory_space<vmem>>, vector<1x80x64xbf16>
    %5 = vector.shape_cast %4 : vector<1x80x64xbf16> to vector<80x64xbf16>
    %c64 = arith.constant 64 : index
    %c0_6 = arith.constant 0 : index
    %6 = vector.load %arg3[%c64, %c0_6] : memref<576x64xbf16, #tpu.memory_space<vmem>>, vector<64x64xbf16>
    %cst_7 = arith.constant dense<0.000000e+00> : vector<80x64xf32>
    %7 = tpu.matmul %5, %6, %cst_7 {dimension_numbers = #tpu.dot_dimension_numbers<[1], [0], [0], [1], [0, 0, 1, 1], [], []>} : vector<80x64xbf16>, vector<64x64xbf16>, vector<80x64xf32> -> vector<80x64xf32>
    %8 = arith.addf %3, %7 : vector<80x64xf32>
    %c0_8 = arith.constant 0 : index
    %c2 = arith.constant 2 : index
    %c0_9 = arith.constant 0 : index
    %9 = vector.load %arg2[%c0_8, %c2, %c0_9] : memref<1x102x64xbf16, #tpu.memory_space<vmem>>, vector<1x80x64xbf16>
    %10 = vector.shape_cast %9 : vector<1x80x64xbf16> to vector<80x64xbf16>
    %c128 = arith.constant 128 : index
    %c0_10 = arith.constant 0 : index
    %11 = vector.load %arg3[%c128, %c0_10] : memref<576x64xbf16, #tpu.memory_space<vmem>>, vector<64x64xbf16>
    %cst_11 = arith.constant dense<0.000000e+00> : vector<80x64xf32>
    %12 = tpu.matmul %10, %11, %cst_11 {dimension_numbers = #tpu.dot_dimension_numbers<[1], [0], [0], [1], [0, 0, 1, 1], [], []>} : vector<80x64xbf16>, vector<64x64xbf16>, vector<80x64xf32> -> vector<80x64xf32>
    %13 = arith.addf %8, %12 : vector<80x64xf32>
    %c0_12 = arith.constant 0 : index
    %c10 = arith.constant 10 : index
    %c0_13 = arith.constant 0 : index
    %14 = vector.load %arg2[%c0_12, %c10, %c0_13] : memref<1x102x64xbf16, #tpu.memory_space<vmem>>, vector<1x80x64xbf16>
    %15 = vector.shape_cast %14 : vector<1x80x64xbf16> to vector<80x64xbf16>
    %c192 = arith.constant 192 : index
    %c0_14 = arith.constant 0 : index
    %16 = vector.load %arg3[%c192, %c0_14] : memref<576x64xbf16, #tpu.memory_space<vmem>>, vector<64x64xbf16>
    %cst_15 = arith.constant dense<0.000000e+00> : vector<80x64xf32>
    %17 = tpu.matmul %15, %16, %cst_15 {dimension_numbers = #tpu.dot_dimension_numbers<[1], [0], [0], [1], [0, 0, 1, 1], [], []>} : vector<80x64xbf16>, vector<64x64xbf16>, vector<80x64xf32> -> vector<80x64xf32>
    %18 = arith.addf %13, %17 : vector<80x64xf32>
    %c0_16 = arith.constant 0 : index
    %c11 = arith.constant 11 : index
    %c0_17 = arith.constant 0 : index
    %19 = vector.load %arg2[%c0_16, %c11, %c0_17] : memref<1x102x64xbf16, #tpu.memory_space<vmem>>, vector<1x80x64xbf16>
    %20 = vector.shape_cast %19 : vector<1x80x64xbf16> to vector<80x64xbf16>
    %c256 = arith.constant 256 : index
    %c0_18 = arith.constant 0 : index
    %21 = vector.load %arg3[%c256, %c0_18] : memref<576x64xbf16, #tpu.memory_space<vmem>>, vector<64x64xbf16>
    %cst_19 = arith.constant dense<0.000000e+00> : vector<80x64xf32>
    %22 = tpu.matmul %20, %21, %cst_19 {dimension_numbers = #tpu.dot_dimension_numbers<[1], [0], [0], [1], [0, 0, 1, 1], [], []>} : vector<80x64xbf16>, vector<64x64xbf16>, vector<80x64xf32> -> vector<80x64xf32>
    %23 = arith.addf %18, %22 : vector<80x64xf32>
    %c0_20 = arith.constant 0 : index
    %c12 = arith.constant 12 : index
    %c0_21 = arith.constant 0 : index
    %24 = vector.load %arg2[%c0_20, %c12, %c0_21] : memref<1x102x64xbf16, #tpu.memory_space<vmem>>, vector<1x80x64xbf16>
    %25 = vector.shape_cast %24 : vector<1x80x64xbf16> to vector<80x64xbf16>
    %c320 = arith.constant 320 : index
    %c0_22 = arith.constant 0 : index
    %26 = vector.load %arg3[%c320, %c0_22] : memref<576x64xbf16, #tpu.memory_space<vmem>>, vector<64x64xbf16>
    %cst_23 = arith.constant dense<0.000000e+00> : vector<80x64xf32>
    %27 = tpu.matmul %25, %26, %cst_23 {dimension_numbers = #tpu.dot_dimension_numbers<[1], [0], [0], [1], [0, 0, 1, 1], [], []>} : vector<80x64xbf16>, vector<64x64xbf16>, vector<80x64xf32> -> vector<80x64xf32>
    %28 = arith.addf %23, %27 : vector<80x64xf32>
    %c0_24 = arith.constant 0 : index
    %c20 = arith.constant 20 : index
    %c0_25 = arith.constant 0 : index
    %29 = vector.load %arg2[%c0_24, %c20, %c0_25] : memref<1x102x64xbf16, #tpu.memory_space<vmem>>, vector<1x80x64xbf16>
    %30 = vector.shape_cast %29 : vector<1x80x64xbf16> to vector<80x64xbf16>
    %c384 = arith.constant 384 : index
    %c0_26 = arith.constant 0 : index
    %31 = vector.load %arg3[%c384, %c0_26] : memref<576x64xbf16, #tpu.memory_space<vmem>>, vector<64x64xbf16>
    %cst_27 = arith.constant dense<0.000000e+00> : vector<80x64xf32>
    %32 = tpu.matmul %30, %31, %cst_27 {dimension_numbers = #tpu.dot_dimension_numbers<[1], [0], [0], [1], [0, 0, 1, 1], [], []>} : vector<80x64xbf16>, vector<64x64xbf16>, vector<80x64xf32> -> vector<80x64xf32>
    %33 = arith.addf %28, %32 : vector<80x64xf32>
    %c0_28 = arith.constant 0 : index
    %c21 = arith.constant 21 : index
    %c0_29 = arith.constant 0 : index
    %34 = vector.load %arg2[%c0_28, %c21, %c0_29] : memref<1x102x64xbf16, #tpu.memory_space<vmem>>, vector<1x80x64xbf16>
    %35 = vector.shape_cast %34 : vector<1x80x64xbf16> to vector<80x64xbf16>
    %c448 = arith.constant 448 : index
    %c0_30 = arith.constant 0 : index
    %36 = vector.load %arg3[%c448, %c0_30] : memref<576x64xbf16, #tpu.memory_space<vmem>>, vector<64x64xbf16>
    %cst_31 = arith.constant dense<0.000000e+00> : vector<80x64xf32>
    %37 = tpu.matmul %35, %36, %cst_31 {dimension_numbers = #tpu.dot_dimension_numbers<[1], [0], [0], [1], [0, 0, 1, 1], [], []>} : vector<80x64xbf16>, vector<64x64xbf16>, vector<80x64xf32> -> vector<80x64xf32>
    %38 = arith.addf %33, %37 : vector<80x64xf32>
    %c0_32 = arith.constant 0 : index
    %c22 = arith.constant 22 : index
    %c0_33 = arith.constant 0 : index
    %39 = vector.load %arg2[%c0_32, %c22, %c0_33] : memref<1x102x64xbf16, #tpu.memory_space<vmem>>, vector<1x80x64xbf16>
    %40 = vector.shape_cast %39 : vector<1x80x64xbf16> to vector<80x64xbf16>
    %c512 = arith.constant 512 : index
    %c0_34 = arith.constant 0 : index
    %41 = vector.load %arg3[%c512, %c0_34] : memref<576x64xbf16, #tpu.memory_space<vmem>>, vector<64x64xbf16>
    %cst_35 = arith.constant dense<0.000000e+00> : vector<80x64xf32>
    %42 = tpu.matmul %40, %41, %cst_35 {dimension_numbers = #tpu.dot_dimension_numbers<[1], [0], [0], [1], [0, 0, 1, 1], [], []>} : vector<80x64xbf16>, vector<64x64xbf16>, vector<80x64xf32> -> vector<80x64xf32>
    %43 = arith.addf %38, %42 : vector<80x64xf32>
    %c0_36 = arith.constant 0 : index
    %c0_37 = arith.constant 0 : index
    %44 = vector.load %arg4[%c0_36, %c0_37] : memref<1x64xf32, #tpu.memory_space<vmem>>, vector<1x64xf32>
    %45 = vector.broadcast %44 : vector<1x64xf32> to vector<80x64xf32>
    %46 = arith.addf %43, %45 : vector<80x64xf32>
    %c0_38 = arith.constant 0 : index
    %c0_39 = arith.constant 0 : index
    %c0_40 = arith.constant 0 : index
    %47 = vector.load %arg5[%c0_38, %c0_39, %c0_40] : memref<1x80x64xbf16, #tpu.memory_space<vmem>>, vector<1x80x64xbf16>
    %48 = vector.shape_cast %47 : vector<1x80x64xbf16> to vector<80x64xbf16>
    %49 = arith.extf %48 : vector<80x64xbf16> to vector<80x64xf32>
    %50 = arith.addf %46, %49 : vector<80x64xf32>
    %cst_41 = arith.constant 0.000000e+00 : f32
    %51 = vector.broadcast %cst_41 : f32 to vector<80x64xf32>
    %52 = arith.maximumf %50, %51 : vector<80x64xf32>
    %53 = arith.truncf %52 : vector<80x64xf32> to vector<80x64xbf16>
    %c0_42 = arith.constant 0 : index
    %c0_43 = arith.constant 0 : index
    %c0_44 = arith.constant 0 : index
    %54 = vector.load %arg6[%c0_42, %c0_43, %c0_44] : memref<1x80x64xbf16, #tpu.memory_space<vmem>>, vector<1x80x64xbf16>
    %55 = vector.shape_cast %54 : vector<1x80x64xbf16> to vector<80x64xbf16>
    %56 = vector.shape_cast %53 : vector<80x64xbf16> to vector<1x80x64xbf16>
    tpu.vector_store %arg6[%c0_42, %c0_43, %c0_44], %56 {strides = array<i32>} : memref<1x80x64xbf16, #tpu.memory_space<vmem>>, vector<1x80x64xbf16>,
    return
  }
  func.func @transform_0(%arg0: i32, %arg1: i32) -> (i32, i32, i32) {
    %c0_i32 = arith.constant 0 : i32
    %c0_i32_0 = arith.constant 0 : i32
    %c0_i32_1 = arith.constant 0 : i32
    return %arg0, %c0_i32, %c0_i32_0 : i32, i32, i32
  }
  func.func @transform_1(%arg0: i32, %arg1: i32) -> (i32, i32) {
    %c0_i32 = arith.constant 0 : i32
    %c0_i32_0 = arith.constant 0 : i32
    %c0_i32_1 = arith.constant 0 : i32
    return %c0_i32, %c0_i32_0 : i32, i32
  }
  func.func @transform_2(%arg0: i32, %arg1: i32) -> (i32, i32) {
    %c0_i32 = arith.constant 0 : i32
    %c0_i32_0 = arith.constant 0 : i32
    %c0_i32_1 = arith.constant 0 : i32
    return %c0_i32, %c0_i32_0 : i32, i32
  }
  func.func @transform_3(%arg0: i32, %arg1: i32) -> (i32, i32, i32) {
    %c0_i32 = arith.constant 0 : i32
    %c0_i32_0 = arith.constant 0 : i32
    return %arg0, %arg1, %c0_i32 : i32, i32, i32
  }
  func.func @transform_4(%arg0: i32, %arg1: i32) -> (i32, i32, i32) {
    %c0_i32 = arith.constant 0 : i32
    %c0_i32_0 = arith.constant 0 : i32
    return %arg0, %arg1, %c0_i32 : i32, i32, i32
  }
}

module attributes {stable_mosaic.version = 11 : i64} {
  func.func @_tapconv_kernel(%arg0: i32, %arg1: i32, %arg2: memref<1x59x128xbf16, #tpu.memory_space<vmem>>, %arg3: memref<768x128xbf16, #tpu.memory_space<vmem>>, %arg4: memref<1x128xf32, #tpu.memory_space<vmem>>, %arg5: memref<1x48x128xbf16, #tpu.memory_space<vmem>>) attributes {dimension_semantics = [#tpu.dimension_semantics<parallel>, #tpu.dimension_semantics<parallel>], iteration_bounds = array<i64: 2, 1>, scalar_prefetch = 0 : i64, scratch_operands = 0 : i64, tpu.core_type = #tpu.core_type<tc>, window_params = [{transform_indices = @transform_0, window_bounds = array<i64: 1, 59, 128>}, {pipeline_mode = #tpu.pipeline_mode<synchronous>, transform_indices = @transform_1, window_bounds = array<i64: 768, 128>}, {pipeline_mode = #tpu.pipeline_mode<synchronous>, transform_indices = @transform_2, window_bounds = array<i64: 1, 128>}, {transform_indices = @transform_3, window_bounds = array<i64: 1, 48, 128>}]} {
    %c0 = arith.constant 0 : index
    %c0_0 = arith.constant 0 : index
    %c0_1 = arith.constant 0 : index
    %0 = vector.load %arg2[%c0, %c0_0, %c0_1] : memref<1x59x128xbf16, #tpu.memory_space<vmem>>, vector<1x48x128xbf16>
    %1 = vector.shape_cast %0 : vector<1x48x128xbf16> to vector<48x128xbf16>
    %c0_2 = arith.constant 0 : index
    %c0_3 = arith.constant 0 : index
    %2 = vector.load %arg3[%c0_2, %c0_3] : memref<768x128xbf16, #tpu.memory_space<vmem>>, vector<128x128xbf16>
    %cst = arith.constant dense<0.000000e+00> : vector<48x128xf32>
    %3 = tpu.matmul %1, %2, %cst {dimension_numbers = #tpu.dot_dimension_numbers<[1], [0], [0], [1], [0, 0, 1, 1], [], []>} : vector<48x128xbf16>, vector<128x128xbf16>, vector<48x128xf32> -> vector<48x128xf32>
    %c0_4 = arith.constant 0 : index
    %c1 = arith.constant 1 : index
    %c0_5 = arith.constant 0 : index
    %4 = vector.load %arg2[%c0_4, %c1, %c0_5] : memref<1x59x128xbf16, #tpu.memory_space<vmem>>, vector<1x48x128xbf16>
    %5 = vector.shape_cast %4 : vector<1x48x128xbf16> to vector<48x128xbf16>
    %c128 = arith.constant 128 : index
    %c0_6 = arith.constant 0 : index
    %6 = vector.load %arg3[%c128, %c0_6] : memref<768x128xbf16, #tpu.memory_space<vmem>>, vector<128x128xbf16>
    %cst_7 = arith.constant dense<0.000000e+00> : vector<48x128xf32>
    %7 = tpu.matmul %5, %6, %cst_7 {dimension_numbers = #tpu.dot_dimension_numbers<[1], [0], [0], [1], [0, 0, 1, 1], [], []>} : vector<48x128xbf16>, vector<128x128xbf16>, vector<48x128xf32> -> vector<48x128xf32>
    %8 = arith.addf %3, %7 : vector<48x128xf32>
    %c0_8 = arith.constant 0 : index
    %c5 = arith.constant 5 : index
    %c0_9 = arith.constant 0 : index
    %9 = vector.load %arg2[%c0_8, %c5, %c0_9] : memref<1x59x128xbf16, #tpu.memory_space<vmem>>, vector<1x48x128xbf16>
    %10 = vector.shape_cast %9 : vector<1x48x128xbf16> to vector<48x128xbf16>
    %c256 = arith.constant 256 : index
    %c0_10 = arith.constant 0 : index
    %11 = vector.load %arg3[%c256, %c0_10] : memref<768x128xbf16, #tpu.memory_space<vmem>>, vector<128x128xbf16>
    %cst_11 = arith.constant dense<0.000000e+00> : vector<48x128xf32>
    %12 = tpu.matmul %10, %11, %cst_11 {dimension_numbers = #tpu.dot_dimension_numbers<[1], [0], [0], [1], [0, 0, 1, 1], [], []>} : vector<48x128xbf16>, vector<128x128xbf16>, vector<48x128xf32> -> vector<48x128xf32>
    %13 = arith.addf %8, %12 : vector<48x128xf32>
    %c0_12 = arith.constant 0 : index
    %c6 = arith.constant 6 : index
    %c0_13 = arith.constant 0 : index
    %14 = vector.load %arg2[%c0_12, %c6, %c0_13] : memref<1x59x128xbf16, #tpu.memory_space<vmem>>, vector<1x48x128xbf16>
    %15 = vector.shape_cast %14 : vector<1x48x128xbf16> to vector<48x128xbf16>
    %c384 = arith.constant 384 : index
    %c0_14 = arith.constant 0 : index
    %16 = vector.load %arg3[%c384, %c0_14] : memref<768x128xbf16, #tpu.memory_space<vmem>>, vector<128x128xbf16>
    %cst_15 = arith.constant dense<0.000000e+00> : vector<48x128xf32>
    %17 = tpu.matmul %15, %16, %cst_15 {dimension_numbers = #tpu.dot_dimension_numbers<[1], [0], [0], [1], [0, 0, 1, 1], [], []>} : vector<48x128xbf16>, vector<128x128xbf16>, vector<48x128xf32> -> vector<48x128xf32>
    %18 = arith.addf %13, %17 : vector<48x128xf32>
    %c0_16 = arith.constant 0 : index
    %c10 = arith.constant 10 : index
    %c0_17 = arith.constant 0 : index
    %19 = vector.load %arg2[%c0_16, %c10, %c0_17] : memref<1x59x128xbf16, #tpu.memory_space<vmem>>, vector<1x48x128xbf16>
    %20 = vector.shape_cast %19 : vector<1x48x128xbf16> to vector<48x128xbf16>
    %c512 = arith.constant 512 : index
    %c0_18 = arith.constant 0 : index
    %21 = vector.load %arg3[%c512, %c0_18] : memref<768x128xbf16, #tpu.memory_space<vmem>>, vector<128x128xbf16>
    %cst_19 = arith.constant dense<0.000000e+00> : vector<48x128xf32>
    %22 = tpu.matmul %20, %21, %cst_19 {dimension_numbers = #tpu.dot_dimension_numbers<[1], [0], [0], [1], [0, 0, 1, 1], [], []>} : vector<48x128xbf16>, vector<128x128xbf16>, vector<48x128xf32> -> vector<48x128xf32>
    %23 = arith.addf %18, %22 : vector<48x128xf32>
    %c0_20 = arith.constant 0 : index
    %c11 = arith.constant 11 : index
    %c0_21 = arith.constant 0 : index
    %24 = vector.load %arg2[%c0_20, %c11, %c0_21] : memref<1x59x128xbf16, #tpu.memory_space<vmem>>, vector<1x48x128xbf16>
    %25 = vector.shape_cast %24 : vector<1x48x128xbf16> to vector<48x128xbf16>
    %c640 = arith.constant 640 : index
    %c0_22 = arith.constant 0 : index
    %26 = vector.load %arg3[%c640, %c0_22] : memref<768x128xbf16, #tpu.memory_space<vmem>>, vector<128x128xbf16>
    %cst_23 = arith.constant dense<0.000000e+00> : vector<48x128xf32>
    %27 = tpu.matmul %25, %26, %cst_23 {dimension_numbers = #tpu.dot_dimension_numbers<[1], [0], [0], [1], [0, 0, 1, 1], [], []>} : vector<48x128xbf16>, vector<128x128xbf16>, vector<48x128xf32> -> vector<48x128xf32>
    %28 = arith.addf %23, %27 : vector<48x128xf32>
    %c0_24 = arith.constant 0 : index
    %c0_25 = arith.constant 0 : index
    %29 = vector.load %arg4[%c0_24, %c0_25] : memref<1x128xf32, #tpu.memory_space<vmem>>, vector<1x128xf32>
    %30 = vector.broadcast %29 : vector<1x128xf32> to vector<48x128xf32>
    %31 = arith.addf %28, %30 : vector<48x128xf32>
    %cst_26 = arith.constant 0.000000e+00 : f32
    %32 = vector.broadcast %cst_26 : f32 to vector<48x128xf32>
    %33 = arith.maximumf %31, %32 : vector<48x128xf32>
    %34 = arith.truncf %33 : vector<48x128xf32> to vector<48x128xbf16>
    %c0_27 = arith.constant 0 : index
    %c0_28 = arith.constant 0 : index
    %c0_29 = arith.constant 0 : index
    %35 = vector.load %arg5[%c0_27, %c0_28, %c0_29] : memref<1x48x128xbf16, #tpu.memory_space<vmem>>, vector<1x48x128xbf16>
    %36 = vector.shape_cast %35 : vector<1x48x128xbf16> to vector<48x128xbf16>
    %37 = vector.shape_cast %34 : vector<48x128xbf16> to vector<1x48x128xbf16>
    tpu.vector_store %arg5[%c0_27, %c0_28, %c0_29], %37 {strides = array<i32>} : memref<1x48x128xbf16, #tpu.memory_space<vmem>>, vector<1x48x128xbf16>,
    return
  }
  func.func @transform_0(%arg0: i32, %arg1: i32) -> (i32, i32, i32) {
    %c0_i32 = arith.constant 0 : i32
    %c0_i32_0 = arith.constant 0 : i32
    %c0_i32_1 = arith.constant 0 : i32
    return %arg0, %c0_i32, %c0_i32_0 : i32, i32, i32
  }
  func.func @transform_1(%arg0: i32, %arg1: i32) -> (i32, i32) {
    %c0_i32 = arith.constant 0 : i32
    %c0_i32_0 = arith.constant 0 : i32
    %c0_i32_1 = arith.constant 0 : i32
    return %c0_i32, %c0_i32_0 : i32, i32
  }
  func.func @transform_2(%arg0: i32, %arg1: i32) -> (i32, i32) {
    %c0_i32 = arith.constant 0 : i32
    %c0_i32_0 = arith.constant 0 : i32
    %c0_i32_1 = arith.constant 0 : i32
    return %c0_i32, %c0_i32_0 : i32, i32
  }
  func.func @transform_3(%arg0: i32, %arg1: i32) -> (i32, i32, i32) {
    %c0_i32 = arith.constant 0 : i32
    %c0_i32_0 = arith.constant 0 : i32
    return %arg0, %arg1, %c0_i32 : i32, i32, i32
  }
}

module attributes {stable_mosaic.version = 11 : i64} {
  func.func @_mm_bn_kernel(%arg0: i32, %arg1: memref<128x64xbf16, #tpu.memory_space<vmem>>, %arg2: memref<64x128xbf16, #tpu.memory_space<vmem>>, %arg3: memref<1x128xf32, #tpu.memory_space<vmem>>, %arg4: memref<128x128xbf16, #tpu.memory_space<vmem>>) attributes {dimension_semantics = [#tpu.dimension_semantics<parallel>], iteration_bounds = array<i64: 1>, scalar_prefetch = 0 : i64, scratch_operands = 0 : i64, tpu.core_type = #tpu.core_type<tc>, window_params = [{transform_indices = @transform_0, window_bounds = array<i64: 128, 64>}, {pipeline_mode = #tpu.pipeline_mode<synchronous>, transform_indices = @transform_1, window_bounds = array<i64: 64, 128>}, {pipeline_mode = #tpu.pipeline_mode<synchronous>, transform_indices = @transform_2, window_bounds = array<i64: 1, 128>}, {transform_indices = @transform_3, window_bounds = array<i64: 128, 128>}]} {
    %c0 = arith.constant 0 : index
    %c0_0 = arith.constant 0 : index
    %0 = vector.load %arg1[%c0, %c0_0] : memref<128x64xbf16, #tpu.memory_space<vmem>>, vector<128x64xbf16>
    %c0_1 = arith.constant 0 : index
    %c0_2 = arith.constant 0 : index
    %1 = vector.load %arg2[%c0_1, %c0_2] : memref<64x128xbf16, #tpu.memory_space<vmem>>, vector<64x128xbf16>
    %cst = arith.constant dense<0.000000e+00> : vector<128x128xf32>
    %2 = tpu.matmul %0, %1, %cst {dimension_numbers = #tpu.dot_dimension_numbers<[1], [0], [0], [1], [0, 0, 1, 1], [], []>} : vector<128x64xbf16>, vector<64x128xbf16>, vector<128x128xf32> -> vector<128x128xf32>
    %c0_3 = arith.constant 0 : index
    %c0_4 = arith.constant 0 : index
    %3 = vector.load %arg3[%c0_3, %c0_4] : memref<1x128xf32, #tpu.memory_space<vmem>>, vector<1x128xf32>
    %4 = vector.broadcast %3 : vector<1x128xf32> to vector<128x128xf32>
    %5 = arith.addf %2, %4 : vector<128x128xf32>
    %6 = arith.truncf %5 : vector<128x128xf32> to vector<128x128xbf16>
    %c0_5 = arith.constant 0 : index
    %c0_6 = arith.constant 0 : index
    %7 = vector.load %arg4[%c0_5, %c0_6] : memref<128x128xbf16, #tpu.memory_space<vmem>>, vector<128x128xbf16>
    tpu.vector_store %arg4[%c0_5, %c0_6], %6 {strides = array<i32>} : memref<128x128xbf16, #tpu.memory_space<vmem>>, vector<128x128xbf16>,
    return
  }
  func.func @transform_0(%arg0: i32) -> (i32, i32) {
    %c0_i32 = arith.constant 0 : i32
    %c0_i32_0 = arith.constant 0 : i32
    return %arg0, %c0_i32 : i32, i32
  }
  func.func @transform_1(%arg0: i32) -> (i32, i32) {
    %c0_i32 = arith.constant 0 : i32
    %c0_i32_0 = arith.constant 0 : i32
    %c0_i32_1 = arith.constant 0 : i32
    return %c0_i32, %c0_i32_0 : i32, i32
  }
  func.func @transform_2(%arg0: i32) -> (i32, i32) {
    %c0_i32 = arith.constant 0 : i32
    %c0_i32_0 = arith.constant 0 : i32
    %c0_i32_1 = arith.constant 0 : i32
    return %c0_i32, %c0_i32_0 : i32, i32
  }
  func.func @transform_3(%arg0: i32) -> (i32, i32) {
    %c0_i32 = arith.constant 0 : i32
    %c0_i32_0 = arith.constant 0 : i32
    return %arg0, %c0_i32 : i32, i32
  }
}

module attributes {stable_mosaic.version = 11 : i64} {
  func.func @_tapconv_res_kernel(%arg0: i32, %arg1: i32, %arg2: memref<1x46x128xbf16, #tpu.memory_space<vmem>>, %arg3: memref<1152x128xbf16, #tpu.memory_space<vmem>>, %arg4: memref<1x128xf32, #tpu.memory_space<vmem>>, %arg5: memref<1x32x128xbf16, #tpu.memory_space<vmem>>, %arg6: memref<1x32x128xbf16, #tpu.memory_space<vmem>>) attributes {dimension_semantics = [#tpu.dimension_semantics<parallel>, #tpu.dimension_semantics<parallel>], iteration_bounds = array<i64: 2, 1>, scalar_prefetch = 0 : i64, scratch_operands = 0 : i64, tpu.core_type = #tpu.core_type<tc>, window_params = [{transform_indices = @transform_0, window_bounds = array<i64: 1, 46, 128>}, {pipeline_mode = #tpu.pipeline_mode<synchronous>, transform_indices = @transform_1, window_bounds = array<i64: 1152, 128>}, {pipeline_mode = #tpu.pipeline_mode<synchronous>, transform_indices = @transform_2, window_bounds = array<i64: 1, 128>}, {transform_indices = @transform_3, window_bounds = array<i64: 1, 32, 128>}, {transform_indices = @transform_4, window_bounds = array<i64: 1, 32, 128>}]} {
    %c0 = arith.constant 0 : index
    %c0_0 = arith.constant 0 : index
    %c0_1 = arith.constant 0 : index
    %0 = vector.load %arg2[%c0, %c0_0, %c0_1] : memref<1x46x128xbf16, #tpu.memory_space<vmem>>, vector<1x32x128xbf16>
    %1 = vector.shape_cast %0 : vector<1x32x128xbf16> to vector<32x128xbf16>
    %c0_2 = arith.constant 0 : index
    %c0_3 = arith.constant 0 : index
    %2 = vector.load %arg3[%c0_2, %c0_3] : memref<1152x128xbf16, #tpu.memory_space<vmem>>, vector<128x128xbf16>
    %cst = arith.constant dense<0.000000e+00> : vector<32x128xf32>
    %3 = tpu.matmul %1, %2, %cst {dimension_numbers = #tpu.dot_dimension_numbers<[1], [0], [0], [1], [0, 0, 1, 1], [], []>} : vector<32x128xbf16>, vector<128x128xbf16>, vector<32x128xf32> -> vector<32x128xf32>
    %c0_4 = arith.constant 0 : index
    %c1 = arith.constant 1 : index
    %c0_5 = arith.constant 0 : index
    %4 = vector.load %arg2[%c0_4, %c1, %c0_5] : memref<1x46x128xbf16, #tpu.memory_space<vmem>>, vector<1x32x128xbf16>
    %5 = vector.shape_cast %4 : vector<1x32x128xbf16> to vector<32x128xbf16>
    %c128 = arith.constant 128 : index
    %c0_6 = arith.constant 0 : index
    %6 = vector.load %arg3[%c128, %c0_6] : memref<1152x128xbf16, #tpu.memory_space<vmem>>, vector<128x128xbf16>
    %cst_7 = arith.constant dense<0.000000e+00> : vector<32x128xf32>
    %7 = tpu.matmul %5, %6, %cst_7 {dimension_numbers = #tpu.dot_dimension_numbers<[1], [0], [0], [1], [0, 0, 1, 1], [], []>} : vector<32x128xbf16>, vector<128x128xbf16>, vector<32x128xf32> -> vector<32x128xf32>
    %8 = arith.addf %3, %7 : vector<32x128xf32>
    %c0_8 = arith.constant 0 : index
    %c2 = arith.constant 2 : index
    %c0_9 = arith.constant 0 : index
    %9 = vector.load %arg2[%c0_8, %c2, %c0_9] : memref<1x46x128xbf16, #tpu.memory_space<vmem>>, vector<1x32x128xbf16>
    %10 = vector.shape_cast %9 : vector<1x32x128xbf16> to vector<32x128xbf16>
    %c256 = arith.constant 256 : index
    %c0_10 = arith.constant 0 : index
    %11 = vector.load %arg3[%c256, %c0_10] : memref<1152x128xbf16, #tpu.memory_space<vmem>>, vector<128x128xbf16>
    %cst_11 = arith.constant dense<0.000000e+00> : vector<32x128xf32>
    %12 = tpu.matmul %10, %11, %cst_11 {dimension_numbers = #tpu.dot_dimension_numbers<[1], [0], [0], [1], [0, 0, 1, 1], [], []>} : vector<32x128xbf16>, vector<128x128xbf16>, vector<32x128xf32> -> vector<32x128xf32>
    %13 = arith.addf %8, %12 : vector<32x128xf32>
    %c0_12 = arith.constant 0 : index
    %c6 = arith.constant 6 : index
    %c0_13 = arith.constant 0 : index
    %14 = vector.load %arg2[%c0_12, %c6, %c0_13] : memref<1x46x128xbf16, #tpu.memory_space<vmem>>, vector<1x32x128xbf16>
    %15 = vector.shape_cast %14 : vector<1x32x128xbf16> to vector<32x128xbf16>
    %c384 = arith.constant 384 : index
    %c0_14 = arith.constant 0 : index
    %16 = vector.load %arg3[%c384, %c0_14] : memref<1152x128xbf16, #tpu.memory_space<vmem>>, vector<128x128xbf16>
    %cst_15 = arith.constant dense<0.000000e+00> : vector<32x128xf32>
    %17 = tpu.matmul %15, %16, %cst_15 {dimension_numbers = #tpu.dot_dimension_numbers<[1], [0], [0], [1], [0, 0, 1, 1], [], []>} : vector<32x128xbf16>, vector<128x128xbf16>, vector<32x128xf32> -> vector<32x128xf32>
    %18 = arith.addf %13, %17 : vector<32x128xf32>
    %c0_16 = arith.constant 0 : index
    %c7 = arith.constant 7 : index
    %c0_17 = arith.constant 0 : index
    %19 = vector.load %arg2[%c0_16, %c7, %c0_17] : memref<1x46x128xbf16, #tpu.memory_space<vmem>>, vector<1x32x128xbf16>
    %20 = vector.shape_cast %19 : vector<1x32x128xbf16> to vector<32x128xbf16>
    %c512 = arith.constant 512 : index
    %c0_18 = arith.constant 0 : index
    %21 = vector.load %arg3[%c512, %c0_18] : memref<1152x128xbf16, #tpu.memory_space<vmem>>, vector<128x128xbf16>
    %cst_19 = arith.constant dense<0.000000e+00> : vector<32x128xf32>
    %22 = tpu.matmul %20, %21, %cst_19 {dimension_numbers = #tpu.dot_dimension_numbers<[1], [0], [0], [1], [0, 0, 1, 1], [], []>} : vector<32x128xbf16>, vector<128x128xbf16>, vector<32x128xf32> -> vector<32x128xf32>
    %23 = arith.addf %18, %22 : vector<32x128xf32>
    %c0_20 = arith.constant 0 : index
    %c8 = arith.constant 8 : index
    %c0_21 = arith.constant 0 : index
    %24 = vector.load %arg2[%c0_20, %c8, %c0_21] : memref<1x46x128xbf16, #tpu.memory_space<vmem>>, vector<1x32x128xbf16>
    %25 = vector.shape_cast %24 : vector<1x32x128xbf16> to vector<32x128xbf16>
    %c640 = arith.constant 640 : index
    %c0_22 = arith.constant 0 : index
    %26 = vector.load %arg3[%c640, %c0_22] : memref<1152x128xbf16, #tpu.memory_space<vmem>>, vector<128x128xbf16>
    %cst_23 = arith.constant dense<0.000000e+00> : vector<32x128xf32>
    %27 = tpu.matmul %25, %26, %cst_23 {dimension_numbers = #tpu.dot_dimension_numbers<[1], [0], [0], [1], [0, 0, 1, 1], [], []>} : vector<32x128xbf16>, vector<128x128xbf16>, vector<32x128xf32> -> vector<32x128xf32>
    %28 = arith.addf %23, %27 : vector<32x128xf32>
    %c0_24 = arith.constant 0 : index
    %c12 = arith.constant 12 : index
    %c0_25 = arith.constant 0 : index
    %29 = vector.load %arg2[%c0_24, %c12, %c0_25] : memref<1x46x128xbf16, #tpu.memory_space<vmem>>, vector<1x32x128xbf16>
    %30 = vector.shape_cast %29 : vector<1x32x128xbf16> to vector<32x128xbf16>
    %c768 = arith.constant 768 : index
    %c0_26 = arith.constant 0 : index
    %31 = vector.load %arg3[%c768, %c0_26] : memref<1152x128xbf16, #tpu.memory_space<vmem>>, vector<128x128xbf16>
    %cst_27 = arith.constant dense<0.000000e+00> : vector<32x128xf32>
    %32 = tpu.matmul %30, %31, %cst_27 {dimension_numbers = #tpu.dot_dimension_numbers<[1], [0], [0], [1], [0, 0, 1, 1], [], []>} : vector<32x128xbf16>, vector<128x128xbf16>, vector<32x128xf32> -> vector<32x128xf32>
    %33 = arith.addf %28, %32 : vector<32x128xf32>
    %c0_28 = arith.constant 0 : index
    %c13 = arith.constant 13 : index
    %c0_29 = arith.constant 0 : index
    %34 = vector.load %arg2[%c0_28, %c13, %c0_29] : memref<1x46x128xbf16, #tpu.memory_space<vmem>>, vector<1x32x128xbf16>
    %35 = vector.shape_cast %34 : vector<1x32x128xbf16> to vector<32x128xbf16>
    %c896 = arith.constant 896 : index
    %c0_30 = arith.constant 0 : index
    %36 = vector.load %arg3[%c896, %c0_30] : memref<1152x128xbf16, #tpu.memory_space<vmem>>, vector<128x128xbf16>
    %cst_31 = arith.constant dense<0.000000e+00> : vector<32x128xf32>
    %37 = tpu.matmul %35, %36, %cst_31 {dimension_numbers = #tpu.dot_dimension_numbers<[1], [0], [0], [1], [0, 0, 1, 1], [], []>} : vector<32x128xbf16>, vector<128x128xbf16>, vector<32x128xf32> -> vector<32x128xf32>
    %38 = arith.addf %33, %37 : vector<32x128xf32>
    %c0_32 = arith.constant 0 : index
    %c14 = arith.constant 14 : index
    %c0_33 = arith.constant 0 : index
    %39 = vector.load %arg2[%c0_32, %c14, %c0_33] : memref<1x46x128xbf16, #tpu.memory_space<vmem>>, vector<1x32x128xbf16>
    %40 = vector.shape_cast %39 : vector<1x32x128xbf16> to vector<32x128xbf16>
    %c1024 = arith.constant 1024 : index
    %c0_34 = arith.constant 0 : index
    %41 = vector.load %arg3[%c1024, %c0_34] : memref<1152x128xbf16, #tpu.memory_space<vmem>>, vector<128x128xbf16>
    %cst_35 = arith.constant dense<0.000000e+00> : vector<32x128xf32>
    %42 = tpu.matmul %40, %41, %cst_35 {dimension_numbers = #tpu.dot_dimension_numbers<[1], [0], [0], [1], [0, 0, 1, 1], [], []>} : vector<32x128xbf16>, vector<128x128xbf16>, vector<32x128xf32> -> vector<32x128xf32>
    %43 = arith.addf %38, %42 : vector<32x128xf32>
    %c0_36 = arith.constant 0 : index
    %c0_37 = arith.constant 0 : index
    %44 = vector.load %arg4[%c0_36, %c0_37] : memref<1x128xf32, #tpu.memory_space<vmem>>, vector<1x128xf32>
    %45 = vector.broadcast %44 : vector<1x128xf32> to vector<32x128xf32>
    %46 = arith.addf %43, %45 : vector<32x128xf32>
    %c0_38 = arith.constant 0 : index
    %c0_39 = arith.constant 0 : index
    %c0_40 = arith.constant 0 : index
    %47 = vector.load %arg5[%c0_38, %c0_39, %c0_40] : memref<1x32x128xbf16, #tpu.memory_space<vmem>>, vector<1x32x128xbf16>
    %48 = vector.shape_cast %47 : vector<1x32x128xbf16> to vector<32x128xbf16>
    %49 = arith.extf %48 : vector<32x128xbf16> to vector<32x128xf32>
    %50 = arith.addf %46, %49 : vector<32x128xf32>
    %cst_41 = arith.constant 0.000000e+00 : f32
    %51 = vector.broadcast %cst_41 : f32 to vector<32x128xf32>
    %52 = arith.maximumf %50, %51 : vector<32x128xf32>
    %53 = arith.truncf %52 : vector<32x128xf32> to vector<32x128xbf16>
    %c0_42 = arith.constant 0 : index
    %c0_43 = arith.constant 0 : index
    %c0_44 = arith.constant 0 : index
    %54 = vector.load %arg6[%c0_42, %c0_43, %c0_44] : memref<1x32x128xbf16, #tpu.memory_space<vmem>>, vector<1x32x128xbf16>
    %55 = vector.shape_cast %54 : vector<1x32x128xbf16> to vector<32x128xbf16>
    %56 = vector.shape_cast %53 : vector<32x128xbf16> to vector<1x32x128xbf16>
    tpu.vector_store %arg6[%c0_42, %c0_43, %c0_44], %56 {strides = array<i32>} : memref<1x32x128xbf16, #tpu.memory_space<vmem>>, vector<1x32x128xbf16>,
    return
  }
  func.func @transform_0(%arg0: i32, %arg1: i32) -> (i32, i32, i32) {
    %c0_i32 = arith.constant 0 : i32
    %c0_i32_0 = arith.constant 0 : i32
    %c0_i32_1 = arith.constant 0 : i32
    return %arg0, %c0_i32, %c0_i32_0 : i32, i32, i32
  }
  func.func @transform_1(%arg0: i32, %arg1: i32) -> (i32, i32) {
    %c0_i32 = arith.constant 0 : i32
    %c0_i32_0 = arith.constant 0 : i32
    %c0_i32_1 = arith.constant 0 : i32
    return %c0_i32, %c0_i32_0 : i32, i32
  }
  func.func @transform_2(%arg0: i32, %arg1: i32) -> (i32, i32) {
    %c0_i32 = arith.constant 0 : i32
    %c0_i32_0 = arith.constant 0 : i32
    %c0_i32_1 = arith.constant 0 : i32
    return %c0_i32, %c0_i32_0 : i32, i32
  }
  func.func @transform_3(%arg0: i32, %arg1: i32) -> (i32, i32, i32) {
    %c0_i32 = arith.constant 0 : i32
    %c0_i32_0 = arith.constant 0 : i32
    return %arg0, %arg1, %c0_i32 : i32, i32, i32
  }
  func.func @transform_4(%arg0: i32, %arg1: i32) -> (i32, i32, i32) {
    %c0_i32 = arith.constant 0 : i32
    %c0_i32_0 = arith.constant 0 : i32
    return %arg0, %arg1, %c0_i32 : i32, i32, i32
  }
}

module attributes {stable_mosaic.version = 11 : i64} {
  func.func @_tapconv_res_kernel(%arg0: i32, %arg1: i32, %arg2: memref<1x46x128xbf16, #tpu.memory_space<vmem>>, %arg3: memref<1152x128xbf16, #tpu.memory_space<vmem>>, %arg4: memref<1x128xf32, #tpu.memory_space<vmem>>, %arg5: memref<1x32x128xbf16, #tpu.memory_space<vmem>>, %arg6: memref<1x32x128xf32, #tpu.memory_space<vmem>>) attributes {dimension_semantics = [#tpu.dimension_semantics<parallel>, #tpu.dimension_semantics<parallel>], iteration_bounds = array<i64: 2, 1>, scalar_prefetch = 0 : i64, scratch_operands = 0 : i64, tpu.core_type = #tpu.core_type<tc>, window_params = [{transform_indices = @transform_0, window_bounds = array<i64: 1, 46, 128>}, {pipeline_mode = #tpu.pipeline_mode<synchronous>, transform_indices = @transform_1, window_bounds = array<i64: 1152, 128>}, {pipeline_mode = #tpu.pipeline_mode<synchronous>, transform_indices = @transform_2, window_bounds = array<i64: 1, 128>}, {transform_indices = @transform_3, window_bounds = array<i64: 1, 32, 128>}, {transform_indices = @transform_4, window_bounds = array<i64: 1, 32, 128>}]} {
    %c0 = arith.constant 0 : index
    %c0_0 = arith.constant 0 : index
    %c0_1 = arith.constant 0 : index
    %0 = vector.load %arg2[%c0, %c0_0, %c0_1] : memref<1x46x128xbf16, #tpu.memory_space<vmem>>, vector<1x32x128xbf16>
    %1 = vector.shape_cast %0 : vector<1x32x128xbf16> to vector<32x128xbf16>
    %c0_2 = arith.constant 0 : index
    %c0_3 = arith.constant 0 : index
    %2 = vector.load %arg3[%c0_2, %c0_3] : memref<1152x128xbf16, #tpu.memory_space<vmem>>, vector<128x128xbf16>
    %cst = arith.constant dense<0.000000e+00> : vector<32x128xf32>
    %3 = tpu.matmul %1, %2, %cst {dimension_numbers = #tpu.dot_dimension_numbers<[1], [0], [0], [1], [0, 0, 1, 1], [], []>} : vector<32x128xbf16>, vector<128x128xbf16>, vector<32x128xf32> -> vector<32x128xf32>
    %c0_4 = arith.constant 0 : index
    %c1 = arith.constant 1 : index
    %c0_5 = arith.constant 0 : index
    %4 = vector.load %arg2[%c0_4, %c1, %c0_5] : memref<1x46x128xbf16, #tpu.memory_space<vmem>>, vector<1x32x128xbf16>
    %5 = vector.shape_cast %4 : vector<1x32x128xbf16> to vector<32x128xbf16>
    %c128 = arith.constant 128 : index
    %c0_6 = arith.constant 0 : index
    %6 = vector.load %arg3[%c128, %c0_6] : memref<1152x128xbf16, #tpu.memory_space<vmem>>, vector<128x128xbf16>
    %cst_7 = arith.constant dense<0.000000e+00> : vector<32x128xf32>
    %7 = tpu.matmul %5, %6, %cst_7 {dimension_numbers = #tpu.dot_dimension_numbers<[1], [0], [0], [1], [0, 0, 1, 1], [], []>} : vector<32x128xbf16>, vector<128x128xbf16>, vector<32x128xf32> -> vector<32x128xf32>
    %8 = arith.addf %3, %7 : vector<32x128xf32>
    %c0_8 = arith.constant 0 : index
    %c2 = arith.constant 2 : index
    %c0_9 = arith.constant 0 : index
    %9 = vector.load %arg2[%c0_8, %c2, %c0_9] : memref<1x46x128xbf16, #tpu.memory_space<vmem>>, vector<1x32x128xbf16>
    %10 = vector.shape_cast %9 : vector<1x32x128xbf16> to vector<32x128xbf16>
    %c256 = arith.constant 256 : index
    %c0_10 = arith.constant 0 : index
    %11 = vector.load %arg3[%c256, %c0_10] : memref<1152x128xbf16, #tpu.memory_space<vmem>>, vector<128x128xbf16>
    %cst_11 = arith.constant dense<0.000000e+00> : vector<32x128xf32>
    %12 = tpu.matmul %10, %11, %cst_11 {dimension_numbers = #tpu.dot_dimension_numbers<[1], [0], [0], [1], [0, 0, 1, 1], [], []>} : vector<32x128xbf16>, vector<128x128xbf16>, vector<32x128xf32> -> vector<32x128xf32>
    %13 = arith.addf %8, %12 : vector<32x128xf32>
    %c0_12 = arith.constant 0 : index
    %c6 = arith.constant 6 : index
    %c0_13 = arith.constant 0 : index
    %14 = vector.load %arg2[%c0_12, %c6, %c0_13] : memref<1x46x128xbf16, #tpu.memory_space<vmem>>, vector<1x32x128xbf16>
    %15 = vector.shape_cast %14 : vector<1x32x128xbf16> to vector<32x128xbf16>
    %c384 = arith.constant 384 : index
    %c0_14 = arith.constant 0 : index
    %16 = vector.load %arg3[%c384, %c0_14] : memref<1152x128xbf16, #tpu.memory_space<vmem>>, vector<128x128xbf16>
    %cst_15 = arith.constant dense<0.000000e+00> : vector<32x128xf32>
    %17 = tpu.matmul %15, %16, %cst_15 {dimension_numbers = #tpu.dot_dimension_numbers<[1], [0], [0], [1], [0, 0, 1, 1], [], []>} : vector<32x128xbf16>, vector<128x128xbf16>, vector<32x128xf32> -> vector<32x128xf32>
    %18 = arith.addf %13, %17 : vector<32x128xf32>
    %c0_16 = arith.constant 0 : index
    %c7 = arith.constant 7 : index
    %c0_17 = arith.constant 0 : index
    %19 = vector.load %arg2[%c0_16, %c7, %c0_17] : memref<1x46x128xbf16, #tpu.memory_space<vmem>>, vector<1x32x128xbf16>
    %20 = vector.shape_cast %19 : vector<1x32x128xbf16> to vector<32x128xbf16>
    %c512 = arith.constant 512 : index
    %c0_18 = arith.constant 0 : index
    %21 = vector.load %arg3[%c512, %c0_18] : memref<1152x128xbf16, #tpu.memory_space<vmem>>, vector<128x128xbf16>
    %cst_19 = arith.constant dense<0.000000e+00> : vector<32x128xf32>
    %22 = tpu.matmul %20, %21, %cst_19 {dimension_numbers = #tpu.dot_dimension_numbers<[1], [0], [0], [1], [0, 0, 1, 1], [], []>} : vector<32x128xbf16>, vector<128x128xbf16>, vector<32x128xf32> -> vector<32x128xf32>
    %23 = arith.addf %18, %22 : vector<32x128xf32>
    %c0_20 = arith.constant 0 : index
    %c8 = arith.constant 8 : index
    %c0_21 = arith.constant 0 : index
    %24 = vector.load %arg2[%c0_20, %c8, %c0_21] : memref<1x46x128xbf16, #tpu.memory_space<vmem>>, vector<1x32x128xbf16>
    %25 = vector.shape_cast %24 : vector<1x32x128xbf16> to vector<32x128xbf16>
    %c640 = arith.constant 640 : index
    %c0_22 = arith.constant 0 : index
    %26 = vector.load %arg3[%c640, %c0_22] : memref<1152x128xbf16, #tpu.memory_space<vmem>>, vector<128x128xbf16>
    %cst_23 = arith.constant dense<0.000000e+00> : vector<32x128xf32>
    %27 = tpu.matmul %25, %26, %cst_23 {dimension_numbers = #tpu.dot_dimension_numbers<[1], [0], [0], [1], [0, 0, 1, 1], [], []>} : vector<32x128xbf16>, vector<128x128xbf16>, vector<32x128xf32> -> vector<32x128xf32>
    %28 = arith.addf %23, %27 : vector<32x128xf32>
    %c0_24 = arith.constant 0 : index
    %c12 = arith.constant 12 : index
    %c0_25 = arith.constant 0 : index
    %29 = vector.load %arg2[%c0_24, %c12, %c0_25] : memref<1x46x128xbf16, #tpu.memory_space<vmem>>, vector<1x32x128xbf16>
    %30 = vector.shape_cast %29 : vector<1x32x128xbf16> to vector<32x128xbf16>
    %c768 = arith.constant 768 : index
    %c0_26 = arith.constant 0 : index
    %31 = vector.load %arg3[%c768, %c0_26] : memref<1152x128xbf16, #tpu.memory_space<vmem>>, vector<128x128xbf16>
    %cst_27 = arith.constant dense<0.000000e+00> : vector<32x128xf32>
    %32 = tpu.matmul %30, %31, %cst_27 {dimension_numbers = #tpu.dot_dimension_numbers<[1], [0], [0], [1], [0, 0, 1, 1], [], []>} : vector<32x128xbf16>, vector<128x128xbf16>, vector<32x128xf32> -> vector<32x128xf32>
    %33 = arith.addf %28, %32 : vector<32x128xf32>
    %c0_28 = arith.constant 0 : index
    %c13 = arith.constant 13 : index
    %c0_29 = arith.constant 0 : index
    %34 = vector.load %arg2[%c0_28, %c13, %c0_29] : memref<1x46x128xbf16, #tpu.memory_space<vmem>>, vector<1x32x128xbf16>
    %35 = vector.shape_cast %34 : vector<1x32x128xbf16> to vector<32x128xbf16>
    %c896 = arith.constant 896 : index
    %c0_30 = arith.constant 0 : index
    %36 = vector.load %arg3[%c896, %c0_30] : memref<1152x128xbf16, #tpu.memory_space<vmem>>, vector<128x128xbf16>
    %cst_31 = arith.constant dense<0.000000e+00> : vector<32x128xf32>
    %37 = tpu.matmul %35, %36, %cst_31 {dimension_numbers = #tpu.dot_dimension_numbers<[1], [0], [0], [1], [0, 0, 1, 1], [], []>} : vector<32x128xbf16>, vector<128x128xbf16>, vector<32x128xf32> -> vector<32x128xf32>
    %38 = arith.addf %33, %37 : vector<32x128xf32>
    %c0_32 = arith.constant 0 : index
    %c14 = arith.constant 14 : index
    %c0_33 = arith.constant 0 : index
    %39 = vector.load %arg2[%c0_32, %c14, %c0_33] : memref<1x46x128xbf16, #tpu.memory_space<vmem>>, vector<1x32x128xbf16>
    %40 = vector.shape_cast %39 : vector<1x32x128xbf16> to vector<32x128xbf16>
    %c1024 = arith.constant 1024 : index
    %c0_34 = arith.constant 0 : index
    %41 = vector.load %arg3[%c1024, %c0_34] : memref<1152x128xbf16, #tpu.memory_space<vmem>>, vector<128x128xbf16>
    %cst_35 = arith.constant dense<0.000000e+00> : vector<32x128xf32>
    %42 = tpu.matmul %40, %41, %cst_35 {dimension_numbers = #tpu.dot_dimension_numbers<[1], [0], [0], [1], [0, 0, 1, 1], [], []>} : vector<32x128xbf16>, vector<128x128xbf16>, vector<32x128xf32> -> vector<32x128xf32>
    %43 = arith.addf %38, %42 : vector<32x128xf32>
    %c0_36 = arith.constant 0 : index
    %c0_37 = arith.constant 0 : index
    %44 = vector.load %arg4[%c0_36, %c0_37] : memref<1x128xf32, #tpu.memory_space<vmem>>, vector<1x128xf32>
    %45 = vector.broadcast %44 : vector<1x128xf32> to vector<32x128xf32>
    %46 = arith.addf %43, %45 : vector<32x128xf32>
    %c0_38 = arith.constant 0 : index
    %c0_39 = arith.constant 0 : index
    %c0_40 = arith.constant 0 : index
    %47 = vector.load %arg5[%c0_38, %c0_39, %c0_40] : memref<1x32x128xbf16, #tpu.memory_space<vmem>>, vector<1x32x128xbf16>
    %48 = vector.shape_cast %47 : vector<1x32x128xbf16> to vector<32x128xbf16>
    %49 = arith.extf %48 : vector<32x128xbf16> to vector<32x128xf32>
    %50 = arith.addf %46, %49 : vector<32x128xf32>
    %cst_41 = arith.constant 0.000000e+00 : f32
    %51 = vector.broadcast %cst_41 : f32 to vector<32x128xf32>
    %52 = arith.maximumf %50, %51 : vector<32x128xf32>
    %c0_42 = arith.constant 0 : index
    %c0_43 = arith.constant 0 : index
    %c0_44 = arith.constant 0 : index
    %53 = vector.load %arg6[%c0_42, %c0_43, %c0_44] : memref<1x32x128xf32, #tpu.memory_space<vmem>>, vector<1x32x128xf32>
    %54 = vector.shape_cast %53 : vector<1x32x128xf32> to vector<32x128xf32>
    %55 = vector.shape_cast %52 : vector<32x128xf32> to vector<1x32x128xf32>
    tpu.vector_store %arg6[%c0_42, %c0_43, %c0_44], %55 {strides = array<i32>} : memref<1x32x128xf32, #tpu.memory_space<vmem>>, vector<1x32x128xf32>,
    return
  }
  func.func @transform_0(%arg0: i32, %arg1: i32) -> (i32, i32, i32) {
    %c0_i32 = arith.constant 0 : i32
    %c0_i32_0 = arith.constant 0 : i32
    %c0_i32_1 = arith.constant 0 : i32
    return %arg0, %c0_i32, %c0_i32_0 : i32, i32, i32
  }
  func.func @transform_1(%arg0: i32, %arg1: i32) -> (i32, i32) {
    %c0_i32 = arith.constant 0 : i32
    %c0_i32_0 = arith.constant 0 : i32
    %c0_i32_1 = arith.constant 0 : i32
    return %c0_i32, %c0_i32_0 : i32, i32
  }
  func.func @transform_2(%arg0: i32, %arg1: i32) -> (i32, i32) {
    %c0_i32 = arith.constant 0 : i32
    %c0_i32_0 = arith.constant 0 : i32
    %c0_i32_1 = arith.constant 0 : i32
    return %c0_i32, %c0_i32_0 : i32, i32
  }
  func.func @transform_3(%arg0: i32, %arg1: i32) -> (i32, i32, i32) {
    %c0_i32 = arith.constant 0 : i32
    %c0_i32_0 = arith.constant 0 : i32
    return %arg0, %arg1, %c0_i32 : i32, i32, i32
  }
  func.func @transform_4(%arg0: i32, %arg1: i32) -> (i32, i32, i32) {
    %c0_i32 = arith.constant 0 : i32
    %c0_i32_0 = arith.constant 0 : i32
    return %arg0, %arg1, %c0_i32 : i32, i32, i32
  }
}

module attributes {stable_mosaic.version = 11 : i64} {
  func.func @_tapconv_kernel(%arg0: i32, %arg1: i32, %arg2: memref<1x46x128xbf16, #tpu.memory_space<vmem>>, %arg3: memref<1152x128xbf16, #tpu.memory_space<vmem>>, %arg4: memref<1x128xf32, #tpu.memory_space<vmem>>, %arg5: memref<1x32x128xbf16, #tpu.memory_space<vmem>>) attributes {dimension_semantics = [#tpu.dimension_semantics<parallel>, #tpu.dimension_semantics<parallel>], iteration_bounds = array<i64: 2, 1>, scalar_prefetch = 0 : i64, scratch_operands = 0 : i64, tpu.core_type = #tpu.core_type<tc>, window_params = [{transform_indices = @transform_0, window_bounds = array<i64: 1, 46, 128>}, {pipeline_mode = #tpu.pipeline_mode<synchronous>, transform_indices = @transform_1, window_bounds = array<i64: 1152, 128>}, {pipeline_mode = #tpu.pipeline_mode<synchronous>, transform_indices = @transform_2, window_bounds = array<i64: 1, 128>}, {transform_indices = @transform_3, window_bounds = array<i64: 1, 32, 128>}]} {
    %c0 = arith.constant 0 : index
    %c0_0 = arith.constant 0 : index
    %c0_1 = arith.constant 0 : index
    %0 = vector.load %arg2[%c0, %c0_0, %c0_1] : memref<1x46x128xbf16, #tpu.memory_space<vmem>>, vector<1x32x128xbf16>
    %1 = vector.shape_cast %0 : vector<1x32x128xbf16> to vector<32x128xbf16>
    %c0_2 = arith.constant 0 : index
    %c0_3 = arith.constant 0 : index
    %2 = vector.load %arg3[%c0_2, %c0_3] : memref<1152x128xbf16, #tpu.memory_space<vmem>>, vector<128x128xbf16>
    %cst = arith.constant dense<0.000000e+00> : vector<32x128xf32>
    %3 = tpu.matmul %1, %2, %cst {dimension_numbers = #tpu.dot_dimension_numbers<[1], [0], [0], [1], [0, 0, 1, 1], [], []>} : vector<32x128xbf16>, vector<128x128xbf16>, vector<32x128xf32> -> vector<32x128xf32>
    %c0_4 = arith.constant 0 : index
    %c1 = arith.constant 1 : index
    %c0_5 = arith.constant 0 : index
    %4 = vector.load %arg2[%c0_4, %c1, %c0_5] : memref<1x46x128xbf16, #tpu.memory_space<vmem>>, vector<1x32x128xbf16>
    %5 = vector.shape_cast %4 : vector<1x32x128xbf16> to vector<32x128xbf16>
    %c128 = arith.constant 128 : index
    %c0_6 = arith.constant 0 : index
    %6 = vector.load %arg3[%c128, %c0_6] : memref<1152x128xbf16, #tpu.memory_space<vmem>>, vector<128x128xbf16>
    %cst_7 = arith.constant dense<0.000000e+00> : vector<32x128xf32>
    %7 = tpu.matmul %5, %6, %cst_7 {dimension_numbers = #tpu.dot_dimension_numbers<[1], [0], [0], [1], [0, 0, 1, 1], [], []>} : vector<32x128xbf16>, vector<128x128xbf16>, vector<32x128xf32> -> vector<32x128xf32>
    %8 = arith.addf %3, %7 : vector<32x128xf32>
    %c0_8 = arith.constant 0 : index
    %c2 = arith.constant 2 : index
    %c0_9 = arith.constant 0 : index
    %9 = vector.load %arg2[%c0_8, %c2, %c0_9] : memref<1x46x128xbf16, #tpu.memory_space<vmem>>, vector<1x32x128xbf16>
    %10 = vector.shape_cast %9 : vector<1x32x128xbf16> to vector<32x128xbf16>
    %c256 = arith.constant 256 : index
    %c0_10 = arith.constant 0 : index
    %11 = vector.load %arg3[%c256, %c0_10] : memref<1152x128xbf16, #tpu.memory_space<vmem>>, vector<128x128xbf16>
    %cst_11 = arith.constant dense<0.000000e+00> : vector<32x128xf32>
    %12 = tpu.matmul %10, %11, %cst_11 {dimension_numbers = #tpu.dot_dimension_numbers<[1], [0], [0], [1], [0, 0, 1, 1], [], []>} : vector<32x128xbf16>, vector<128x128xbf16>, vector<32x128xf32> -> vector<32x128xf32>
    %13 = arith.addf %8, %12 : vector<32x128xf32>
    %c0_12 = arith.constant 0 : index
    %c6 = arith.constant 6 : index
    %c0_13 = arith.constant 0 : index
    %14 = vector.load %arg2[%c0_12, %c6, %c0_13] : memref<1x46x128xbf16, #tpu.memory_space<vmem>>, vector<1x32x128xbf16>
    %15 = vector.shape_cast %14 : vector<1x32x128xbf16> to vector<32x128xbf16>
    %c384 = arith.constant 384 : index
    %c0_14 = arith.constant 0 : index
    %16 = vector.load %arg3[%c384, %c0_14] : memref<1152x128xbf16, #tpu.memory_space<vmem>>, vector<128x128xbf16>
    %cst_15 = arith.constant dense<0.000000e+00> : vector<32x128xf32>
    %17 = tpu.matmul %15, %16, %cst_15 {dimension_numbers = #tpu.dot_dimension_numbers<[1], [0], [0], [1], [0, 0, 1, 1], [], []>} : vector<32x128xbf16>, vector<128x128xbf16>, vector<32x128xf32> -> vector<32x128xf32>
    %18 = arith.addf %13, %17 : vector<32x128xf32>
    %c0_16 = arith.constant 0 : index
    %c7 = arith.constant 7 : index
    %c0_17 = arith.constant 0 : index
    %19 = vector.load %arg2[%c0_16, %c7, %c0_17] : memref<1x46x128xbf16, #tpu.memory_space<vmem>>, vector<1x32x128xbf16>
    %20 = vector.shape_cast %19 : vector<1x32x128xbf16> to vector<32x128xbf16>
    %c512 = arith.constant 512 : index
    %c0_18 = arith.constant 0 : index
    %21 = vector.load %arg3[%c512, %c0_18] : memref<1152x128xbf16, #tpu.memory_space<vmem>>, vector<128x128xbf16>
    %cst_19 = arith.constant dense<0.000000e+00> : vector<32x128xf32>
    %22 = tpu.matmul %20, %21, %cst_19 {dimension_numbers = #tpu.dot_dimension_numbers<[1], [0], [0], [1], [0, 0, 1, 1], [], []>} : vector<32x128xbf16>, vector<128x128xbf16>, vector<32x128xf32> -> vector<32x128xf32>
    %23 = arith.addf %18, %22 : vector<32x128xf32>
    %c0_20 = arith.constant 0 : index
    %c8 = arith.constant 8 : index
    %c0_21 = arith.constant 0 : index
    %24 = vector.load %arg2[%c0_20, %c8, %c0_21] : memref<1x46x128xbf16, #tpu.memory_space<vmem>>, vector<1x32x128xbf16>
    %25 = vector.shape_cast %24 : vector<1x32x128xbf16> to vector<32x128xbf16>
    %c640 = arith.constant 640 : index
    %c0_22 = arith.constant 0 : index
    %26 = vector.load %arg3[%c640, %c0_22] : memref<1152x128xbf16, #tpu.memory_space<vmem>>, vector<128x128xbf16>
    %cst_23 = arith.constant dense<0.000000e+00> : vector<32x128xf32>
    %27 = tpu.matmul %25, %26, %cst_23 {dimension_numbers = #tpu.dot_dimension_numbers<[1], [0], [0], [1], [0, 0, 1, 1], [], []>} : vector<32x128xbf16>, vector<128x128xbf16>, vector<32x128xf32> -> vector<32x128xf32>
    %28 = arith.addf %23, %27 : vector<32x128xf32>
    %c0_24 = arith.constant 0 : index
    %c12 = arith.constant 12 : index
    %c0_25 = arith.constant 0 : index
    %29 = vector.load %arg2[%c0_24, %c12, %c0_25] : memref<1x46x128xbf16, #tpu.memory_space<vmem>>, vector<1x32x128xbf16>
    %30 = vector.shape_cast %29 : vector<1x32x128xbf16> to vector<32x128xbf16>
    %c768 = arith.constant 768 : index
    %c0_26 = arith.constant 0 : index
    %31 = vector.load %arg3[%c768, %c0_26] : memref<1152x128xbf16, #tpu.memory_space<vmem>>, vector<128x128xbf16>
    %cst_27 = arith.constant dense<0.000000e+00> : vector<32x128xf32>
    %32 = tpu.matmul %30, %31, %cst_27 {dimension_numbers = #tpu.dot_dimension_numbers<[1], [0], [0], [1], [0, 0, 1, 1], [], []>} : vector<32x128xbf16>, vector<128x128xbf16>, vector<32x128xf32> -> vector<32x128xf32>
    %33 = arith.addf %28, %32 : vector<32x128xf32>
    %c0_28 = arith.constant 0 : index
    %c13 = arith.constant 13 : index
    %c0_29 = arith.constant 0 : index
    %34 = vector.load %arg2[%c0_28, %c13, %c0_29] : memref<1x46x128xbf16, #tpu.memory_space<vmem>>, vector<1x32x128xbf16>
    %35 = vector.shape_cast %34 : vector<1x32x128xbf16> to vector<32x128xbf16>
    %c896 = arith.constant 896 : index
    %c0_30 = arith.constant 0 : index
    %36 = vector.load %arg3[%c896, %c0_30] : memref<1152x128xbf16, #tpu.memory_space<vmem>>, vector<128x128xbf16>
    %cst_31 = arith.constant dense<0.000000e+00> : vector<32x128xf32>
    %37 = tpu.matmul %35, %36, %cst_31 {dimension_numbers = #tpu.dot_dimension_numbers<[1], [0], [0], [1], [0, 0, 1, 1], [], []>} : vector<32x128xbf16>, vector<128x128xbf16>, vector<32x128xf32> -> vector<32x128xf32>
    %38 = arith.addf %33, %37 : vector<32x128xf32>
    %c0_32 = arith.constant 0 : index
    %c14 = arith.constant 14 : index
    %c0_33 = arith.constant 0 : index
    %39 = vector.load %arg2[%c0_32, %c14, %c0_33] : memref<1x46x128xbf16, #tpu.memory_space<vmem>>, vector<1x32x128xbf16>
    %40 = vector.shape_cast %39 : vector<1x32x128xbf16> to vector<32x128xbf16>
    %c1024 = arith.constant 1024 : index
    %c0_34 = arith.constant 0 : index
    %41 = vector.load %arg3[%c1024, %c0_34] : memref<1152x128xbf16, #tpu.memory_space<vmem>>, vector<128x128xbf16>
    %cst_35 = arith.constant dense<0.000000e+00> : vector<32x128xf32>
    %42 = tpu.matmul %40, %41, %cst_35 {dimension_numbers = #tpu.dot_dimension_numbers<[1], [0], [0], [1], [0, 0, 1, 1], [], []>} : vector<32x128xbf16>, vector<128x128xbf16>, vector<32x128xf32> -> vector<32x128xf32>
    %43 = arith.addf %38, %42 : vector<32x128xf32>
    %c0_36 = arith.constant 0 : index
    %c0_37 = arith.constant 0 : index
    %44 = vector.load %arg4[%c0_36, %c0_37] : memref<1x128xf32, #tpu.memory_space<vmem>>, vector<1x128xf32>
    %45 = vector.broadcast %44 : vector<1x128xf32> to vector<32x128xf32>
    %46 = arith.addf %43, %45 : vector<32x128xf32>
    %cst_38 = arith.constant 0.000000e+00 : f32
    %47 = vector.broadcast %cst_38 : f32 to vector<32x128xf32>
    %48 = arith.maximumf %46, %47 : vector<32x128xf32>
    %49 = arith.truncf %48 : vector<32x128xf32> to vector<32x128xbf16>
    %c0_39 = arith.constant 0 : index
    %c0_40 = arith.constant 0 : index
    %c0_41 = arith.constant 0 : index
    %50 = vector.load %arg5[%c0_39, %c0_40, %c0_41] : memref<1x32x128xbf16, #tpu.memory_space<vmem>>, vector<1x32x128xbf16>
    %51 = vector.shape_cast %50 : vector<1x32x128xbf16> to vector<32x128xbf16>
    %52 = vector.shape_cast %49 : vector<32x128xbf16> to vector<1x32x128xbf16>
    tpu.vector_store %arg5[%c0_39, %c0_40, %c0_41], %52 {strides = array<i32>} : memref<1x32x128xbf16, #tpu.memory_space<vmem>>, vector<1x32x128xbf16>,
    return
  }
  func.func @transform_0(%arg0: i32, %arg1: i32) -> (i32, i32, i32) {
    %c0_i32 = arith.constant 0 : i32
    %c0_i32_0 = arith.constant 0 : i32
    %c0_i32_1 = arith.constant 0 : i32
    return %arg0, %c0_i32, %c0_i32_0 : i32, i32, i32
  }
  func.func @transform_1(%arg0: i32, %arg1: i32) -> (i32, i32) {
    %c0_i32 = arith.constant 0 : i32
    %c0_i32_0 = arith.constant 0 : i32
    %c0_i32_1 = arith.constant 0 : i32
    return %c0_i32, %c0_i32_0 : i32, i32
  }
  func.func @transform_2(%arg0: i32, %arg1: i32) -> (i32, i32) {
    %c0_i32 = arith.constant 0 : i32
    %c0_i32_0 = arith.constant 0 : i32
    %c0_i32_1 = arith.constant 0 : i32
    return %c0_i32, %c0_i32_0 : i32, i32
  }
  func.func @transform_3(%arg0: i32, %arg1: i32) -> (i32, i32, i32) {
    %c0_i32 = arith.constant 0 : i32
    %c0_i32_0 = arith.constant 0 : i32
    return %arg0, %arg1, %c0_i32 : i32, i32, i32
  }
}

</mosaic_0001>

<bundles_post_ra>
// kernel: pretrained_image_encoding_forward.12
= control target key start
LH: loop header
LB: loop body
LE: loop exit
PB: predicated region body
PF: predicated region fallthrough
CT: control target
= control target key end

     0   :  { %s438_s6 = smov 0   ;;  %s560_s0 = inlined_call_operand.vmem [shape: bf16[2,9,2,9,128], index: 0, kind: input, shape index: {}]   ;;  %s561_s1 = inlined_call_operand.vmem [shape: bf16[2,8,8,64], index: 1, kind: output, shape index: {}]  }
   0x1 LB: > { %s378_s7 = sadd.s32 4294967295, %s425_s6   ;;  %p382_p0 = scmp.ge.s32.totalorder %s425_s6, 1  ;;  %s425_s6 = sphi %s438_s6, %s11_s6  }
   0x2   : > { %p87_p1 = scmp.lt.s32.totalorder %s425_s6, 3 }
   0x4   : > { %p88_p2 = pnand %p382_p0, %p87_p1 }
   0x5   : > { %p107_p3 = scmp.lt.s32.totalorder (!%p88_p2), %s378_s7, 1  ;;  %s427_s12 = smov (!%p88_p2), 64   ;;  %vm265_vm0 = vcmask (!%p88_p2), 1046528   ;;  %vm314_vm1 = vcmask (!%p88_p2), 519168  }
   0x6   : > { %91 = sbr.rel (%p88_p2) target bundleno = 157 (0x9d), region = 24 }
   0xd   : > { %s563_s7 = smov (!%p107_p3, %s378_s7), 1 }
   0xe   : > { %s389_s8 = smul.u32 144, %s563_s7  ;;  %s388_s13 = sshll.u32 %s563_s7, 5 }
   0xf   : > { %s533_s16 = scalar_lea.vmem %s561_s1, %s388_s13 }
  0x10   : > { %s452_s11 = scalar_lea.vmem %s560_s0, %s389_s8 }
  0x11   : > { %v133_v0 = vld [vmem:[%s452_s11 + $0x40] ss:$8 sps:$4 sm:$0xff]   ;;  %v137_v1 = vld [vmem:[%s452_s11 + $0x50] ss:$8 sps:$4 sm:$0xff]   ;;  %v488_v46 = vld [vmem:[%s452_s11 + $0x44] sm:$0x1] }
  0x12   : > { %v141_v2 = vld [vmem:[%s452_s11 + $0x60] ss:$8 sps:$4 sm:$0xff]   ;;  %v167_v3 = vunpack.c.l.bf16 %v133_v0  ;;  %v169_v4 = vunpack.c.h.bf16 %v133_v0  ;;  %v171_v5 = vunpack.c.l.bf16 %v137_v1  ;;  %v173_v6 = vunpack.c.h.bf16 %v137_v1  ;;  %v121_v8 = vld [vmem:[%s452_s11 + $0x10] ss:$8 sps:$4 sm:$0xff]   ;;  %v136_v47 = vld [vmem:[%s452_s11 + $0x4c] sm:$0x1] }
  0x13   : > { %v117_v7 = vld [vmem:[%s452_s11] ss:$8 sps:$4 sm:$0xff]   ;;  %v175_v10 = vunpack.c.l.bf16 %v141_v2  ;;  %v177_v11 = vunpack.c.h.bf16 %v141_v2  ;;  %v145_v14 = vld [vmem:[%s452_s11 + $0x70] ss:$8 sps:$4 sm:$0xff]   ;;  %v155_v17 = vunpack.c.l.bf16 %v121_v8  ;;  %v157_v18 = vunpack.c.h.bf16 %v121_v8  ;;  %v138_v48 = vld [vmem:[%s452_s11 + $0x54] sm:$0x1] }
  0x14   : > { %v125_v9 = vld [vmem:[%s452_s11 + $0x20] ss:$8 sps:$4 sm:$0xff]   ;;  %v151_v12 = vunpack.c.l.bf16 %v117_v7  ;;  %v153_v13 = vunpack.c.h.bf16 %v117_v7  ;;  %v193_v15 = vmax.f32 %v167_v3, %v169_v4  ;;  %v195_v16 = vmax.f32 %v171_v5, %v173_v6  ;;  %v131_v31 = vld [vmem:[%s452_s11 + $0x38] sm:$0xf]  ;;  %v140_v49 = vld [vmem:[%s452_s11 + $0x5c] sm:$0x1] }
  0x15   : > { %v197_v19 = vmax.f32 %v175_v10, %v177_v11  ;;  %v159_v20 = vunpack.c.l.bf16 %v125_v9  ;;  %v161_v21 = vunpack.c.h.bf16 %v125_v9  ;;  %v187_v25 = vmax.f32 %v155_v17, %v157_v18  ;;  %v149_v26 = vld [vmem:[%s452_s11 + $0x30] ss:$80 sps:$4 sm:$0xff]   ;;  %v118_v50 = vld [vmem:[%s452_s11 + $0x4] sm:$0x1]  ;;  %v120_v51 = vld [vmem:[%s452_s11 + $0xc] sm:$0x1] }
  0x16   : > { %v185_v22 = vmax.f32 %v151_v12, %v153_v13  ;;  %v461_v23 = vmax.f32 %v193_v15, %v171_v5  ;;  %v463_v24 = vmax.f32 %v195_v16, %v175_v10  ;;  %v179_v27 = vunpack.c.l.bf16 %v145_v14  ;;  %v122_v52 = vld [vmem:[%s452_s11 + $0x14] sm:$0x1]  ;;  %v124_v53 = vld [vmem:[%s452_s11 + $0x1c] sm:$0x1]  ;;  %v144_v60 = vld [vmem:[%s452_s11 + $0x6c] sm:$0x1] }
  0x17   : > { %v181_v29 = vunpack.c.h.bf16 %v145_v14  ;;  %v183_v30 = vunpack.c.h.bf16 %v149_v26  ;;  %v189_v33 = vmax.f32 %v159_v20, %v161_v21  ;;  %v471_v34 = vmax.f32 %v187_v25, %v159_v20  ;;  %v146_v61 = vld [vmem:[%s452_s11 + $0x74] sm:$0x1]  ;;  %v148_v62 = vld [vmem:[%s452_s11 + $0x7c] sm:$0x1]  ;;  %v142_v63 = vld [vmem:[%s452_s11 + $0x64] sm:$0x1] }
  0x18   : > { %v466_v28 = vmax.f32 %v185_v22, %v155_v17  ;;  %v409_v32 = vpack.i.bf16 %v463_v24, %v461_v23  ;;  %v473_v36 = vmax.f32 %v197_v19, %v179_v27  ;;  %v163_v37 = vunpack.c.l.bf16 %v149_v26  ;;  %v126_v2 = vld [vmem:[%s452_s11 + $0x24] sm:$0x1]  ;;  %v128_v13 = vld [vmem:[%s452_s11 + $0x2c] sm:$0x1]  ;;  %v130_v14 = vld [vmem:[%s452_s11 + $0x34] sm:$0x1] }
  0x19   : > { %v199_v35 = vmax.f32 %v179_v27, %v181_v29  ;;  %v165_v39 = vunpack.c.l.bf16 %v131_v31  ;;  %v168_v54 = vunpack.c.l.bf16 %v488_v46  ;;  %v170_v55 = vunpack.c.l.bf16 %v136_v47  ;;  %v150_v10 = vld [vmem:[%s452_s11 + $0x84] sm:$0x1]  ;;  %v132_v15 = vld [vmem:[%s452_s11 + $0x3c] sm:$0x1] }
  0x1a   : > { %410 = vrot.lane.b32.xlu1 %v409_v32, %s427_s12  ;;  %v399_v38 = vpack.i.bf16 %v471_v34, %v466_v28  ;;  %v479_v42 = vmax.f32 %v189_v33, %v163_v37  ;;  %v172_v56 = vunpack.c.l.bf16 %v138_v48  ;;  %v174_v57 = vunpack.c.l.bf16 %v140_v49 }
  0x1b   : > { %v477_v40 = vmax.f32 %v199_v35, %v183_v30  ;;  %v191_v41 = vmax.f32 %v163_v37, %v165_v39  ;;  %v152_v58 = vunpack.c.l.bf16 %v118_v50  ;;  %v154_v59 = vunpack.c.l.bf16 %v120_v51 }
  0x1c   : > { %400 = vrot.lane.b32.xlu0 %v399_v38, %s427_s12  ;;  %v156_v0 = vunpack.c.l.bf16 %v122_v52  ;;  %v158_v1 = vunpack.c.l.bf16 %v124_v53  ;;  %v180_v4 = vunpack.c.l.bf16 %v146_v61  ;;  %v182_v5 = vunpack.c.l.bf16 %v148_v62 }
  0x1d   : > { %v414_v43 = vpack.i.bf16 %v477_v40, %v473_v36  ;;  %v483_v44 = vmax.f32 %v191_v41, %v167_v3  ;;  %v178_v3 = vunpack.c.l.bf16 %v144_v60  ;;  %v176_v6 = vunpack.c.l.bf16 %v142_v63 }
  0x1e   : > { %v194_v7 = vmax.f32 %v168_v54, %v170_v55  ;;  %v196_v8 = vmax.f32 %v172_v56, %v174_v57  ;;  %v186_v9 = vmax.f32 %v152_v58, %v154_v59  ;;  %v160_v11 = vunpack.c.l.bf16 %v126_v2 }
  0x1f   : > { %415 = vrot.lane.b32.xlu1 %v414_v43, %s427_s12  ;;  %v404_v45 = vpack.i.bf16 %v483_v44, %v479_v42  ;;  %v188_v12 = vmax.f32 %v156_v0, %v158_v1  ;;  %v184_v16 = vunpack.c.l.bf16 %v150_v10  ;;  %v198_v17 = vmax.f32 %v176_v6, %v178_v3 }
  0x20   : > { %v200_v18 = vmax.f32 %v180_v4, %v182_v5  ;;  %v210_v19 = vmax.f32 %v194_v7, %v172_v56  ;;  %v212_v20 = vmax.f32 %v196_v8, %v176_v6  ;;  %v202_v21 = vmax.f32 %v186_v9, %v156_v0 }
  0x21   : > { %405 = vrot.lane.b32.xlu0 %v404_v45, %s427_s12  ;;  %v204_v22 = vmax.f32 %v188_v12, %v160_v11  ;;  %v162_v25 = vunpack.c.l.bf16 %v128_v13  ;;  %v164_v26 = vunpack.c.l.bf16 %v130_v14  ;;  %v166_v27 = vunpack.c.l.bf16 %v132_v15 }
  0x22   : > { %v281_v29 = vrot.slane %v463_v24, 1  ;;  %v278_v30 = vrot.slane %v461_v23, 1  ;;  %v214_v31 = vmax.f32 %v198_v17, %v180_v4  ;;  %v216_v32 = vmax.f32 %v200_v18, %v184_v16 }
  0x23   : > { %v269_v33 = vrot.slane %v471_v34, 1  ;;  %v266_v35 = vrot.slane %v466_v28, 1  ;;  %v279_v37 = vrot.slane %v210_v19, 1  ;;  %v282_v38 = vrot.slane %v212_v20, 1 }
  0x24   : > { %v267_v39 = vrot.slane %v202_v21, 1  ;;  %v270_v41 = vrot.slane %v204_v22, 1  ;;  %v190_v43 = vmax.f32 %v160_v11, %v162_v25  ;;  %v192_v45 = vmax.f32 %v164_v26, %v166_v27 }
  0x25   : > { %v284_v48 = vrot.slane %v473_v36, 1  ;;  %v285_v49 = vrot.slane %v214_v31, 1  ;;  %v287_v50 = vrot.slane %v477_v40, 1  ;;  %v288_v51 = vrot.slane %v216_v32, 1 }
  0x26   : > { %v283_v52 = vsel %vm265_vm0, %v281_v29, %v282_v38  ;;  %v280_v56 = vsel %vm265_vm0, %v278_v30, %v279_v37  ;;  %v271_v57 = vsel %vm265_vm0, %v269_v33, %v270_v41  ;;  %v268_v59 = vsel %vm265_vm0, %v266_v35, %v267_v39 }
  0x27   : > { %v206_v60 = vmax.f32 %v190_v43, %v164_v26  ;;  %v208_v61 = vmax.f32 %v192_v45, %v168_v54  ;;  %v286_v2 = vsel %vm265_vm0, %v284_v48, %v285_v49  ;;  %v289_v3 = vsel %vm265_vm0, %v287_v50, %v288_v51 }
  0x28   : > { %v272_v4 = vrot.slane %v479_v42, 1  ;;  %v275_v5 = vrot.slane %v483_v44, 1 }
  0x29   : > { %v273_v9 = vrot.slane %v206_v60, 1  ;;  %v276_v10 = vrot.slane %v208_v61, 1 }
  0x2b   : > { %v274_v22 = vsel %vm265_vm0, %v272_v4, %v273_v9 }
  0x8c   : > { %v411_v47 = vpop.permute.xlu1 %410 }
  0x8d   : > { %v413_v53 = vunpack.i.h.bf16 %v411_v47  ;;  %v412_v55 = vunpack.i.l.bf16 %v411_v47 }
  0x8e   : > { %v401_v58 = vpop.permute.xlu0 %400 }
  0x8f   : > { %v254_v62 = vmax.f32 %v463_v24, %v413_v53  ;;  %v253_v63 = vmax.f32 %v461_v23, %v412_v55  ;;  %v403_v0 = vunpack.i.h.bf16 %v401_v58  ;;  %v402_v1 = vunpack.i.l.bf16 %v401_v58 }
  0x91   : > { %v303_v6 = vmax.f32 %v254_v62, %v283_v52  ;;  %v302_v7 = vmax.f32 %v253_v63, %v280_v56  ;;  %v250_v46 = vmax.f32 %v471_v34, %v403_v0  ;;  %v249_v54 = vmax.f32 %v466_v28, %v402_v1  ;;  %v416_v8 = vpop.permute.xlu1 %415 }
  0x92   : > { %v418_v23 = vunpack.i.h.bf16 %v416_v8  ;;  %v417_v24 = vunpack.i.l.bf16 %v416_v8 }
  0x93   : > { %v311_v11 = vpack.c.bf16 %v303_v6, %v303_v6  ;;  %v310_v12 = vpack.c.bf16 %v302_v7, %v302_v7  ;;  %v299_v13 = vmax.f32 %v250_v46, %v271_v57  ;;  %v298_v34 = vmax.f32 %v249_v54, %v268_v59  ;;  %v406_v15 = vpop.permute.xlu0 %405 }
  0x94   : > { %v256_v28 = vmax.f32 %v477_v40, %v418_v23  ;;  %v255_v14 = vmax.f32 %v473_v36, %v417_v24  ;;  %v408_v18 = vunpack.i.h.bf16 %v406_v15  ;;  %v407_v19 = vunpack.i.l.bf16 %v406_v15 }
  0x95   : > { %320 = vst.msk [vmem:[%s533_s16 + $0x14] sm:$0xf] %vm314_vm1, %v311_v11  ;;  %319 = vst.msk [vmem:[%s533_s16 + $0x10] sm:$0xf] %vm314_vm1, %v310_v12  ;;  %v307_v16 = vpack.c.bf16 %v299_v13, %v299_v13  ;;  %v306_v17 = vpack.c.bf16 %v298_v34, %v298_v34  ;;  %v277_v40 = vsel %vm265_vm0, %v275_v5, %v276_v10 }
  0x96   : > { %v305_v20 = vmax.f32 %v256_v28, %v289_v3  ;;  %v304_v21 = vmax.f32 %v255_v14, %v286_v2  ;;  %v252_v36 = vmax.f32 %v483_v44, %v408_v18  ;;  %v251_v25 = vmax.f32 %v479_v42, %v407_v19 }
  0x97   : > { %316 = vst.msk [vmem:[%s533_s16 + $0x4] sm:$0xf] %vm314_vm1, %v307_v16  ;;  %315 = vst.msk [vmem:[%s533_s16] sm:$0xf] %vm314_vm1, %v306_v17 }
  0x98   : > { %v313_v26 = vpack.c.bf16 %v305_v20, %v305_v20  ;;  %v312_v27 = vpack.c.bf16 %v304_v21, %v304_v21  ;;  %v301_v29 = vmax.f32 %v252_v36, %v277_v40  ;;  %v300_v30 = vmax.f32 %v251_v25, %v274_v22 }
  0x9a   : > { %322 = vst.msk [vmem:[%s533_s16 + $0x1c] sm:$0xf] %vm314_vm1, %v313_v26  ;;  %321 = vst.msk [vmem:[%s533_s16 + $0x18] sm:$0xf] %vm314_vm1, %v312_v27  ;;  %v309_v31 = vpack.c.bf16 %v301_v29, %v301_v29  ;;  %v308_v32 = vpack.c.bf16 %v300_v30, %v300_v30 }
  0x9c   : > { %318 = vst.msk [vmem:[%s533_s16 + $0xc] sm:$0xf] %vm314_vm1, %v309_v31  ;;  %317 = vst.msk [vmem:[%s533_s16 + $0x8] sm:$0xf] %vm314_vm1, %v308_v32 }
  0x9d PF: > { %s11_s6 = sadd.s32 1, %s425_s6  }
  0x9e   : > { %p8_p4 = scmp.ge.s32.totalorder %s11_s6, 4  }
  0xa0   :  { %10 = sbr.rel (!%p8_p4) target bundleno = 1 (0x1), region = 54 }

// kernel: pretrained_image_encoding_forward.11
= control target key start
LH: loop header
LB: loop body
LE: loop exit
PB: predicated region body
PF: predicated region fallthrough
CT: control target
= control target key end

     0   :  { %s1157_s12 = smov 0   ;;  %s1361_s0 = inlined_call_operand.vmem [shape: bf16[512,147], index: 0, kind: input, shape index: {}]   ;;  %s1362_s1 = inlined_call_operand.vmem [shape: bf16[147,64], index: 1, kind: input, shape index: {}]   ;;  %s1363_s2 = inlined_call_operand.vmem [shape: f32[1,64], index: 2, kind: input, shape index: {}]   ;;  %s1364_s3 = inlined_call_operand.vmem [shape: bf16[512,64], index: 3, kind: output, shape index: {}]  }
   0x1 LB: > { %s903_s13 = sadd.s32 4294967295, %s1133_s12   ;;  %p907_p0 = scmp.ge.s32.totalorder %s1133_s12, 1  ;;  %s1133_s12 = sphi %s1157_s12, %s13_s12  }
   0x2   : > { %p139_p1 = scmp.lt.s32.totalorder %s1133_s12, 3 }
   0x4   : > { %p140_p2 = pnand %p907_p0, %p139_p1 }
   0x5   : > { %v1069_v0 = vld [vmem:[%s1362_s1] sm:$0xff] (!%p140_p2)   ;;  %v1135_v1 = vmov (!%p140_p2), 0   ;;  %v1070_v2 = vld [vmem:[%s1362_s1 + $0x8] sm:$0xff] (!%p140_p2)   ;;  %v1071_v3 = vld [vmem:[%s1362_s1 + $0x10] sm:$0xff] (!%p140_p2)   ;;  %s908_s20 = sshll.u32 (!%p140_p2), %s903_s13, 5  ;;  %vm437_vm0 = vcmask (!%p140_p2), 154624  }
   0x6   : > { %143 = sbr.rel (%p140_p2) target bundleno = 323 (0x143), region = 32  ;;  %493 = vmatprep.subr.bf16.mxu0 (!%p140_p2), %v1135_v1  ;;  %1039 = vmatprep.subr.bf16.mxu1 (!%p140_p2), %v1135_v1  ;;  %p165_p3 = scmp.lt.s32.totalorder (!%p140_p2), %s908_s20, 63  ;;  %v1072_v4 = vld [vmem:[%s1362_s1 + $0x18] sm:$0xff] (!%p140_p2)   ;;  %v1073_v5 = vld [vmem:[%s1362_s1 + $0x20] sm:$0xff] (!%p140_p2)   ;;  %v1074_v8 = vld [vmem:[%s1362_s1 + $0x28] sm:$0xff] (!%p140_p2)   ;;  %vm486_vm1 = vcmask (!%p140_p2), 1040384  }
   0x7   : > { %494 = vmatpush1.bf16.msra.mxu0 (!%p140_p2), %v1069_v0  ;;  %1049 = vmatpush1.bf16.msra.mxu1 (!%p140_p2), %v1069_v0  ;;  %v1075_v9 = vld [vmem:[%s1362_s1 + $0x30] sm:$0xff] (!%p140_p2)   ;;  %v1076_v10 = vld [vmem:[%s1362_s1 + $0x38] sm:$0xff] (!%p140_p2)   ;;  %vm487_vm2 = vcmask (!%p140_p2), 1041408   ;;  %v1136_v11 = vmov (!%p140_p2), 65535   ;;  %v1077_v13 = vld [vmem:[%s1362_s1 + $0x40] sm:$0xff] (!%p140_p2)   ;;  %vm814_vm3 = vcmask (!%p140_p2), 519168  }
   0x8   : > { %495 = vmatprep.subr.bf16.mxu0 (!%p140_p2), %v1135_v1  ;;  %1040 = vmatprep.subr.bf16.mxu1 (!%p140_p2), %v1135_v1  ;;  %v488_v12 = vsel (!%p140_p2), %vm486_vm1, 4294967295, %v1136_v11  ;;  %v1078_v14 = vld [vmem:[%s1362_s1 + $0x48] ss:$0 sps:$4 sm:$0x33] (!%p140_p2)   ;;  %v1254_v47 = vld [vmem:[%s1363_s2] ss:$0 sm:$0xff] (!%p140_p2) }
   0x9   : > { %v489_v15 = vsel (!%p140_p2), %vm487_vm2, %v488_v12, 0 }
   0xa   : > { %v491_v16 = vand.u32 (!%p140_p2), %v1078_v14, %v489_v15 }
   0xb   : > { %496 = vmatpush1.bf16.msra.mxu0 (!%p140_p2), %v1070_v2  ;;  %1050 = vmatpush1.bf16.msra.mxu1 (!%p140_p2), %v1070_v2 }
   0xc   : > { %497 = vmatprep.subr.bf16.mxu0 (!%p140_p2), %v1135_v1  ;;  %1041 = vmatprep.subr.bf16.mxu1 (!%p140_p2), %v1135_v1 }
   0xd   : > { %s1366_s20 = smov (!%p165_p3, %s908_s20), 63 }
   0xe   : > { %s1006_s23 = sshll.u32 %s1366_s20, 3  ;;  %s912_s15 = sshll.u32 %s1366_s20, 2 }
   0xf   : > { %498 = vmatpush1.bf16.msra.mxu0 %v1071_v3  ;;  %1051 = vmatpush1.bf16.msra.mxu1 %v1071_v3  ;;  %s1183_s26 = scalar_lea.vmem %s1361_s0, %s1006_s23  ;;  %s1264_s18 = scalar_lea.vmem %s1364_s3, %s912_s15 }
  0x10   : > { %499 = vmatprep.subr.bf16.mxu0 %v1135_v1  ;;  %1042 = vmatprep.subr.bf16.mxu1 %v1135_v1  ;;  %v1081_v6 = vld [vmem:[%s1183_s26 + $0x4] ss:$8 sps:$4 sm:$0xff]   ;;  %v1079_v17 = vld [vmem:[%s1183_s26] ss:$8 sps:$4 sm:$0xff]   ;;  %v1085_v19 = vld [vmem:[%s1183_s26 + $0x14] ss:$8 sps:$4 sm:$0xff]  }
  0x11   : > { %v1084_v7 = vld [vmem:[%s1183_s26 + $0x84] ss:$8 sps:$4 sm:$0xff]   ;;  %956 = vmatprep.mubr.msk.bf16.mxu0 %vm437_vm0, %v1081_v6  ;;  %v1082_v18 = vld [vmem:[%s1183_s26 + $0x80] ss:$8 sps:$4 sm:$0xff]   ;;  %v1087_v20 = vld [vmem:[%s1183_s26 + $0x94] ss:$8 sps:$4 sm:$0xff]  }
  0x12   : > { %964 = vmatprep.mubr.msk.bf16.mxu1 %vm437_vm0, %v1084_v7  ;;  %v1089_v21 = vld [vmem:[%s1183_s26 + $0x10] ss:$8 sps:$4 sm:$0xff]   ;;  %v1091_v23 = vld [vmem:[%s1183_s26 + $0x24] ss:$8 sps:$4 sm:$0xff]   ;;  %v1095_v25 = vld [vmem:[%s1183_s26 + $0x20] ss:$8 sps:$4 sm:$0xff]  }
  0x13   : > { %500 = vmatpush1.bf16.msra.mxu0 %v1072_v4  ;;  %1052 = vmatpush1.bf16.msra.mxu1 %v1072_v4  ;;  %v1090_v22 = vld [vmem:[%s1183_s26 + $0x90] ss:$8 sps:$4 sm:$0xff]   ;;  %v1093_v24 = vld [vmem:[%s1183_s26 + $0xa4] ss:$8 sps:$4 sm:$0xff]   ;;  %v1096_v26 = vld [vmem:[%s1183_s26 + $0xa0] ss:$8 sps:$4 sm:$0xff]  }
  0x14   : > { %501 = vmatprep.subr.bf16.mxu0 %v1135_v1  ;;  %1043 = vmatprep.subr.bf16.mxu1 %v1135_v1  ;;  %v1097_v27 = vld [vmem:[%s1183_s26 + $0x34] ss:$8 sps:$4 sm:$0xff]   ;;  %v1101_v29 = vld [vmem:[%s1183_s26 + $0x30] ss:$8 sps:$4 sm:$0xff]   ;;  %v1103_v31 = vld [vmem:[%s1183_s26 + $0x44] ss:$8 sps:$4 sm:$0xff]  }
  0x15   : > { %v1099_v28 = vld [vmem:[%s1183_s26 + $0xb4] ss:$8 sps:$4 sm:$0xff]   ;;  %v1102_v30 = vld [vmem:[%s1183_s26 + $0xb0] ss:$8 sps:$4 sm:$0xff]   ;;  %v1105_v32 = vld [vmem:[%s1183_s26 + $0xc4] ss:$8 sps:$4 sm:$0xff]  }
  0x16   : > { %v1107_v33 = vld [vmem:[%s1183_s26 + $0x40] ss:$8 sps:$4 sm:$0xff]   ;;  %v1109_v35 = vld [vmem:[%s1183_s26 + $0x54] ss:$8 sps:$4 sm:$0xff]   ;;  %v1113_v37 = vld [vmem:[%s1183_s26 + $0x50] ss:$8 sps:$4 sm:$0xff]  }
  0x17   : > { %502 = vmatpush1.bf16.msra.mxu0 %v1073_v5  ;;  %1053 = vmatpush1.bf16.msra.mxu1 %v1073_v5  ;;  %v1108_v34 = vld [vmem:[%s1183_s26 + $0xc0] ss:$8 sps:$4 sm:$0xff]   ;;  %v1111_v36 = vld [vmem:[%s1183_s26 + $0xd4] ss:$8 sps:$4 sm:$0xff]   ;;  %v1114_v38 = vld [vmem:[%s1183_s26 + $0xd0] ss:$8 sps:$4 sm:$0xff]  }
  0x18   : > { %503 = vmatprep.subr.bf16.mxu0 %v1135_v1  ;;  %1044 = vmatprep.subr.bf16.mxu1 %v1135_v1  ;;  %v1115_v39 = vld [vmem:[%s1183_s26 + $0x64] ss:$8 sps:$4 sm:$0xff]   ;;  %v1119_v41 = vld [vmem:[%s1183_s26 + $0x60] ss:$8 sps:$4 sm:$0xff]   ;;  %v1121_v43 = vld [vmem:[%s1183_s26 + $0x74] ss:$8 sps:$4 sm:$0xff]  }
  0x19   : > { %v1117_v40 = vld [vmem:[%s1183_s26 + $0xe4] ss:$8 sps:$4 sm:$0xff]   ;;  %v1120_v42 = vld [vmem:[%s1183_s26 + $0xe0] ss:$8 sps:$4 sm:$0xff]   ;;  %v1123_v44 = vld [vmem:[%s1183_s26 + $0xf4] ss:$8 sps:$4 sm:$0xff]  }
  0x1a   : > { %v1125_v45 = vld [vmem:[%s1183_s26 + $0x70] ss:$8 sps:$4 sm:$0xff]  }
  0x1b   : > { %504 = vmatpush1.bf16.msra.mxu0 %v1074_v8  ;;  %1054 = vmatpush1.bf16.msra.mxu1 %v1074_v8  ;;  %v1126_v46 = vld [vmem:[%s1183_s26 + $0xf0] ss:$8 sps:$4 sm:$0xff]  }
  0x1c   : > { %505 = vmatprep.subr.bf16.mxu0 %v1135_v1  ;;  %1045 = vmatprep.subr.bf16.mxu1 %v1135_v1 }
  0x1f   : > { %506 = vmatpush1.bf16.msra.mxu0 %v1075_v9  ;;  %1055 = vmatpush1.bf16.msra.mxu1 %v1075_v9 }
  0x20   : > { %507 = vmatprep.subr.bf16.mxu0 %v1135_v1  ;;  %1046 = vmatprep.subr.bf16.mxu1 %v1135_v1 }
  0x23   : > { %508 = vmatpush1.bf16.msra.mxu0 %v1076_v10  ;;  %1056 = vmatpush1.bf16.msra.mxu1 %v1076_v10 }
  0x24   : > { %509 = vmatprep.subr.bf16.mxu0 %v1135_v1  ;;  %1047 = vmatprep.subr.bf16.mxu1 %v1135_v1 }
  0x27   : > { %510 = vmatpush1.bf16.msra.mxu0 %v1077_v13  ;;  %1057 = vmatpush1.bf16.msra.mxu1 %v1077_v13 }
  0x28   : > { %511 = vmatprep.subr.bf16.mxu0 %v1135_v1  ;;  %1048 = vmatprep.subr.bf16.mxu1 %v1135_v1 }
  0x2b   : > { %512 = vmatpush1.bf16.msra.mxu0 %v491_v16  ;;  %1058 = vmatpush1.bf16.msra.mxu1 %v491_v16 }
  0x2e   : > { %526 = vmatmul.mubr.bf16.vlgmr.msra.gmra.mrb[0].mxu0 %v1079_v17  ;;  %590 = vmatmul.mubr.bf16.vlgmr.msra.gmra.mrb[0].mxu1 %v1082_v18 }
  0x2f   : > { %957 = vmatprep.mubr.msk.bf16.mxu0 %vm437_vm0, %v1085_v19  ;;  %965 = vmatprep.mubr.msk.bf16.mxu1 %vm437_vm0, %v1087_v20 }
  0x36   : > { %534 = vmatmul.mubr.bf16.gmra.mrb[4].mxu0 %v1089_v21  ;;  %598 = vmatmul.mubr.bf16.gmra.mrb[4].mxu1 %v1090_v22 }
  0x37   : > { %958 = vmatprep.mubr.msk.bf16.mxu0 %vm437_vm0, %v1091_v23  ;;  %966 = vmatprep.mubr.msk.bf16.mxu1 %vm437_vm0, %v1093_v24 }
  0x3e   : > { %542 = vmatmul.mubr.bf16.gmra.mrb[8].mxu0 %v1095_v25  ;;  %606 = vmatmul.mubr.bf16.gmra.mrb[8].mxu1 %v1096_v26 }
  0x3f   : > { %959 = vmatprep.mubr.msk.bf16.mxu0 %vm437_vm0, %v1097_v27  ;;  %967 = vmatprep.mubr.msk.bf16.mxu1 %vm437_vm0, %v1099_v28 }
  0x46   : > { %550 = vmatmul.mubr.bf16.gmra.mrb[12].mxu0 %v1101_v29  ;;  %614 = vmatmul.mubr.bf16.gmra.mrb[12].mxu1 %v1102_v30 }
  0x47   : > { %960 = vmatprep.mubr.msk.bf16.mxu0 %vm437_vm0, %v1103_v31  ;;  %968 = vmatprep.mubr.msk.bf16.mxu1 %vm437_vm0, %v1105_v32 }
  0x4e   : > { %558 = vmatmul.mubr.bf16.gmra.mrb[16].mxu0 %v1107_v33  ;;  %622 = vmatmul.mubr.bf16.gmra.mrb[16].mxu1 %v1108_v34 }
  0x4f   : > { %961 = vmatprep.mubr.msk.bf16.mxu0 %vm437_vm0, %v1109_v35  ;;  %969 = vmatprep.mubr.msk.bf16.mxu1 %vm437_vm0, %v1111_v36 }
  0x56   : > { %566 = vmatmul.mubr.bf16.gmra.mrb[20].mxu0 %v1113_v37  ;;  %630 = vmatmul.mubr.bf16.gmra.mrb[20].mxu1 %v1114_v38 }
  0x57   : > { %962 = vmatprep.mubr.msk.bf16.mxu0 %vm437_vm0, %v1115_v39  ;;  %970 = vmatprep.mubr.msk.bf16.mxu1 %vm437_vm0, %v1117_v40 }
  0x5e   : > { %574 = vmatmul.mubr.bf16.gmra.mrb[24].mxu0 %v1119_v41  ;;  %638 = vmatmul.mubr.bf16.gmra.mrb[24].mxu1 %v1120_v42 }
  0x5f   : > { %963 = vmatprep.mubr.msk.bf16.mxu0 %vm437_vm0, %v1121_v43  ;;  %971 = vmatprep.mubr.msk.bf16.mxu1 %vm437_vm0, %v1123_v44 }
  0x66   : > { %582 = vmatmul.mubr.bf16.gmra.mrb[28].mxu0 %v1125_v45  ;;  %646 = vmatmul.mubr.bf16.gmra.mrb[28].mxu1 %v1126_v46 }
 0x101   : > { %v527_v48 = vpop.f32.mrb[0].mxu0  ;;  %v591_v49 = vpop.f32.mrb[0].mxu1 }
 0x102   : > { %v528_v50 = vadd.f32 %v1254_v47, %v527_v48  ;;  %v592_v51 = vadd.f32 %v1254_v47, %v591_v49  ;;  %v529_v52 = vpop.f32.mrb[1].mxu0  ;;  %v593_v53 = vpop.f32.mrb[1].mxu1 }
 0x103   : > { %v530_v54 = vpop.f32.mrb[2].mxu0  ;;  %v594_v55 = vpop.f32.mrb[2].mxu1 }
 0x104   : > { %v654_v56 = vmax.f32 %v528_v50, 0.0  ;;  %v670_v57 = vmax.f32 %v592_v51, 0.0  ;;  %v531_v58 = vadd.f32 %v1254_v47, %v530_v54  ;;  %v595_v59 = vadd.f32 %v1254_v47, %v594_v55  ;;  %v532_v60 = vpop.f32.mrb[3].mxu0  ;;  %v596_v61 = vpop.f32.mrb[3].mxu1 }
 0x106   : > { %v1007_v62 = vpack.c.bf16 %v654_v56, %v654_v56  ;;  %v1023_v63 = vpack.c.bf16 %v670_v57, %v670_v57  ;;  %v655_v0 = vmax.f32 %v531_v58, 0.0  ;;  %v671_v1 = vmax.f32 %v595_v59, 0.0 }
 0x108   : > { %815 = vst.msk [vmem:[%s1264_s18] sm:$0xf] %vm814_vm3, %v1007_v62  ;;  %831 = vst.msk [vmem:[%s1264_s18 + $0x40] sm:$0xf] %vm814_vm3, %v1023_v63  ;;  %v1008_v2 = vpack.c.bf16 %v655_v0, %v655_v0  ;;  %v1024_v3 = vpack.c.bf16 %v671_v1, %v671_v1 }
 0x109   : > { %v535_v4 = vpop.f32.mrb[4].mxu0  ;;  %v599_v5 = vpop.f32.mrb[4].mxu1 }
 0x10a   : > { %816 = vst.msk [vmem:[%s1264_s18 + $0x4] sm:$0xf] %vm814_vm3, %v1008_v2  ;;  %832 = vst.msk [vmem:[%s1264_s18 + $0x44] sm:$0xf] %vm814_vm3, %v1024_v3  ;;  %v536_v6 = vadd.f32 %v1254_v47, %v535_v4  ;;  %v600_v7 = vadd.f32 %v1254_v47, %v599_v5  ;;  %v537_v8 = vpop.f32.mrb[5].mxu0  ;;  %v601_v9 = vpop.f32.mrb[5].mxu1 }
 0x10b   : > { %v538_v10 = vpop.f32.mrb[6].mxu0  ;;  %v602_v11 = vpop.f32.mrb[6].mxu1 }
 0x10c   : > { %v656_v12 = vmax.f32 %v536_v6, 0.0  ;;  %v672_v13 = vmax.f32 %v600_v7, 0.0  ;;  %v539_v14 = vadd.f32 %v1254_v47, %v538_v10  ;;  %v603_v15 = vadd.f32 %v1254_v47, %v602_v11  ;;  %v540_v16 = vpop.f32.mrb[7].mxu0  ;;  %v604_v17 = vpop.f32.mrb[7].mxu1 }
 0x10e   : > { %v1009_v18 = vpack.c.bf16 %v656_v12, %v656_v12  ;;  %v1025_v19 = vpack.c.bf16 %v672_v13, %v672_v13  ;;  %v657_v20 = vmax.f32 %v539_v14, 0.0  ;;  %v673_v21 = vmax.f32 %v603_v15, 0.0 }
 0x110   : > { %817 = vst.msk [vmem:[%s1264_s18 + $0x8] sm:$0xf] %vm814_vm3, %v1009_v18  ;;  %833 = vst.msk [vmem:[%s1264_s18 + $0x48] sm:$0xf] %vm814_vm3, %v1025_v19  ;;  %v1010_v22 = vpack.c.bf16 %v657_v20, %v657_v20  ;;  %v1026_v23 = vpack.c.bf16 %v673_v21, %v673_v21 }
 0x111   : > { %v543_v24 = vpop.f32.mrb[8].mxu0  ;;  %v607_v25 = vpop.f32.mrb[8].mxu1 }
 0x112   : > { %818 = vst.msk [vmem:[%s1264_s18 + $0xc] sm:$0xf] %vm814_vm3, %v1010_v22  ;;  %834 = vst.msk [vmem:[%s1264_s18 + $0x4c] sm:$0xf] %vm814_vm3, %v1026_v23  ;;  %v544_v26 = vadd.f32 %v1254_v47, %v543_v24  ;;  %v608_v27 = vadd.f32 %v1254_v47, %v607_v25  ;;  %v545_v28 = vpop.f32.mrb[9].mxu0  ;;  %v609_v29 = vpop.f32.mrb[9].mxu1 }
 0x113   : > { %v546_v30 = vpop.f32.mrb[10].mxu0  ;;  %v610_v31 = vpop.f32.mrb[10].mxu1 }
 0x114   : > { %v658_v32 = vmax.f32 %v544_v26, 0.0  ;;  %v674_v33 = vmax.f32 %v608_v27, 0.0  ;;  %v547_v34 = vadd.f32 %v1254_v47, %v546_v30  ;;  %v611_v35 = vadd.f32 %v1254_v47, %v610_v31  ;;  %v548_v36 = vpop.f32.mrb[11].mxu0  ;;  %v612_v37 = vpop.f32.mrb[11].mxu1 }
 0x116   : > { %v1011_v38 = vpack.c.bf16 %v658_v32, %v658_v32  ;;  %v1027_v39 = vpack.c.bf16 %v674_v33, %v674_v33  ;;  %v659_v40 = vmax.f32 %v547_v34, 0.0  ;;  %v675_v41 = vmax.f32 %v611_v35, 0.0 }
 0x118   : > { %819 = vst.msk [vmem:[%s1264_s18 + $0x10] sm:$0xf] %vm814_vm3, %v1011_v38  ;;  %835 = vst.msk [vmem:[%s1264_s18 + $0x50] sm:$0xf] %vm814_vm3, %v1027_v39  ;;  %v1012_v42 = vpack.c.bf16 %v659_v40, %v659_v40  ;;  %v1028_v43 = vpack.c.bf16 %v675_v41, %v675_v41 }
 0x119   : > { %v551_v44 = vpop.f32.mrb[12].mxu0  ;;  %v615_v45 = vpop.f32.mrb[12].mxu1 }
 0x11a   : > { %820 = vst.msk [vmem:[%s1264_s18 + $0x14] sm:$0xf] %vm814_vm3, %v1012_v42  ;;  %836 = vst.msk [vmem:[%s1264_s18 + $0x54] sm:$0xf] %vm814_vm3, %v1028_v43  ;;  %v552_v46 = vadd.f32 %v1254_v47, %v551_v44  ;;  %v616_v48 = vadd.f32 %v1254_v47, %v615_v45  ;;  %v553_v49 = vpop.f32.mrb[13].mxu0  ;;  %v617_v50 = vpop.f32.mrb[13].mxu1 }
 0x11b   : > { %v554_v51 = vpop.f32.mrb[14].mxu0  ;;  %v618_v52 = vpop.f32.mrb[14].mxu1 }
 0x11c   : > { %v660_v53 = vmax.f32 %v552_v46, 0.0  ;;  %v676_v54 = vmax.f32 %v616_v48, 0.0  ;;  %v555_v55 = vadd.f32 %v1254_v47, %v554_v51  ;;  %v619_v56 = vadd.f32 %v1254_v47, %v618_v52  ;;  %v556_v57 = vpop.f32.mrb[15].mxu0  ;;  %v620_v58 = vpop.f32.mrb[15].mxu1 }
 0x11e   : > { %v1013_v59 = vpack.c.bf16 %v660_v53, %v660_v53  ;;  %v1029_v60 = vpack.c.bf16 %v676_v54, %v676_v54  ;;  %v661_v61 = vmax.f32 %v555_v55, 0.0  ;;  %v677_v62 = vmax.f32 %v619_v56, 0.0 }
 0x120   : > { %821 = vst.msk [vmem:[%s1264_s18 + $0x18] sm:$0xf] %vm814_vm3, %v1013_v59  ;;  %837 = vst.msk [vmem:[%s1264_s18 + $0x58] sm:$0xf] %vm814_vm3, %v1029_v60  ;;  %v1014_v63 = vpack.c.bf16 %v661_v61, %v661_v61  ;;  %v1030_v0 = vpack.c.bf16 %v677_v62, %v677_v62 }
 0x121   : > { %v559_v1 = vpop.f32.mrb[16].mxu0  ;;  %v623_v2 = vpop.f32.mrb[16].mxu1 }
 0x122   : > { %822 = vst.msk [vmem:[%s1264_s18 + $0x1c] sm:$0xf] %vm814_vm3, %v1014_v63  ;;  %838 = vst.msk [vmem:[%s1264_s18 + $0x5c] sm:$0xf] %vm814_vm3, %v1030_v0  ;;  %v560_v3 = vadd.f32 %v1254_v47, %v559_v1  ;;  %v624_v4 = vadd.f32 %v1254_v47, %v623_v2  ;;  %v561_v5 = vpop.f32.mrb[17].mxu0  ;;  %v625_v6 = vpop.f32.mrb[17].mxu1 }
 0x123   : > { %v562_v7 = vpop.f32.mrb[18].mxu0  ;;  %v626_v8 = vpop.f32.mrb[18].mxu1 }
 0x124   : > { %v662_v9 = vmax.f32 %v560_v3, 0.0  ;;  %v678_v10 = vmax.f32 %v624_v4, 0.0  ;;  %v563_v11 = vadd.f32 %v1254_v47, %v562_v7  ;;  %v627_v12 = vadd.f32 %v1254_v47, %v626_v8  ;;  %v564_v13 = vpop.f32.mrb[19].mxu0  ;;  %v628_v14 = vpop.f32.mrb[19].mxu1 }
 0x126   : > { %v1015_v15 = vpack.c.bf16 %v662_v9, %v662_v9  ;;  %v1031_v16 = vpack.c.bf16 %v678_v10, %v678_v10  ;;  %v663_v17 = vmax.f32 %v563_v11, 0.0  ;;  %v679_v18 = vmax.f32 %v627_v12, 0.0 }
 0x128   : > { %823 = vst.msk [vmem:[%s1264_s18 + $0x20] sm:$0xf] %vm814_vm3, %v1015_v15  ;;  %839 = vst.msk [vmem:[%s1264_s18 + $0x60] sm:$0xf] %vm814_vm3, %v1031_v16  ;;  %v1016_v19 = vpack.c.bf16 %v663_v17, %v663_v17  ;;  %v1032_v20 = vpack.c.bf16 %v679_v18, %v679_v18 }
 0x129   : > { %v567_v21 = vpop.f32.mrb[20].mxu0  ;;  %v631_v22 = vpop.f32.mrb[20].mxu1 }
 0x12a   : > { %824 = vst.msk [vmem:[%s1264_s18 + $0x24] sm:$0xf] %vm814_vm3, %v1016_v19  ;;  %840 = vst.msk [vmem:[%s1264_s18 + $0x64] sm:$0xf] %vm814_vm3, %v1032_v20  ;;  %v568_v23 = vadd.f32 %v1254_v47, %v567_v21  ;;  %v632_v24 = vadd.f32 %v1254_v47, %v631_v22  ;;  %v569_v25 = vpop.f32.mrb[21].mxu0  ;;  %v633_v26 = vpop.f32.mrb[21].mxu1 }
 0x12b   : > { %v570_v27 = vpop.f32.mrb[22].mxu0  ;;  %v634_v28 = vpop.f32.mrb[22].mxu1 }
 0x12c   : > { %v664_v29 = vmax.f32 %v568_v23, 0.0  ;;  %v680_v30 = vmax.f32 %v632_v24, 0.0  ;;  %v571_v31 = vadd.f32 %v1254_v47, %v570_v27  ;;  %v635_v32 = vadd.f32 %v1254_v47, %v634_v28  ;;  %v572_v33 = vpop.f32.mrb[23].mxu0  ;;  %v636_v34 = vpop.f32.mrb[23].mxu1 }
 0x12e   : > { %v1017_v35 = vpack.c.bf16 %v664_v29, %v664_v29  ;;  %v1033_v36 = vpack.c.bf16 %v680_v30, %v680_v30  ;;  %v665_v37 = vmax.f32 %v571_v31, 0.0  ;;  %v681_v38 = vmax.f32 %v635_v32, 0.0 }
 0x130   : > { %825 = vst.msk [vmem:[%s1264_s18 + $0x28] sm:$0xf] %vm814_vm3, %v1017_v35  ;;  %841 = vst.msk [vmem:[%s1264_s18 + $0x68] sm:$0xf] %vm814_vm3, %v1033_v36  ;;  %v1018_v39 = vpack.c.bf16 %v665_v37, %v665_v37  ;;  %v1034_v40 = vpack.c.bf16 %v681_v38, %v681_v38 }
 0x131   : > { %v575_v41 = vpop.f32.mrb[24].mxu0  ;;  %v639_v42 = vpop.f32.mrb[24].mxu1 }
 0x132   : > { %826 = vst.msk [vmem:[%s1264_s18 + $0x2c] sm:$0xf] %vm814_vm3, %v1018_v39  ;;  %842 = vst.msk [vmem:[%s1264_s18 + $0x6c] sm:$0xf] %vm814_vm3, %v1034_v40  ;;  %v576_v43 = vadd.f32 %v1254_v47, %v575_v41  ;;  %v640_v44 = vadd.f32 %v1254_v47, %v639_v42  ;;  %v577_v45 = vpop.f32.mrb[25].mxu0  ;;  %v641_v46 = vpop.f32.mrb[25].mxu1 }
 0x133   : > { %v578_v48 = vpop.f32.mrb[26].mxu0  ;;  %v642_v49 = vpop.f32.mrb[26].mxu1 }
 0x134   : > { %v666_v50 = vmax.f32 %v576_v43, 0.0  ;;  %v682_v51 = vmax.f32 %v640_v44, 0.0  ;;  %v579_v52 = vadd.f32 %v1254_v47, %v578_v48  ;;  %v643_v53 = vadd.f32 %v1254_v47, %v642_v49  ;;  %v580_v54 = vpop.f32.mrb[27].mxu0  ;;  %v644_v55 = vpop.f32.mrb[27].mxu1 }
 0x136   : > { %v1019_v56 = vpack.c.bf16 %v666_v50, %v666_v50  ;;  %v1035_v57 = vpack.c.bf16 %v682_v51, %v682_v51  ;;  %v667_v58 = vmax.f32 %v579_v52, 0.0  ;;  %v683_v59 = vmax.f32 %v643_v53, 0.0 }
 0x138   : > { %827 = vst.msk [vmem:[%s1264_s18 + $0x30] sm:$0xf] %vm814_vm3, %v1019_v56  ;;  %843 = vst.msk [vmem:[%s1264_s18 + $0x70] sm:$0xf] %vm814_vm3, %v1035_v57  ;;  %v1020_v60 = vpack.c.bf16 %v667_v58, %v667_v58  ;;  %v1036_v61 = vpack.c.bf16 %v683_v59, %v683_v59 }
 0x139   : > { %v583_v62 = vpop.f32.mrb[28].mxu0  ;;  %v647_v63 = vpop.f32.mrb[28].mxu1 }
 0x13a   : > { %828 = vst.msk [vmem:[%s1264_s18 + $0x34] sm:$0xf] %vm814_vm3, %v1020_v60  ;;  %844 = vst.msk [vmem:[%s1264_s18 + $0x74] sm:$0xf] %vm814_vm3, %v1036_v61  ;;  %v584_v0 = vadd.f32 %v1254_v47, %v583_v62  ;;  %v648_v1 = vadd.f32 %v1254_v47, %v647_v63  ;;  %v585_v2 = vpop.f32.mrb[29].mxu0  ;;  %v649_v3 = vpop.f32.mrb[29].mxu1 }
 0x13b   : > { %v586_v4 = vpop.f32.mrb[30].mxu0  ;;  %v650_v5 = vpop.f32.mrb[30].mxu1 }
 0x13c   : > { %v668_v6 = vmax.f32 %v584_v0, 0.0  ;;  %v684_v7 = vmax.f32 %v648_v1, 0.0  ;;  %v587_v8 = vadd.f32 %v1254_v47, %v586_v4  ;;  %v651_v9 = vadd.f32 %v1254_v47, %v650_v5  ;;  %v588_v10 = vpop.f32.mrb[31].mxu0  ;;  %v652_v11 = vpop.f32.mrb[31].mxu1 }
 0x13e   : > { %v1021_v12 = vpack.c.bf16 %v668_v6, %v668_v6  ;;  %v1037_v13 = vpack.c.bf16 %v684_v7, %v684_v7  ;;  %v669_v14 = vmax.f32 %v587_v8, 0.0  ;;  %v685_v15 = vmax.f32 %v651_v9, 0.0 }
 0x140   : > { %829 = vst.msk [vmem:[%s1264_s18 + $0x38] sm:$0xf] %vm814_vm3, %v1021_v12  ;;  %845 = vst.msk [vmem:[%s1264_s18 + $0x78] sm:$0xf] %vm814_vm3, %v1037_v13  ;;  %v1022_v16 = vpack.c.bf16 %v669_v14, %v669_v14  ;;  %v1038_v17 = vpack.c.bf16 %v685_v15, %v685_v15 }
 0x142   : > { %830 = vst.msk [vmem:[%s1264_s18 + $0x3c] sm:$0xf] %vm814_vm3, %v1022_v16  ;;  %846 = vst.msk [vmem:[%s1264_s18 + $0x7c] sm:$0xf] %vm814_vm3, %v1038_v17 }
 0x143 PF: > { %s13_s12 = sadd.s32 1, %s1133_s12  }
 0x144   : > { %p10_p4 = scmp.ge.s32.totalorder %s13_s12, 4  }
 0x146   :  { %12 = sbr.rel (!%p10_p4) target bundleno = 1 (0x1), region = 62 }

// kernel: pretrained_image_encoding_forward.13
= control target key start
LH: loop header
LB: loop body
LE: loop exit
PB: predicated region body
PF: predicated region fallthrough
CT: control target
= control target key end

     0   :  { %s2456_s12 = smov 0   ;;  %s2458_s13 = smov 0   ;;  %s3018_s0 = inlined_call_operand.vmem [shape: bf16[2,102,64], index: 0, kind: input, shape index: {}]   ;;  %s3019_s1 = inlined_call_operand.vmem [shape: bf16[576,64], index: 1, kind: input, shape index: {}]   ;;  %s3020_s2 = inlined_call_operand.vmem [shape: f32[1,64], index: 2, kind: input, shape index: {}]   ;;  %s3021_s3 = inlined_call_operand.vmem [shape: bf16[2,80,64], index: 3, kind: output, shape index: {}]  }
   0x1   :  { %s2460_s14 = smov 0  }
   0x2 LB: > { %s25_s15 = sadd.s32 1, %s2428_s13  ;;  %p1852_p0 = scmp.ge.s32.totalorder %s2432_s14, 1  ;;  %s2432_s14 = sphi %s2460_s14, %s13_s14   ;;  %s2428_s13 = sphi %s2458_s13, %s3023_s13   ;;  %s2424_s12 = sphi %s2456_s12, %s3022_s12  }
   0x3   : > { %p27_p1 = scmp.ge.s32.totalorder %s25_s15, 2  ;;  %p151_p2 = scmp.lt.s32.totalorder %s2432_s14, 3 }
   0x5   : > { %s3025_s15 = smov (%p27_p1, %s25_s15), 0  ;;  %p152_p3 = pnand %p1852_p0, %p151_p2 }
   0x6   : > { %v2351_v0 = vld [vmem:[%s3019_s1 + $0x20] sm:$0xff] (!%p152_p3)   ;;  %v2434_v1 = vmov (!%p152_p3), 0.0   ;;  %v2352_v2 = vld [vmem:[%s3019_s1 + $0x28] sm:$0xff] (!%p152_p3)   ;;  %p179_p4 = scmp.lt.s32.totalorder (!%p152_p3), %s2424_s12, 1  ;;  %vm2435_vm0 = vmmov (!%p152_p3), 0   ;;  %v2353_v3 = vld [vmem:[%s3019_s1 + $0x30] sm:$0xff] (!%p152_p3)  }
   0x7   : > { %155 = sbr.rel (%p152_p3) target bundleno = 427 (0x1ab), region = 32  ;;  %2315 = vmatprep.subr.bf16.mxu1 (!%p152_p3), %v2434_v1  ;;  %2063 = vmatprep.subr.bf16.mxu0 (!%p152_p3), %v2434_v1  ;;  %v2354_v4 = vld [vmem:[%s3019_s1 + $0x38] sm:$0xff] (!%p152_p3)   ;;  %vm250_vm1 = vsmask.f32 (!%p152_p3), 7424  ;;  %vm319_vm2 = vcmask (!%p152_p3), 523264   ;;  %v2357_v21 = vld [vmem:[%s3019_s1] sm:$0xff] (!%p152_p3)  }
   0x8   : > { %2319 = vmatpush3.bf16.msra.mxu1 (!%p152_p3), %v2351_v0  ;;  %2064 = vmatpush3.bf16.msra.mxu0 (!%p152_p3), %v2351_v0  ;;  %v2362_v28 = vld [vmem:[%s3019_s1 + $0x40] sm:$0xff] (!%p152_p3)   ;;  %v2358_v31 = vld [vmem:[%s3019_s1 + $0x8] sm:$0xff] (!%p152_p3)   ;;  %v2363_v35 = vld [vmem:[%s3019_s1 + $0x10] sm:$0xff] (!%p152_p3)   ;;  %vm527_vm3 = vcmask (!%p152_p3), 1046528   ;;  %vm853_vm4 = vsmask.f32 (!%p152_p3), 6400 }
   0x9   : > { %2316 = vmatprep.subr.bf16.mxu1 (!%p152_p3), %v2434_v1  ;;  %2065 = vmatprep.subr.bf16.mxu0 (!%p152_p3), %v2434_v1  ;;  %v2364_v36 = vld [vmem:[%s3019_s1 + $0x48] sm:$0xff] (!%p152_p3)   ;;  %v2366_v43 = vld [vmem:[%s3019_s1 + $0x50] sm:$0xff] (!%p152_p3)   ;;  %v2367_v47 = vld [vmem:[%s3019_s1 + $0x18] sm:$0xff] (!%p152_p3)   ;;  %vm1041_vm5 = vcmask (!%p152_p3), 1045504   ;;  %vm1555_vm6 = vcmask (!%p152_p3), 1044480   ;;  %vm1756_vm8 = vcmask (!%p152_p3), 519168  }
   0xa   : > { %2079 = vmatprep.mubr.msk.bf16.mxu1 (!%p152_p3), %vm2435_vm0, %v2434_v1  ;;  %2071 = vmatprep.mubr.msk.bf16.mxu0 (!%p152_p3), %vm2435_vm0, %v2434_v1  ;;  %v2368_v48 = vld [vmem:[%s3019_s1 + $0x58] sm:$0xff] (!%p152_p3)   ;;  %v2371_v53 = vld [vmem:[%s3019_s1 + $0x80] sm:$0xff] (!%p152_p3)   ;;  %v2373_v55 = vld [vmem:[%s3019_s1 + $0x88] sm:$0xff] (!%p152_p3)   ;;  %vm1367_vm7 = vsmask.f32 (!%p152_p3), 5376 }
   0xb   : > { %v2370_v56 = vld [vmem:[%s3019_s1 + $0x60] sm:$0xff] (!%p152_p3)   ;;  %v2375_v60 = vld [vmem:[%s3019_s1 + $0x90] sm:$0xff] (!%p152_p3)   ;;  %v2372_v0 = vld [vmem:[%s3019_s1 + $0x68] sm:$0xff] (!%p152_p3)  }
   0xc   : > { %2320 = vmatpush3.bf16.msra.mxu1 (!%p152_p3), %v2352_v2  ;;  %2066 = vmatpush3.bf16.msra.mxu0 (!%p152_p3), %v2352_v2 }
   0xd   : > { %2317 = vmatprep.subr.bf16.mxu1 (!%p152_p3), %v2434_v1  ;;  %2067 = vmatprep.subr.bf16.mxu0 (!%p152_p3), %v2434_v1 }
   0xe   : > { %s3027_s12 = smov (!%p179_p4, %s2424_s12), 1 }
   0xf   : > { %s2323_s22 = smul.u32 52, %s3027_s12 }
  0x10   : > { %2321 = vmatpush3.bf16.msra.mxu1 %v2353_v3  ;;  %2068 = vmatpush3.bf16.msra.mxu0 %v2353_v3  ;;  %s2324_s26 = smul.u32 40, %s3027_s12 }
  0x11   : > { %s2502_s27 = scalar_lea.vmem %s3018_s0, %s2323_s22  ;;  %2318 = vmatprep.subr.bf16.mxu1 %v2434_v1  ;;  %2069 = vmatprep.subr.bf16.mxu0 %v2434_v1 }
  0x12   : > { %v2505_v5 = vld [vmem:[%s2502_s27 + $0x10] sm:$0xff]   ;;  %v2508_v6 = vld [vmem:[%s2502_s27 + $0x18] sm:$0xff]   ;;  %v195_v7 = vld [vmem:[%s2502_s27] sm:$0xf]  ;;  %s2971_s30 = scalar_lea.vmem %s3021_s3, %s2324_s26 }
  0x13   : > { %v2514_v8 = vld [vmem:[%s2502_s27 + $0x4] sm:$0xf]  ;;  %v267_v9 = vshll.u32 %v2505_v5, 16  ;;  %v271_v10 = vshrl.u32 %v2505_v5, 16  ;;  %v275_v11 = vshll.u32 %v2508_v6, 16  ;;  %v2523_v13 = vld [vmem:[%s2502_s27 + $0x8] sm:$0xff]  }
  0x14   : > { %v2520_v12 = vcombine.low %v195_v7, %v2514_v8  ;;  %v2526_v14 = vld [vmem:[%s2502_s27 + $0x20] sm:$0xff]   ;;  %2322 = vmatpush3.bf16.msra.mxu1 %v2354_v4  ;;  %2070 = vmatpush3.bf16.msra.mxu0 %v2354_v4  ;;  %v259_v19 = vshll.u32 %v2523_v13, 16  ;;  %v279_v23 = vshrl.u32 %v2508_v6, 16  ;;  %v263_v29 = vshrl.u32 %v2523_v13, 16  ;;  %v2377_v7 = vld [vmem:[%s3019_s1 + $0x98] sm:$0xff]  }
  0x15   : > { %v269_v15 = vrot.slane %v267_v9, 1  ;;  %v277_v16 = vrot.slane %v275_v11, 1  ;;  %2091 = vmatprep.subr.bf16.mxu1 %v2434_v1  ;;  %2119 = vmatprep.subr.bf16.mxu0 %v2434_v1  ;;  %v283_v24 = vshll.u32 %v2526_v14, 16  ;;  %v2545_v30 = vld [vmem:[%s2502_s27 + $0x28] ss:$0 sps:$4 sm:$0x11]  }
  0x16   : > { %v252_v17 = vshrl.u32 %v2520_v12, 16  ;;  %v254_v18 = vshll.u32 %v2520_v12, 16  ;;  %v261_v25 = vrot.slane %v259_v19, 1  ;;  %v515_v38 = vld [vmem:[%s2502_s27] sm:$0xe]  ;;  %v287_v40 = vshrl.u32 %v2526_v14, 16 }
  0x17   : > { %v273_v20 = vor.u32 %v271_v10, %v269_v15  ;;  %v281_v33 = vor.u32 %v279_v23, %v277_v16  ;;  %v285_v34 = vrot.slane %v283_v24, 1  ;;  %v291_v41 = vshll.u32 %v2545_v30, 16  ;;  %v2612_v57 = vld [vmem:[%s2502_s27 + $0x1c] sm:$0xff]   ;;  %v2615_v58 = vld [vmem:[%s2502_s27 + $0x24] sm:$0xff]   ;;  %v2374_v9 = vld [vmem:[%s3019_s1 + $0x70] sm:$0xff]  }
  0x18   : > { %v256_v22 = vrot.slane %v254_v18, 1  ;;  %v265_v37 = vor.u32 %v263_v29, %v261_v25  ;;  %v1879_v44 = vcombine.low %v515_v38, %v2514_v8  ;;  %v529_v50 = vrot.slane %v2523_v13, 1  ;;  %v2390_v63 = vld [vmem:[%s2502_s27 + $0x2c] ss:$0 sps:$4 sm:$0x11]  }
  0x19   : > { %v278_v26 = vsel %vm250_vm1, %v273_v20, %v277_v16  ;;  %v286_v39 = vsel %vm250_vm1, %v281_v33, %v285_v34  ;;  %v289_v45 = vor.u32 %v287_v40, %v285_v34  ;;  %v293_v46 = vrot.slane %v291_v41, 1  ;;  %v2675_v18 = vld [vmem:[%s2502_s27 + $0xc] sm:$0xff]  }
  0x1a   : > { %v257_v27 = vor.u32 %v256_v22, %v252_v17  ;;  %2080 = vmatmul.mubr.msk.bf16.vlgmr.msra.gmra.mrb[0].mxu1 %vm319_vm2, %v278_v26  ;;  %v270_v42 = vsel %vm250_vm1, %v265_v37, %v269_v15  ;;  %v528_v49 = vrot.slane %v1879_v44, 1  ;;  %v531_v54 = vrot.slane %v2505_v5, 1  ;;  %v2669_v15 = vld [vmem:[%s2502_s27 + $0x8] sm:$0xf] }
  0x1b   : > { %2092 = vmatpush3.bf16.msra.mxu1 %v2357_v21  ;;  %2083 = vmatprep.mubr.msk.bf16.mxu1 %vm2435_vm0, %v2434_v1  ;;  %v294_v51 = vsel %vm250_vm1, %v289_v45, %v293_v46  ;;  %v713_v61 = vrot.slane %v2612_v57, 1  ;;  %v715_v62 = vrot.slane %v2615_v58, 1  ;;  %v717_v3 = vrot.slane %v2390_v63, 1  ;;  %v2387_v46 = vld [vmem:[%s3019_s1 + $0xd0] sm:$0xff]  }
  0x1c   : > { %v262_v32 = vsel %vm250_vm1, %v257_v27, %v261_v25  ;;  %2093 = vmatprep.subr.bf16.mxu1 %v2434_v1  ;;  %v530_v52 = vsel %vm527_vm3, %v528_v49, %v529_v50  ;;  %v532_v59 = vsel %vm527_vm3, %v529_v50, %v531_v54  ;;  %v533_v4 = vrot.slane %v2508_v6, 1 }
  0x1d   : > { %2072 = vmatmul.mubr.msk.bf16.vlgmr.msra.gmra.mrb[0].mxu0 %vm319_vm2, %v262_v32  ;;  %v2635_v2 = vsel %vm527_vm3, %v713_v61, %v715_v62  ;;  %v2647_v8 = vsel %vm527_vm3, %v715_v62, %v717_v3  ;;  %v535_v11 = vrot.slane %v2526_v14, 1  ;;  %v537_v19 = vrot.slane %v2545_v30, 1  ;;  %v2389_v62 = vld [vmem:[%s3019_s1 + $0xb8] sm:$0xff]  }
  0x1e   : > { %2120 = vmatpush3.bf16.msra.mxu0 %v2362_v28  ;;  %2075 = vmatprep.mubr.msk.bf16.mxu0 %vm2435_vm0, %v2434_v1  ;;  %v534_v10 = vsel %vm527_vm3, %v531_v54, %v533_v4  ;;  %v863_v22 = vshrl.u32 %v2675_v18, 16  ;;  %v866_v23 = vshll.u32 %v2675_v18, 16  ;;  %v2689_v28 = vld [vmem:[%s2502_s27 + $0x14] sm:$0xff]   ;;  %v709_v37 = vrot.slane %v2675_v18, 1 }
  0x1f   : > { %2121 = vmatprep.subr.bf16.mxu0 %v2434_v1  ;;  %2094 = vmatpush3.bf16.msra.mxu1 %v2358_v31  ;;  %v536_v16 = vsel %vm527_vm3, %v533_v4, %v535_v11  ;;  %v538_v24 = vsel %vm527_vm3, %v535_v11, %v537_v19  ;;  %v872_v31 = vshrl.u32 %v2689_v28, 16  ;;  %v875_v32 = vshll.u32 %v2689_v28, 16  ;;  %v2386_v54 = vld [vmem:[%s3019_s1 + $0xb0] sm:$0xff]   ;;  %v1029_v19 = vld [vmem:[%s2502_s27 + $0x4] sm:$0xc] }
  0x20   : > { %2095 = vmatprep.subr.bf16.mxu1 %v2434_v1  ;;  %v865_v26 = vrot.slane %v863_v22, 1  ;;  %v868_v27 = vrot.slane %v866_v23, 2  ;;  %v881_v40 = vshrl.u32 %v2612_v57, 16  ;;  %v890_v50 = vshrl.u32 %v2615_v58, 16 }
  0x21   : > { %v874_v34 = vrot.slane %v872_v31, 1  ;;  %v1914_v22 = vcombine.low %v1029_v19, %v2669_v15  ;;  %v1045_v31 = vrot.slane %v2689_v28, 2 }
  0x22   : > { %2122 = vmatpush3.bf16.msra.mxu0 %v2364_v36  ;;  %2084 = vmatmul.mubr.msk.bf16.gmra.mrb[4].mxu1 %vm319_vm2, %v286_v39  ;;  %v869_v30 = vor.u32 %v868_v27, %v865_v26  ;;  %v2384_v39 = vld [vmem:[%s3019_s1 + $0xc8] sm:$0xff]   ;;  %v883_v44 = vrot.slane %v881_v40, 1 }
  0x23   : > { %2123 = vmatprep.subr.bf16.mxu0 %v2434_v1  ;;  %2096 = vmatpush3.bf16.msra.mxu1 %v2363_v35  ;;  %v877_v35 = vrot.slane %v875_v32, 2  ;;  %v2400_v26 = vld [vmem:[%s3019_s1 + $0x108] sm:$0xff]  }
  0x24   : > { %2087 = vmatprep.mubr.msk.bf16.mxu1 %vm2435_vm0, %v2434_v1  ;;  %2097 = vmatprep.subr.bf16.mxu1 %v2434_v1  ;;  %v2399_v32 = vld [vmem:[%s3019_s1 + $0xe8] sm:$0xff]  }
  0x25   : > { %2076 = vmatmul.mubr.msk.bf16.gmra.mrb[4].mxu0 %vm319_vm2, %v270_v42  ;;  %v878_v38 = vor.u32 %v877_v35, %v874_v34  ;;  %v2380_v42 = vld [vmem:[%s3019_s1 + $0xa0] sm:$0xff]   ;;  %v2402_v34 = vld [vmem:[%s3019_s1 + $0xf0] sm:$0xff]  }
  0x26   : > { %2124 = vmatpush3.bf16.msra.mxu0 %v2366_v43  ;;  %2127 = vmatprep.mubr.msk.bf16.mxu0 %vm2435_vm0, %v2434_v1 }
  0x27   : > { %2125 = vmatprep.subr.bf16.mxu0 %v2434_v1  ;;  %2098 = vmatpush3.bf16.msra.mxu1 %v2367_v47  ;;  %v879_v43 = vsel %vm853_vm4, %v869_v30, %v878_v38  ;;  %v711_v47 = vrot.slane %v2689_v28, 1 }
  0x28   : > { %2147 = vmatprep.subr.bf16.mxu1 %v2434_v1 }
  0x29   : > { %v714_v4 = vsel %vm527_vm3, %v711_v47, %v713_v61  ;;  %v1175_v61 = vld [vmem:[%s2502_s27 + $0x8] sm:$0xc] }
  0x2a   : > { %2126 = vmatpush3.bf16.msra.mxu0 %v2368_v48  ;;  %2088 = vmatmul.mubr.msk.bf16.gmra.mrb[8].mxu1 %vm319_vm2, %v294_v51  ;;  %v2383_v48 = vld [vmem:[%s3019_s1 + $0xa8] sm:$0xff]   ;;  %v893_v51 = vshll.u32 %v2615_v58, 16 }
  0x2b   : > { %2175 = vmatprep.subr.bf16.mxu0 %v2434_v1  ;;  %2099 = vmatprep.mubr.msk.bf16.mxu1 %vm2435_vm0, %v2434_v1 }
  0x2d   : > { %2128 = vmatmul.mubr.msk.bf16.vlgmr.msra.gmra.mrb[8].mxu0 %vm319_vm2, %v530_v52  ;;  %v2392_v52 = vld [vmem:[%s3019_s1 + $0xd8] sm:$0xff]  }
  0x2e   : > { %2176 = vmatpush3.bf16.msra.mxu0 %v2371_v53  ;;  %2131 = vmatprep.mubr.msk.bf16.mxu0 %vm2435_vm0, %v2434_v1  ;;  %v712_v53 = vsel %vm527_vm3, %v709_v37, %v711_v47 }
  0x2f   : > { %2177 = vmatprep.subr.bf16.mxu0 %v2434_v1 }
  0x32   : > { %2178 = vmatpush3.bf16.msra.mxu0 %v2373_v55  ;;  %2100 = vmatmul.mubr.msk.bf16.vlgmr.msra.gmra.mrb[12].mxu1 %vm319_vm2, %v2520_v12  ;;  %v2376_v12 = vld [vmem:[%s3019_s1 + $0x78] sm:$0xff]  }
  0x33   : > { %2179 = vmatprep.subr.bf16.mxu0 %v2434_v1  ;;  %2148 = vmatpush3.bf16.msra.mxu1 %v2370_v56  ;;  %v892_v56 = vrot.slane %v890_v50, 1 }
  0x34   : > { %2103 = vmatprep.mubr.msk.bf16.mxu1 %vm2435_vm0, %v2434_v1  ;;  %2149 = vmatprep.subr.bf16.mxu1 %v2434_v1 }
  0x35   : > { %2132 = vmatmul.mubr.msk.bf16.gmra.mrb[12].mxu0 %vm319_vm2, %v532_v59  ;;  %v895_v59 = vrot.slane %v893_v51, 2 }
  0x36   : > { %2135 = vmatprep.mubr.msk.bf16.mxu0 %vm2435_vm0, %v2434_v1  ;;  %2180 = vmatpush3.bf16.msra.mxu0 %v2375_v60  ;;  %v2751_v60 = vld [vmem:[%s2502_s27 + $0x2c] ss:$0 sps:$4 sm:$0x33]  }
  0x37   : > { %2181 = vmatprep.subr.bf16.mxu0 %v2434_v1  ;;  %2150 = vmatpush3.bf16.msra.mxu1 %v2372_v0  ;;  %v896_v63 = vor.u32 %v895_v59, %v892_v56  ;;  %v899_v0 = vshrl.u32 %v2751_v60, 16  ;;  %v902_v3 = vshll.u32 %v2751_v60, 16  ;;  %v1051_v47 = vrot.slane %v2751_v60, 2 }
  0x38   : > { %2151 = vmatprep.subr.bf16.mxu1 %v2434_v1 }
  0x3a   : > { %2182 = vmatpush3.bf16.msra.mxu0 %v2377_v7  ;;  %2104 = vmatmul.mubr.msk.bf16.gmra.mrb[16].mxu1 %vm319_vm2, %v2523_v13  ;;  %v661_v13 = vld [vmem:[%s2502_s27 + $0x4] sm:$0xe] }
  0x3b   : > { %2231 = vmatprep.subr.bf16.mxu0 %v2434_v1  ;;  %2107 = vmatprep.mubr.msk.bf16.mxu1 %vm2435_vm0, %v2434_v1  ;;  %v1889_v17 = vcombine.low %v661_v13, %v2669_v15 }
  0x3c   : > { %2152 = vmatpush3.bf16.msra.mxu1 %v2374_v9  ;;  %v901_v9 = vrot.slane %v899_v0, 1 }
  0x3d   : > { %2136 = vmatmul.mubr.msk.bf16.gmra.mrb[16].mxu0 %vm319_vm2, %v534_v10  ;;  %2153 = vmatprep.subr.bf16.mxu1 %v2434_v1  ;;  %v855_v20 = vshrl.u32 %v1889_v17, 16  ;;  %v858_v21 = vshll.u32 %v1889_v17, 16  ;;  %v708_v36 = vrot.slane %v1889_v17, 1  ;;  %v904_v10 = vrot.slane %v902_v3, 2  ;;  %v2786_v17 = vld [vmem:[%s2502_s27 + $0x10] sm:$0xff]  }
  0x3e   : > { %2139 = vmatprep.mubr.msk.bf16.mxu0 %vm2435_vm0, %v2434_v1  ;;  %v1380_v50 = vshll.u32 %v2786_v17, 16 }
  0x3f   : > { %v857_v25 = vrot.slane %v855_v20, 1  ;;  %v710_v41 = vsel %vm527_vm3, %v708_v36, %v709_v37  ;;  %v905_v11 = vor.u32 %v904_v10, %v901_v9  ;;  %v2854_v36 = vld [vmem:[%s2502_s27 + $0x28] sm:$0xff]   ;;  %v1047_v37 = vrot.slane %v2612_v57, 2 }
  0x40   : > { %2154 = vmatpush3.bf16.msra.mxu1 %v2376_v12  ;;  %v2779_v12 = vld [vmem:[%s2502_s27 + $0xc] sm:$0xf]  ;;  %v1382_v59 = vrot.slane %v1380_v50, 3 }
  0x41   : > { %2203 = vmatprep.subr.bf16.mxu1 %v2434_v1  ;;  %v906_v13 = vsel %vm853_vm4, %v896_v63, %v905_v11  ;;  %v1048_v40 = vsel %vm1041_vm5, %v1045_v31, %v1047_v37 }
  0x42   : > { %2108 = vmatmul.mubr.msk.bf16.gmra.mrb[20].mxu1 %vm319_vm2, %v2505_v5  ;;  %v860_v5 = vrot.slane %v858_v21, 2  ;;  %v1223_v21 = vrot.slane %v2786_v17, 2 }
  0x43   : > { %2111 = vmatprep.mubr.msk.bf16.mxu1 %vm2435_vm0, %v2434_v1 }
  0x44   : > { %v861_v29 = vor.u32 %v860_v5, %v857_v25  ;;  %v1042_v25 = vrot.slane %v1914_v22, 2  ;;  %v1043_v5 = vrot.slane %v2675_v18, 2  ;;  %v2396_v18 = vld [vmem:[%s3019_s1 + $0xe0] sm:$0xff]  }
  0x45   : > { %2140 = vmatmul.mubr.msk.bf16.gmra.mrb[20].mxu0 %vm319_vm2, %v536_v16  ;;  %v2783_v16 = vcombine.low %v1175_v61, %v2779_v12 }
  0x46   : > { %2143 = vmatprep.mubr.msk.bf16.mxu0 %vm2435_vm0, %v2434_v1  ;;  %v870_v33 = vsel %vm853_vm4, %v861_v29, %v869_v30  ;;  %v2825_v29 = vld [vmem:[%s2502_s27 + $0x20] sm:$0xff]   ;;  %v2403_v30 = vld [vmem:[%s3019_s1 + $0x110] sm:$0xff]   ;;  %v1046_v28 = vsel %vm1041_vm5, %v1043_v5, %v1045_v31 }
  0x47   : > { %v1222_v20 = vrot.slane %v2783_v16, 2 }
  0x49   : > { %v1224_v23 = vsel %vm1041_vm5, %v1222_v20, %v1223_v21 }
  0x4a   : > { %2112 = vmatmul.mubr.msk.bf16.gmra.mrb[24].mxu1 %vm319_vm2, %v2508_v6  ;;  %v2381_v6 = vld [vmem:[%s3019_s1 + $0xc0] sm:$0xff]  }
  0x4b   : > { %2115 = vmatprep.mubr.msk.bf16.mxu1 %vm2435_vm0, %v2434_v1 }
  0x4d   : > { %2144 = vmatmul.mubr.msk.bf16.gmra.mrb[24].mxu0 %vm319_vm2, %v538_v24  ;;  %v2804_v24 = vld [vmem:[%s2502_s27 + $0x18] sm:$0xff]  }
  0x4e   : > { %2183 = vmatprep.mubr.msk.bf16.mxu0 %vm2435_vm0, %v2434_v1  ;;  %v1225_v15 = vrot.slane %v2804_v24, 2  ;;  %v1386_v0 = vshrl.u32 %v2804_v24, 16  ;;  %v1389_v3 = vshll.u32 %v2804_v24, 16 }
  0x50   : > { %v1226_v27 = vsel %vm1041_vm5, %v1223_v21, %v1225_v15  ;;  %v1388_v9 = vrot.slane %v1386_v0, 2  ;;  %v1391_v10 = vrot.slane %v1389_v3, 3 }
  0x52   : > { %2116 = vmatmul.mubr.msk.bf16.gmra.mrb[28].mxu1 %vm319_vm2, %v2526_v14  ;;  %v884_v14 = vshll.u32 %v2612_v57, 16  ;;  %v1392_v61 = vor.u32 %v1391_v10, %v1388_v9 }
  0x53   : > { %2155 = vmatprep.mubr.msk.bf16.mxu1 %vm2435_vm0, %v2434_v1 }
  0x54   : > { %v886_v45 = vrot.slane %v884_v14, 2  ;;  %v2406_v14 = vld [vmem:[%s2502_s27 + $0x30] ss:$0 sps:$4 sm:$0x33]  }
  0x55   : > { %2184 = vmatmul.mubr.msk.bf16.vlgmr.msra.gmra.mrb[28].mxu0 %vm319_vm2, %v870_v33  ;;  %v1227_v33 = vrot.slane %v2825_v29, 2 }
  0x56   : > { %2232 = vmatpush3.bf16.msra.mxu0 %v2381_v6  ;;  %2187 = vmatprep.mubr.msk.bf16.mxu0 %vm2435_vm0, %v2434_v1  ;;  %v887_v49 = vor.u32 %v886_v45, %v883_v44  ;;  %v2407_v6 = vld [vmem:[%s3019_s1 + $0x118] sm:$0xff]  }
  0x57   : > { %2233 = vmatprep.subr.bf16.mxu0 %v2434_v1  ;;  %v1228_v35 = vsel %vm1041_vm5, %v1225_v15, %v1227_v33 }
  0x58   : > { %v888_v55 = vsel %vm853_vm4, %v878_v38, %v887_v49  ;;  %v897_v7 = vsel %vm853_vm4, %v887_v49, %v896_v63  ;;  %v2405_v38 = vld [vmem:[%s3019_s1 + $0xf8] sm:$0xff]   ;;  %v1377_v49 = vshrl.u32 %v2786_v17, 16 }
  0x5a   : > { %2234 = vmatpush3.bf16.msra.mxu0 %v2384_v39  ;;  %2156 = vmatmul.mubr.msk.bf16.vlgmr.msra.gmra.mrb[32].mxu1 %vm319_vm2, %v710_v41  ;;  %v1229_v39 = vrot.slane %v2854_v36, 2  ;;  %v1049_v41 = vrot.slane %v2615_v58, 2  ;;  %v1369_v58 = vshrl.u32 %v2783_v16, 16  ;;  %v1379_v56 = vrot.slane %v1377_v49, 2 }
  0x5b   : > { %2235 = vmatprep.subr.bf16.mxu0 %v2434_v1  ;;  %2204 = vmatpush3.bf16.msra.mxu1 %v2380_v42  ;;  %v1231_v42 = vrot.slane %v2406_v14, 2 }
  0x5c   : > { %2159 = vmatprep.mubr.msk.bf16.mxu1 %vm2435_vm0, %v2434_v1  ;;  %2205 = vmatprep.subr.bf16.mxu1 %v2434_v1  ;;  %v1230_v57 = vsel %vm1041_vm5, %v1227_v33, %v1229_v39  ;;  %v1050_v44 = vsel %vm1041_vm5, %v1047_v37, %v1049_v41  ;;  %v1383_v63 = vor.u32 %v1382_v59, %v1379_v56 }
  0x5d   : > { %2188 = vmatmul.mubr.msk.bf16.gmra.mrb[32].mxu0 %vm319_vm2, %v879_v43  ;;  %v1543_v43 = vld [vmem:[%s2502_s27 + $0x8] sm:$0x8]  ;;  %v1232_v45 = vsel %vm1041_vm5, %v1229_v39, %v1231_v42 }
  0x5e   : > { %2191 = vmatprep.mubr.msk.bf16.mxu0 %vm2435_vm0, %v2434_v1  ;;  %2236 = vmatpush3.bf16.msra.mxu0 %v2387_v46  ;;  %v1949_v46 = vcombine.low %v1543_v43, %v2779_v12  ;;  %v1395_v12 = vshrl.u32 %v2825_v29, 16 }
  0x5f   : > { %2237 = vmatprep.subr.bf16.mxu0 %v2434_v1  ;;  %2206 = vmatpush3.bf16.msra.mxu1 %v2383_v48  ;;  %v1372_v48 = vshll.u32 %v2783_v16, 16  ;;  %v1561_v16 = vrot.slane %v2825_v29, 3 }
  0x60   : > { %2207 = vmatprep.subr.bf16.mxu1 %v2434_v1  ;;  %v1556_v51 = vrot.slane %v1949_v46, 3  ;;  %v1397_v19 = vrot.slane %v1395_v12, 2 }
  0x62   : > { %2238 = vmatpush3.bf16.msra.mxu0 %v2392_v52  ;;  %2160 = vmatmul.mubr.msk.bf16.gmra.mrb[36].mxu1 %vm319_vm2, %v712_v53  ;;  %v1557_v52 = vrot.slane %v2786_v17, 3  ;;  %v1052_v53 = vsel %vm1041_vm5, %v1049_v41, %v1051_v47  ;;  %v1393_v17 = vsel %vm1367_vm7, %v1383_v63, %v1392_v61 }
  0x63   : > { %2287 = vmatprep.subr.bf16.mxu0 %v2434_v1  ;;  %2163 = vmatprep.mubr.msk.bf16.mxu1 %vm2435_vm0, %v2434_v1 }
  0x64   : > { %2208 = vmatpush3.bf16.msra.mxu1 %v2386_v54  ;;  %v1371_v54 = vrot.slane %v1369_v58, 2  ;;  %v1558_v60 = vsel %vm1555_vm6, %v1556_v51, %v1557_v52 }
  0x65   : > { %2192 = vmatmul.mubr.msk.bf16.gmra.mrb[36].mxu0 %vm319_vm2, %v888_v55  ;;  %2209 = vmatprep.subr.bf16.mxu1 %v2434_v1  ;;  %v1374_v55 = vrot.slane %v1372_v48, 3 }
  0x66   : > { %2195 = vmatprep.mubr.msk.bf16.mxu0 %vm2435_vm0, %v2434_v1 }
  0x68   : > { %2210 = vmatpush3.bf16.msra.mxu1 %v2389_v62  ;;  %v1375_v62 = vor.u32 %v1374_v55, %v1371_v54 }
  0x69   : > { %2259 = vmatprep.subr.bf16.mxu1 %v2434_v1 }
  0x6a   : > { %2164 = vmatmul.mubr.msk.bf16.gmra.mrb[40].mxu1 %vm319_vm2, %v714_v4  ;;  %v1559_v4 = vrot.slane %v2804_v24, 3  ;;  %v1563_v24 = vrot.slane %v2854_v36, 3 }
  0x6b   : > { %2167 = vmatprep.mubr.msk.bf16.mxu1 %vm2435_vm0, %v2434_v1 }
  0x6c   : > { %v1560_v11 = vsel %vm1555_vm6, %v1557_v52, %v1559_v4  ;;  %v1562_v21 = vsel %vm1555_vm6, %v1559_v4, %v1561_v16 }
  0x6d   : > { %2196 = vmatmul.mubr.msk.bf16.gmra.mrb[40].mxu0 %vm319_vm2, %v897_v7  ;;  %v1384_v7 = vsel %vm1367_vm7, %v1375_v62, %v1383_v63 }
  0x6e   : > { %2199 = vmatprep.mubr.msk.bf16.mxu0 %vm2435_vm0, %v2434_v1 }
  0x72   : > { %2168 = vmatmul.mubr.msk.bf16.gmra.mrb[44].mxu1 %vm319_vm2, %v2635_v2  ;;  %v2397_v2 = vld [vmem:[%s3019_s1 + $0x100] sm:$0xff]  }
  0x73   : > { %2171 = vmatprep.mubr.msk.bf16.mxu1 %vm2435_vm0, %v2434_v1 }
  0x75   : > { %2200 = vmatmul.mubr.msk.bf16.gmra.mrb[44].mxu0 %vm319_vm2, %v906_v13  ;;  %v1398_v13 = vshll.u32 %v2825_v29, 16 }
  0x76   : > { %2239 = vmatprep.mubr.msk.bf16.mxu0 %vm2435_vm0, %v2434_v1 }
  0x77   : > { %v1400_v20 = vrot.slane %v1398_v13, 3 }
  0x79   : > { %v1401_v22 = vor.u32 %v1400_v20, %v1397_v19 }
  0x7a   : > { %2172 = vmatmul.mubr.msk.bf16.gmra.mrb[48].mxu1 %vm319_vm2, %v2647_v8  ;;  %v1044_v8 = vsel %vm1041_vm5, %v1042_v25, %v1043_v5 }
  0x7b   : > { %2211 = vmatprep.mubr.msk.bf16.mxu1 %vm2435_vm0, %v2434_v1  ;;  %v1402_v25 = vsel %vm1367_vm7, %v1392_v61, %v1401_v22 }
  0x7d   : > { %2240 = vmatmul.mubr.msk.bf16.vlgmr.msra.gmra.mrb[48].mxu0 %vm319_vm2, %v1224_v23  ;;  %v1404_v23 = vshrl.u32 %v2854_v36, 16 }
  0x7e   : > { %2288 = vmatpush3.bf16.msra.mxu0 %v2397_v2  ;;  %2243 = vmatprep.mubr.msk.bf16.mxu0 %vm2435_vm0, %v2434_v1  ;;  %v1407_v2 = vshll.u32 %v2854_v36, 16 }
  0x7f   : > { %2289 = vmatprep.subr.bf16.mxu0 %v2434_v1  ;;  %v1406_v5 = vrot.slane %v1404_v23, 2 }
  0x80   : > { %v1409_v15 = vrot.slane %v1407_v2, 3 }
  0x82   : > { %2290 = vmatpush3.bf16.msra.mxu0 %v2400_v26  ;;  %2212 = vmatmul.mubr.msk.bf16.vlgmr.msra.gmra.mrb[52].mxu1 %vm319_vm2, %v1044_v8  ;;  %v2409_v26 = vld [vmem:[%s2502_s27 + $0x30] ss:$0 sps:$4 sm:$0x77]   ;;  %v1564_v8 = vsel %vm1555_vm6, %v1561_v16, %v1563_v24 }
  0x83   : > { %2291 = vmatprep.subr.bf16.mxu0 %v2434_v1  ;;  %2260 = vmatpush3.bf16.msra.mxu1 %v2396_v18  ;;  %v1410_v18 = vor.u32 %v1409_v15, %v1406_v5  ;;  %v1416_v29 = vshll.u32 %v2409_v26, 16 }
  0x84   : > { %2215 = vmatprep.mubr.msk.bf16.mxu1 %vm2435_vm0, %v2434_v1  ;;  %2261 = vmatprep.subr.bf16.mxu1 %v2434_v1 }
  0x85   : > { %2244 = vmatmul.mubr.msk.bf16.gmra.mrb[52].mxu0 %vm319_vm2, %v1226_v27  ;;  %v1413_v27 = vshrl.u32 %v2409_v26, 16  ;;  %v1411_v31 = vsel %vm1367_vm7, %v1401_v22, %v1410_v18  ;;  %v1418_v33 = vrot.slane %v1416_v29, 3 }
  0x86   : > { %2247 = vmatprep.mubr.msk.bf16.mxu0 %vm2435_vm0, %v2434_v1  ;;  %2292 = vmatpush3.bf16.msra.mxu0 %v2403_v30  ;;  %v1565_v30 = vrot.slane %v2409_v26, 3 }
  0x87   : > { %2293 = vmatprep.subr.bf16.mxu0 %v2434_v1  ;;  %2262 = vmatpush3.bf16.msra.mxu1 %v2399_v32  ;;  %v1415_v32 = vrot.slane %v1413_v27, 2 }
  0x88   : > { %2263 = vmatprep.subr.bf16.mxu1 %v2434_v1 }
  0x8a   : > { %2294 = vmatpush3.bf16.msra.mxu0 %v2407_v6  ;;  %2216 = vmatmul.mubr.msk.bf16.gmra.mrb[56].mxu1 %vm319_vm2, %v1046_v28  ;;  %v1566_v6 = vsel %vm1555_vm6, %v1563_v24, %v1565_v30  ;;  %v1419_v28 = vor.u32 %v1418_v33, %v1415_v32 }
  0x8b   : > { %2219 = vmatprep.mubr.msk.bf16.mxu1 %vm2435_vm0, %v2434_v1  ;;  %2264 = vmatpush3.bf16.msra.mxu1 %v2402_v34 }
  0x8c   : > { %2265 = vmatprep.subr.bf16.mxu1 %v2434_v1  ;;  %v1420_v34 = vsel %vm1367_vm7, %v1410_v18, %v1419_v28 }
  0x8d   : > { %2248 = vmatmul.mubr.msk.bf16.gmra.mrb[56].mxu0 %vm319_vm2, %v1228_v35 }
  0x8e   : > { %2251 = vmatprep.mubr.msk.bf16.mxu0 %vm2435_vm0, %v2434_v1 }
  0x8f   : > { %2266 = vmatpush3.bf16.msra.mxu1 %v2405_v38 }
  0x92   : > { %2220 = vmatmul.mubr.msk.bf16.gmra.mrb[60].mxu1 %vm319_vm2, %v1048_v40 }
  0x93   : > { %2223 = vmatprep.mubr.msk.bf16.mxu1 %vm2435_vm0, %v2434_v1 }
  0x95   : > { %2252 = vmatmul.mubr.msk.bf16.gmra.mrb[60].mxu0 %vm319_vm2, %v1230_v57 }
  0x96   : > { %2255 = vmatprep.mubr.msk.bf16.mxu0 %vm2435_vm0, %v2434_v1 }
  0x9a   : > { %2224 = vmatmul.mubr.msk.bf16.gmra.mrb[64].mxu1 %vm319_vm2, %v1050_v44 }
  0x9b   : > { %2227 = vmatprep.mubr.msk.bf16.mxu1 %vm2435_vm0, %v2434_v1 }
  0x9d   : > { %2256 = vmatmul.mubr.msk.bf16.gmra.mrb[64].mxu0 %vm319_vm2, %v1232_v45 }
  0x9e   : > { %2295 = vmatprep.mubr.msk.bf16.mxu0 %vm2435_vm0, %v2434_v1 }
  0xa2   : > { %2228 = vmatmul.mubr.msk.bf16.gmra.mrb[68].mxu1 %vm319_vm2, %v1052_v53 }
  0xa3   : > { %2267 = vmatprep.mubr.msk.bf16.mxu1 %vm2435_vm0, %v2434_v1 }
  0xa5   : > { %2296 = vmatmul.mubr.msk.bf16.vlgmr.msra.gmra.mrb[68].mxu0 %vm319_vm2, %v1558_v60 }
  0xa6   : > { %2299 = vmatprep.mubr.msk.bf16.mxu0 %vm2435_vm0, %v2434_v1 }
  0xaa   : > { %2268 = vmatmul.mubr.msk.bf16.vlgmr.msra.gmra.mrb[72].mxu1 %vm319_vm2, %v1384_v7 }
  0xab   : > { %2271 = vmatprep.mubr.msk.bf16.mxu1 %vm2435_vm0, %v2434_v1 }
  0xad   : > { %2300 = vmatmul.mubr.msk.bf16.gmra.mrb[72].mxu0 %vm319_vm2, %v1560_v11 }
  0xae   : > { %2303 = vmatprep.mubr.msk.bf16.mxu0 %vm2435_vm0, %v2434_v1 }
  0xb2   : > { %2272 = vmatmul.mubr.msk.bf16.gmra.mrb[76].mxu1 %vm319_vm2, %v1393_v17 }
  0xb3   : > { %2275 = vmatprep.mubr.msk.bf16.mxu1 %vm2435_vm0, %v2434_v1 }
  0xb5   : > { %2304 = vmatmul.mubr.msk.bf16.gmra.mrb[76].mxu0 %vm319_vm2, %v1562_v21 }
  0xb6   : > { %2307 = vmatprep.mubr.msk.bf16.mxu0 %vm2435_vm0, %v2434_v1 }
  0xba   : > { %2276 = vmatmul.mubr.msk.bf16.gmra.mrb[80].mxu1 %vm319_vm2, %v1402_v25 }
  0xbb   : > { %2279 = vmatprep.mubr.msk.bf16.mxu1 %vm2435_vm0, %v2434_v1 }
  0xbd   : > { %2308 = vmatmul.mubr.msk.bf16.gmra.mrb[80].mxu0 %vm319_vm2, %v1564_v8 }
  0xbe   : > { %2311 = vmatprep.mubr.msk.bf16.mxu0 %vm2435_vm0, %v2434_v1 }
  0xc2   : > { %2280 = vmatmul.mubr.msk.bf16.gmra.mrb[84].mxu1 %vm319_vm2, %v1411_v31 }
  0xc3   : > { %2283 = vmatprep.mubr.msk.bf16.mxu1 %vm2435_vm0, %v2434_v1 }
  0xc5   : > { %2312 = vmatmul.mubr.msk.bf16.gmra.mrb[84].mxu0 %vm319_vm2, %v1566_v6 }
  0xca   : > { %2284 = vmatmul.mubr.msk.bf16.gmra.mrb[88].mxu1 %vm319_vm2, %v1420_v34 }
  0xed   : > { %v385_v35 = vpop.f32.mrb[0].mxu1 }
  0xee   : > { %v2081_v36 = vpop.f32.mrb[1].mxu1 }
  0xef   : > { %v388_v37 = vpop.f32.mrb[2].mxu1 }
  0xf0   : > { %v369_v38 = vpop.f32.mrb[0].mxu0  ;;  %v2082_v39 = vpop.f32.mrb[3].mxu1 }
  0xf1   : > { %v2073_v40 = vpop.f32.mrb[1].mxu0 }
  0xf2   : > { %v372_v57 = vpop.f32.mrb[2].mxu0 }
  0xf3   : > { %v2074_v14 = vpop.f32.mrb[3].mxu0 }
  0xf5   : > { %v393_v41 = vpop.f32.mrb[4].mxu1 }
  0xf6   : > { %v2085_v42 = vpop.f32.mrb[5].mxu1 }
  0xf7   : > { %v396_v43 = vpop.f32.mrb[6].mxu1 }
  0xf8   : > { %v377_v44 = vpop.f32.mrb[4].mxu0  ;;  %v2086_v1 = vpop.f32.mrb[7].mxu1 }
  0xf9   : > { %v2077_v45 = vpop.f32.mrb[5].mxu0 }
  0xfa   : > { %v380_v46 = vpop.f32.mrb[6].mxu0 }
  0xfb   : > { %v2078_v47 = vpop.f32.mrb[7].mxu0 }
  0xfd   : > { %v401_v58 = vpop.f32.mrb[8].mxu1 }
  0xfe   : > { %v2089_v48 = vpop.f32.mrb[9].mxu1 }
  0xff   : > { %v404_v49 = vpop.f32.mrb[10].mxu1 }
 0x100   : > { %v612_v50 = vpop.f32.mrb[8].mxu0  ;;  %v2090_v51 = vpop.f32.mrb[11].mxu1 }
 0x101   : > { %v2129_v52 = vpop.f32.mrb[9].mxu0 }
 0x102   : > { %v615_v53 = vpop.f32.mrb[10].mxu0 }
 0x103   : > { %v2130_v54 = vpop.f32.mrb[11].mxu0 }
 0x105   : > { %v476_v55 = vpop.f32.mrb[12].mxu1 }
 0x106   : > { %v477_v56 = vadd.f32 %v476_v55, %v369_v38  ;;  %v2101_v59 = vpop.f32.mrb[13].mxu1 }
 0x107   : > { %v479_v60 = vpop.f32.mrb[14].mxu1 }
 0x108   : > { %v620_v62 = vpop.f32.mrb[12].mxu0  ;;  %v651_v63 = vadd.f32 %v612_v50, %v477_v56  ;;  %v480_v0 = vadd.f32 %v479_v60, %v372_v57  ;;  %v2102_v3 = vpop.f32.mrb[15].mxu1 }
 0x109   : > { %v2133_v4 = vpop.f32.mrb[13].mxu0 }
 0x10a   : > { %v623_v7 = vpop.f32.mrb[14].mxu0  ;;  %v652_v9 = vadd.f32 %v615_v53, %v480_v0 }
 0x10b   : > { %v2134_v10 = vpop.f32.mrb[15].mxu0 }
 0x10d   : > { %v484_v11 = vpop.f32.mrb[16].mxu1 }
 0x10e   : > { %v485_v61 = vadd.f32 %v484_v11, %v377_v44  ;;  %v2105_v12 = vpop.f32.mrb[17].mxu1 }
 0x10f   : > { %v487_v13 = vpop.f32.mrb[18].mxu1 }
 0x110   : > { %v628_v16 = vpop.f32.mrb[16].mxu0  ;;  %v653_v17 = vadd.f32 %v620_v62, %v485_v61  ;;  %v488_v19 = vadd.f32 %v487_v13, %v380_v46  ;;  %v2106_v20 = vpop.f32.mrb[19].mxu1 }
 0x111   : > { %v2137_v21 = vpop.f32.mrb[17].mxu0 }
 0x112   : > { %v631_v22 = vpop.f32.mrb[18].mxu0  ;;  %v654_v23 = vadd.f32 %v623_v7, %v488_v19 }
 0x113   : > { %v2138_v2 = vpop.f32.mrb[19].mxu0 }
 0x115   : > { %v492_v24 = vpop.f32.mrb[20].mxu1 }
 0x116   : > { %v493_v25 = vadd.f32 %v492_v24, %v385_v35  ;;  %v2109_v5 = vpop.f32.mrb[21].mxu1 }
 0x117   : > { %v495_v15 = vpop.f32.mrb[22].mxu1 }
 0x118   : > { %v636_v26 = vpop.f32.mrb[20].mxu0  ;;  %v655_v8 = vadd.f32 %v628_v16, %v493_v25  ;;  %v496_v18 = vadd.f32 %v495_v15, %v388_v37  ;;  %v2110_v27 = vpop.f32.mrb[23].mxu1 }
 0x119   : > { %v2141_v29 = vpop.f32.mrb[21].mxu0 }
 0x11a   : > { %v639_v30 = vpop.f32.mrb[22].mxu0  ;;  %v656_v31 = vadd.f32 %v631_v22, %v496_v18 }
 0x11b   : > { %v2142_v32 = vpop.f32.mrb[23].mxu0 }
 0x11d   : > { %v500_v33 = vpop.f32.mrb[24].mxu1 }
 0x11e   : > { %v501_v6 = vadd.f32 %v500_v33, %v393_v41  ;;  %v2113_v28 = vpop.f32.mrb[25].mxu1 }
 0x11f   : > { %v503_v34 = vpop.f32.mrb[26].mxu1 }
 0x120   : > { %v644_v36 = vpop.f32.mrb[24].mxu0  ;;  %v657_v38 = vadd.f32 %v636_v26, %v501_v6  ;;  %v504_v39 = vadd.f32 %v503_v34, %v396_v43  ;;  %v2114_v40 = vpop.f32.mrb[27].mxu1 }
 0x121   : > { %v2145_v57 = vpop.f32.mrb[25].mxu0 }
 0x122   : > { %v647_v35 = vpop.f32.mrb[26].mxu0  ;;  %v658_v14 = vadd.f32 %v639_v30, %v504_v39 }
 0x123   : > { %v2146_v42 = vpop.f32.mrb[27].mxu0 }
 0x125   : > { %v508_v44 = vpop.f32.mrb[28].mxu1 }
 0x126   : > { %v509_v1 = vadd.f32 %v508_v44, %v401_v58  ;;  %v2117_v37 = vpop.f32.mrb[29].mxu1 }
 0x127   : > { %v511_v45 = vpop.f32.mrb[30].mxu1 }
 0x128   : > { %v980_v46 = vpop.f32.mrb[28].mxu0  ;;  %v659_v47 = vadd.f32 %v644_v36, %v509_v1  ;;  %v512_v48 = vadd.f32 %v511_v45, %v404_v49  ;;  %v2118_v50 = vpop.f32.mrb[31].mxu1 }
 0x129   : > { %v2185_v51 = vpop.f32.mrb[29].mxu0 }
 0x12a   : > { %v983_v41 = vpop.f32.mrb[30].mxu0  ;;  %v660_v52 = vadd.f32 %v647_v35, %v512_v48 }
 0x12b   : > { %v2186_v53 = vpop.f32.mrb[31].mxu0 }
 0x12d   : > { %v792_v54 = vpop.f32.mrb[32].mxu1 }
 0x12e   : > { %v831_v55 = vadd.f32 %v792_v54, %v651_v63  ;;  %v2157_v43 = vpop.f32.mrb[33].mxu1 }
 0x12f   : > { %v795_v56 = vpop.f32.mrb[34].mxu1 }
 0x130   : > { %v988_v59 = vpop.f32.mrb[32].mxu0  ;;  %v1019_v60 = vadd.f32 %v980_v46, %v831_v55  ;;  %v832_v62 = vadd.f32 %v795_v56, %v652_v9  ;;  %v2158_v0 = vpop.f32.mrb[35].mxu1 }
 0x131   : > { %v2189_v3 = vpop.f32.mrb[33].mxu0 }
 0x132   : > { %v991_v58 = vpop.f32.mrb[34].mxu0  ;;  %v1020_v4 = vadd.f32 %v983_v41, %v832_v62 }
 0x133   : > { %v2190_v7 = vpop.f32.mrb[35].mxu0 }
 0x135   : > { %v800_v10 = vpop.f32.mrb[36].mxu1 }
 0x136   : > { %v833_v11 = vadd.f32 %v800_v10, %v653_v17  ;;  %v2161_v49 = vpop.f32.mrb[37].mxu1 }
 0x137   : > { %v803_v61 = vpop.f32.mrb[38].mxu1 }
 0x138   : > { %v996_v12 = vpop.f32.mrb[36].mxu0  ;;  %v1021_v13 = vadd.f32 %v988_v59, %v833_v11  ;;  %v834_v16 = vadd.f32 %v803_v61, %v654_v23  ;;  %v2162_v19 = vpop.f32.mrb[39].mxu1 }
 0x139   : > { %v2193_v20 = vpop.f32.mrb[37].mxu0 }
 0x13a   : > { %v999_v63 = vpop.f32.mrb[38].mxu0  ;;  %v1022_v21 = vadd.f32 %v991_v58, %v834_v16 }
 0x13b   : > { %v2194_v22 = vpop.f32.mrb[39].mxu0 }
 0x13d   : > { %v808_v2 = vpop.f32.mrb[40].mxu1 }
 0x13e   : > { %v835_v24 = vadd.f32 %v808_v2, %v655_v8  ;;  %v2165_v9 = vpop.f32.mrb[41].mxu1 }
 0x13f   : > { %v811_v25 = vpop.f32.mrb[42].mxu1 }
 0x140   : > { %v1004_v5 = vpop.f32.mrb[40].mxu0  ;;  %v1023_v15 = vadd.f32 %v996_v12, %v835_v24  ;;  %v836_v26 = vadd.f32 %v811_v25, %v656_v31  ;;  %v2166_v18 = vpop.f32.mrb[43].mxu1 }
 0x141   : > { %v2197_v27 = vpop.f32.mrb[41].mxu0 }
 0x142   : > { %v1007_v17 = vpop.f32.mrb[42].mxu0  ;;  %v1024_v29 = vadd.f32 %v999_v63, %v836_v26 }
 0x143   : > { %v2198_v30 = vpop.f32.mrb[43].mxu0 }
 0x145   : > { %v816_v32 = vpop.f32.mrb[44].mxu1 }
 0x146   : > { %v837_v33 = vadd.f32 %v816_v32, %v657_v38  ;;  %v2169_v23 = vpop.f32.mrb[45].mxu1 }
 0x147   : > { %v819_v6 = vpop.f32.mrb[46].mxu1 }
 0x148   : > { %v1012_v28 = vpop.f32.mrb[44].mxu0  ;;  %v1025_v34 = vadd.f32 %v1004_v5, %v837_v33  ;;  %v838_v36 = vadd.f32 %v819_v6, %v658_v14  ;;  %v2170_v39 = vpop.f32.mrb[47].mxu1 }
 0x149   : > { %v2201_v40 = vpop.f32.mrb[45].mxu0 }
 0x14a   : > { %v1015_v8 = vpop.f32.mrb[46].mxu0  ;;  %v1026_v57 = vadd.f32 %v1007_v17, %v838_v36 }
 0x14b   : > { %v2202_v35 = vpop.f32.mrb[47].mxu0 }
 0x14d   : > { %v824_v42 = vpop.f32.mrb[48].mxu1 }
 0x14e   : > { %v839_v44 = vadd.f32 %v824_v42, %v659_v47  ;;  %v2173_v31 = vpop.f32.mrb[49].mxu1 }
 0x14f   : > { %v827_v1 = vpop.f32.mrb[50].mxu1 }
 0x150   : > { %v1306_v37 = vpop.f32.mrb[48].mxu0  ;;  %v1027_v45 = vadd.f32 %v1012_v28, %v839_v44  ;;  %v840_v46 = vadd.f32 %v827_v1, %v660_v52  ;;  %v2174_v48 = vpop.f32.mrb[51].mxu1 }
 0x151   : > { %v2241_v50 = vpop.f32.mrb[49].mxu0 }
 0x152   : > { %v1309_v38 = vpop.f32.mrb[50].mxu0  ;;  %v1028_v51 = vadd.f32 %v1015_v8, %v840_v46 }
 0x153   : > { %v2242_v41 = vpop.f32.mrb[51].mxu0 }
 0x155   : > { %v1126_v53 = vpop.f32.mrb[52].mxu1 }
 0x156   : > { %v1165_v54 = vadd.f32 %v1126_v53, %v1019_v60  ;;  %v2213_v14 = vpop.f32.mrb[53].mxu1 }
 0x157   : > { %v1129_v55 = vpop.f32.mrb[54].mxu1 }
 0x158   : > { %v1314_v43 = vpop.f32.mrb[52].mxu0  ;;  %v1345_v56 = vadd.f32 %v1306_v37, %v1165_v54  ;;  %v1166_v59 = vadd.f32 %v1129_v55, %v1020_v4  ;;  %v2214_v62 = vpop.f32.mrb[55].mxu1 }
 0x159   : > { %v2245_v0 = vpop.f32.mrb[53].mxu0 }
 0x15a   : > { %v1317_v47 = vpop.f32.mrb[54].mxu0  ;;  %v1346_v3 = vadd.f32 %v1309_v38, %v1166_v59 }
 0x15b   : > { %v2246_v58 = vpop.f32.mrb[55].mxu0 }
 0x15d   : > { %v1134_v7 = vpop.f32.mrb[56].mxu1 }
 0x15e   : > { %v1167_v10 = vadd.f32 %v1134_v7, %v1021_v13  ;;  %v2217_v52 = vpop.f32.mrb[57].mxu1 }
 0x15f   : > { %v1137_v11 = vpop.f32.mrb[58].mxu1 }
 0x160   : > { %v1322_v49 = vpop.f32.mrb[56].mxu0  ;;  %v2944_v61 = vadd.f32 %v1314_v43, %v1167_v10  ;;  %v1168_v12 = vadd.f32 %v1137_v11, %v1022_v21  ;;  %v2218_v16 = vpop.f32.mrb[59].mxu1 }
 0x161   : > { %v2249_v60 = vpop.f32.mrb[57].mxu0 }
 0x162   : > { %v1325_v19 = vpop.f32.mrb[58].mxu0  ;;  %v2946_v20 = vadd.f32 %v1317_v47, %v1168_v12 }
 0x163   : > { %v2250_v63 = vpop.f32.mrb[59].mxu0 }
 0x165   : > { %v1142_v4 = vpop.f32.mrb[60].mxu1 }
 0x166   : > { %v1169_v22 = vadd.f32 %v1142_v4, %v1023_v15  ;;  %v2221_v2 = vpop.f32.mrb[61].mxu1 }
 0x167   : > { %v1145_v24 = vpop.f32.mrb[62].mxu1 }
 0x168   : > { %v1330_v9 = vpop.f32.mrb[60].mxu0  ;;  %v2948_v25 = vadd.f32 %v1322_v49, %v1169_v22  ;;  %v1170_v13 = vadd.f32 %v1145_v24, %v1024_v29  ;;  %v2222_v5 = vpop.f32.mrb[63].mxu1 }
 0x169   : > { %v2253_v26 = vpop.f32.mrb[61].mxu0 }
 0x16a   : > { %v1333_v18 = vpop.f32.mrb[62].mxu0  ;;  %v2950_v27 = vadd.f32 %v1325_v19, %v1170_v13 }
 0x16b   : > { %v2254_v21 = vpop.f32.mrb[63].mxu0 }
 0x16d   : > { %v1150_v17 = vpop.f32.mrb[64].mxu1 }
 0x16e   : > { %v1171_v30 = vadd.f32 %v1150_v17, %v1025_v34  ;;  %v2225_v32 = vpop.f32.mrb[65].mxu1 }
 0x16f   : > { %v1153_v33 = vpop.f32.mrb[66].mxu1 }
 0x170   : > { %v1338_v23 = vpop.f32.mrb[64].mxu0  ;;  %v2952_v6 = vadd.f32 %v1330_v9, %v1171_v30  ;;  %v1172_v15 = vadd.f32 %v1153_v33, %v1026_v57  ;;  %v2226_v28 = vpop.f32.mrb[67].mxu1 }
 0x171   : > { %v2257_v36 = vpop.f32.mrb[65].mxu0 }
 0x172   : > { %v1341_v39 = vpop.f32.mrb[66].mxu0  ;;  %v2954_v40 = vadd.f32 %v1333_v18, %v1172_v15 }
 0x173   : > { %v2258_v29 = vpop.f32.mrb[67].mxu0 }
 0x175   : > { %v1158_v8 = vpop.f32.mrb[68].mxu1 }
 0x176   : > { %v1173_v35 = vadd.f32 %v1158_v8, %v1027_v45  ;;  %v2229_v42 = vpop.f32.mrb[69].mxu1  ;;  %v2963_v45 = vld [vmem:[%s3020_s2] ss:$0 sm:$0xff] }
 0x177   : > { %v1161_v44 = vpop.f32.mrb[70].mxu1 }
 0x178   : > { %v1640_v31 = vpop.f32.mrb[68].mxu0  ;;  %v2956_v1 = vadd.f32 %v1338_v23, %v1173_v35  ;;  %v1174_v34 = vadd.f32 %v1161_v44, %v1028_v51  ;;  %v2230_v37 = vpop.f32.mrb[71].mxu1 }
 0x179   : > { %v2297_v46 = vpop.f32.mrb[69].mxu0 }
 0x17a   : > { %v1643_v48 = vpop.f32.mrb[70].mxu0  ;;  %v2958_v50 = vadd.f32 %v1341_v39, %v1174_v34 }
 0x17b   : > { %v2298_v57 = vpop.f32.mrb[71].mxu0 }
 0x17d   : > { %v1494_v38 = vpop.f32.mrb[72].mxu1 }
 0x17e   : > { %v1533_v41 = vadd.f32 %v1494_v38, %v1345_v56  ;;  %v2269_v53 = vpop.f32.mrb[73].mxu1 }
 0x17f   : > { %v1497_v54 = vpop.f32.mrb[74].mxu1 }
 0x180   : > { %v1648_v14 = vpop.f32.mrb[72].mxu0  ;;  %v1679_v55 = vadd.f32 %v1640_v31, %v1533_v41  ;;  %v1534_v43 = vadd.f32 %v1497_v54, %v1346_v3  ;;  %v2270_v51 = vpop.f32.mrb[75].mxu1 }
 0x181   : > { %v2301_v59 = vpop.f32.mrb[73].mxu0 }
 0x182   : > { %v1651_v62 = vpop.f32.mrb[74].mxu0  ;;  %v1696_v0 = vadd.f32 %v2963_v45, %v1679_v55  ;;  %v1680_v47 = vadd.f32 %v1643_v48, %v1534_v43 }
 0x183   : > { %v2302_v58 = vpop.f32.mrb[75].mxu0 }
 0x184   : > { %v1706_v7 = vmax.f32 %v1696_v0, 0.0  ;;  %v1697_v56 = vadd.f32 %v2963_v45, %v1680_v47 }
 0x185   : > { %v1502_v3 = vpop.f32.mrb[76].mxu1 }
 0x186   : > { %v1972_v10 = vpack.c.bf16 %v1706_v7, %v1706_v7  ;;  %v1707_v52 = vmax.f32 %v1697_v56, 0.0  ;;  %v1535_v11 = vadd.f32 %v1502_v3, %v2944_v61  ;;  %v2273_v49 = vpop.f32.mrb[77].mxu1 }
 0x187   : > { %v1505_v12 = vpop.f32.mrb[78].mxu1 }
 0x188   : > { %v1656_v16 = vpop.f32.mrb[76].mxu0  ;;  %1757 = vst.msk [vmem:[%s2971_s30] sm:$0xf] %vm1756_vm8, %v1972_v10  ;;  %v1973_v60 = vpack.c.bf16 %v1707_v52, %v1707_v52  ;;  %v1681_v19 = vadd.f32 %v1648_v14, %v1535_v11  ;;  %v1536_v63 = vadd.f32 %v1505_v12, %v2946_v20  ;;  %v2274_v4 = vpop.f32.mrb[79].mxu1 }
 0x189   : > { %v2305_v22 = vpop.f32.mrb[77].mxu0 }
 0x18a   : > { %v1659_v2 = vpop.f32.mrb[78].mxu0  ;;  %1758 = vst.msk [vmem:[%s2971_s30 + $0x4] sm:$0xf] %vm1756_vm8, %v1973_v60  ;;  %v1698_v24 = vadd.f32 %v2963_v45, %v1681_v19  ;;  %v1682_v9 = vadd.f32 %v1651_v62, %v1536_v63 }
 0x18b   : > { %v2306_v13 = vpop.f32.mrb[79].mxu0 }
 0x18c   : > { %v1708_v61 = vmax.f32 %v1698_v24, 0.0  ;;  %v1699_v5 = vadd.f32 %v2963_v45, %v1682_v9 }
 0x18d   : > { %v1510_v26 = vpop.f32.mrb[80].mxu1 }
 0x18e   : > { %v1974_v18 = vpack.c.bf16 %v1708_v61, %v1708_v61  ;;  %v1709_v21 = vmax.f32 %v1699_v5, 0.0  ;;  %v1537_v17 = vadd.f32 %v1510_v26, %v2948_v25  ;;  %v2277_v20 = vpop.f32.mrb[81].mxu1 }
 0x18f   : > { %v1513_v30 = vpop.f32.mrb[82].mxu1 }
 0x190   : > { %v1664_v32 = vpop.f32.mrb[80].mxu0  ;;  %1759 = vst.msk [vmem:[%s2971_s30 + $0x8] sm:$0xf] %vm1756_vm8, %v1974_v18  ;;  %v1975_v33 = vpack.c.bf16 %v1709_v21, %v1709_v21  ;;  %v1683_v23 = vadd.f32 %v1656_v16, %v1537_v17  ;;  %v1538_v15 = vadd.f32 %v1513_v30, %v2950_v27  ;;  %v2278_v28 = vpop.f32.mrb[83].mxu1 }
 0x191   : > { %v2309_v36 = vpop.f32.mrb[81].mxu0 }
 0x192   : > { %v1667_v39 = vpop.f32.mrb[82].mxu0  ;;  %1760 = vst.msk [vmem:[%s2971_s30 + $0xc] sm:$0xf] %vm1756_vm8, %v1975_v33  ;;  %v1700_v29 = vadd.f32 %v2963_v45, %v1683_v23  ;;  %v1684_v8 = vadd.f32 %v1659_v2, %v1538_v15 }
 0x193   : > { %v2310_v35 = vpop.f32.mrb[83].mxu0 }
 0x194   : > { %v1710_v25 = vmax.f32 %v1700_v29, 0.0  ;;  %v1701_v42 = vadd.f32 %v2963_v45, %v1684_v8 }
 0x195   : > { %v1518_v44 = vpop.f32.mrb[84].mxu1 }
 0x196   : > { %v1976_v31 = vpack.c.bf16 %v1710_v25, %v1710_v25  ;;  %v1711_v34 = vmax.f32 %v1701_v42, 0.0  ;;  %v1539_v37 = vadd.f32 %v1518_v44, %v2952_v6  ;;  %v2281_v27 = vpop.f32.mrb[85].mxu1 }
 0x197   : > { %v1521_v46 = vpop.f32.mrb[86].mxu1 }
 0x198   : > { %v1672_v48 = vpop.f32.mrb[84].mxu0  ;;  %1761 = vst.msk [vmem:[%s2971_s30 + $0x10] sm:$0xf] %vm1756_vm8, %v1976_v31  ;;  %v1977_v57 = vpack.c.bf16 %v1711_v34, %v1711_v34  ;;  %v1685_v38 = vadd.f32 %v1664_v32, %v1539_v37  ;;  %v1540_v41 = vadd.f32 %v1521_v46, %v2954_v40  ;;  %v2282_v53 = vpop.f32.mrb[87].mxu1 }
 0x199   : > { %v2313_v54 = vpop.f32.mrb[85].mxu0 }
 0x19a   : > { %v1675_v14 = vpop.f32.mrb[86].mxu0  ;;  %1762 = vst.msk [vmem:[%s2971_s30 + $0x14] sm:$0xf] %vm1756_vm8, %v1977_v57  ;;  %v1702_v55 = vadd.f32 %v2963_v45, %v1685_v38  ;;  %v1686_v43 = vadd.f32 %v1667_v39, %v1540_v41 }
 0x19b   : > { %v2314_v6 = vpop.f32.mrb[87].mxu0 }
 0x19c   : > { %v1712_v51 = vmax.f32 %v1702_v55, 0.0  ;;  %v1703_v59 = vadd.f32 %v2963_v45, %v1686_v43 }
 0x19d   : > { %v1526_v62 = vpop.f32.mrb[88].mxu1 }
 0x19e   : > { %v1978_v0 = vpack.c.bf16 %v1712_v51, %v1712_v51  ;;  %v1713_v47 = vmax.f32 %v1703_v59, 0.0  ;;  %v1541_v40 = vadd.f32 %v1526_v62, %v2956_v1  ;;  %v2285_v58 = vpop.f32.mrb[89].mxu1 }
 0x19f   : > { %v1529_v7 = vpop.f32.mrb[90].mxu1 }
 0x1a0   : > { %1763 = vst.msk [vmem:[%s2971_s30 + $0x18] sm:$0xf] %vm1756_vm8, %v1978_v0  ;;  %v1979_v56 = vpack.c.bf16 %v1713_v47, %v1713_v47  ;;  %v1687_v3 = vadd.f32 %v1672_v48, %v1541_v40  ;;  %v1542_v10 = vadd.f32 %v1529_v7, %v2958_v50  ;;  %v2286_v52 = vpop.f32.mrb[91].mxu1 }
 0x1a2   : > { %1764 = vst.msk [vmem:[%s2971_s30 + $0x1c] sm:$0xf] %vm1756_vm8, %v1979_v56  ;;  %v1704_v11 = vadd.f32 %v2963_v45, %v1687_v3  ;;  %v1688_v49 = vadd.f32 %v1675_v14, %v1542_v10 }
 0x1a4   : > { %v1714_v12 = vmax.f32 %v1704_v11, 0.0  ;;  %v1705_v16 = vadd.f32 %v2963_v45, %v1688_v49 }
 0x1a6   : > { %v1980_v60 = vpack.c.bf16 %v1714_v12, %v1714_v12  ;;  %v1715_v1 = vmax.f32 %v1705_v16, 0.0 }
 0x1a8   : > { %1765 = vst.msk [vmem:[%s2971_s30 + $0x20] sm:$0xf] %vm1756_vm8, %v1980_v60  ;;  %v1981_v19 = vpack.c.bf16 %v1715_v1, %v1715_v1 }
 0x1aa   : > { %1766 = vst.msk [vmem:[%s2971_s30 + $0x24] sm:$0xf] %vm1756_vm8, %v1981_v19 }
 0x1ab PF: > { %s13_s14 = sadd.s32 1, %s2432_s14   ;;  %s3022_s12 = smov %s2428_s13 }
 0x1ac   : > { %p10_p5 = scmp.ge.s32.totalorder %s13_s14, 4   ;;  %s3023_s13 = smov %s3025_s15 }
 0x1ae   :  { %12 = sbr.rel (!%p10_p5) target bundleno = 2 (0x2), region = 62 }

// kernel: pretrained_image_encoding_forward.14
= control target key start
LH: loop header
LB: loop body
LE: loop exit
PB: predicated region body
PF: predicated region fallthrough
CT: control target
= control target key end

     0   :  { %s2597_s15 = smov 0   ;;  %s2599_s16 = smov 0   ;;  %s3173_s0 = inlined_call_operand.vmem [shape: bf16[2,102,64], index: 0, kind: input, shape index: {}]   ;;  %s3174_s1 = inlined_call_operand.vmem [shape: bf16[576,64], index: 1, kind: input, shape index: {}]   ;;  %s3175_s2 = inlined_call_operand.vmem [shape: f32[1,64], index: 2, kind: input, shape index: {}]   ;;  %s3176_s3 = inlined_call_operand.vmem [shape: bf16[2,80,64], index: 3, kind: input, shape index: {}]   ;;  %s3177_s4 = inlined_call_operand.vmem [shape: bf16[2,80,64], index: 4, kind: output, shape index: {}]  }
   0x1   :  { %s2601_s17 = smov 0  }
   0x2 LB: > { %s26_s18 = sadd.s32 1, %s2564_s16  ;;  %p1963_p0 = scmp.ge.s32.totalorder %s2568_s17, 1  ;;  %s2568_s17 = sphi %s2601_s17, %s14_s17   ;;  %s2564_s16 = sphi %s2599_s16, %s3179_s16   ;;  %s2560_s15 = sphi %s2597_s15, %s3178_s15  }
   0x3   : > { %p28_p1 = scmp.ge.s32.totalorder %s26_s18, 2  ;;  %p193_p2 = scmp.lt.s32.totalorder %s2568_s17, 3 }
   0x5   : > { %s3181_s18 = smov (%p28_p1, %s26_s18), 0  ;;  %p194_p3 = pnand %p1963_p0, %p193_p2 }
   0x6   : > { %v2487_v0 = vld [vmem:[%s3174_s1 + $0x20] sm:$0xff] (!%p194_p3)   ;;  %v2570_v1 = vmov (!%p194_p3), 0.0   ;;  %v2488_v2 = vld [vmem:[%s3174_s1 + $0x28] sm:$0xff] (!%p194_p3)   ;;  %p232_p4 = scmp.lt.s32.totalorder (!%p194_p3), %s2560_s15, 1  ;;  %vm2571_vm0 = vmmov (!%p194_p3), 0   ;;  %v2489_v3 = vld [vmem:[%s3174_s1 + $0x30] sm:$0xff] (!%p194_p3)  }
   0x7   : > { %197 = sbr.rel (%p194_p3) target bundleno = 429 (0x1ad), region = 36  ;;  %2451 = vmatprep.subr.bf16.mxu1 (!%p194_p3), %v2570_v1  ;;  %2199 = vmatprep.subr.bf16.mxu0 (!%p194_p3), %v2570_v1  ;;  %v2490_v4 = vld [vmem:[%s3174_s1 + $0x38] sm:$0xff] (!%p194_p3)   ;;  %vm313_vm1 = vsmask.f32 (!%p194_p3), 7424  ;;  %vm382_vm2 = vcmask (!%p194_p3), 523264   ;;  %v2493_v21 = vld [vmem:[%s3174_s1] sm:$0xff] (!%p194_p3)  }
   0x8   : > { %2455 = vmatpush3.bf16.msra.mxu1 (!%p194_p3), %v2487_v0  ;;  %2200 = vmatpush3.bf16.msra.mxu0 (!%p194_p3), %v2487_v0  ;;  %v2498_v28 = vld [vmem:[%s3174_s1 + $0x40] sm:$0xff] (!%p194_p3)   ;;  %v2494_v31 = vld [vmem:[%s3174_s1 + $0x8] sm:$0xff] (!%p194_p3)   ;;  %v2499_v35 = vld [vmem:[%s3174_s1 + $0x10] sm:$0xff] (!%p194_p3)   ;;  %vm590_vm3 = vcmask (!%p194_p3), 1046528   ;;  %vm916_vm4 = vsmask.f32 (!%p194_p3), 6400 }
   0x9   : > { %2452 = vmatprep.subr.bf16.mxu1 (!%p194_p3), %v2570_v1  ;;  %2201 = vmatprep.subr.bf16.mxu0 (!%p194_p3), %v2570_v1  ;;  %v2500_v36 = vld [vmem:[%s3174_s1 + $0x48] sm:$0xff] (!%p194_p3)   ;;  %v2502_v43 = vld [vmem:[%s3174_s1 + $0x50] sm:$0xff] (!%p194_p3)   ;;  %v2503_v47 = vld [vmem:[%s3174_s1 + $0x18] sm:$0xff] (!%p194_p3)   ;;  %vm1104_vm5 = vcmask (!%p194_p3), 1045504   ;;  %vm1618_vm6 = vcmask (!%p194_p3), 1044480   ;;  %vm1849_vm8 = vcmask (!%p194_p3), 519168  }
   0xa   : > { %2215 = vmatprep.mubr.msk.bf16.mxu1 (!%p194_p3), %vm2571_vm0, %v2570_v1  ;;  %2207 = vmatprep.mubr.msk.bf16.mxu0 (!%p194_p3), %vm2571_vm0, %v2570_v1  ;;  %v2504_v48 = vld [vmem:[%s3174_s1 + $0x58] sm:$0xff] (!%p194_p3)   ;;  %v2507_v53 = vld [vmem:[%s3174_s1 + $0x80] sm:$0xff] (!%p194_p3)   ;;  %v2509_v55 = vld [vmem:[%s3174_s1 + $0x88] sm:$0xff] (!%p194_p3)   ;;  %vm1430_vm7 = vsmask.f32 (!%p194_p3), 5376 }
   0xb   : > { %v2506_v56 = vld [vmem:[%s3174_s1 + $0x60] sm:$0xff] (!%p194_p3)   ;;  %v2511_v60 = vld [vmem:[%s3174_s1 + $0x90] sm:$0xff] (!%p194_p3)   ;;  %v2508_v0 = vld [vmem:[%s3174_s1 + $0x68] sm:$0xff] (!%p194_p3)  }
   0xc   : > { %2456 = vmatpush3.bf16.msra.mxu1 (!%p194_p3), %v2488_v2  ;;  %2202 = vmatpush3.bf16.msra.mxu0 (!%p194_p3), %v2488_v2 }
   0xd   : > { %2453 = vmatprep.subr.bf16.mxu1 (!%p194_p3), %v2570_v1  ;;  %2203 = vmatprep.subr.bf16.mxu0 (!%p194_p3), %v2570_v1 }
   0xe   : > { %s3183_s15 = smov (!%p232_p4, %s2560_s15), 1 }
   0xf   : > { %s2459_s25 = smul.u32 52, %s3183_s15 }
  0x10   : > { %2457 = vmatpush3.bf16.msra.mxu1 %v2489_v3  ;;  %2204 = vmatpush3.bf16.msra.mxu0 %v2489_v3 }
  0x11   : > { %s2643_s30 = scalar_lea.vmem %s3173_s0, %s2459_s25  ;;  %2454 = vmatprep.subr.bf16.mxu1 %v2570_v1  ;;  %2205 = vmatprep.subr.bf16.mxu0 %v2570_v1 }
  0x12   : > { %v2646_v5 = vld [vmem:[%s2643_s30 + $0x10] sm:$0xff]   ;;  %v2649_v6 = vld [vmem:[%s2643_s30 + $0x18] sm:$0xff]   ;;  %v258_v7 = vld [vmem:[%s2643_s30] sm:$0xf] }
  0x13   : > { %v2655_v8 = vld [vmem:[%s2643_s30 + $0x4] sm:$0xf]  ;;  %v330_v9 = vshll.u32 %v2646_v5, 16  ;;  %v334_v10 = vshrl.u32 %v2646_v5, 16  ;;  %v338_v11 = vshll.u32 %v2649_v6, 16  ;;  %v2664_v13 = vld [vmem:[%s2643_s30 + $0x8] sm:$0xff]  }
  0x14   : > { %v2661_v12 = vcombine.low %v258_v7, %v2655_v8  ;;  %v2667_v14 = vld [vmem:[%s2643_s30 + $0x20] sm:$0xff]   ;;  %2458 = vmatpush3.bf16.msra.mxu1 %v2490_v4  ;;  %2206 = vmatpush3.bf16.msra.mxu0 %v2490_v4  ;;  %v322_v19 = vshll.u32 %v2664_v13, 16  ;;  %v342_v23 = vshrl.u32 %v2649_v6, 16  ;;  %v326_v29 = vshrl.u32 %v2664_v13, 16  ;;  %v2513_v7 = vld [vmem:[%s3174_s1 + $0x98] sm:$0xff]  }
  0x15   : > { %v332_v15 = vrot.slane %v330_v9, 1  ;;  %v340_v16 = vrot.slane %v338_v11, 1  ;;  %2227 = vmatprep.subr.bf16.mxu1 %v2570_v1  ;;  %2255 = vmatprep.subr.bf16.mxu0 %v2570_v1  ;;  %v346_v24 = vshll.u32 %v2667_v14, 16  ;;  %v2686_v30 = vld [vmem:[%s2643_s30 + $0x28] ss:$0 sps:$4 sm:$0x11]  }
  0x16   : > { %v315_v17 = vshrl.u32 %v2661_v12, 16  ;;  %v317_v18 = vshll.u32 %v2661_v12, 16  ;;  %v324_v25 = vrot.slane %v322_v19, 1  ;;  %v578_v38 = vld [vmem:[%s2643_s30] sm:$0xe]  ;;  %v350_v40 = vshrl.u32 %v2667_v14, 16 }
  0x17   : > { %v336_v20 = vor.u32 %v334_v10, %v332_v15  ;;  %v344_v33 = vor.u32 %v342_v23, %v340_v16  ;;  %v348_v34 = vrot.slane %v346_v24, 1  ;;  %v354_v41 = vshll.u32 %v2686_v30, 16  ;;  %v2753_v57 = vld [vmem:[%s2643_s30 + $0x1c] sm:$0xff]   ;;  %v2756_v58 = vld [vmem:[%s2643_s30 + $0x24] sm:$0xff]   ;;  %v2510_v9 = vld [vmem:[%s3174_s1 + $0x70] sm:$0xff]  }
  0x18   : > { %v319_v22 = vrot.slane %v317_v18, 1  ;;  %v328_v37 = vor.u32 %v326_v29, %v324_v25  ;;  %v1991_v44 = vcombine.low %v578_v38, %v2655_v8  ;;  %v592_v50 = vrot.slane %v2664_v13, 1  ;;  %v2526_v63 = vld [vmem:[%s2643_s30 + $0x2c] ss:$0 sps:$4 sm:$0x11]  }
  0x19   : > { %v341_v26 = vsel %vm313_vm1, %v336_v20, %v340_v16  ;;  %v349_v39 = vsel %vm313_vm1, %v344_v33, %v348_v34  ;;  %v352_v45 = vor.u32 %v350_v40, %v348_v34  ;;  %v356_v46 = vrot.slane %v354_v41, 1  ;;  %v2816_v18 = vld [vmem:[%s2643_s30 + $0xc] sm:$0xff]  }
  0x1a   : > { %v320_v27 = vor.u32 %v319_v22, %v315_v17  ;;  %2216 = vmatmul.mubr.msk.bf16.vlgmr.msra.gmra.mrb[0].mxu1 %vm382_vm2, %v341_v26  ;;  %v333_v42 = vsel %vm313_vm1, %v328_v37, %v332_v15  ;;  %v591_v49 = vrot.slane %v1991_v44, 1  ;;  %v594_v54 = vrot.slane %v2646_v5, 1  ;;  %v2810_v15 = vld [vmem:[%s2643_s30 + $0x8] sm:$0xf] }
  0x1b   : > { %2228 = vmatpush3.bf16.msra.mxu1 %v2493_v21  ;;  %2219 = vmatprep.mubr.msk.bf16.mxu1 %vm2571_vm0, %v2570_v1  ;;  %v357_v51 = vsel %vm313_vm1, %v352_v45, %v356_v46  ;;  %v776_v61 = vrot.slane %v2753_v57, 1  ;;  %v778_v62 = vrot.slane %v2756_v58, 1  ;;  %v780_v3 = vrot.slane %v2526_v63, 1  ;;  %v2523_v46 = vld [vmem:[%s3174_s1 + $0xd0] sm:$0xff]  }
  0x1c   : > { %v325_v32 = vsel %vm313_vm1, %v320_v27, %v324_v25  ;;  %2229 = vmatprep.subr.bf16.mxu1 %v2570_v1  ;;  %v593_v52 = vsel %vm590_vm3, %v591_v49, %v592_v50  ;;  %v595_v59 = vsel %vm590_vm3, %v592_v50, %v594_v54  ;;  %v596_v4 = vrot.slane %v2649_v6, 1 }
  0x1d   : > { %2208 = vmatmul.mubr.msk.bf16.vlgmr.msra.gmra.mrb[0].mxu0 %vm382_vm2, %v325_v32  ;;  %v2776_v2 = vsel %vm590_vm3, %v776_v61, %v778_v62  ;;  %v2788_v8 = vsel %vm590_vm3, %v778_v62, %v780_v3  ;;  %v598_v11 = vrot.slane %v2667_v14, 1  ;;  %v600_v19 = vrot.slane %v2686_v30, 1  ;;  %v2525_v62 = vld [vmem:[%s3174_s1 + $0xb8] sm:$0xff]  }
  0x1e   : > { %2256 = vmatpush3.bf16.msra.mxu0 %v2498_v28  ;;  %2211 = vmatprep.mubr.msk.bf16.mxu0 %vm2571_vm0, %v2570_v1  ;;  %v597_v10 = vsel %vm590_vm3, %v594_v54, %v596_v4  ;;  %v926_v22 = vshrl.u32 %v2816_v18, 16  ;;  %v929_v23 = vshll.u32 %v2816_v18, 16  ;;  %v2830_v28 = vld [vmem:[%s2643_s30 + $0x14] sm:$0xff]   ;;  %v772_v37 = vrot.slane %v2816_v18, 1 }
  0x1f   : > { %2257 = vmatprep.subr.bf16.mxu0 %v2570_v1  ;;  %2230 = vmatpush3.bf16.msra.mxu1 %v2494_v31  ;;  %v599_v16 = vsel %vm590_vm3, %v596_v4, %v598_v11  ;;  %v601_v24 = vsel %vm590_vm3, %v598_v11, %v600_v19  ;;  %v935_v31 = vshrl.u32 %v2830_v28, 16  ;;  %v938_v32 = vshll.u32 %v2830_v28, 16  ;;  %v2522_v54 = vld [vmem:[%s3174_s1 + $0xb0] sm:$0xff]   ;;  %v1092_v19 = vld [vmem:[%s2643_s30 + $0x4] sm:$0xc] }
  0x20   : > { %2231 = vmatprep.subr.bf16.mxu1 %v2570_v1  ;;  %v928_v26 = vrot.slane %v926_v22, 1  ;;  %v931_v27 = vrot.slane %v929_v23, 2  ;;  %v944_v40 = vshrl.u32 %v2753_v57, 16  ;;  %v953_v50 = vshrl.u32 %v2756_v58, 16 }
  0x21   : > { %v937_v34 = vrot.slane %v935_v31, 1  ;;  %v2026_v22 = vcombine.low %v1092_v19, %v2810_v15  ;;  %v1108_v31 = vrot.slane %v2830_v28, 2 }
  0x22   : > { %2258 = vmatpush3.bf16.msra.mxu0 %v2500_v36  ;;  %2220 = vmatmul.mubr.msk.bf16.gmra.mrb[4].mxu1 %vm382_vm2, %v349_v39  ;;  %v932_v30 = vor.u32 %v931_v27, %v928_v26  ;;  %v2520_v39 = vld [vmem:[%s3174_s1 + $0xc8] sm:$0xff]   ;;  %v946_v44 = vrot.slane %v944_v40, 1 }
  0x23   : > { %2259 = vmatprep.subr.bf16.mxu0 %v2570_v1  ;;  %2232 = vmatpush3.bf16.msra.mxu1 %v2499_v35  ;;  %v940_v35 = vrot.slane %v938_v32, 2  ;;  %v2536_v26 = vld [vmem:[%s3174_s1 + $0x108] sm:$0xff]  }
  0x24   : > { %2223 = vmatprep.mubr.msk.bf16.mxu1 %vm2571_vm0, %v2570_v1  ;;  %2233 = vmatprep.subr.bf16.mxu1 %v2570_v1  ;;  %v2535_v32 = vld [vmem:[%s3174_s1 + $0xe8] sm:$0xff]  }
  0x25   : > { %2212 = vmatmul.mubr.msk.bf16.gmra.mrb[4].mxu0 %vm382_vm2, %v333_v42  ;;  %v941_v38 = vor.u32 %v940_v35, %v937_v34  ;;  %v2516_v42 = vld [vmem:[%s3174_s1 + $0xa0] sm:$0xff]   ;;  %v2538_v34 = vld [vmem:[%s3174_s1 + $0xf0] sm:$0xff]  }
  0x26   : > { %2260 = vmatpush3.bf16.msra.mxu0 %v2502_v43  ;;  %2263 = vmatprep.mubr.msk.bf16.mxu0 %vm2571_vm0, %v2570_v1 }
  0x27   : > { %2261 = vmatprep.subr.bf16.mxu0 %v2570_v1  ;;  %2234 = vmatpush3.bf16.msra.mxu1 %v2503_v47  ;;  %v942_v43 = vsel %vm916_vm4, %v932_v30, %v941_v38  ;;  %v774_v47 = vrot.slane %v2830_v28, 1 }
  0x28   : > { %2283 = vmatprep.subr.bf16.mxu1 %v2570_v1 }
  0x29   : > { %v777_v4 = vsel %vm590_vm3, %v774_v47, %v776_v61  ;;  %v1238_v61 = vld [vmem:[%s2643_s30 + $0x8] sm:$0xc] }
  0x2a   : > { %2262 = vmatpush3.bf16.msra.mxu0 %v2504_v48  ;;  %2224 = vmatmul.mubr.msk.bf16.gmra.mrb[8].mxu1 %vm382_vm2, %v357_v51  ;;  %v2519_v48 = vld [vmem:[%s3174_s1 + $0xa8] sm:$0xff]   ;;  %v956_v51 = vshll.u32 %v2756_v58, 16 }
  0x2b   : > { %2311 = vmatprep.subr.bf16.mxu0 %v2570_v1  ;;  %2235 = vmatprep.mubr.msk.bf16.mxu1 %vm2571_vm0, %v2570_v1 }
  0x2d   : > { %2264 = vmatmul.mubr.msk.bf16.vlgmr.msra.gmra.mrb[8].mxu0 %vm382_vm2, %v593_v52  ;;  %v2528_v52 = vld [vmem:[%s3174_s1 + $0xd8] sm:$0xff]  }
  0x2e   : > { %2312 = vmatpush3.bf16.msra.mxu0 %v2507_v53  ;;  %2267 = vmatprep.mubr.msk.bf16.mxu0 %vm2571_vm0, %v2570_v1  ;;  %v775_v53 = vsel %vm590_vm3, %v772_v37, %v774_v47 }
  0x2f   : > { %2313 = vmatprep.subr.bf16.mxu0 %v2570_v1 }
  0x32   : > { %2314 = vmatpush3.bf16.msra.mxu0 %v2509_v55  ;;  %2236 = vmatmul.mubr.msk.bf16.vlgmr.msra.gmra.mrb[12].mxu1 %vm382_vm2, %v2661_v12  ;;  %v2512_v12 = vld [vmem:[%s3174_s1 + $0x78] sm:$0xff]  }
  0x33   : > { %2315 = vmatprep.subr.bf16.mxu0 %v2570_v1  ;;  %2284 = vmatpush3.bf16.msra.mxu1 %v2506_v56  ;;  %v955_v56 = vrot.slane %v953_v50, 1 }
  0x34   : > { %2239 = vmatprep.mubr.msk.bf16.mxu1 %vm2571_vm0, %v2570_v1  ;;  %2285 = vmatprep.subr.bf16.mxu1 %v2570_v1 }
  0x35   : > { %2268 = vmatmul.mubr.msk.bf16.gmra.mrb[12].mxu0 %vm382_vm2, %v595_v59  ;;  %v958_v59 = vrot.slane %v956_v51, 2 }
  0x36   : > { %2271 = vmatprep.mubr.msk.bf16.mxu0 %vm2571_vm0, %v2570_v1  ;;  %2316 = vmatpush3.bf16.msra.mxu0 %v2511_v60  ;;  %v2892_v60 = vld [vmem:[%s2643_s30 + $0x2c] ss:$0 sps:$4 sm:$0x33]  }
  0x37   : > { %2317 = vmatprep.subr.bf16.mxu0 %v2570_v1  ;;  %2286 = vmatpush3.bf16.msra.mxu1 %v2508_v0  ;;  %v959_v63 = vor.u32 %v958_v59, %v955_v56  ;;  %v962_v0 = vshrl.u32 %v2892_v60, 16  ;;  %v965_v3 = vshll.u32 %v2892_v60, 16  ;;  %v1114_v47 = vrot.slane %v2892_v60, 2 }
  0x38   : > { %2287 = vmatprep.subr.bf16.mxu1 %v2570_v1 }
  0x3a   : > { %2318 = vmatpush3.bf16.msra.mxu0 %v2513_v7  ;;  %2240 = vmatmul.mubr.msk.bf16.gmra.mrb[16].mxu1 %vm382_vm2, %v2664_v13  ;;  %v724_v13 = vld [vmem:[%s2643_s30 + $0x4] sm:$0xe] }
  0x3b   : > { %2367 = vmatprep.subr.bf16.mxu0 %v2570_v1  ;;  %2243 = vmatprep.mubr.msk.bf16.mxu1 %vm2571_vm0, %v2570_v1  ;;  %v2001_v17 = vcombine.low %v724_v13, %v2810_v15 }
  0x3c   : > { %2288 = vmatpush3.bf16.msra.mxu1 %v2510_v9  ;;  %v964_v9 = vrot.slane %v962_v0, 1 }
  0x3d   : > { %2272 = vmatmul.mubr.msk.bf16.gmra.mrb[16].mxu0 %vm382_vm2, %v597_v10  ;;  %2289 = vmatprep.subr.bf16.mxu1 %v2570_v1  ;;  %v918_v20 = vshrl.u32 %v2001_v17, 16  ;;  %v921_v21 = vshll.u32 %v2001_v17, 16  ;;  %v771_v36 = vrot.slane %v2001_v17, 1  ;;  %v967_v10 = vrot.slane %v965_v3, 2  ;;  %v2927_v17 = vld [vmem:[%s2643_s30 + $0x10] sm:$0xff]  }
  0x3e   : > { %2275 = vmatprep.mubr.msk.bf16.mxu0 %vm2571_vm0, %v2570_v1  ;;  %v1443_v50 = vshll.u32 %v2927_v17, 16 }
  0x3f   : > { %v920_v25 = vrot.slane %v918_v20, 1  ;;  %v773_v41 = vsel %vm590_vm3, %v771_v36, %v772_v37  ;;  %v968_v11 = vor.u32 %v967_v10, %v964_v9  ;;  %v2995_v36 = vld [vmem:[%s2643_s30 + $0x28] sm:$0xff]   ;;  %v1110_v37 = vrot.slane %v2753_v57, 2 }
  0x40   : > { %2290 = vmatpush3.bf16.msra.mxu1 %v2512_v12  ;;  %v2920_v12 = vld [vmem:[%s2643_s30 + $0xc] sm:$0xf]  ;;  %v1445_v59 = vrot.slane %v1443_v50, 3 }
  0x41   : > { %2339 = vmatprep.subr.bf16.mxu1 %v2570_v1  ;;  %v969_v13 = vsel %vm916_vm4, %v959_v63, %v968_v11  ;;  %v1111_v40 = vsel %vm1104_vm5, %v1108_v31, %v1110_v37 }
  0x42   : > { %2244 = vmatmul.mubr.msk.bf16.gmra.mrb[20].mxu1 %vm382_vm2, %v2646_v5  ;;  %v923_v5 = vrot.slane %v921_v21, 2  ;;  %v1286_v21 = vrot.slane %v2927_v17, 2 }
  0x43   : > { %2247 = vmatprep.mubr.msk.bf16.mxu1 %vm2571_vm0, %v2570_v1 }
  0x44   : > { %v924_v29 = vor.u32 %v923_v5, %v920_v25  ;;  %v1105_v25 = vrot.slane %v2026_v22, 2  ;;  %v1106_v5 = vrot.slane %v2816_v18, 2  ;;  %v2532_v18 = vld [vmem:[%s3174_s1 + $0xe0] sm:$0xff]  }
  0x45   : > { %2276 = vmatmul.mubr.msk.bf16.gmra.mrb[20].mxu0 %vm382_vm2, %v599_v16  ;;  %v2924_v16 = vcombine.low %v1238_v61, %v2920_v12 }
  0x46   : > { %2279 = vmatprep.mubr.msk.bf16.mxu0 %vm2571_vm0, %v2570_v1  ;;  %v933_v33 = vsel %vm916_vm4, %v924_v29, %v932_v30  ;;  %v2966_v29 = vld [vmem:[%s2643_s30 + $0x20] sm:$0xff]   ;;  %v2539_v30 = vld [vmem:[%s3174_s1 + $0x110] sm:$0xff]   ;;  %v1109_v28 = vsel %vm1104_vm5, %v1106_v5, %v1108_v31 }
  0x47   : > { %v1285_v20 = vrot.slane %v2924_v16, 2 }
  0x49   : > { %v1287_v23 = vsel %vm1104_vm5, %v1285_v20, %v1286_v21 }
  0x4a   : > { %2248 = vmatmul.mubr.msk.bf16.gmra.mrb[24].mxu1 %vm382_vm2, %v2649_v6  ;;  %v2517_v6 = vld [vmem:[%s3174_s1 + $0xc0] sm:$0xff]  }
  0x4b   : > { %2251 = vmatprep.mubr.msk.bf16.mxu1 %vm2571_vm0, %v2570_v1 }
  0x4d   : > { %2280 = vmatmul.mubr.msk.bf16.gmra.mrb[24].mxu0 %vm382_vm2, %v601_v24  ;;  %v2945_v24 = vld [vmem:[%s2643_s30 + $0x18] sm:$0xff]  }
  0x4e   : > { %2319 = vmatprep.mubr.msk.bf16.mxu0 %vm2571_vm0, %v2570_v1  ;;  %v1288_v15 = vrot.slane %v2945_v24, 2  ;;  %v1449_v0 = vshrl.u32 %v2945_v24, 16  ;;  %v1452_v3 = vshll.u32 %v2945_v24, 16 }
  0x50   : > { %v1289_v27 = vsel %vm1104_vm5, %v1286_v21, %v1288_v15  ;;  %v1451_v9 = vrot.slane %v1449_v0, 2  ;;  %v1454_v10 = vrot.slane %v1452_v3, 3 }
  0x52   : > { %2252 = vmatmul.mubr.msk.bf16.gmra.mrb[28].mxu1 %vm382_vm2, %v2667_v14  ;;  %v947_v14 = vshll.u32 %v2753_v57, 16  ;;  %v1455_v61 = vor.u32 %v1454_v10, %v1451_v9 }
  0x53   : > { %2291 = vmatprep.mubr.msk.bf16.mxu1 %vm2571_vm0, %v2570_v1 }
  0x54   : > { %v949_v45 = vrot.slane %v947_v14, 2  ;;  %v2542_v14 = vld [vmem:[%s2643_s30 + $0x30] ss:$0 sps:$4 sm:$0x33]  }
  0x55   : > { %2320 = vmatmul.mubr.msk.bf16.vlgmr.msra.gmra.mrb[28].mxu0 %vm382_vm2, %v933_v33  ;;  %v1290_v33 = vrot.slane %v2966_v29, 2 }
  0x56   : > { %2368 = vmatpush3.bf16.msra.mxu0 %v2517_v6  ;;  %2323 = vmatprep.mubr.msk.bf16.mxu0 %vm2571_vm0, %v2570_v1  ;;  %v950_v49 = vor.u32 %v949_v45, %v946_v44  ;;  %v2543_v6 = vld [vmem:[%s3174_s1 + $0x118] sm:$0xff]  }
  0x57   : > { %2369 = vmatprep.subr.bf16.mxu0 %v2570_v1  ;;  %v1291_v35 = vsel %vm1104_vm5, %v1288_v15, %v1290_v33 }
  0x58   : > { %v951_v55 = vsel %vm916_vm4, %v941_v38, %v950_v49  ;;  %v960_v7 = vsel %vm916_vm4, %v950_v49, %v959_v63  ;;  %v2541_v38 = vld [vmem:[%s3174_s1 + $0xf8] sm:$0xff]   ;;  %v1440_v49 = vshrl.u32 %v2927_v17, 16 }
  0x5a   : > { %2370 = vmatpush3.bf16.msra.mxu0 %v2520_v39  ;;  %2292 = vmatmul.mubr.msk.bf16.vlgmr.msra.gmra.mrb[32].mxu1 %vm382_vm2, %v773_v41  ;;  %v1292_v39 = vrot.slane %v2995_v36, 2  ;;  %v1112_v41 = vrot.slane %v2756_v58, 2  ;;  %v1432_v58 = vshrl.u32 %v2924_v16, 16  ;;  %v1442_v56 = vrot.slane %v1440_v49, 2 }
  0x5b   : > { %2371 = vmatprep.subr.bf16.mxu0 %v2570_v1  ;;  %2340 = vmatpush3.bf16.msra.mxu1 %v2516_v42  ;;  %v1294_v42 = vrot.slane %v2542_v14, 2 }
  0x5c   : > { %2295 = vmatprep.mubr.msk.bf16.mxu1 %vm2571_vm0, %v2570_v1  ;;  %2341 = vmatprep.subr.bf16.mxu1 %v2570_v1  ;;  %v1293_v57 = vsel %vm1104_vm5, %v1290_v33, %v1292_v39  ;;  %v1113_v44 = vsel %vm1104_vm5, %v1110_v37, %v1112_v41  ;;  %v1446_v63 = vor.u32 %v1445_v59, %v1442_v56 }
  0x5d   : > { %2324 = vmatmul.mubr.msk.bf16.gmra.mrb[32].mxu0 %vm382_vm2, %v942_v43  ;;  %v1606_v43 = vld [vmem:[%s2643_s30 + $0x8] sm:$0x8]  ;;  %v1295_v45 = vsel %vm1104_vm5, %v1292_v39, %v1294_v42 }
  0x5e   : > { %2327 = vmatprep.mubr.msk.bf16.mxu0 %vm2571_vm0, %v2570_v1  ;;  %2372 = vmatpush3.bf16.msra.mxu0 %v2523_v46  ;;  %v2061_v46 = vcombine.low %v1606_v43, %v2920_v12  ;;  %v1458_v12 = vshrl.u32 %v2966_v29, 16 }
  0x5f   : > { %2373 = vmatprep.subr.bf16.mxu0 %v2570_v1  ;;  %2342 = vmatpush3.bf16.msra.mxu1 %v2519_v48  ;;  %v1435_v48 = vshll.u32 %v2924_v16, 16  ;;  %v1624_v16 = vrot.slane %v2966_v29, 3 }
  0x60   : > { %2343 = vmatprep.subr.bf16.mxu1 %v2570_v1  ;;  %v1619_v51 = vrot.slane %v2061_v46, 3  ;;  %v1460_v19 = vrot.slane %v1458_v12, 2 }
  0x62   : > { %2374 = vmatpush3.bf16.msra.mxu0 %v2528_v52  ;;  %2296 = vmatmul.mubr.msk.bf16.gmra.mrb[36].mxu1 %vm382_vm2, %v775_v53  ;;  %v1620_v52 = vrot.slane %v2927_v17, 3  ;;  %v1115_v53 = vsel %vm1104_vm5, %v1112_v41, %v1114_v47  ;;  %v1456_v17 = vsel %vm1430_vm7, %v1446_v63, %v1455_v61 }
  0x63   : > { %2423 = vmatprep.subr.bf16.mxu0 %v2570_v1  ;;  %2299 = vmatprep.mubr.msk.bf16.mxu1 %vm2571_vm0, %v2570_v1 }
  0x64   : > { %2344 = vmatpush3.bf16.msra.mxu1 %v2522_v54  ;;  %v1434_v54 = vrot.slane %v1432_v58, 2  ;;  %v1621_v60 = vsel %vm1618_vm6, %v1619_v51, %v1620_v52 }
  0x65   : > { %2328 = vmatmul.mubr.msk.bf16.gmra.mrb[36].mxu0 %vm382_vm2, %v951_v55  ;;  %2345 = vmatprep.subr.bf16.mxu1 %v2570_v1  ;;  %v1437_v55 = vrot.slane %v1435_v48, 3 }
  0x66   : > { %2331 = vmatprep.mubr.msk.bf16.mxu0 %vm2571_vm0, %v2570_v1 }
  0x68   : > { %2346 = vmatpush3.bf16.msra.mxu1 %v2525_v62  ;;  %v1438_v62 = vor.u32 %v1437_v55, %v1434_v54 }
  0x69   : > { %2395 = vmatprep.subr.bf16.mxu1 %v2570_v1 }
  0x6a   : > { %2300 = vmatmul.mubr.msk.bf16.gmra.mrb[40].mxu1 %vm382_vm2, %v777_v4  ;;  %v1622_v4 = vrot.slane %v2945_v24, 3  ;;  %v1626_v24 = vrot.slane %v2995_v36, 3 }
  0x6b   : > { %2303 = vmatprep.mubr.msk.bf16.mxu1 %vm2571_vm0, %v2570_v1 }
  0x6c   : > { %v1623_v11 = vsel %vm1618_vm6, %v1620_v52, %v1622_v4  ;;  %v1625_v21 = vsel %vm1618_vm6, %v1622_v4, %v1624_v16 }
  0x6d   : > { %2332 = vmatmul.mubr.msk.bf16.gmra.mrb[40].mxu0 %vm382_vm2, %v960_v7  ;;  %v1447_v7 = vsel %vm1430_vm7, %v1438_v62, %v1446_v63 }
  0x6e   : > { %2335 = vmatprep.mubr.msk.bf16.mxu0 %vm2571_vm0, %v2570_v1 }
  0x72   : > { %2304 = vmatmul.mubr.msk.bf16.gmra.mrb[44].mxu1 %vm382_vm2, %v2776_v2  ;;  %v2533_v2 = vld [vmem:[%s3174_s1 + $0x100] sm:$0xff]  }
  0x73   : > { %2307 = vmatprep.mubr.msk.bf16.mxu1 %vm2571_vm0, %v2570_v1 }
  0x75   : > { %2336 = vmatmul.mubr.msk.bf16.gmra.mrb[44].mxu0 %vm382_vm2, %v969_v13  ;;  %v1461_v13 = vshll.u32 %v2966_v29, 16 }
  0x76   : > { %2375 = vmatprep.mubr.msk.bf16.mxu0 %vm2571_vm0, %v2570_v1 }
  0x77   : > { %v1463_v20 = vrot.slane %v1461_v13, 3 }
  0x79   : > { %v1464_v22 = vor.u32 %v1463_v20, %v1460_v19 }
  0x7a   : > { %2308 = vmatmul.mubr.msk.bf16.gmra.mrb[48].mxu1 %vm382_vm2, %v2788_v8  ;;  %v1107_v8 = vsel %vm1104_vm5, %v1105_v25, %v1106_v5 }
  0x7b   : > { %2347 = vmatprep.mubr.msk.bf16.mxu1 %vm2571_vm0, %v2570_v1  ;;  %v1465_v25 = vsel %vm1430_vm7, %v1455_v61, %v1464_v22 }
  0x7d   : > { %2376 = vmatmul.mubr.msk.bf16.vlgmr.msra.gmra.mrb[48].mxu0 %vm382_vm2, %v1287_v23  ;;  %v1467_v23 = vshrl.u32 %v2995_v36, 16 }
  0x7e   : > { %2424 = vmatpush3.bf16.msra.mxu0 %v2533_v2  ;;  %2379 = vmatprep.mubr.msk.bf16.mxu0 %vm2571_vm0, %v2570_v1  ;;  %v1470_v2 = vshll.u32 %v2995_v36, 16 }
  0x7f   : > { %2425 = vmatprep.subr.bf16.mxu0 %v2570_v1  ;;  %v1469_v5 = vrot.slane %v1467_v23, 2 }
  0x80   : > { %v1472_v15 = vrot.slane %v1470_v2, 3 }
  0x82   : > { %2426 = vmatpush3.bf16.msra.mxu0 %v2536_v26  ;;  %2348 = vmatmul.mubr.msk.bf16.vlgmr.msra.gmra.mrb[52].mxu1 %vm382_vm2, %v1107_v8  ;;  %v2545_v26 = vld [vmem:[%s2643_s30 + $0x30] ss:$0 sps:$4 sm:$0x77]   ;;  %v1627_v8 = vsel %vm1618_vm6, %v1624_v16, %v1626_v24  ;;  %s2460_s30 = smul.u32 40, %s3183_s15 }
  0x83   : > { %2427 = vmatprep.subr.bf16.mxu0 %v2570_v1  ;;  %2396 = vmatpush3.bf16.msra.mxu1 %v2532_v18  ;;  %v1473_v18 = vor.u32 %v1472_v15, %v1469_v5  ;;  %v1479_v29 = vshll.u32 %v2545_v26, 16 }
  0x84   : > { %2351 = vmatprep.mubr.msk.bf16.mxu1 %vm2571_vm0, %v2570_v1  ;;  %2397 = vmatprep.subr.bf16.mxu1 %v2570_v1  ;;  %s3107_s8 = scalar_lea.vmem %s3176_s3, %s2460_s30  ;;  %s3124_s13 = scalar_lea.vmem %s3177_s4, %s2460_s30 }
  0x85   : > { %2380 = vmatmul.mubr.msk.bf16.gmra.mrb[52].mxu0 %vm382_vm2, %v1289_v27  ;;  %v1476_v27 = vshrl.u32 %v2545_v26, 16  ;;  %v1474_v31 = vsel %vm1430_vm7, %v1464_v22, %v1473_v18  ;;  %v1481_v33 = vrot.slane %v1479_v29, 3 }
  0x86   : > { %2383 = vmatprep.mubr.msk.bf16.mxu0 %vm2571_vm0, %v2570_v1  ;;  %2428 = vmatpush3.bf16.msra.mxu0 %v2539_v30  ;;  %v1628_v30 = vrot.slane %v2545_v26, 3 }
  0x87   : > { %2429 = vmatprep.subr.bf16.mxu0 %v2570_v1  ;;  %2398 = vmatpush3.bf16.msra.mxu1 %v2535_v32  ;;  %v1478_v32 = vrot.slane %v1476_v27, 2 }
  0x88   : > { %2399 = vmatprep.subr.bf16.mxu1 %v2570_v1 }
  0x8a   : > { %2430 = vmatpush3.bf16.msra.mxu0 %v2543_v6  ;;  %2352 = vmatmul.mubr.msk.bf16.gmra.mrb[56].mxu1 %vm382_vm2, %v1109_v28  ;;  %v1629_v6 = vsel %vm1618_vm6, %v1626_v24, %v1628_v30  ;;  %v1482_v28 = vor.u32 %v1481_v33, %v1478_v32 }
  0x8b   : > { %2355 = vmatprep.mubr.msk.bf16.mxu1 %vm2571_vm0, %v2570_v1  ;;  %2400 = vmatpush3.bf16.msra.mxu1 %v2538_v34 }
  0x8c   : > { %2401 = vmatprep.subr.bf16.mxu1 %v2570_v1  ;;  %v1483_v34 = vsel %vm1430_vm7, %v1473_v18, %v1482_v28 }
  0x8d   : > { %2384 = vmatmul.mubr.msk.bf16.gmra.mrb[56].mxu0 %vm382_vm2, %v1291_v35 }
  0x8e   : > { %2387 = vmatprep.mubr.msk.bf16.mxu0 %vm2571_vm0, %v2570_v1 }
  0x8f   : > { %2402 = vmatpush3.bf16.msra.mxu1 %v2541_v38 }
  0x92   : > { %2356 = vmatmul.mubr.msk.bf16.gmra.mrb[60].mxu1 %vm382_vm2, %v1111_v40 }
  0x93   : > { %2359 = vmatprep.mubr.msk.bf16.mxu1 %vm2571_vm0, %v2570_v1 }
  0x95   : > { %2388 = vmatmul.mubr.msk.bf16.gmra.mrb[60].mxu0 %vm382_vm2, %v1293_v57 }
  0x96   : > { %2391 = vmatprep.mubr.msk.bf16.mxu0 %vm2571_vm0, %v2570_v1 }
  0x9a   : > { %2360 = vmatmul.mubr.msk.bf16.gmra.mrb[64].mxu1 %vm382_vm2, %v1113_v44 }
  0x9b   : > { %2363 = vmatprep.mubr.msk.bf16.mxu1 %vm2571_vm0, %v2570_v1 }
  0x9d   : > { %2392 = vmatmul.mubr.msk.bf16.gmra.mrb[64].mxu0 %vm382_vm2, %v1295_v45 }
  0x9e   : > { %2431 = vmatprep.mubr.msk.bf16.mxu0 %vm2571_vm0, %v2570_v1 }
  0xa2   : > { %2364 = vmatmul.mubr.msk.bf16.gmra.mrb[68].mxu1 %vm382_vm2, %v1115_v53 }
  0xa3   : > { %2403 = vmatprep.mubr.msk.bf16.mxu1 %vm2571_vm0, %v2570_v1 }
  0xa5   : > { %2432 = vmatmul.mubr.msk.bf16.vlgmr.msra.gmra.mrb[68].mxu0 %vm382_vm2, %v1621_v60 }
  0xa6   : > { %2435 = vmatprep.mubr.msk.bf16.mxu0 %vm2571_vm0, %v2570_v1 }
  0xaa   : > { %2404 = vmatmul.mubr.msk.bf16.vlgmr.msra.gmra.mrb[72].mxu1 %vm382_vm2, %v1447_v7 }
  0xab   : > { %2407 = vmatprep.mubr.msk.bf16.mxu1 %vm2571_vm0, %v2570_v1 }
  0xad   : > { %2436 = vmatmul.mubr.msk.bf16.gmra.mrb[72].mxu0 %vm382_vm2, %v1623_v11 }
  0xae   : > { %2439 = vmatprep.mubr.msk.bf16.mxu0 %vm2571_vm0, %v2570_v1 }
  0xb2   : > { %2408 = vmatmul.mubr.msk.bf16.gmra.mrb[76].mxu1 %vm382_vm2, %v1456_v17 }
  0xb3   : > { %2411 = vmatprep.mubr.msk.bf16.mxu1 %vm2571_vm0, %v2570_v1 }
  0xb5   : > { %2440 = vmatmul.mubr.msk.bf16.gmra.mrb[76].mxu0 %vm382_vm2, %v1625_v21 }
  0xb6   : > { %2443 = vmatprep.mubr.msk.bf16.mxu0 %vm2571_vm0, %v2570_v1 }
  0xba   : > { %2412 = vmatmul.mubr.msk.bf16.gmra.mrb[80].mxu1 %vm382_vm2, %v1465_v25 }
  0xbb   : > { %2415 = vmatprep.mubr.msk.bf16.mxu1 %vm2571_vm0, %v2570_v1 }
  0xbd   : > { %2444 = vmatmul.mubr.msk.bf16.gmra.mrb[80].mxu0 %vm382_vm2, %v1627_v8 }
  0xbe   : > { %2447 = vmatprep.mubr.msk.bf16.mxu0 %vm2571_vm0, %v2570_v1 }
  0xc2   : > { %2416 = vmatmul.mubr.msk.bf16.gmra.mrb[84].mxu1 %vm382_vm2, %v1474_v31 }
  0xc3   : > { %2419 = vmatprep.mubr.msk.bf16.mxu1 %vm2571_vm0, %v2570_v1 }
  0xc5   : > { %2448 = vmatmul.mubr.msk.bf16.gmra.mrb[84].mxu0 %vm382_vm2, %v1629_v6 }
  0xca   : > { %2420 = vmatmul.mubr.msk.bf16.gmra.mrb[88].mxu1 %vm382_vm2, %v1483_v34 }
  0xed   : > { %v448_v35 = vpop.f32.mrb[0].mxu1 }
  0xee   : > { %v2217_v36 = vpop.f32.mrb[1].mxu1 }
  0xef   : > { %v451_v37 = vpop.f32.mrb[2].mxu1 }
  0xf0   : > { %v432_v38 = vpop.f32.mrb[0].mxu0  ;;  %v2218_v39 = vpop.f32.mrb[3].mxu1 }
  0xf1   : > { %v2209_v40 = vpop.f32.mrb[1].mxu0 }
  0xf2   : > { %v435_v57 = vpop.f32.mrb[2].mxu0 }
  0xf3   : > { %v2210_v14 = vpop.f32.mrb[3].mxu0 }
  0xf5   : > { %v456_v41 = vpop.f32.mrb[4].mxu1 }
  0xf6   : > { %v2221_v42 = vpop.f32.mrb[5].mxu1 }
  0xf7   : > { %v459_v43 = vpop.f32.mrb[6].mxu1 }
  0xf8   : > { %v440_v44 = vpop.f32.mrb[4].mxu0  ;;  %v2222_v1 = vpop.f32.mrb[7].mxu1 }
  0xf9   : > { %v2213_v45 = vpop.f32.mrb[5].mxu0 }
  0xfa   : > { %v443_v46 = vpop.f32.mrb[6].mxu0 }
  0xfb   : > { %v2214_v47 = vpop.f32.mrb[7].mxu0 }
  0xfd   : > { %v464_v58 = vpop.f32.mrb[8].mxu1 }
  0xfe   : > { %v2225_v48 = vpop.f32.mrb[9].mxu1 }
  0xff   : > { %v467_v49 = vpop.f32.mrb[10].mxu1 }
 0x100   : > { %v675_v50 = vpop.f32.mrb[8].mxu0  ;;  %v2226_v51 = vpop.f32.mrb[11].mxu1 }
 0x101   : > { %v2265_v52 = vpop.f32.mrb[9].mxu0 }
 0x102   : > { %v678_v53 = vpop.f32.mrb[10].mxu0 }
 0x103   : > { %v2266_v54 = vpop.f32.mrb[11].mxu0 }
 0x105   : > { %v539_v55 = vpop.f32.mrb[12].mxu1 }
 0x106   : > { %v540_v56 = vadd.f32 %v539_v55, %v432_v38  ;;  %v2237_v59 = vpop.f32.mrb[13].mxu1 }
 0x107   : > { %v542_v60 = vpop.f32.mrb[14].mxu1 }
 0x108   : > { %v683_v62 = vpop.f32.mrb[12].mxu0  ;;  %v714_v63 = vadd.f32 %v675_v50, %v540_v56  ;;  %v543_v0 = vadd.f32 %v542_v60, %v435_v57  ;;  %v2238_v3 = vpop.f32.mrb[15].mxu1 }
 0x109   : > { %v2269_v4 = vpop.f32.mrb[13].mxu0 }
 0x10a   : > { %v686_v7 = vpop.f32.mrb[14].mxu0  ;;  %v715_v9 = vadd.f32 %v678_v53, %v543_v0 }
 0x10b   : > { %v2270_v10 = vpop.f32.mrb[15].mxu0 }
 0x10d   : > { %v547_v11 = vpop.f32.mrb[16].mxu1 }
 0x10e   : > { %v548_v61 = vadd.f32 %v547_v11, %v440_v44  ;;  %v2241_v12 = vpop.f32.mrb[17].mxu1 }
 0x10f   : > { %v550_v13 = vpop.f32.mrb[18].mxu1 }
 0x110   : > { %v691_v16 = vpop.f32.mrb[16].mxu0  ;;  %v716_v17 = vadd.f32 %v683_v62, %v548_v61  ;;  %v551_v19 = vadd.f32 %v550_v13, %v443_v46  ;;  %v2242_v20 = vpop.f32.mrb[19].mxu1 }
 0x111   : > { %v2273_v21 = vpop.f32.mrb[17].mxu0 }
 0x112   : > { %v694_v22 = vpop.f32.mrb[18].mxu0  ;;  %v717_v23 = vadd.f32 %v686_v7, %v551_v19 }
 0x113   : > { %v2274_v2 = vpop.f32.mrb[19].mxu0 }
 0x115   : > { %v555_v24 = vpop.f32.mrb[20].mxu1 }
 0x116   : > { %v556_v25 = vadd.f32 %v555_v24, %v448_v35  ;;  %v2245_v5 = vpop.f32.mrb[21].mxu1 }
 0x117   : > { %v558_v15 = vpop.f32.mrb[22].mxu1 }
 0x118   : > { %v699_v26 = vpop.f32.mrb[20].mxu0  ;;  %v718_v8 = vadd.f32 %v691_v16, %v556_v25  ;;  %v559_v18 = vadd.f32 %v558_v15, %v451_v37  ;;  %v2246_v27 = vpop.f32.mrb[23].mxu1 }
 0x119   : > { %v2277_v29 = vpop.f32.mrb[21].mxu0 }
 0x11a   : > { %v702_v30 = vpop.f32.mrb[22].mxu0  ;;  %v719_v31 = vadd.f32 %v694_v22, %v559_v18 }
 0x11b   : > { %v2278_v32 = vpop.f32.mrb[23].mxu0 }
 0x11d   : > { %v563_v33 = vpop.f32.mrb[24].mxu1 }
 0x11e   : > { %v564_v6 = vadd.f32 %v563_v33, %v456_v41  ;;  %v2249_v28 = vpop.f32.mrb[25].mxu1 }
 0x11f   : > { %v566_v34 = vpop.f32.mrb[26].mxu1 }
 0x120   : > { %v707_v36 = vpop.f32.mrb[24].mxu0  ;;  %v720_v38 = vadd.f32 %v699_v26, %v564_v6  ;;  %v567_v39 = vadd.f32 %v566_v34, %v459_v43  ;;  %v2250_v40 = vpop.f32.mrb[27].mxu1 }
 0x121   : > { %v2281_v57 = vpop.f32.mrb[25].mxu0 }
 0x122   : > { %v710_v35 = vpop.f32.mrb[26].mxu0  ;;  %v721_v14 = vadd.f32 %v702_v30, %v567_v39 }
 0x123   : > { %v2282_v42 = vpop.f32.mrb[27].mxu0 }
 0x125   : > { %v571_v44 = vpop.f32.mrb[28].mxu1 }
 0x126   : > { %v572_v1 = vadd.f32 %v571_v44, %v464_v58  ;;  %v2253_v37 = vpop.f32.mrb[29].mxu1 }
 0x127   : > { %v574_v45 = vpop.f32.mrb[30].mxu1 }
 0x128   : > { %v1043_v46 = vpop.f32.mrb[28].mxu0  ;;  %v722_v47 = vadd.f32 %v707_v36, %v572_v1  ;;  %v575_v48 = vadd.f32 %v574_v45, %v467_v49  ;;  %v2254_v50 = vpop.f32.mrb[31].mxu1 }
 0x129   : > { %v2321_v51 = vpop.f32.mrb[29].mxu0 }
 0x12a   : > { %v1046_v41 = vpop.f32.mrb[30].mxu0  ;;  %v723_v52 = vadd.f32 %v710_v35, %v575_v48 }
 0x12b   : > { %v2322_v53 = vpop.f32.mrb[31].mxu0 }
 0x12d   : > { %v855_v54 = vpop.f32.mrb[32].mxu1 }
 0x12e   : > { %v894_v55 = vadd.f32 %v855_v54, %v714_v63  ;;  %v2293_v43 = vpop.f32.mrb[33].mxu1 }
 0x12f   : > { %v858_v56 = vpop.f32.mrb[34].mxu1 }
 0x130   : > { %v1051_v59 = vpop.f32.mrb[32].mxu0  ;;  %v1082_v60 = vadd.f32 %v1043_v46, %v894_v55  ;;  %v895_v62 = vadd.f32 %v858_v56, %v715_v9  ;;  %v2294_v0 = vpop.f32.mrb[35].mxu1 }
 0x131   : > { %v2325_v3 = vpop.f32.mrb[33].mxu0 }
 0x132   : > { %v1054_v58 = vpop.f32.mrb[34].mxu0  ;;  %v1083_v4 = vadd.f32 %v1046_v41, %v895_v62 }
 0x133   : > { %v2326_v7 = vpop.f32.mrb[35].mxu0 }
 0x135   : > { %v863_v10 = vpop.f32.mrb[36].mxu1 }
 0x136   : > { %v896_v11 = vadd.f32 %v863_v10, %v716_v17  ;;  %v2297_v49 = vpop.f32.mrb[37].mxu1 }
 0x137   : > { %v866_v61 = vpop.f32.mrb[38].mxu1 }
 0x138   : > { %v1059_v12 = vpop.f32.mrb[36].mxu0  ;;  %v1084_v13 = vadd.f32 %v1051_v59, %v896_v11  ;;  %v897_v16 = vadd.f32 %v866_v61, %v717_v23  ;;  %v2298_v19 = vpop.f32.mrb[39].mxu1 }
 0x139   : > { %v2329_v20 = vpop.f32.mrb[37].mxu0 }
 0x13a   : > { %v1062_v63 = vpop.f32.mrb[38].mxu0  ;;  %v1085_v21 = vadd.f32 %v1054_v58, %v897_v16 }
 0x13b   : > { %v2330_v22 = vpop.f32.mrb[39].mxu0 }
 0x13d   : > { %v871_v2 = vpop.f32.mrb[40].mxu1 }
 0x13e   : > { %v898_v24 = vadd.f32 %v871_v2, %v718_v8  ;;  %v2301_v9 = vpop.f32.mrb[41].mxu1 }
 0x13f   : > { %v874_v25 = vpop.f32.mrb[42].mxu1 }
 0x140   : > { %v1067_v5 = vpop.f32.mrb[40].mxu0  ;;  %v1086_v15 = vadd.f32 %v1059_v12, %v898_v24  ;;  %v899_v26 = vadd.f32 %v874_v25, %v719_v31  ;;  %v2302_v18 = vpop.f32.mrb[43].mxu1 }
 0x141   : > { %v2333_v27 = vpop.f32.mrb[41].mxu0 }
 0x142   : > { %v1070_v17 = vpop.f32.mrb[42].mxu0  ;;  %v1087_v29 = vadd.f32 %v1062_v63, %v899_v26 }
 0x143   : > { %v2334_v30 = vpop.f32.mrb[43].mxu0 }
 0x145   : > { %v879_v32 = vpop.f32.mrb[44].mxu1 }
 0x146   : > { %v900_v33 = vadd.f32 %v879_v32, %v720_v38  ;;  %v2305_v23 = vpop.f32.mrb[45].mxu1 }
 0x147   : > { %v882_v6 = vpop.f32.mrb[46].mxu1 }
 0x148   : > { %v1075_v28 = vpop.f32.mrb[44].mxu0  ;;  %v1088_v34 = vadd.f32 %v1067_v5, %v900_v33  ;;  %v901_v36 = vadd.f32 %v882_v6, %v721_v14  ;;  %v2306_v39 = vpop.f32.mrb[47].mxu1 }
 0x149   : > { %v2337_v40 = vpop.f32.mrb[45].mxu0 }
 0x14a   : > { %v1078_v8 = vpop.f32.mrb[46].mxu0  ;;  %v1089_v57 = vadd.f32 %v1070_v17, %v901_v36 }
 0x14b   : > { %v2338_v35 = vpop.f32.mrb[47].mxu0 }
 0x14d   : > { %v887_v42 = vpop.f32.mrb[48].mxu1 }
 0x14e   : > { %v902_v44 = vadd.f32 %v887_v42, %v722_v47  ;;  %v2309_v31 = vpop.f32.mrb[49].mxu1 }
 0x14f   : > { %v890_v1 = vpop.f32.mrb[50].mxu1 }
 0x150   : > { %v1369_v37 = vpop.f32.mrb[48].mxu0  ;;  %v1090_v45 = vadd.f32 %v1075_v28, %v902_v44  ;;  %v903_v46 = vadd.f32 %v890_v1, %v723_v52  ;;  %v2310_v48 = vpop.f32.mrb[51].mxu1 }
 0x151   : > { %v2377_v50 = vpop.f32.mrb[49].mxu0 }
 0x152   : > { %v1372_v38 = vpop.f32.mrb[50].mxu0  ;;  %v1091_v51 = vadd.f32 %v1078_v8, %v903_v46 }
 0x153   : > { %v2378_v41 = vpop.f32.mrb[51].mxu0 }
 0x155   : > { %v1189_v53 = vpop.f32.mrb[52].mxu1 }
 0x156   : > { %v1228_v54 = vadd.f32 %v1189_v53, %v1082_v60  ;;  %v2349_v14 = vpop.f32.mrb[53].mxu1 }
 0x157   : > { %v1192_v55 = vpop.f32.mrb[54].mxu1 }
 0x158   : > { %v1377_v43 = vpop.f32.mrb[52].mxu0  ;;  %v1408_v56 = vadd.f32 %v1369_v37, %v1228_v54  ;;  %v1229_v59 = vadd.f32 %v1192_v55, %v1083_v4  ;;  %v2350_v62 = vpop.f32.mrb[55].mxu1 }
 0x159   : > { %v2381_v0 = vpop.f32.mrb[53].mxu0 }
 0x15a   : > { %v1380_v47 = vpop.f32.mrb[54].mxu0  ;;  %v1409_v3 = vadd.f32 %v1372_v38, %v1229_v59  ;;  %v2095_v38 = vld [vmem:[%s3107_s8] sm:$0xff]  }
 0x15b   : > { %v2382_v58 = vpop.f32.mrb[55].mxu0 }
 0x15d   : > { %v1197_v7 = vpop.f32.mrb[56].mxu1 }
 0x15e   : > { %v1230_v10 = vadd.f32 %v1197_v7, %v1084_v13  ;;  %v2353_v52 = vpop.f32.mrb[57].mxu1 }
 0x15f   : > { %v1200_v11 = vpop.f32.mrb[58].mxu1 }
 0x160   : > { %v1385_v49 = vpop.f32.mrb[56].mxu0  ;;  %v3085_v61 = vadd.f32 %v1377_v43, %v1230_v10  ;;  %v1231_v12 = vadd.f32 %v1200_v11, %v1085_v21  ;;  %v2354_v16 = vpop.f32.mrb[59].mxu1  ;;  %v2096_v43 = vunpack.c.l.bf16 %v2095_v38 }
 0x161   : > { %v2385_v60 = vpop.f32.mrb[57].mxu0 }
 0x162   : > { %v1388_v19 = vpop.f32.mrb[58].mxu0  ;;  %v3087_v20 = vadd.f32 %v1380_v47, %v1231_v12 }
 0x163   : > { %v2386_v63 = vpop.f32.mrb[59].mxu0 }
 0x165   : > { %v1205_v4 = vpop.f32.mrb[60].mxu1 }
 0x166   : > { %v1232_v22 = vadd.f32 %v1205_v4, %v1086_v15  ;;  %v2357_v2 = vpop.f32.mrb[61].mxu1 }
 0x167   : > { %v1208_v24 = vpop.f32.mrb[62].mxu1 }
 0x168   : > { %v1393_v9 = vpop.f32.mrb[60].mxu0  ;;  %v3089_v25 = vadd.f32 %v1385_v49, %v1232_v22  ;;  %v1233_v13 = vadd.f32 %v1208_v24, %v1087_v29  ;;  %v2358_v5 = vpop.f32.mrb[63].mxu1  ;;  %v2114_v49 = vld [vmem:[%s3107_s8 + $0x8] sm:$0xff]  }
 0x169   : > { %v2389_v26 = vpop.f32.mrb[61].mxu0 }
 0x16a   : > { %v1396_v18 = vpop.f32.mrb[62].mxu0  ;;  %v3091_v27 = vadd.f32 %v1388_v19, %v1233_v13 }
 0x16b   : > { %v2390_v21 = vpop.f32.mrb[63].mxu0 }
 0x16d   : > { %v1213_v17 = vpop.f32.mrb[64].mxu1 }
 0x16e   : > { %v1234_v30 = vadd.f32 %v1213_v17, %v1088_v34  ;;  %v2361_v32 = vpop.f32.mrb[65].mxu1 }
 0x16f   : > { %v1216_v33 = vpop.f32.mrb[66].mxu1 }
 0x170   : > { %v1401_v23 = vpop.f32.mrb[64].mxu0  ;;  %v3093_v6 = vadd.f32 %v1393_v9, %v1234_v30  ;;  %v1235_v15 = vadd.f32 %v1216_v33, %v1089_v57  ;;  %v2362_v28 = vpop.f32.mrb[67].mxu1  ;;  %v2101_v30 = vunpack.c.h.bf16 %v2114_v49 }
 0x171   : > { %v2393_v36 = vpop.f32.mrb[65].mxu0 }
 0x172   : > { %v1404_v39 = vpop.f32.mrb[66].mxu0  ;;  %v3095_v29 = vadd.f32 %v1396_v18, %v1235_v15  ;;  %v2115_v15 = vld [vmem:[%s3107_s8 + $0x10] sm:$0xff]  }
 0x173   : > { %v2394_v40 = vpop.f32.mrb[67].mxu0 }
 0x175   : > { %v1221_v8 = vpop.f32.mrb[68].mxu1 }
 0x176   : > { %v1236_v35 = vadd.f32 %v1221_v8, %v1090_v45  ;;  %v2365_v42 = vpop.f32.mrb[69].mxu1  ;;  %v2104_v8 = vunpack.c.l.bf16 %v2115_v15 }
 0x177   : > { %v1224_v44 = vpop.f32.mrb[70].mxu1 }
 0x178   : > { %v1703_v31 = vpop.f32.mrb[68].mxu0  ;;  %v3098_v34 = vadd.f32 %v1401_v23, %v1236_v35  ;;  %v1237_v1 = vadd.f32 %v1224_v44, %v1091_v51  ;;  %v2366_v37 = vpop.f32.mrb[71].mxu1  ;;  %v3113_v51 = vld [vmem:[%s3175_s2] ss:$0 sm:$0xff] }
 0x179   : > { %v2433_v46 = vpop.f32.mrb[69].mxu0 }
 0x17a   : > { %v1706_v48 = vpop.f32.mrb[70].mxu0  ;;  %v3100_v57 = vadd.f32 %v1404_v39, %v1237_v1 }
 0x17b   : > { %v2434_v45 = vpop.f32.mrb[71].mxu0 }
 0x17d   : > { %v1557_v50 = vpop.f32.mrb[72].mxu1 }
 0x17e   : > { %v1596_v41 = vadd.f32 %v1557_v50, %v1408_v56  ;;  %v2405_v53 = vpop.f32.mrb[73].mxu1  ;;  %v2097_v56 = vunpack.c.h.bf16 %v2095_v38 }
 0x17f   : > { %v1560_v54 = vpop.f32.mrb[74].mxu1 }
 0x180   : > { %v1711_v14 = vpop.f32.mrb[72].mxu0  ;;  %v1742_v55 = vadd.f32 %v1703_v31, %v1596_v41  ;;  %v1597_v59 = vadd.f32 %v1560_v54, %v1409_v3  ;;  %v2406_v62 = vpop.f32.mrb[75].mxu1  ;;  %v2100_v3 = vunpack.c.l.bf16 %v2114_v49  ;;  %v2105_v41 = vunpack.c.h.bf16 %v2115_v15 }
 0x181   : > { %v2437_v0 = vpop.f32.mrb[73].mxu0 }
 0x182   : > { %v1714_v47 = vpop.f32.mrb[74].mxu0  ;;  %v1759_v58 = vadd.f32 %v3113_v51, %v1742_v55  ;;  %v1743_v7 = vadd.f32 %v1706_v48, %v1597_v59  ;;  %v2116_v55 = vld [vmem:[%s3107_s8 + $0x18] sm:$0xff]  }
 0x183   : > { %v2438_v10 = vpop.f32.mrb[75].mxu0 }
 0x184   : > { %v1789_v52 = vadd.f32 %v2096_v43, %v1759_v58  ;;  %v1760_v11 = vadd.f32 %v3113_v51, %v1743_v7 }
 0x185   : > { %v1565_v12 = vpop.f32.mrb[76].mxu1 }
 0x186   : > { %v1799_v16 = vmax.f32 %v1789_v52, 0.0  ;;  %v1790_v60 = vadd.f32 %v2097_v56, %v1760_v11  ;;  %v1598_v19 = vadd.f32 %v1565_v12, %v3085_v61  ;;  %v2409_v63 = vpop.f32.mrb[77].mxu1 }
 0x187   : > { %v1568_v4 = vpop.f32.mrb[78].mxu1  ;;  %v2109_v63 = vunpack.c.h.bf16 %v2116_v55 }
 0x188   : > { %v1719_v22 = vpop.f32.mrb[76].mxu0  ;;  %v2084_v2 = vpack.c.bf16 %v1799_v16, %v1799_v16  ;;  %v1800_v24 = vmax.f32 %v1790_v60, 0.0  ;;  %v1744_v9 = vadd.f32 %v1711_v14, %v1598_v19  ;;  %v1599_v13 = vadd.f32 %v1568_v4, %v3087_v20  ;;  %v2410_v61 = vpop.f32.mrb[79].mxu1 }
 0x189   : > { %v2441_v5 = vpop.f32.mrb[77].mxu0 }
 0x18a   : > { %v1722_v26 = vpop.f32.mrb[78].mxu0  ;;  %1850 = vst.msk [vmem:[%s3124_s13] sm:$0xf] %vm1849_vm8, %v2084_v2  ;;  %v2085_v18 = vpack.c.bf16 %v1800_v24, %v1800_v24  ;;  %v1761_v21 = vadd.f32 %v3113_v51, %v1744_v9  ;;  %v1745_v17 = vadd.f32 %v1714_v47, %v1599_v13  ;;  %v2108_v47 = vunpack.c.l.bf16 %v2116_v55  ;;  %v2117_v2 = vld [vmem:[%s3107_s8 + $0x20] sm:$0xff]  }
 0x18b   : > { %v2442_v32 = vpop.f32.mrb[79].mxu0  ;;  %v2112_v5 = vunpack.c.l.bf16 %v2117_v2 }
 0x18c   : > { %1851 = vst.msk [vmem:[%s3124_s13 + $0x4] sm:$0xf] %vm1849_vm8, %v2085_v18  ;;  %v1791_v33 = vadd.f32 %v2100_v3, %v1761_v21  ;;  %v1762_v23 = vadd.f32 %v3113_v51, %v1745_v17 }
 0x18d   : > { %v1573_v28 = vpop.f32.mrb[80].mxu1 }
 0x18e   : > { %v1801_v20 = vmax.f32 %v1791_v33, 0.0  ;;  %v1792_v36 = vadd.f32 %v2101_v30, %v1762_v23  ;;  %v1600_v39 = vadd.f32 %v1573_v28, %v3089_v25  ;;  %v2413_v40 = vpop.f32.mrb[81].mxu1  ;;  %v2113_v28 = vunpack.c.h.bf16 %v2117_v2 }
 0x18f   : > { %v1576_v35 = vpop.f32.mrb[82].mxu1 }
 0x190   : > { %v1727_v42 = vpop.f32.mrb[80].mxu0  ;;  %v2086_v44 = vpack.c.bf16 %v1801_v20, %v1801_v20  ;;  %v1802_v31 = vmax.f32 %v1792_v36, 0.0  ;;  %v1746_v1 = vadd.f32 %v1719_v22, %v1600_v39  ;;  %v1601_v37 = vadd.f32 %v1576_v35, %v3091_v27  ;;  %v2414_v46 = vpop.f32.mrb[83].mxu1 }
 0x191   : > { %v2445_v48 = vpop.f32.mrb[81].mxu0 }
 0x192   : > { %v1730_v45 = vpop.f32.mrb[82].mxu0  ;;  %1852 = vst.msk [vmem:[%s3124_s13 + $0x8] sm:$0xf] %vm1849_vm8, %v2086_v44  ;;  %v2087_v50 = vpack.c.bf16 %v1802_v31, %v1802_v31  ;;  %v1763_v38 = vadd.f32 %v3113_v51, %v1746_v1  ;;  %v1747_v25 = vadd.f32 %v1722_v26, %v1601_v37 }
 0x193   : > { %v2446_v53 = vpop.f32.mrb[83].mxu0 }
 0x194   : > { %1853 = vst.msk [vmem:[%s3124_s13 + $0xc] sm:$0xf] %vm1849_vm8, %v2087_v50  ;;  %v1793_v54 = vadd.f32 %v2104_v8, %v1763_v38  ;;  %v1764_v14 = vadd.f32 %v3113_v51, %v1747_v25 }
 0x195   : > { %v1581_v43 = vpop.f32.mrb[84].mxu1 }
 0x196   : > { %v1803_v27 = vmax.f32 %v1793_v54, 0.0  ;;  %v1794_v59 = vadd.f32 %v2105_v41, %v1764_v14  ;;  %v1602_v62 = vadd.f32 %v1581_v43, %v3093_v6  ;;  %v2417_v0 = vpop.f32.mrb[85].mxu1 }
 0x197   : > { %v1584_v58 = vpop.f32.mrb[86].mxu1 }
 0x198   : > { %v1735_v7 = vpop.f32.mrb[84].mxu0  ;;  %v2088_v56 = vpack.c.bf16 %v1803_v27, %v1803_v27  ;;  %v1804_v10 = vmax.f32 %v1794_v59, 0.0  ;;  %v1748_v52 = vadd.f32 %v1727_v42, %v1602_v62  ;;  %v1603_v11 = vadd.f32 %v1584_v58, %v3095_v29  ;;  %v2418_v49 = vpop.f32.mrb[87].mxu1 }
 0x199   : > { %v2449_v12 = vpop.f32.mrb[85].mxu0 }
 0x19a   : > { %v1738_v16 = vpop.f32.mrb[86].mxu0  ;;  %1854 = vst.msk [vmem:[%s3124_s13 + $0x10] sm:$0xf] %vm1849_vm8, %v2088_v56  ;;  %v2089_v60 = vpack.c.bf16 %v1804_v10, %v1804_v10  ;;  %v1765_v19 = vadd.f32 %v3113_v51, %v1748_v52  ;;  %v1749_v6 = vadd.f32 %v1730_v45, %v1603_v11 }
 0x19b   : > { %v2450_v3 = vpop.f32.mrb[87].mxu0 }
 0x19c   : > { %1855 = vst.msk [vmem:[%s3124_s13 + $0x14] sm:$0xf] %vm1849_vm8, %v2089_v60  ;;  %v1795_v4 = vadd.f32 %v2108_v47, %v1765_v19  ;;  %v1766_v22 = vadd.f32 %v3113_v51, %v1749_v6 }
 0x19d   : > { %v1589_v24 = vpop.f32.mrb[88].mxu1 }
 0x19e   : > { %v1805_v29 = vmax.f32 %v1795_v4, 0.0  ;;  %v1796_v9 = vadd.f32 %v2109_v63, %v1766_v22  ;;  %v1604_v13 = vadd.f32 %v1589_v24, %v3098_v34  ;;  %v2421_v61 = vpop.f32.mrb[89].mxu1 }
 0x19f   : > { %v1592_v26 = vpop.f32.mrb[90].mxu1 }
 0x1a0   : > { %v2090_v18 = vpack.c.bf16 %v1805_v29, %v1805_v29  ;;  %v1806_v21 = vmax.f32 %v1796_v9, 0.0  ;;  %v1750_v17 = vadd.f32 %v1735_v7, %v1604_v13  ;;  %v1605_v30 = vadd.f32 %v1592_v26, %v3100_v57  ;;  %v2422_v32 = vpop.f32.mrb[91].mxu1 }
 0x1a2   : > { %1856 = vst.msk [vmem:[%s3124_s13 + $0x18] sm:$0xf] %vm1849_vm8, %v2090_v18  ;;  %v2091_v33 = vpack.c.bf16 %v1806_v21, %v1806_v21  ;;  %v1767_v23 = vadd.f32 %v3113_v51, %v1750_v17  ;;  %v1751_v15 = vadd.f32 %v1738_v16, %v1605_v30 }
 0x1a4   : > { %1857 = vst.msk [vmem:[%s3124_s13 + $0x1c] sm:$0xf] %vm1849_vm8, %v2091_v33  ;;  %v1797_v34 = vadd.f32 %v2112_v5, %v1767_v23  ;;  %v1768_v20 = vadd.f32 %v3113_v51, %v1751_v15 }
 0x1a6   : > { %v1807_v36 = vmax.f32 %v1797_v34, 0.0  ;;  %v1798_v39 = vadd.f32 %v2113_v28, %v1768_v20 }
 0x1a8   : > { %v2092_v40 = vpack.c.bf16 %v1807_v36, %v1807_v36  ;;  %v1808_v8 = vmax.f32 %v1798_v39, 0.0 }
 0x1aa   : > { %1858 = vst.msk [vmem:[%s3124_s13 + $0x20] sm:$0xf] %vm1849_vm8, %v2092_v40  ;;  %v2093_v57 = vpack.c.bf16 %v1808_v8, %v1808_v8 }
 0x1ac   : > { %1859 = vst.msk [vmem:[%s3124_s13 + $0x24] sm:$0xf] %vm1849_vm8, %v2093_v57 }
 0x1ad PF: > { %s14_s17 = sadd.s32 1, %s2568_s17   ;;  %s3178_s15 = smov %s2564_s16 }
 0x1ae   : > { %p11_p5 = scmp.ge.s32.totalorder %s14_s17, 4   ;;  %s3179_s16 = smov %s3181_s18 }
 0x1b0   :  { %13 = sbr.rel (!%p11_p5) target bundleno = 2 (0x2), region = 69 }

// kernel: pretrained_image_encoding_forward.17
= control target key start
LH: loop header
LB: loop body
LE: loop exit
PB: predicated region body
PF: predicated region fallthrough
CT: control target
= control target key end

     0   :  { %s1734_s12 = smov 0   ;;  %s1736_s13 = smov 0   ;;  %s2066_s0 = inlined_call_operand.vmem [shape: bf16[2,59,128], index: 0, kind: input, shape index: {}]   ;;  %s2067_s1 = inlined_call_operand.vmem [shape: bf16[768,128], index: 1, kind: input, shape index: {}]   ;;  %s2068_s2 = inlined_call_operand.vmem [shape: f32[1,128], index: 2, kind: input, shape index: {}]   ;;  %s2069_s3 = inlined_call_operand.vmem [shape: bf16[2,48,128], index: 3, kind: output, shape index: {}]  }
   0x1   :  { %s1738_s14 = smov 0  }
   0x2 LB: > { %s25_s15 = sadd.s32 1, %s1706_s13  ;;  %p1270_p0 = scmp.ge.s32.totalorder %s1710_s14, 1  ;;  %s1710_s14 = sphi %s1738_s14, %s13_s14   ;;  %s1706_s13 = sphi %s1736_s13, %s2071_s13   ;;  %s1702_s12 = sphi %s1734_s12, %s2070_s12  }
   0x3   : > { %p27_p1 = scmp.ge.s32.totalorder %s25_s15, 2  ;;  %p151_p2 = scmp.lt.s32.totalorder %s1710_s14, 3 }
   0x5   : > { %s2073_s15 = smov (%p27_p1, %s25_s15), 0  ;;  %p152_p3 = pnand %p1270_p0, %p151_p2 }
   0x6   : > { %v1628_v0 = vld [vmem:[%s2067_s1 + $0x40] sm:$0xff] (!%p152_p3)   ;;  %v1712_v1 = vmov (!%p152_p3), 0.0   ;;  %v1630_v3 = vld [vmem:[%s2067_s1 + $0x48] sm:$0xff] (!%p152_p3)   ;;  %vm1713_vm0 = vmmov (!%p152_p3), 0   ;;  %p179_p4 = scmp.lt.s32.totalorder (!%p152_p3), %s1702_s12, 1  ;;  %v1632_v5 = vld [vmem:[%s2067_s1 + $0x50] sm:$0xff] (!%p152_p3)  }
   0x7   : > { %155 = sbr.rel (%p152_p3) target bundleno = 344 (0x158), region = 32  ;;  %1433 = vmatprep.subr.bf16.mxu0 (!%p152_p3), %v1712_v1  ;;  %1461 = vmatprep.subr.bf16.mxu1 (!%p152_p3), %v1712_v1  ;;  %v1629_v2 = vld [vmem:[%s2067_s1] sm:$0xff] (!%p152_p3)   ;;  %v1631_v4 = vld [vmem:[%s2067_s1 + $0x8] sm:$0xff] (!%p152_p3)   ;;  %v1633_v6 = vld [vmem:[%s2067_s1 + $0x10] sm:$0xff] (!%p152_p3)   ;;  %vm252_vm1 = vsmask.f32 (!%p152_p3), 7424 }
   0x8   : > { %1434 = vmatpush3.bf16.msra.mxu0 (!%p152_p3), %v1628_v0  ;;  %1449 = vmatprep.mubr.msk.bf16.mxu0 (!%p152_p3), %vm1713_vm0, %v1712_v1  ;;  %v1634_v7 = vld [vmem:[%s2067_s1 + $0x58] sm:$0xff] (!%p152_p3)   ;;  %v1636_v9 = vld [vmem:[%s2067_s1 + $0x60] sm:$0xff] (!%p152_p3)   ;;  %v1638_v13 = vld [vmem:[%s2067_s1 + $0x68] sm:$0xff] (!%p152_p3)   ;;  %vm521_vm2 = vsmask.f32 (!%p152_p3), 5376  ;;  %vm681_vm3 = vcmask (!%p152_p3), 1044480  }
   0x9   : > { %1462 = vmatpush3.bf16.msra.mxu1 (!%p152_p3), %v1629_v2  ;;  %1435 = vmatprep.subr.bf16.mxu0 (!%p152_p3), %v1712_v1  ;;  %v1635_v8 = vld [vmem:[%s2067_s1 + $0x18] sm:$0xff] (!%p152_p3)   ;;  %v1637_v10 = vld [vmem:[%s2067_s1 + $0x20] sm:$0xff] (!%p152_p3)   ;;  %v1639_v16 = vld [vmem:[%s2067_s1 + $0x28] sm:$0xff] (!%p152_p3)   ;;  %vm844_vm4 = vcmask (!%p152_p3), 1046528   ;;  %vm986_vm5 = vsmask.f32 (!%p152_p3), 6400 }
   0xa   : > { %1463 = vmatprep.subr.bf16.mxu1 (!%p152_p3), %v1712_v1  ;;  %1477 = vmatprep.mubr.msk.bf16.mxu1 (!%p152_p3), %vm1713_vm0, %v1712_v1  ;;  %v1640_v18 = vld [vmem:[%s2067_s1 + $0x70] sm:$0xff] (!%p152_p3)   ;;  %v1642_v23 = vld [vmem:[%s2067_s1 + $0x78] sm:$0xff] (!%p152_p3)   ;;  %v1646_v28 = vld [vmem:[%s2067_s1 + $0x80] sm:$0xff] (!%p152_p3)  }
   0xb   : > { %v1641_v22 = vld [vmem:[%s2067_s1 + $0x30] sm:$0xff] (!%p152_p3)   ;;  %v1643_v24 = vld [vmem:[%s2067_s1 + $0x38] sm:$0xff] (!%p152_p3)   ;;  %v1647_v32 = vld [vmem:[%s2067_s1 + $0xc0] sm:$0xff] (!%p152_p3)  }
   0xc   : > { %1436 = vmatpush3.bf16.msra.mxu0 (!%p152_p3), %v1630_v3  ;;  %v1648_v34 = vld [vmem:[%s2067_s1 + $0x88] sm:$0xff] (!%p152_p3)   ;;  %v1650_v39 = vld [vmem:[%s2067_s1 + $0x90] sm:$0xff] (!%p152_p3)   ;;  %v1652_v43 = vld [vmem:[%s2067_s1 + $0x98] sm:$0xff] (!%p152_p3)  }
   0xd   : > { %1464 = vmatpush3.bf16.msra.mxu1 (!%p152_p3), %v1631_v4  ;;  %1437 = vmatprep.subr.bf16.mxu0 (!%p152_p3), %v1712_v1  ;;  %v1649_v37 = vld [vmem:[%s2067_s1 + $0xc8] sm:$0xff] (!%p152_p3)   ;;  %v1651_v42 = vld [vmem:[%s2067_s1 + $0xd0] sm:$0xff] (!%p152_p3)   ;;  %v1653_v47 = vld [vmem:[%s2067_s1 + $0xd8] sm:$0xff] (!%p152_p3)  }
   0xe   : > { %s2075_s12 = smov (!%p179_p4, %s1702_s12), 1  ;;  %1465 = vmatprep.subr.bf16.mxu1 %v1712_v1  ;;  %v1655_v49 = vld [vmem:[%s2067_s1 + $0xa0] sm:$0xff]   ;;  %v1657_v52 = vld [vmem:[%s2067_s1 + $0xa8] sm:$0xff]   ;;  %v1660_v59 = vld [vmem:[%s2067_s1 + $0xb0] sm:$0xff]  }
   0xf   : > { %s1343_s30 = sshll.u32 %s2075_s12, 5  ;;  %v1656_v51 = vld [vmem:[%s2067_s1 + $0xe0] sm:$0xff]   ;;  %v1658_v56 = vld [vmem:[%s2067_s1 + $0xe8] sm:$0xff]   ;;  %v1661_v62 = vld [vmem:[%s2067_s1 + $0xf0] sm:$0xff]   ;;  %s1601_s28 = smul.u32 24, %s2075_s12 }
  0x10   : > { %1438 = vmatpush3.bf16.msra.mxu0 %v1632_v5  ;;  %s1794_s8 = scalar_lea.vmem %s2066_s0, %s1343_s30  ;;  %v1662_v0 = vld [vmem:[%s2067_s1 + $0xb8] sm:$0xff]  }
  0x11   : > { %1466 = vmatpush3.bf16.msra.mxu1 %v1633_v6  ;;  %1439 = vmatprep.subr.bf16.mxu0 %v1712_v1  ;;  %v195_v11 = vld [vmem:[%s1794_s8] sm:$0xf]  ;;  %v1806_v12 = vld [vmem:[%s1794_s8 + $0x4] sm:$0xf]  ;;  %v1813_v15 = vld [vmem:[%s1794_s8 + $0x8] sm:$0xff]   ;;  %s2052_s4 = scalar_lea.vmem %s2069_s3, %s1601_s28 }
  0x12   : > { %1467 = vmatprep.subr.bf16.mxu1 %v1712_v1  ;;  %v1274_v14 = vcombine.low %v195_v11, %v1806_v12  ;;  %v261_v21 = vshll.u32 %v1813_v15, 16  ;;  %v1839_v27 = vld [vmem:[%s1794_s8 + $0x10] sm:$0xff]   ;;  %v265_v30 = vshrl.u32 %v1813_v15, 16  ;;  %v1659_v33 = vld [vmem:[%s1794_s8 + $0x18] ss:$0 sps:$4 sm:$0x11]  }
  0x13   : > { %v269_v31 = vshll.u32 %v1839_v27, 16  ;;  %v277_v38 = vshll.u32 %v1659_v33, 16  ;;  %v273_v41 = vshrl.u32 %v1839_v27, 16  ;;  %v497_v45 = vld [vmem:[%s1794_s8] sm:$0xc]  ;;  %v683_v4 = vrot.slane %v1813_v15, 3 }
  0x14   : > { %1440 = vmatpush3.bf16.msra.mxu0 %v1634_v7  ;;  %v256_v17 = vshll.u32 %v1274_v14, 16  ;;  %v254_v19 = vshrl.u32 %v1274_v14, 16  ;;  %v263_v26 = vrot.slane %v261_v21, 1  ;;  %v1294_v48 = vcombine.low %v497_v45, %v1806_v12  ;;  %v661_v57 = vld [vmem:[%s1794_s8] sm:$0x8]  ;;  %v1663_v5 = vld [vmem:[%s2067_s1 + $0xf8] sm:$0xff]  }
  0x15   : > { %1468 = vmatpush3.bf16.msra.mxu1 %v1635_v8  ;;  %1441 = vmatprep.subr.bf16.mxu0 %v1712_v1  ;;  %v271_v36 = vrot.slane %v269_v31, 1  ;;  %v279_v44 = vrot.slane %v277_v38, 1  ;;  %v531_v55 = vrot.slane %v261_v21, 3  ;;  %v530_v58 = vrot.slane %v265_v30, 2  ;;  %v1666_v8 = vld [vmem:[%s2067_s1 + $0x100] sm:$0xff]   ;;  %v1670_v21 = vld [vmem:[%s2067_s1 + $0x110] sm:$0xff]  }
  0x16   : > { %1469 = vmatprep.subr.bf16.mxu1 %v1712_v1  ;;  %v258_v20 = vrot.slane %v256_v17, 1  ;;  %v267_v35 = vor.u32 %v265_v30, %v263_v26  ;;  %v523_v53 = vshrl.u32 %v1294_v48, 16  ;;  %v526_v54 = vshll.u32 %v1294_v48, 16  ;;  %v1674_v11 = vld [vmem:[%s1794_s8 + $0x18] ss:$0 sps:$4 sm:$0x77]  }
  0x17   : > { %v275_v46 = vor.u32 %v273_v41, %v271_v36  ;;  %v1304_v63 = vcombine.low %v661_v57, %v1806_v12  ;;  %v532_v3 = vor.u32 %v531_v55, %v530_v58  ;;  %v542_v17 = vshll.u32 %v1674_v11, 16  ;;  %v1685_v48 = vld [vmem:[%s1794_s8 + $0x14] sm:$0xff]  }
  0x18   : > { %1442 = vmatpush3.bf16.msra.mxu0 %v1636_v9  ;;  %v259_v25 = vor.u32 %v258_v20, %v254_v19  ;;  %v272_v40 = vsel %vm252_vm1, %v267_v35, %v271_v36  ;;  %v525_v60 = vrot.slane %v523_v53, 2  ;;  %v528_v61 = vrot.slane %v526_v54, 3  ;;  %v1684_v35 = vld [vmem:[%s1794_s8 + $0xc] sm:$0xff]  }
  0x19   : > { %1470 = vmatpush3.bf16.msra.mxu1 %v1637_v10  ;;  %1443 = vmatprep.subr.bf16.mxu0 %v1712_v1  ;;  %v280_v50 = vsel %vm252_vm1, %v275_v46, %v279_v44  ;;  %v682_v6 = vrot.slane %v1304_v63, 3  ;;  %v534_v9 = vrot.slane %v273_v41, 2  ;;  %v535_v10 = vrot.slane %v269_v31, 3  ;;  %v1675_v31 = vld [vmem:[%s2067_s1 + $0x120] sm:$0xff]   ;;  %v1677_v36 = vld [vmem:[%s2067_s1 + $0x128] sm:$0xff]  }
  0x1a   : > { %1471 = vmatprep.subr.bf16.mxu1 %v1712_v1  ;;  %v264_v29 = vsel %vm252_vm1, %v259_v25, %v263_v26  ;;  %v529_v2 = vor.u32 %v528_v61, %v525_v60  ;;  %v685_v19 = vrot.slane %v1839_v27, 3  ;;  %v1672_v26 = vld [vmem:[%s2067_s1 + $0x118] sm:$0xff]   ;;  %v999_v41 = vshll.u32 %v1684_v35, 16 }
  0x1b   : > { %v684_v12 = vsel %vm681_vm3, %v682_v6, %v683_v4  ;;  %v1005_v55 = vshrl.u32 %v1685_v48, 16  ;;  %v1687_v61 = vld [vmem:[%s1794_s8 + $0x1c] ss:$0 sps:$4 sm:$0x33]  }
  0x1c   : > { %1444 = vmatpush3.bf16.msra.mxu0 %v1638_v13  ;;  %v533_v7 = vsel %vm521_vm2, %v529_v2, %v532_v3  ;;  %v1667_v13 = vld [vmem:[%s2067_s1 + $0x140] sm:$0xff]   ;;  %v686_v25 = vsel %vm681_vm3, %v683_v4, %v685_v19  ;;  %v1017_v2 = vshll.u32 %v1687_v61, 16  ;;  %v1686_v4 = vld [vmem:[%s1794_s8 + $0x1c] ss:$0 sps:$4 sm:$0x11]  }
  0x1d   : > { %1472 = vmatpush3.bf16.msra.mxu1 %v1639_v16  ;;  %1445 = vmatprep.subr.bf16.mxu0 %v1712_v1  ;;  %v539_v16 = vshrl.u32 %v1674_v11, 16 }
  0x1e   : > { %1473 = vmatprep.subr.bf16.mxu1 %v1712_v1 }
  0x20   : > { %1446 = vmatpush3.bf16.msra.mxu0 %v1640_v18  ;;  %v1669_v18 = vld [vmem:[%s2067_s1 + $0x148] sm:$0xff]  }
  0x21   : > { %1474 = vmatpush3.bf16.msra.mxu1 %v1641_v22  ;;  %1447 = vmatprep.subr.bf16.mxu0 %v1712_v1  ;;  %v541_v22 = vrot.slane %v539_v16, 2 }
  0x22   : > { %1475 = vmatprep.subr.bf16.mxu1 %v1712_v1 }
  0x24   : > { %1448 = vmatpush3.bf16.msra.mxu0 %v1642_v23  ;;  %v544_v23 = vrot.slane %v542_v17, 3 }
  0x25   : > { %1476 = vmatpush3.bf16.msra.mxu1 %v1643_v24  ;;  %1489 = vmatprep.subr.bf16.mxu0 %v1712_v1  ;;  %v1671_v24 = vld [vmem:[%s2067_s1 + $0x150] sm:$0xff]  }
  0x26   : > { %1517 = vmatprep.subr.bf16.mxu1 %v1712_v1 }
  0x27   : > { %1450 = vmatmul.mubr.bf16.vlgmr.msra.gmra.mrb[0].mxu0 %v264_v29  ;;  %v687_v29 = vrot.slane %v1674_v11, 3 }
  0x28   : > { %1478 = vmatmul.mubr.bf16.vlgmr.msra.gmra.mrb[0].mxu1 %v1274_v14  ;;  %1490 = vmatpush3.bf16.msra.mxu0 %v1646_v28  ;;  %v1668_v14 = vld [vmem:[%s2067_s1 + $0x108] sm:$0xff]   ;;  %v1673_v28 = vld [vmem:[%s2067_s1 + $0x158] sm:$0xff]  }
  0x29   : > { %1518 = vmatpush3.bf16.msra.mxu1 %v1647_v32  ;;  %1491 = vmatprep.subr.bf16.mxu0 %v1712_v1  ;;  %v1676_v32 = vld [vmem:[%s2067_s1 + $0x160] sm:$0xff]   ;;  %v688_v33 = vsel %vm681_vm3, %v685_v19, %v687_v29 }
  0x2a   : > { %1519 = vmatprep.subr.bf16.mxu1 %v1712_v1  ;;  %1453 = vmatprep.mubr.msk.bf16.mxu0 %vm1713_vm0, %v1712_v1 }
  0x2b   : > { %1481 = vmatprep.mubr.msk.bf16.mxu1 %vm1713_vm0, %v1712_v1 }
  0x2c   : > { %1492 = vmatpush3.bf16.msra.mxu0 %v1648_v34  ;;  %v1683_v34 = vld [vmem:[%s1794_s8 + $0x4] sm:$0xfe]  }
  0x2d   : > { %1520 = vmatpush3.bf16.msra.mxu1 %v1649_v37  ;;  %1493 = vmatprep.subr.bf16.mxu0 %v1712_v1  ;;  %v1678_v37 = vld [vmem:[%s2067_s1 + $0x168] sm:$0xff]   ;;  %v988_v38 = vshrl.u32 %v1683_v34, 16 }
  0x2e   : > { %1521 = vmatprep.subr.bf16.mxu1 %v1712_v1 }
  0x2f   : > { %1454 = vmatmul.mubr.bf16.gmra.mrb[4].mxu0 %v272_v40  ;;  %v996_v40 = vshrl.u32 %v1684_v35, 16  ;;  %v990_v44 = vrot.slane %v988_v38, 1 }
  0x30   : > { %1494 = vmatpush3.bf16.msra.mxu0 %v1650_v39  ;;  %1482 = vmatmul.mubr.bf16.gmra.mrb[4].mxu1 %v1813_v15  ;;  %v536_v15 = vor.u32 %v535_v10, %v534_v9  ;;  %v991_v39 = vshll.u32 %v1683_v34, 16 }
  0x31   : > { %1522 = vmatpush3.bf16.msra.mxu1 %v1651_v42  ;;  %1495 = vmatprep.subr.bf16.mxu0 %v1712_v1  ;;  %v1679_v42 = vld [vmem:[%s2067_s1 + $0x130] sm:$0xff]   ;;  %v998_v46 = vrot.slane %v996_v40, 1 }
  0x32   : > { %1523 = vmatprep.subr.bf16.mxu1 %v1712_v1  ;;  %1457 = vmatprep.mubr.msk.bf16.mxu0 %vm1713_vm0, %v1712_v1  ;;  %v537_v20 = vsel %vm521_vm2, %v532_v3, %v536_v15  ;;  %v993_v45 = vrot.slane %v991_v39, 2 }
  0x33   : > { %1485 = vmatprep.mubr.msk.bf16.mxu1 %vm1713_vm0, %v1712_v1 }
  0x34   : > { %1496 = vmatpush3.bf16.msra.mxu0 %v1652_v43  ;;  %v1680_v43 = vld [vmem:[%s2067_s1 + $0x170] sm:$0xff]   ;;  %v994_v53 = vor.u32 %v993_v45, %v990_v44 }
  0x35   : > { %1524 = vmatpush3.bf16.msra.mxu1 %v1653_v47  ;;  %1497 = vmatprep.subr.bf16.mxu0 %v1712_v1  ;;  %v1001_v47 = vrot.slane %v999_v41, 2 }
  0x36   : > { %1525 = vmatprep.subr.bf16.mxu1 %v1712_v1 }
  0x37   : > { %1458 = vmatmul.mubr.bf16.gmra.mrb[8].mxu0 %v280_v50  ;;  %v845_v50 = vrot.slane %v1683_v34, 1  ;;  %v1002_v54 = vor.u32 %v1001_v47, %v998_v46 }
  0x38   : > { %1498 = vmatpush3.bf16.msra.mxu0 %v1655_v49  ;;  %1486 = vmatmul.mubr.bf16.gmra.mrb[8].mxu1 %v1839_v27  ;;  %v545_v27 = vor.u32 %v544_v23, %v541_v22  ;;  %v1681_v49 = vld [vmem:[%s2067_s1 + $0x138] sm:$0xff]  }
  0x39   : > { %1526 = vmatpush3.bf16.msra.mxu1 %v1656_v51  ;;  %1499 = vmatprep.subr.bf16.mxu0 %v1712_v1  ;;  %v846_v51 = vrot.slane %v1684_v35, 1  ;;  %v1003_v58 = vsel %vm986_vm5, %v994_v53, %v1002_v54 }
  0x3a   : > { %1527 = vmatprep.subr.bf16.mxu1 %v1712_v1  ;;  %1505 = vmatprep.mubr.msk.bf16.mxu0 %vm1713_vm0, %v1712_v1  ;;  %v546_v30 = vsel %vm521_vm2, %v536_v15, %v545_v27 }
  0x3b   : > { %1533 = vmatprep.mubr.msk.bf16.mxu1 %vm1713_vm0, %v1712_v1  ;;  %v847_v57 = vsel %vm844_vm4, %v845_v50, %v846_v51 }
  0x3c   : > { %1500 = vmatpush3.bf16.msra.mxu0 %v1657_v52  ;;  %v1682_v52 = vld [vmem:[%s2067_s1 + $0x178] sm:$0xff]  }
  0x3d   : > { %1528 = vmatpush3.bf16.msra.mxu1 %v1658_v56  ;;  %1501 = vmatprep.subr.bf16.mxu0 %v1712_v1  ;;  %v1008_v56 = vshll.u32 %v1685_v48, 16 }
  0x3e   : > { %1529 = vmatprep.subr.bf16.mxu1 %v1712_v1 }
  0x3f   : > { %v1010_v60 = vrot.slane %v1008_v56, 2 }
  0x40   : > { %1502 = vmatpush3.bf16.msra.mxu0 %v1660_v59  ;;  %v1007_v59 = vrot.slane %v1005_v55, 1 }
  0x41   : > { %1530 = vmatpush3.bf16.msra.mxu1 %v1661_v62  ;;  %1503 = vmatprep.subr.bf16.mxu0 %v1712_v1  ;;  %v848_v62 = vrot.slane %v1685_v48, 1 }
  0x42   : > { %1531 = vmatprep.subr.bf16.mxu1 %v1712_v1  ;;  %v1011_v63 = vor.u32 %v1010_v60, %v1007_v59 }
  0x43   : > { %v849_v3 = vsel %vm844_vm4, %v846_v51, %v848_v62 }
  0x44   : > { %1504 = vmatpush3.bf16.msra.mxu0 %v1662_v0  ;;  %v1014_v0 = vshrl.u32 %v1687_v61, 16 }
  0x45   : > { %1532 = vmatpush3.bf16.msra.mxu1 %v1663_v5  ;;  %1545 = vmatprep.subr.bf16.mxu0 %v1712_v1  ;;  %v1012_v5 = vsel %vm986_vm5, %v1002_v54, %v1011_v63 }
  0x46   : > { %1573 = vmatprep.subr.bf16.mxu1 %v1712_v1  ;;  %v1016_v6 = vrot.slane %v1014_v0, 1 }
  0x47   : > { %1506 = vmatmul.mubr.bf16.vlgmr.msra.gmra.mrb[12].mxu0 %v533_v7  ;;  %v1019_v7 = vrot.slane %v1017_v2, 2 }
  0x48   : > { %1534 = vmatmul.mubr.bf16.vlgmr.msra.gmra.mrb[12].mxu1 %v684_v12  ;;  %1546 = vmatpush3.bf16.msra.mxu0 %v1666_v8  ;;  %v850_v8 = vrot.slane %v1686_v4, 1 }
  0x49   : > { %1574 = vmatpush3.bf16.msra.mxu1 %v1667_v13  ;;  %1547 = vmatprep.subr.bf16.mxu0 %v1712_v1  ;;  %v1020_v9 = vor.u32 %v1019_v7, %v1016_v6 }
  0x4a   : > { %1575 = vmatprep.subr.bf16.mxu1 %v1712_v1  ;;  %1509 = vmatprep.mubr.msk.bf16.mxu0 %vm1713_vm0, %v1712_v1  ;;  %v851_v10 = vsel %vm844_vm4, %v848_v62, %v850_v8 }
  0x4b   : > { %1537 = vmatprep.mubr.msk.bf16.mxu1 %vm1713_vm0, %v1712_v1  ;;  %v1021_v11 = vsel %vm986_vm5, %v1011_v63, %v1020_v9 }
  0x4c   : > { %1548 = vmatpush3.bf16.msra.mxu0 %v1668_v14 }
  0x4d   : > { %1576 = vmatpush3.bf16.msra.mxu1 %v1669_v18  ;;  %1549 = vmatprep.subr.bf16.mxu0 %v1712_v1 }
  0x4e   : > { %1577 = vmatprep.subr.bf16.mxu1 %v1712_v1 }
  0x4f   : > { %1510 = vmatmul.mubr.bf16.gmra.mrb[16].mxu0 %v537_v20 }
  0x50   : > { %1550 = vmatpush3.bf16.msra.mxu0 %v1670_v21  ;;  %1538 = vmatmul.mubr.bf16.gmra.mrb[16].mxu1 %v686_v25 }
  0x51   : > { %1578 = vmatpush3.bf16.msra.mxu1 %v1671_v24  ;;  %1551 = vmatprep.subr.bf16.mxu0 %v1712_v1 }
  0x52   : > { %1579 = vmatprep.subr.bf16.mxu1 %v1712_v1  ;;  %1513 = vmatprep.mubr.msk.bf16.mxu0 %vm1713_vm0, %v1712_v1 }
  0x53   : > { %1541 = vmatprep.mubr.msk.bf16.mxu1 %vm1713_vm0, %v1712_v1 }
  0x54   : > { %1552 = vmatpush3.bf16.msra.mxu0 %v1672_v26 }
  0x55   : > { %1580 = vmatpush3.bf16.msra.mxu1 %v1673_v28  ;;  %1553 = vmatprep.subr.bf16.mxu0 %v1712_v1 }
  0x56   : > { %1581 = vmatprep.subr.bf16.mxu1 %v1712_v1 }
  0x57   : > { %1514 = vmatmul.mubr.bf16.gmra.mrb[20].mxu0 %v546_v30 }
  0x58   : > { %1554 = vmatpush3.bf16.msra.mxu0 %v1675_v31  ;;  %1542 = vmatmul.mubr.bf16.gmra.mrb[20].mxu1 %v688_v33 }
  0x59   : > { %1582 = vmatpush3.bf16.msra.mxu1 %v1676_v32  ;;  %1555 = vmatprep.subr.bf16.mxu0 %v1712_v1 }
  0x5a   : > { %1583 = vmatprep.subr.bf16.mxu1 %v1712_v1  ;;  %1561 = vmatprep.mubr.msk.bf16.mxu0 %vm1713_vm0, %v1712_v1 }
  0x5b   : > { %1589 = vmatprep.mubr.msk.bf16.mxu1 %vm1713_vm0, %v1712_v1 }
  0x5c   : > { %1556 = vmatpush3.bf16.msra.mxu0 %v1677_v36 }
  0x5d   : > { %1584 = vmatpush3.bf16.msra.mxu1 %v1678_v37  ;;  %1557 = vmatprep.subr.bf16.mxu0 %v1712_v1 }
  0x5e   : > { %1585 = vmatprep.subr.bf16.mxu1 %v1712_v1 }
  0x60   : > { %1558 = vmatpush3.bf16.msra.mxu0 %v1679_v42 }
  0x61   : > { %1586 = vmatpush3.bf16.msra.mxu1 %v1680_v43  ;;  %1559 = vmatprep.subr.bf16.mxu0 %v1712_v1 }
  0x62   : > { %1587 = vmatprep.subr.bf16.mxu1 %v1712_v1 }
  0x64   : > { %1560 = vmatpush3.bf16.msra.mxu0 %v1681_v49 }
  0x65   : > { %1588 = vmatpush3.bf16.msra.mxu1 %v1682_v52 }
  0x67   : > { %1562 = vmatmul.mubr.bf16.vlgmr.msra.gmra.mrb[24].mxu0 %v847_v57 }
  0x68   : > { %1590 = vmatmul.mubr.bf16.vlgmr.msra.gmra.mrb[24].mxu1 %v1003_v58  ;;  %1565 = vmatprep.mubr.msk.bf16.mxu0 %vm1713_vm0, %v1712_v1 }
  0x69   : > { %1593 = vmatprep.mubr.msk.bf16.mxu1 %vm1713_vm0, %v1712_v1 }
  0x6f   : > { %1566 = vmatmul.mubr.bf16.gmra.mrb[28].mxu0 %v849_v3 }
  0x70   : > { %1594 = vmatmul.mubr.bf16.gmra.mrb[28].mxu1 %v1012_v5  ;;  %1569 = vmatprep.mubr.msk.bf16.mxu0 %vm1713_vm0, %v1712_v1 }
  0x71   : > { %1597 = vmatprep.mubr.msk.bf16.mxu1 %vm1713_vm0, %v1712_v1 }
  0x77   : > { %1570 = vmatmul.mubr.bf16.gmra.mrb[32].mxu0 %v851_v10 }
  0x78   : > { %1598 = vmatmul.mubr.bf16.gmra.mrb[32].mxu1 %v1021_v11 }
  0xfa   : > { %v366_v12 = vpop.f32.mrb[0].mxu0 }
  0xfb   : > { %v474_v13 = vpop.f32.mrb[0].mxu1  ;;  %v1451_v14 = vpop.f32.mrb[1].mxu0 }
  0xfc   : > { %v475_v15 = vadd.f32 %v474_v13, %v366_v12  ;;  %v1479_v16 = vpop.f32.mrb[1].mxu1  ;;  %v369_v17 = vpop.f32.mrb[2].mxu0 }
  0xfd   : > { %v477_v18 = vpop.f32.mrb[2].mxu1  ;;  %v1452_v19 = vpop.f32.mrb[3].mxu0 }
  0xfe   : > { %v478_v20 = vadd.f32 %v477_v18, %v369_v17  ;;  %v1480_v21 = vpop.f32.mrb[3].mxu1  ;;  %v1334_v18 = vld [vmem:[%s2068_s2] ss:$0 sm:$0xff] }
 0x102   : > { %v374_v22 = vpop.f32.mrb[4].mxu0 }
 0x103   : > { %v1455_v23 = vpop.f32.mrb[5].mxu0  ;;  %v482_v1 = vpop.f32.mrb[4].mxu1 }
 0x104   : > { %v483_v24 = vadd.f32 %v482_v1, %v374_v22  ;;  %v377_v25 = vpop.f32.mrb[6].mxu0  ;;  %v1483_v26 = vpop.f32.mrb[5].mxu1 }
 0x105   : > { %v1456_v27 = vpop.f32.mrb[7].mxu0  ;;  %v485_v28 = vpop.f32.mrb[6].mxu1 }
 0x106   : > { %v486_v29 = vadd.f32 %v485_v28, %v377_v25  ;;  %v1484_v30 = vpop.f32.mrb[7].mxu1 }
 0x10a   : > { %v382_v31 = vpop.f32.mrb[8].mxu0 }
 0x10b   : > { %v1459_v32 = vpop.f32.mrb[9].mxu0  ;;  %v490_v33 = vpop.f32.mrb[8].mxu1 }
 0x10c   : > { %v491_v34 = vadd.f32 %v490_v33, %v382_v31  ;;  %v385_v35 = vpop.f32.mrb[10].mxu0  ;;  %v1487_v36 = vpop.f32.mrb[9].mxu1 }
 0x10d   : > { %v1460_v37 = vpop.f32.mrb[11].mxu0  ;;  %v493_v38 = vpop.f32.mrb[10].mxu1 }
 0x10e   : > { %v494_v39 = vadd.f32 %v493_v38, %v385_v35  ;;  %v1488_v40 = vpop.f32.mrb[11].mxu1 }
 0x11a   : > { %v632_v41 = vpop.f32.mrb[12].mxu0 }
 0x11b   : > { %v655_v42 = vadd.f32 %v632_v41, %v475_v15  ;;  %v774_v43 = vpop.f32.mrb[12].mxu1  ;;  %v1507_v44 = vpop.f32.mrb[13].mxu0 }
 0x11c   : > { %v1535_v45 = vpop.f32.mrb[13].mxu1  ;;  %v635_v46 = vpop.f32.mrb[14].mxu0 }
 0x11d   : > { %v797_v47 = vadd.f32 %v774_v43, %v655_v42  ;;  %v656_v48 = vadd.f32 %v635_v46, %v478_v20  ;;  %v777_v49 = vpop.f32.mrb[14].mxu1  ;;  %v1508_v50 = vpop.f32.mrb[15].mxu0 }
 0x11e   : > { %v1536_v51 = vpop.f32.mrb[15].mxu1 }
 0x11f   : > { %v798_v52 = vadd.f32 %v777_v49, %v656_v48 }
 0x122   : > { %v640_v53 = vpop.f32.mrb[16].mxu0 }
 0x123   : > { %v657_v54 = vadd.f32 %v640_v53, %v483_v24  ;;  %v1511_v55 = vpop.f32.mrb[17].mxu0  ;;  %v782_v56 = vpop.f32.mrb[16].mxu1 }
 0x124   : > { %v643_v57 = vpop.f32.mrb[18].mxu0  ;;  %v1539_v58 = vpop.f32.mrb[17].mxu1 }
 0x125   : > { %v658_v59 = vadd.f32 %v643_v57, %v486_v29  ;;  %v799_v60 = vadd.f32 %v782_v56, %v657_v54  ;;  %v785_v61 = vpop.f32.mrb[18].mxu1  ;;  %v1512_v62 = vpop.f32.mrb[19].mxu0 }
 0x126   : > { %v1540_v63 = vpop.f32.mrb[19].mxu1 }
 0x127   : > { %v800_v0 = vadd.f32 %v785_v61, %v658_v59 }
 0x12a   : > { %v648_v2 = vpop.f32.mrb[20].mxu0 }
 0x12b   : > { %v659_v3 = vadd.f32 %v648_v2, %v491_v34  ;;  %v1515_v4 = vpop.f32.mrb[21].mxu0  ;;  %v790_v5 = vpop.f32.mrb[20].mxu1 }
 0x12c   : > { %v651_v6 = vpop.f32.mrb[22].mxu0  ;;  %v1543_v7 = vpop.f32.mrb[21].mxu1 }
 0x12d   : > { %v660_v8 = vadd.f32 %v651_v6, %v494_v39  ;;  %v801_v9 = vadd.f32 %v790_v5, %v659_v3  ;;  %v793_v10 = vpop.f32.mrb[22].mxu1  ;;  %v1516_v11 = vpop.f32.mrb[23].mxu0 }
 0x12e   : > { %v1544_v12 = vpop.f32.mrb[23].mxu1 }
 0x12f   : > { %v802_v13 = vadd.f32 %v793_v10, %v660_v8 }
 0x13a   : > { %v937_v14 = vpop.f32.mrb[24].mxu0 }
 0x13b   : > { %v960_v15 = vadd.f32 %v937_v14, %v797_v47  ;;  %v1107_v16 = vpop.f32.mrb[24].mxu1  ;;  %v1563_v17 = vpop.f32.mrb[25].mxu0 }
 0x13c   : > { %v1591_v19 = vpop.f32.mrb[25].mxu1  ;;  %v940_v20 = vpop.f32.mrb[26].mxu0 }
 0x13d   : > { %v1130_v21 = vadd.f32 %v1107_v16, %v960_v15  ;;  %v961_v22 = vadd.f32 %v940_v20, %v798_v52  ;;  %v1110_v23 = vpop.f32.mrb[26].mxu1  ;;  %v1564_v1 = vpop.f32.mrb[27].mxu0 }
 0x13e   : > { %v1592_v24 = vpop.f32.mrb[27].mxu1 }
 0x13f   : > { %v1143_v25 = vadd.f32 %v1334_v18, %v1130_v21  ;;  %v1131_v26 = vadd.f32 %v1110_v23, %v961_v22 }
 0x141   : > { %v1144_v27 = vadd.f32 %v1334_v18, %v1131_v26  ;;  %v1149_v29 = vmax.f32 %v1143_v25, 0.0 }
 0x142   : > { %v945_v28 = vpop.f32.mrb[28].mxu0 }
 0x143   : > { %v1150_v30 = vmax.f32 %v1144_v27, 0.0  ;;  %v962_v31 = vadd.f32 %v945_v28, %v799_v60  ;;  %v1115_v32 = vpop.f32.mrb[28].mxu1  ;;  %v1567_v33 = vpop.f32.mrb[29].mxu0 }
 0x144   : > { %v1595_v34 = vpop.f32.mrb[29].mxu1  ;;  %v948_v35 = vpop.f32.mrb[30].mxu0 }
 0x145   : > { %v1353_v36 = vpack.c.bf16 %v1150_v30, %v1149_v29  ;;  %v1132_v37 = vadd.f32 %v1115_v32, %v962_v31  ;;  %v963_v38 = vadd.f32 %v948_v35, %v800_v0  ;;  %v1118_v39 = vpop.f32.mrb[30].mxu1  ;;  %v1568_v40 = vpop.f32.mrb[31].mxu0 }
 0x146   : > { %v1596_v41 = vpop.f32.mrb[31].mxu1 }
 0x147   : > { %1354 = vst [vmem:[%s2052_s4] sm:$0xff] %v1353_v36   ;;  %v1145_v42 = vadd.f32 %v1334_v18, %v1132_v37  ;;  %v1133_v43 = vadd.f32 %v1118_v39, %v963_v38 }
 0x149   : > { %v1146_v44 = vadd.f32 %v1334_v18, %v1133_v43  ;;  %v1151_v46 = vmax.f32 %v1145_v42, 0.0 }
 0x14a   : > { %v953_v45 = vpop.f32.mrb[32].mxu0 }
 0x14b   : > { %v1152_v47 = vmax.f32 %v1146_v44, 0.0  ;;  %v964_v48 = vadd.f32 %v953_v45, %v801_v9  ;;  %v1123_v49 = vpop.f32.mrb[32].mxu1  ;;  %v1571_v50 = vpop.f32.mrb[33].mxu0 }
 0x14c   : > { %v1599_v51 = vpop.f32.mrb[33].mxu1  ;;  %v956_v52 = vpop.f32.mrb[34].mxu0 }
 0x14d   : > { %v1358_v53 = vpack.c.bf16 %v1152_v47, %v1151_v46  ;;  %v1134_v54 = vadd.f32 %v1123_v49, %v964_v48  ;;  %v965_v55 = vadd.f32 %v956_v52, %v802_v13  ;;  %v1126_v56 = vpop.f32.mrb[34].mxu1  ;;  %v1572_v57 = vpop.f32.mrb[35].mxu0 }
 0x14e   : > { %v1600_v58 = vpop.f32.mrb[35].mxu1 }
 0x14f   : > { %1365 = vst [vmem:[%s2052_s4 + $0x8] sm:$0xff] %v1358_v53   ;;  %v1147_v59 = vadd.f32 %v1334_v18, %v1134_v54  ;;  %v1135_v60 = vadd.f32 %v1126_v56, %v965_v55 }
 0x151   : > { %v1148_v61 = vadd.f32 %v1334_v18, %v1135_v60  ;;  %v1153_v62 = vmax.f32 %v1147_v59, 0.0 }
 0x153   : > { %v1154_v63 = vmax.f32 %v1148_v61, 0.0 }
 0x155   : > { %v1363_v0 = vpack.c.bf16 %v1154_v63, %v1153_v62 }
 0x157   : > { %1366 = vst [vmem:[%s2052_s4 + $0x10] sm:$0xff] %v1363_v0  }
 0x158 PF: > { %s13_s14 = sadd.s32 1, %s1710_s14   ;;  %s2070_s12 = smov %s1706_s13 }
 0x159   : > { %p10_p5 = scmp.ge.s32.totalorder %s13_s14, 4   ;;  %s2071_s13 = smov %s2073_s15 }
 0x15b   :  { %12 = sbr.rel (!%p10_p5) target bundleno = 2 (0x2), region = 62 }

// kernel: pretrained_image_encoding_forward.18
= control target key start
LH: loop header
LB: loop body
LE: loop exit
PB: predicated region body
PF: predicated region fallthrough
CT: control target
= control target key end

     0   :  { %vm110_vm0 = vcmask 523264   ;;  %s563_s1 = inlined_call_operand.vmem [shape: bf16[64,128], index: 1, kind: input, shape index: {}]   ;;  %s564_s0 = inlined_call_operand.vmem [shape: bf16[128,64], index: 0, kind: input, shape index: {}]   ;;  %s565_s2 = inlined_call_operand.vmem [shape: f32[1,128], index: 2, kind: input, shape index: {}]   ;;  %s566_s3 = inlined_call_operand.vmem [shape: bf16[128,128], index: 3, kind: output, shape index: {}]  }
   0x1   :  { %v460_v0 = vld [vmem:[%s563_s1] sm:$0xff]   ;;  %v461_v1 = vld [vmem:[%s563_s1 + $0x8] sm:$0xff]   ;;  %v462_v2 = vld [vmem:[%s563_s1 + $0x10] sm:$0xff]  }
   0x2   :  { %428 = vmatprep.subr.bf16.mxu0 %v460_v0  ;;  %452 = vmatprep.subr.bf16.mxu1 %v460_v0  ;;  %v464_v3 = vld [vmem:[%s564_s0] sm:$0xff]   ;;  %v463_v5 = vld [vmem:[%s563_s1 + $0x18] sm:$0xff]   ;;  %v466_v6 = vld [vmem:[%s564_s0 + $0x8] sm:$0xff]  }
   0x3   :  { %429 = vmatpush3.bf16.msra.mxu0 %v460_v0  ;;  %456 = vmatpush3.bf16.msra.mxu1 %v460_v0  ;;  %v465_v4 = vld [vmem:[%s564_s0 + $0x20] sm:$0xff]   ;;  %v467_v7 = vld [vmem:[%s564_s0 + $0x28] sm:$0xff]   ;;  %v468_v8 = vld [vmem:[%s564_s0 + $0x10] sm:$0xff]  }
   0x4   :  { %430 = vmatprep.subr.bf16.mxu0 %v461_v1  ;;  %453 = vmatprep.subr.bf16.mxu1 %v461_v1  ;;  %v469_v9 = vld [vmem:[%s564_s0 + $0x30] sm:$0xff]   ;;  %v470_v10 = vld [vmem:[%s564_s0 + $0x18] sm:$0xff]   ;;  %v316_v13 = vld [vmem:[%s565_s2] ss:$0 sm:$0xff] }
   0x5   :  { %436 = vmatprep.mubr.msk.bf16.mxu0 %vm110_vm0, %v464_v3  ;;  %444 = vmatprep.mubr.msk.bf16.mxu1 %vm110_vm0, %v465_v4  ;;  %v471_v11 = vld [vmem:[%s564_s0 + $0x38] sm:$0xff]  }
   0x7   :  { %431 = vmatpush3.bf16.msra.mxu0 %v461_v1  ;;  %457 = vmatpush3.bf16.msra.mxu1 %v461_v1 }
   0x8   :  { %432 = vmatprep.subr.bf16.mxu0 %v462_v2  ;;  %454 = vmatprep.subr.bf16.mxu1 %v462_v2 }
   0xb   :  { %433 = vmatpush3.bf16.msra.mxu0 %v462_v2  ;;  %458 = vmatpush3.bf16.msra.mxu1 %v462_v2 }
   0xc   :  { %434 = vmatprep.subr.bf16.mxu0 %v463_v5  ;;  %455 = vmatprep.subr.bf16.mxu1 %v463_v5 }
   0xf   :  { %435 = vmatpush3.bf16.msra.mxu0 %v463_v5  ;;  %459 = vmatpush3.bf16.msra.mxu1 %v463_v5 }
  0x12   :  { %437 = vmatmul.mubr.msk.bf16.vlgmr.msra.gmra.mrb[0].mxu0 %vm110_vm0, %v466_v6  ;;  %445 = vmatmul.mubr.msk.bf16.vlgmr.msra.gmra.mrb[0].mxu1 %vm110_vm0, %v467_v7 }
  0x13   :  { %440 = vmatprep.mubr.msk.bf16.mxu0 %vm110_vm0, %v468_v8  ;;  %448 = vmatprep.mubr.msk.bf16.mxu1 %vm110_vm0, %v469_v9 }
  0x1a   :  { %441 = vmatmul.mubr.msk.bf16.gmra.mrb[4].mxu0 %vm110_vm0, %v470_v10  ;;  %449 = vmatmul.mubr.msk.bf16.gmra.mrb[4].mxu1 %vm110_vm0, %v471_v11 }
  0xe5   :  { %v438_v12 = vpop.f32.mrb[0].mxu0  ;;  %v446_v14 = vpop.f32.mrb[0].mxu1 }
  0xe6   :  { %v169_v15 = vpop.f32.mrb[1].mxu0  ;;  %v201_v16 = vpop.f32.mrb[1].mxu1  ;;  %v178_v19 = vadd.f32 %v438_v12, %v316_v13  ;;  %v210_v20 = vadd.f32 %v446_v14, %v316_v13 }
  0xe7   :  { %v439_v17 = vpop.f32.mrb[2].mxu0  ;;  %v447_v18 = vpop.f32.mrb[2].mxu1  ;;  %v170_v25 = vadd.f32 %v316_v13, %v169_v15  ;;  %v202_v26 = vadd.f32 %v316_v13, %v201_v16 }
  0xe8   :  { %v181_v21 = vadd.f32 %v439_v17, %v316_v13  ;;  %v213_v22 = vadd.f32 %v447_v18, %v316_v13  ;;  %v172_v23 = vpop.f32.mrb[3].mxu0  ;;  %v204_v24 = vpop.f32.mrb[3].mxu1 }
  0xe9   :  { %v173_v27 = vadd.f32 %v316_v13, %v172_v23  ;;  %v205_v28 = vadd.f32 %v316_v13, %v204_v24 }
  0xea   :  { %v377_v29 = vpack.c.bf16 %v181_v21, %v178_v19  ;;  %v397_v30 = vpack.c.bf16 %v213_v22, %v210_v20 }
  0xeb   :  { %v372_v31 = vpack.c.bf16 %v173_v27, %v170_v25  ;;  %v392_v32 = vpack.c.bf16 %v205_v28, %v202_v26 }
  0xec   :  { %409 = vst [vmem:[%s566_s3 + $0x8] sm:$0xff] %v377_v29   ;;  %413 = vst [vmem:[%s566_s3 + $0x28] sm:$0xff] %v397_v30  }
  0xed   :  { %373 = vst [vmem:[%s566_s3] sm:$0xff] %v372_v31   ;;  %412 = vst [vmem:[%s566_s3 + $0x20] sm:$0xff] %v392_v32   ;;  %v442_v33 = vpop.f32.mrb[4].mxu0  ;;  %v450_v34 = vpop.f32.mrb[4].mxu1 }
  0xee   :  { %v185_v35 = vpop.f32.mrb[5].mxu0  ;;  %v217_v36 = vpop.f32.mrb[5].mxu1  ;;  %v194_v39 = vadd.f32 %v442_v33, %v316_v13  ;;  %v226_v40 = vadd.f32 %v450_v34, %v316_v13 }
  0xef   :  { %v443_v37 = vpop.f32.mrb[6].mxu0  ;;  %v451_v38 = vpop.f32.mrb[6].mxu1  ;;  %v186_v45 = vadd.f32 %v316_v13, %v185_v35  ;;  %v218_v46 = vadd.f32 %v316_v13, %v217_v36 }
  0xf0   :  { %v197_v41 = vadd.f32 %v443_v37, %v316_v13  ;;  %v229_v42 = vadd.f32 %v451_v38, %v316_v13  ;;  %v188_v43 = vpop.f32.mrb[7].mxu0  ;;  %v220_v44 = vpop.f32.mrb[7].mxu1 }
  0xf1   :  { %v189_v47 = vadd.f32 %v316_v13, %v188_v43  ;;  %v221_v48 = vadd.f32 %v316_v13, %v220_v44 }
  0xf2   :  { %v387_v49 = vpack.c.bf16 %v197_v41, %v194_v39  ;;  %v407_v50 = vpack.c.bf16 %v229_v42, %v226_v40 }
  0xf3   :  { %v382_v51 = vpack.c.bf16 %v189_v47, %v186_v45  ;;  %v402_v52 = vpack.c.bf16 %v221_v48, %v218_v46 }
  0xf4   :  { %411 = vst [vmem:[%s566_s3 + $0x18] sm:$0xff] %v387_v49   ;;  %415 = vst [vmem:[%s566_s3 + $0x38] sm:$0xff] %v407_v50  }
  0xf5   :  { %410 = vst [vmem:[%s566_s3 + $0x10] sm:$0xff] %v382_v51   ;;  %414 = vst [vmem:[%s566_s3 + $0x30] sm:$0xff] %v402_v52  }

// kernel: pretrained_image_encoding_forward.19
= control target key start
LH: loop header
LB: loop body
LE: loop exit
PB: predicated region body
PF: predicated region fallthrough
CT: control target
= control target key end

     0   :  { %s2213_s15 = smov 0   ;;  %s2215_s16 = smov 0   ;;  %s2582_s0 = inlined_call_operand.vmem [shape: bf16[2,46,128], index: 0, kind: input, shape index: {}]   ;;  %s2583_s1 = inlined_call_operand.vmem [shape: bf16[1152,128], index: 1, kind: input, shape index: {}]   ;;  %s2584_s2 = inlined_call_operand.vmem [shape: f32[1,128], index: 2, kind: input, shape index: {}]   ;;  %s2585_s3 = inlined_call_operand.vmem [shape: bf16[2,32,128], index: 3, kind: input, shape index: {}]   ;;  %s2586_s4 = inlined_call_operand.vmem [shape: bf16[2,32,128], index: 4, kind: output, shape index: {}]  }
   0x1   :  { %s2217_s17 = smov 0  }
   0x2 LB: > { %s26_s18 = sadd.s32 1, %s2182_s16  ;;  %p1626_p0 = scmp.ge.s32.totalorder %s2186_s17, 1  ;;  %s2186_s17 = sphi %s2217_s17, %s14_s17   ;;  %s2182_s16 = sphi %s2215_s16, %s2588_s16   ;;  %s2178_s15 = sphi %s2213_s15, %s2587_s15  }
   0x3   : > { %p28_p1 = scmp.ge.s32.totalorder %s26_s18, 2  ;;  %p193_p2 = scmp.lt.s32.totalorder %s2186_s17, 3 }
   0x5   : > { %s2590_s18 = smov (%p28_p1, %s26_s18), 0  ;;  %p194_p3 = pnand %p1626_p0, %p193_p2 }
   0x6   : > { %v2078_v0 = vld [vmem:[%s2583_s1 + $0x40] sm:$0xff] (!%p194_p3)   ;;  %p232_p4 = scmp.lt.s32.totalorder (!%p194_p3), %s2178_s15, 1  ;;  %v2080_v2 = vld [vmem:[%s2583_s1 + $0x48] sm:$0xff] (!%p194_p3)   ;;  %v2082_v4 = vld [vmem:[%s2583_s1 + $0x50] sm:$0xff] (!%p194_p3)   ;;  %vm308_vm0 = vsmask.f32 (!%p194_p3), 7424 }
   0x7   : > { %197 = sbr.rel (%p194_p3) target bundleno = 394 (0x18a), region = 36  ;;  %v2079_v1 = vld [vmem:[%s2583_s1 + $0x100] sm:$0xff] (!%p194_p3)   ;;  %1841 = vmatprep.subr.bf16.mxu1 (!%p194_p3), %v2078_v0  ;;  %v2081_v3 = vld [vmem:[%s2583_s1 + $0x108] sm:$0xff] (!%p194_p3)   ;;  %v2083_v5 = vld [vmem:[%s2583_s1 + $0x110] sm:$0xff] (!%p194_p3)   ;;  %vm809_vm1 = vsmask.f32 (!%p194_p3), 4352 }
   0x8   : > { %1921 = vmatprep.subr.bf16.mxu0 (!%p194_p3), %v2079_v1  ;;  %1842 = vmatpush3.bf16.msra.mxu1 (!%p194_p3), %v2078_v0  ;;  %v2084_v6 = vld [vmem:[%s2583_s1 + $0x58] sm:$0xff] (!%p194_p3)   ;;  %v2086_v8 = vld [vmem:[%s2583_s1 + $0x60] sm:$0xff] (!%p194_p3)   ;;  %v2088_v10 = vld [vmem:[%s2583_s1 + $0x68] sm:$0xff] (!%p194_p3)   ;;  %vm680_vm2 = vcmask (!%p194_p3), 1044480   ;;  %vm547_vm3 = vcmask (!%p194_p3), 1046528   ;;  %vm1089_vm4 = vcmask (!%p194_p3), 1045504  }
   0x9   : > { %1922 = vmatpush3.bf16.msra.mxu0 (!%p194_p3), %v2079_v1  ;;  %1843 = vmatprep.subr.bf16.mxu1 (!%p194_p3), %v2080_v2  ;;  %v2085_v7 = vld [vmem:[%s2583_s1 + $0x118] sm:$0xff] (!%p194_p3)   ;;  %v2087_v9 = vld [vmem:[%s2583_s1 + $0x120] sm:$0xff] (!%p194_p3)   ;;  %v2089_v14 = vld [vmem:[%s2583_s1 + $0x128] sm:$0xff] (!%p194_p3)   ;;  %vm1218_vm5 = vsmask.f32 (!%p194_p3), 5376 }
   0xa   : > { %1923 = vmatprep.subr.bf16.mxu0 (!%p194_p3), %v2081_v3  ;;  %v2090_v17 = vld [vmem:[%s2583_s1 + $0x70] sm:$0xff] (!%p194_p3)   ;;  %v2092_v29 = vld [vmem:[%s2583_s1 + $0x78] sm:$0xff] (!%p194_p3)   ;;  %v2096_v49 = vld [vmem:[%s2583_s1] sm:$0xff] (!%p194_p3)  }
   0xb   : > { %v2091_v25 = vld [vmem:[%s2583_s1 + $0x130] sm:$0xff] (!%p194_p3)   ;;  %v2093_v38 = vld [vmem:[%s2583_s1 + $0x138] sm:$0xff] (!%p194_p3)   ;;  %v2098_v50 = vld [vmem:[%s2583_s1 + $0x140] sm:$0xff] (!%p194_p3)  }
   0xc   : > { %1844 = vmatpush3.bf16.msra.mxu1 (!%p194_p3), %v2080_v2  ;;  %v2101_v56 = vld [vmem:[%s2583_s1 + $0x8] sm:$0xff] (!%p194_p3)   ;;  %v2103_v62 = vld [vmem:[%s2583_s1 + $0x10] sm:$0xff] (!%p194_p3)   ;;  %v2105_v0 = vld [vmem:[%s2583_s1 + $0x18] sm:$0xff] (!%p194_p3)  }
   0xd   : > { %1924 = vmatpush3.bf16.msra.mxu0 (!%p194_p3), %v2081_v3  ;;  %1845 = vmatprep.subr.bf16.mxu1 (!%p194_p3), %v2082_v4  ;;  %v2102_v58 = vld [vmem:[%s2583_s1 + $0x148] sm:$0xff] (!%p194_p3)   ;;  %v2104_v63 = vld [vmem:[%s2583_s1 + $0x150] sm:$0xff] (!%p194_p3)   ;;  %v2106_v1 = vld [vmem:[%s2583_s1 + $0x158] sm:$0xff] (!%p194_p3)  }
   0xe   : > { %s2592_s15 = smov (!%p232_p4, %s2178_s15), 1  ;;  %1925 = vmatprep.subr.bf16.mxu0 %v2083_v5  ;;  %v2107_v2 = vld [vmem:[%s2583_s1 + $0x20] sm:$0xff]  }
   0xf   : > { %s2053_s9 = smul.u32 24, %s2592_s15  ;;  %v2108_v3 = vld [vmem:[%s2583_s1 + $0x160] sm:$0xff]   ;;  %s1725_s13 = sshll.u32 %s2592_s15, 4 }
  0x10   : > { %1846 = vmatpush3.bf16.msra.mxu1 %v2082_v4  ;;  %v2109_v4 = vld [vmem:[%s2583_s1 + $0x28] sm:$0xff]   ;;  %s245_s21 = scalar_lea.vmem %s2585_s3, %s1725_s13  ;;  %s255_s24 = scalar_lea.vmem %s2586_s4, %s1725_s13 }
  0x11   : > { %1926 = vmatpush3.bf16.msra.mxu0 %v2083_v5  ;;  %1847 = vmatprep.subr.bf16.mxu1 %v2084_v6  ;;  %s2267_s20 = scalar_lea.vmem %s2582_s0, %s2053_s9  ;;  %v2110_v5 = vld [vmem:[%s2583_s1 + $0x168] sm:$0xff]  }
  0x12   : > { %1927 = vmatprep.subr.bf16.mxu0 %v2085_v7  ;;  %v258_v11 = vld [vmem:[%s2267_s20] sm:$0xf]  ;;  %v2274_v12 = vld [vmem:[%s2267_s20 + $0x4] sm:$0xf]  ;;  %v2277_v13 = vld [vmem:[%s2267_s20 + $0x8] sm:$0xf] }
  0x13   : > { %v2283_v15 = vld [vmem:[%s2267_s20 + $0xc] sm:$0xf]  ;;  %v2286_v16 = vcombine.low %v258_v11, %v2274_v12  ;;  %v656_v19 = vld [vmem:[%s2267_s20] sm:$0x8]  ;;  %v2315_v37 = vld [vmem:[%s2267_s20 + $0x10] sm:$0xf]  ;;  %v1679_v60 = vcombine.low %v2274_v12, %v2277_v13 }
  0x14   : > { %1848 = vmatpush3.bf16.msra.mxu1 %v2084_v6  ;;  %v2293_v18 = vcombine.low %v2277_v13, %v2283_v15  ;;  %v2299_v22 = vcombine.low %v656_v19, %v2274_v12  ;;  %v2312_v33 = vld [vmem:[%s2267_s20 + $0x10] ss:$0 sps:$4 sm:$0x11]   ;;  %v1670_v41 = vcombine.low %v2315_v37, %v2315_v37  ;;  %v2385_v11 = vld [vmem:[%s2267_s20 + $0x8] sm:$0xf]  ;;  %v2114_v13 = vld [vmem:[%s2583_s1 + $0x178] sm:$0xff]  }
  0x15   : > { %1928 = vmatpush3.bf16.msra.mxu0 %v2085_v7  ;;  %1849 = vmatprep.subr.bf16.mxu1 %v2086_v8  ;;  %v310_v20 = vshrl.u32 %v2286_v16, 16  ;;  %v312_v21 = vshll.u32 %v2286_v16, 16  ;;  %v325_v40 = vshll.u32 %v2312_v33, 16  ;;  %v2111_v6 = vld [vmem:[%s2583_s1 + $0x30] sm:$0xff]   ;;  %v2115_v19 = vld [vmem:[%s2583_s1 + $0x80] sm:$0xff]  }
  0x16   : > { %1929 = vmatprep.subr.bf16.mxu0 %v2087_v9  ;;  %v317_v23 = vshll.u32 %v2293_v18, 16  ;;  %v321_v24 = vshrl.u32 %v2293_v18, 16  ;;  %v811_v27 = vshrl.u32 %v2299_v22, 16  ;;  %v814_v28 = vshll.u32 %v2299_v22, 16  ;;  %v2112_v7 = vld [vmem:[%s2583_s1 + $0x170] sm:$0xff]  }
  0x17   : > { %v314_v26 = vrot.slane %v312_v21, 1  ;;  %v327_v44 = vrot.slane %v325_v40, 1  ;;  %v823_v45 = vshrl.u32 %v1670_v41, 16  ;;  %v826_v46 = vshll.u32 %v1670_v41, 16 }
  0x18   : > { %1850 = vmatpush3.bf16.msra.mxu1 %v2086_v8  ;;  %v319_v30 = vrot.slane %v317_v23, 1  ;;  %v818_v31 = vrot.slane %v321_v24, 3  ;;  %v819_v32 = vrot.slane %v317_v23, 4  ;;  %v813_v35 = vrot.slane %v811_v27, 3  ;;  %v2113_v8 = vld [vmem:[%s2583_s1 + $0x38] sm:$0xff]  }
  0x19   : > { %1930 = vmatpush3.bf16.msra.mxu0 %v2087_v9  ;;  %1851 = vmatprep.subr.bf16.mxu1 %v2088_v10  ;;  %v315_v34 = vor.u32 %v314_v26, %v310_v20  ;;  %v816_v36 = vrot.slane %v814_v28, 4  ;;  %v825_v51 = vrot.slane %v823_v45, 3  ;;  %v828_v52 = vrot.slane %v826_v46, 4  ;;  %v527_v9 = vld [vmem:[%s2267_s20] sm:$0xe]  ;;  %v2120_v26 = vld [vmem:[%s2583_s1 + $0x188] sm:$0xff]  }
  0x1a   : > { %1931 = vmatprep.subr.bf16.mxu0 %v2089_v14  ;;  %v820_v39 = vor.u32 %v819_v32, %v818_v31  ;;  %v323_v48 = vor.u32 %v321_v24, %v319_v30  ;;  %v681_v57 = vrot.slane %v2299_v22, 3  ;;  %v682_v59 = vrot.slane %v2293_v18, 3  ;;  %v2117_v20 = vld [vmem:[%s2583_s1 + $0x180] sm:$0xff]   ;;  %v2121_v28 = vld [vmem:[%s2583_s1 + $0x90] sm:$0xff]   ;;  %v2124_v31 = vld [vmem:[%s2583_s1 + $0x198] sm:$0xff]  }
  0x1b   : > { %v320_v42 = vsel %vm308_vm0, %v315_v34, %v319_v30  ;;  %v817_v43 = vor.u32 %v816_v36, %v813_v35  ;;  %v829_v53 = vor.u32 %v828_v52, %v825_v51  ;;  %v1680_v22 = vcombine.low %v2283_v15, %v2315_v37  ;;  %v2123_v30 = vld [vmem:[%s2583_s1 + $0x98] sm:$0xff]   ;;  %v2125_v32 = vld [vmem:[%s2583_s1 + $0xa0] sm:$0xff]   ;;  %v2127_v35 = vld [vmem:[%s2583_s1 + $0xa8] sm:$0xff]  }
  0x1c   : > { %1852 = vmatpush3.bf16.msra.mxu1 %v2088_v10  ;;  %1857 = vmatprep.mubr.bf16.mxu1 %v320_v42  ;;  %v328_v54 = vsel %vm308_vm0, %v323_v48, %v327_v44  ;;  %v2346_v61 = vsel %vm680_vm2, %v681_v57, %v682_v59  ;;  %v1055_v10 = vld [vmem:[%s2267_s20 + $0x4] sm:$0xc]  ;;  %v2128_v36 = vld [vmem:[%s2583_s1 + $0x1a8] sm:$0xff]   ;;  %v2129_v37 = vld [vmem:[%s2583_s1 + $0xb0] sm:$0xff]   ;;  %v551_v46 = vrot.slane %v2312_v33, 1 }
  0x1d   : > { %1932 = vmatpush3.bf16.msra.mxu0 %v2089_v14  ;;  %1853 = vmatprep.subr.bf16.mxu1 %v2090_v17  ;;  %v821_v47 = vsel %vm809_vm1, %v817_v43, %v820_v39  ;;  %v830_v55 = vsel %vm809_vm1, %v820_v39, %v829_v53  ;;  %v1651_v14 = vcombine.low %v527_v9, %v2274_v12  ;;  %v549_v12 = vrot.slane %v2293_v18, 1  ;;  %v2126_v34 = vld [vmem:[%s2583_s1 + $0x1a0] sm:$0xff]   ;;  %v2131_v43 = vld [vmem:[%s2583_s1 + $0xb8] sm:$0xff]   ;;  %v2138_v44 = vld [vmem:[%s2267_s20 + $0x14] ss:$0 sps:$4 sm:$0x33]  }
  0x1e   : > { %1933 = vmatprep.subr.bf16.mxu0 %v2091_v25  ;;  %1937 = vmatprep.mubr.bf16.mxu0 %v821_v47  ;;  %v2132_v45 = vld [vmem:[%s2583_s1 + $0x1b8] sm:$0xff]   ;;  %v2134_v51 = vld [vmem:[%s2583_s1 + $0xc0] sm:$0xff]   ;;  %v1093_v52 = vrot.slane %v2138_v44, 2  ;;  %v2139_v57 = vld [vmem:[%s2583_s1 + $0xc8] sm:$0xff]  }
  0x1f   : > { %v548_v21 = vrot.slane %v1651_v14, 1  ;;  %v2137_v53 = vld [vmem:[%s2583_s1 + $0x1c0] sm:$0xff]   ;;  %v552_v33 = vsel %vm547_vm3, %v549_v12, %v551_v46  ;;  %v2150_v9 = vld [vmem:[%s2583_s1 + $0x1f0] sm:$0xff]   ;;  %v2151_v14 = vld [vmem:[%s2583_s1 + $0xf8] sm:$0xff]  }
  0x20   : > { %1854 = vmatpush3.bf16.msra.mxu1 %v2090_v17  ;;  %v2395_v17 = vld [vmem:[%s2267_s20 + $0xc] sm:$0xff]  }
  0x21   : > { %1934 = vmatpush3.bf16.msra.mxu0 %v2091_v25  ;;  %1855 = vmatprep.subr.bf16.mxu1 %v2092_v29  ;;  %v1091_v24 = vrot.slane %v2395_v17, 2  ;;  %v2119_v25 = vld [vmem:[%s2583_s1 + $0x88] sm:$0xff]   ;;  %v550_v15 = vsel %vm547_vm3, %v548_v21, %v549_v12  ;;  %v1228_v41 = vshrl.u32 %v2395_v17, 16  ;;  %v1231_v42 = vshll.u32 %v2395_v17, 16 }
  0x22   : > { %1935 = vmatprep.subr.bf16.mxu0 %v2093_v38 }
  0x24   : > { %1856 = vmatpush3.bf16.msra.mxu1 %v2092_v29  ;;  %v2122_v29 = vld [vmem:[%s2583_s1 + $0x190] sm:$0xff]  }
  0x25   : > { %1936 = vmatpush3.bf16.msra.mxu0 %v2093_v38  ;;  %1861 = vmatprep.subr.bf16.mxu1 %v2096_v49  ;;  %v2130_v38 = vld [vmem:[%s2583_s1 + $0x1b0] sm:$0xff]  }
  0x26   : > { %1941 = vmatprep.subr.bf16.mxu0 %v2098_v50 }
  0x27   : > { %1858 = vmatmul.mubr.bf16.vlgmr.msra.gmra.mrb[0].mxu1 %v328_v54 }
  0x28   : > { %1862 = vmatpush3.bf16.msra.mxu1 %v2096_v49  ;;  %1938 = vmatmul.mubr.bf16.vlgmr.msra.gmra.mrb[0].mxu0 %v830_v55  ;;  %v1230_v49 = vrot.slane %v1228_v41, 2  ;;  %v1718_v41 = vld [vmem:[%s2584_s2] ss:$0 sm:$0xff] }
  0x29   : > { %1942 = vmatpush3.bf16.msra.mxu0 %v2098_v50  ;;  %1863 = vmatprep.subr.bf16.mxu1 %v2101_v56  ;;  %v1233_v50 = vrot.slane %v1231_v42, 3 }
  0x2a   : > { %1943 = vmatprep.subr.bf16.mxu0 %v2102_v58  ;;  %1877 = vmatprep.mubr.bf16.mxu1 %v2286_v16  ;;  %v2392_v16 = vcombine.low %v1055_v10, %v2385_v11  ;;  %v1348_v10 = vld [vmem:[%s2267_s20 + $0x4] sm:$0x8] }
  0x2b   : > { %1957 = vmatprep.mubr.bf16.mxu0 %v1679_v60  ;;  %v2472_v55 = vor.u32 %v1233_v50, %v1230_v49  ;;  %v1709_v21 = vcombine.low %v1348_v10, %v2385_v11 }
  0x2c   : > { %1864 = vmatpush3.bf16.msra.mxu1 %v2101_v56  ;;  %v1090_v23 = vrot.slane %v2392_v16, 2  ;;  %v1220_v39 = vshrl.u32 %v2392_v16, 16  ;;  %v1223_v40 = vshll.u32 %v2392_v16, 16  ;;  %v1094_v56 = vsel %vm1089_vm4, %v1091_v24, %v1093_v52 }
  0x2d   : > { %1944 = vmatpush3.bf16.msra.mxu0 %v2102_v58  ;;  %1865 = vmatprep.subr.bf16.mxu1 %v2103_v62  ;;  %v2140_v58 = vld [vmem:[%s2583_s1 + $0x1c8] sm:$0xff]  }
  0x2e   : > { %1945 = vmatprep.subr.bf16.mxu0 %v2104_v63  ;;  %v1092_v27 = vsel %vm1089_vm4, %v1090_v23, %v1091_v24  ;;  %v1222_v47 = vrot.slane %v1220_v39, 2  ;;  %v1225_v48 = vrot.slane %v1223_v40, 3  ;;  %v2154_v23 = vld [vmem:[%s2583_s1 + $0x200] sm:$0xff]   ;;  %v1368_v24 = vrot.slane %v1709_v21, 3 }
  0x2f   : > { %v1732_v39 = vld [vmem:[%s245_s21] sm:$0xff]  }
  0x30   : > { %1866 = vmatpush3.bf16.msra.mxu1 %v2103_v62  ;;  %v1226_v54 = vor.u32 %v1225_v48, %v1222_v47  ;;  %v2141_v62 = vld [vmem:[%s2583_s1 + $0xd0] sm:$0xff]   ;;  %v1733_v46 = vunpack.c.l.bf16 %v1732_v39 }
  0x31   : > { %1946 = vmatpush3.bf16.msra.mxu0 %v2104_v63  ;;  %1867 = vmatprep.subr.bf16.mxu1 %v2105_v0  ;;  %v2142_v63 = vld [vmem:[%s2583_s1 + $0x1d0] sm:$0xff]  }
  0x32   : > { %1947 = vmatprep.subr.bf16.mxu0 %v2106_v1  ;;  %v1235_v60 = vsel %vm1218_vm5, %v1226_v54, %v2472_v55 }
  0x34   : > { %1868 = vmatpush3.bf16.msra.mxu1 %v2105_v0  ;;  %v2143_v0 = vld [vmem:[%s2583_s1 + $0xd8] sm:$0xff]  }
  0x35   : > { %1948 = vmatpush3.bf16.msra.mxu0 %v2106_v1  ;;  %1869 = vmatprep.subr.bf16.mxu1 %v2107_v2  ;;  %v2144_v1 = vld [vmem:[%s2583_s1 + $0x1d8] sm:$0xff]  }
  0x36   : > { %1949 = vmatprep.subr.bf16.mxu0 %v2108_v3 }
  0x38   : > { %1870 = vmatpush3.bf16.msra.mxu1 %v2107_v2  ;;  %v2146_v2 = vld [vmem:[%s2583_s1 + $0x1e0] sm:$0xff]  }
  0x39   : > { %1950 = vmatpush3.bf16.msra.mxu0 %v2108_v3  ;;  %1871 = vmatprep.subr.bf16.mxu1 %v2109_v4  ;;  %v2147_v3 = vld [vmem:[%s2583_s1 + $0xe8] sm:$0xff]  }
  0x3a   : > { %1951 = vmatprep.subr.bf16.mxu0 %v2110_v5 }
  0x3c   : > { %1872 = vmatpush3.bf16.msra.mxu1 %v2109_v4  ;;  %v2508_v4 = vld [vmem:[%s2267_s20 + $0x14] ss:$0 sps:$4 sm:$0x77]  }
  0x3d   : > { %1952 = vmatpush3.bf16.msra.mxu0 %v2110_v5  ;;  %1873 = vmatprep.subr.bf16.mxu1 %v2111_v6  ;;  %v2148_v5 = vld [vmem:[%s2583_s1 + $0x1e8] sm:$0xff]  }
  0x3e   : > { %1953 = vmatprep.subr.bf16.mxu0 %v2112_v7 }
  0x40   : > { %1874 = vmatpush3.bf16.msra.mxu1 %v2111_v6  ;;  %v2149_v6 = vld [vmem:[%s2583_s1 + $0xf0] sm:$0xff]  }
  0x41   : > { %1954 = vmatpush3.bf16.msra.mxu0 %v2112_v7  ;;  %1875 = vmatprep.subr.bf16.mxu1 %v2113_v8  ;;  %v1237_v7 = vshrl.u32 %v2508_v4, 16 }
  0x42   : > { %1955 = vmatprep.subr.bf16.mxu0 %v2114_v13 }
  0x43   : > { %v1239_v16 = vrot.slane %v1237_v7, 2 }
  0x44   : > { %1876 = vmatpush3.bf16.msra.mxu1 %v2113_v8  ;;  %v1240_v8 = vshll.u32 %v2508_v4, 16 }
  0x45   : > { %1956 = vmatpush3.bf16.msra.mxu0 %v2114_v13  ;;  %1881 = vmatprep.subr.bf16.mxu1 %v2115_v19  ;;  %v2153_v13 = vld [vmem:[%s2267_s20 + $0x10] ss:$0 sps:$4 sm:$0x77]  }
  0x46   : > { %1961 = vmatprep.subr.bf16.mxu0 %v2117_v20  ;;  %v684_v12 = vrot.slane %v2153_v13, 3 }
  0x47   : > { %1878 = vmatmul.mubr.bf16.vlgmr.msra.gmra.mrb[0].mxu1 %v2293_v18  ;;  %v2157_v18 = vld [vmem:[%s2583_s1 + $0x210] sm:$0xff]  }
  0x48   : > { %1882 = vmatpush3.bf16.msra.mxu1 %v2115_v19  ;;  %1958 = vmatmul.mubr.bf16.vlgmr.msra.gmra.mrb[0].mxu0 %v1680_v22  ;;  %v1242_v19 = vrot.slane %v1240_v8, 3 }
  0x49   : > { %1962 = vmatpush3.bf16.msra.mxu0 %v2117_v20  ;;  %1883 = vmatprep.subr.bf16.mxu1 %v2119_v25  ;;  %v2152_v20 = vld [vmem:[%s2583_s1 + $0x1f8] sm:$0xff]  }
  0x4a   : > { %1963 = vmatprep.subr.bf16.mxu0 %v2120_v26  ;;  %1897 = vmatprep.mubr.bf16.mxu1 %v550_v15  ;;  %v1243_v22 = vor.u32 %v1242_v19, %v1239_v16  ;;  %v2156_v15 = vld [vmem:[%s2583_s1 + $0x208] sm:$0xff]  }
  0x4b   : > { %1977 = vmatprep.mubr.bf16.mxu0 %v1092_v27 }
  0x4c   : > { %1884 = vmatpush3.bf16.msra.mxu1 %v2119_v25  ;;  %v1369_v25 = vrot.slane %v2395_v17, 3  ;;  %v1244_v11 = vsel %vm1218_vm5, %v2472_v55, %v1243_v22  ;;  %v2159_v17 = vld [vmem:[%s2583_s1 + $0x220] sm:$0xff]  }
  0x4d   : > { %1964 = vmatpush3.bf16.msra.mxu0 %v2120_v26  ;;  %1885 = vmatprep.subr.bf16.mxu1 %v2121_v28  ;;  %v685_v26 = vsel %vm680_vm2, %v682_v59, %v684_v12  ;;  %v2158_v59 = vld [vmem:[%s2583_s1 + $0x218] sm:$0xff]  }
  0x4e   : > { %1965 = vmatprep.subr.bf16.mxu0 %v2122_v29  ;;  %v1370_v27 = vsel %vm680_vm2, %v1368_v24, %v1369_v25 }
  0x50   : > { %1886 = vmatpush3.bf16.msra.mxu1 %v2121_v28  ;;  %v2160_v28 = vld [vmem:[%s2583_s1 + $0x228] sm:$0xff]  }
  0x51   : > { %1966 = vmatpush3.bf16.msra.mxu0 %v2122_v29  ;;  %1887 = vmatprep.subr.bf16.mxu1 %v2123_v30  ;;  %v2161_v29 = vld [vmem:[%s2583_s1 + $0x230] sm:$0xff]  }
  0x52   : > { %1967 = vmatprep.subr.bf16.mxu0 %v2124_v31 }
  0x54   : > { %1888 = vmatpush3.bf16.msra.mxu1 %v2123_v30  ;;  %v2162_v30 = vld [vmem:[%s2583_s1 + $0x238] sm:$0xff]  }
  0x55   : > { %1968 = vmatpush3.bf16.msra.mxu0 %v2124_v31  ;;  %1889 = vmatprep.subr.bf16.mxu1 %v2125_v32  ;;  %v1371_v31 = vrot.slane %v2508_v4, 3 }
  0x56   : > { %1969 = vmatprep.subr.bf16.mxu0 %v2126_v34 }
  0x58   : > { %1890 = vmatpush3.bf16.msra.mxu1 %v2125_v32  ;;  %v1372_v32 = vsel %vm680_vm2, %v1369_v25, %v1371_v31 }
  0x59   : > { %1970 = vmatpush3.bf16.msra.mxu0 %v2126_v34  ;;  %1891 = vmatprep.subr.bf16.mxu1 %v2127_v35 }
  0x5a   : > { %1971 = vmatprep.subr.bf16.mxu0 %v2128_v36 }
  0x5c   : > { %1892 = vmatpush3.bf16.msra.mxu1 %v2127_v35 }
  0x5d   : > { %1972 = vmatpush3.bf16.msra.mxu0 %v2128_v36  ;;  %1893 = vmatprep.subr.bf16.mxu1 %v2129_v37 }
  0x5e   : > { %1973 = vmatprep.subr.bf16.mxu0 %v2130_v38 }
  0x60   : > { %1894 = vmatpush3.bf16.msra.mxu1 %v2129_v37 }
  0x61   : > { %1974 = vmatpush3.bf16.msra.mxu0 %v2130_v38  ;;  %1895 = vmatprep.subr.bf16.mxu1 %v2131_v43  ;;  %v1749_v38 = vld [vmem:[%s245_s21 + $0x8] sm:$0xff]  }
  0x62   : > { %1975 = vmatprep.subr.bf16.mxu0 %v2132_v45  ;;  %v1738_v50 = vunpack.c.h.bf16 %v1749_v38 }
  0x64   : > { %1896 = vmatpush3.bf16.msra.mxu1 %v2131_v43  ;;  %v1737_v43 = vunpack.c.l.bf16 %v1749_v38 }
  0x65   : > { %1976 = vmatpush3.bf16.msra.mxu0 %v2132_v45  ;;  %1901 = vmatprep.subr.bf16.mxu1 %v2134_v51 }
  0x66   : > { %1981 = vmatprep.subr.bf16.mxu0 %v2137_v53 }
  0x67   : > { %1898 = vmatmul.mubr.bf16.vlgmr.msra.gmra.mrb[0].mxu1 %v552_v33  ;;  %v1734_v33 = vunpack.c.h.bf16 %v1732_v39 }
  0x68   : > { %1902 = vmatpush3.bf16.msra.mxu1 %v2134_v51  ;;  %1978 = vmatmul.mubr.bf16.vlgmr.msra.gmra.mrb[0].mxu0 %v1094_v56 }
  0x69   : > { %1982 = vmatpush3.bf16.msra.mxu0 %v2137_v53  ;;  %1903 = vmatprep.subr.bf16.mxu1 %v2139_v57 }
  0x6a   : > { %1983 = vmatprep.subr.bf16.mxu0 %v2140_v58  ;;  %1917 = vmatprep.mubr.bf16.mxu1 %v2346_v61  ;;  %v2145_v61 = vld [vmem:[%s2583_s1 + $0xe0] sm:$0xff]  }
  0x6b   : > { %1997 = vmatprep.mubr.bf16.mxu0 %v1235_v60 }
  0x6c   : > { %1904 = vmatpush3.bf16.msra.mxu1 %v2139_v57 }
  0x6d   : > { %1984 = vmatpush3.bf16.msra.mxu0 %v2140_v58  ;;  %1905 = vmatprep.subr.bf16.mxu1 %v2141_v62 }
  0x6e   : > { %1985 = vmatprep.subr.bf16.mxu0 %v2142_v63 }
  0x70   : > { %1906 = vmatpush3.bf16.msra.mxu1 %v2141_v62 }
  0x71   : > { %1986 = vmatpush3.bf16.msra.mxu0 %v2142_v63  ;;  %1907 = vmatprep.subr.bf16.mxu1 %v2143_v0 }
  0x72   : > { %1987 = vmatprep.subr.bf16.mxu0 %v2144_v1 }
  0x74   : > { %1908 = vmatpush3.bf16.msra.mxu1 %v2143_v0 }
  0x75   : > { %1988 = vmatpush3.bf16.msra.mxu0 %v2144_v1  ;;  %1909 = vmatprep.subr.bf16.mxu1 %v2145_v61 }
  0x76   : > { %1989 = vmatprep.subr.bf16.mxu0 %v2146_v2 }
  0x78   : > { %1910 = vmatpush3.bf16.msra.mxu1 %v2145_v61 }
  0x79   : > { %1990 = vmatpush3.bf16.msra.mxu0 %v2146_v2  ;;  %1911 = vmatprep.subr.bf16.mxu1 %v2147_v3 }
  0x7a   : > { %1991 = vmatprep.subr.bf16.mxu0 %v2148_v5 }
  0x7c   : > { %1912 = vmatpush3.bf16.msra.mxu1 %v2147_v3 }
  0x7d   : > { %1992 = vmatpush3.bf16.msra.mxu0 %v2148_v5  ;;  %1913 = vmatprep.subr.bf16.mxu1 %v2149_v6 }
  0x7e   : > { %1993 = vmatprep.subr.bf16.mxu0 %v2150_v9 }
  0x80   : > { %1914 = vmatpush3.bf16.msra.mxu1 %v2149_v6 }
  0x81   : > { %1994 = vmatpush3.bf16.msra.mxu0 %v2150_v9  ;;  %1915 = vmatprep.subr.bf16.mxu1 %v2151_v14 }
  0x82   : > { %1995 = vmatprep.subr.bf16.mxu0 %v2152_v20 }
  0x84   : > { %1916 = vmatpush3.bf16.msra.mxu1 %v2151_v14 }
  0x85   : > { %1996 = vmatpush3.bf16.msra.mxu0 %v2152_v20 }
  0x86   : > { %2001 = vmatprep.subr.bf16.mxu0 %v2154_v23 }
  0x87   : > { %1918 = vmatmul.mubr.bf16.vlgmr.msra.gmra.mrb[0].mxu1 %v685_v26 }
  0x88   : > { %1998 = vmatmul.mubr.bf16.vlgmr.msra.gmra.mrb[0].mxu0 %v1244_v11 }
  0x89   : > { %2002 = vmatpush3.bf16.msra.mxu0 %v2154_v23  ;;  %2017 = vmatprep.mubr.bf16.mxu0 %v1370_v27 }
  0x8a   : > { %2003 = vmatprep.subr.bf16.mxu0 %v2156_v15 }
  0x8d   : > { %2004 = vmatpush3.bf16.msra.mxu0 %v2156_v15 }
  0x8e   : > { %2005 = vmatprep.subr.bf16.mxu0 %v2157_v18 }
  0x91   : > { %2006 = vmatpush3.bf16.msra.mxu0 %v2157_v18 }
  0x92   : > { %2007 = vmatprep.subr.bf16.mxu0 %v2158_v59 }
  0x95   : > { %2008 = vmatpush3.bf16.msra.mxu0 %v2158_v59 }
  0x96   : > { %2009 = vmatprep.subr.bf16.mxu0 %v2159_v17 }
  0x99   : > { %2010 = vmatpush3.bf16.msra.mxu0 %v2159_v17 }
  0x9a   : > { %2011 = vmatprep.subr.bf16.mxu0 %v2160_v28 }
  0x9d   : > { %2012 = vmatpush3.bf16.msra.mxu0 %v2160_v28 }
  0x9e   : > { %2013 = vmatprep.subr.bf16.mxu0 %v2161_v29 }
  0xa1   : > { %2014 = vmatpush3.bf16.msra.mxu0 %v2161_v29 }
  0xa2   : > { %2015 = vmatprep.subr.bf16.mxu0 %v2162_v30 }
  0xa5   : > { %2016 = vmatpush3.bf16.msra.mxu0 %v2162_v30 }
  0xa8   : > { %2018 = vmatmul.mubr.bf16.vlgmr.msra.gmra.mrb[0].mxu0 %v1372_v32 }
 0x15a   : > { %v1919_v34 = vpop.f32.mrb[0].mxu1 }
 0x15b   : > { %v770_v35 = vpop.f32.mrb[1].mxu1 }
 0x15c   : > { %v1920_v36 = vpop.f32.mrb[2].mxu1 }
 0x15d   : > { %v773_v37 = vpop.f32.mrb[3].mxu1 }
 0x17b   : > { %v2019_v40 = vpop.f32.mrb[0].mxu0 }
 0x17c   : > { %v2021_v42 = vadd.f32 %v2019_v40, %v1919_v34  ;;  %v1457_v44 = vpop.f32.mrb[1].mxu0 }
 0x17d   : > { %v2022_v45 = vadd.f32 %v1457_v44, %v770_v35  ;;  %v2020_v47 = vpop.f32.mrb[2].mxu0 }
 0x17e   : > { %v1485_v48 = vadd.f32 %v2021_v42, %v1718_v41  ;;  %v2023_v49 = vadd.f32 %v2020_v47, %v1920_v36  ;;  %v1460_v51 = vpop.f32.mrb[3].mxu0 }
 0x17f   : > { %v1483_v52 = vadd.f32 %v2022_v45, %v1718_v41  ;;  %v2024_v53 = vadd.f32 %v1460_v51, %v773_v37 }
 0x180   : > { %v1497_v54 = vadd.f32 %v1737_v43, %v1485_v48  ;;  %v1486_v55 = vadd.f32 %v2023_v49, %v1718_v41 }
 0x181   : > { %v1495_v56 = vadd.f32 %v1733_v46, %v1483_v52  ;;  %v1484_v57 = vadd.f32 %v2024_v53, %v1718_v41 }
 0x182   : > { %v1498_v58 = vadd.f32 %v1738_v50, %v1486_v55  ;;  %v1501_v62 = vmax.f32 %v1497_v54, 0.0 }
 0x183   : > { %v1496_v60 = vadd.f32 %v1734_v33, %v1484_v57  ;;  %v1499_v0 = vmax.f32 %v1495_v56, 0.0 }
 0x184   : > { %v1502_v63 = vmax.f32 %v1498_v58, 0.0 }
 0x185   : > { %v1500_v1 = vmax.f32 %v1496_v60, 0.0 }
 0x186   : > { %v1747_v61 = vpack.c.bf16 %v1502_v63, %v1501_v62 }
 0x187   : > { %v1742_v2 = vpack.c.bf16 %v1500_v1, %v1499_v0 }
 0x188   : > { %1750 = vst [vmem:[%s255_s24 + $0x8] sm:$0xff] %v1747_v61  }
 0x189   : > { %1743 = vst [vmem:[%s255_s24] sm:$0xff] %v1742_v2  }
 0x18a PF: > { %s14_s17 = sadd.s32 1, %s2186_s17   ;;  %s2587_s15 = smov %s2182_s16 }
 0x18b   : > { %p11_p5 = scmp.ge.s32.totalorder %s14_s17, 4   ;;  %s2588_s16 = smov %s2590_s18 }
 0x18d   :  { %13 = sbr.rel (!%p11_p5) target bundleno = 2 (0x2), region = 69 }

// kernel: pretrained_image_encoding_forward.20
= control target key start
LH: loop header
LB: loop body
LE: loop exit
PB: predicated region body
PF: predicated region fallthrough
CT: control target
= control target key end

     0   :  { %s2103_s12 = smov 0   ;;  %s2105_s13 = smov 0   ;;  %s2469_s0 = inlined_call_operand.vmem [shape: bf16[2,46,128], index: 0, kind: input, shape index: {}]   ;;  %s2470_s1 = inlined_call_operand.vmem [shape: bf16[1152,128], index: 1, kind: input, shape index: {}]   ;;  %s2471_s2 = inlined_call_operand.vmem [shape: f32[1,128], index: 2, kind: input, shape index: {}]   ;;  %s2472_s3 = inlined_call_operand.vmem [shape: bf16[2,32,128], index: 3, kind: output, shape index: {}]  }
   0x1   :  { %s2107_s14 = smov 0  }
   0x2 LB: > { %s25_s15 = sadd.s32 1, %s2077_s13  ;;  %p1533_p0 = scmp.ge.s32.totalorder %s2081_s14, 1  ;;  %s2081_s14 = sphi %s2107_s14, %s13_s14   ;;  %s2077_s13 = sphi %s2105_s13, %s2474_s13   ;;  %s2073_s12 = sphi %s2103_s12, %s2473_s12  }
   0x3   : > { %p27_p1 = scmp.ge.s32.totalorder %s25_s15, 2  ;;  %p151_p2 = scmp.lt.s32.totalorder %s2081_s14, 3 }
   0x5   : > { %s2476_s15 = smov (%p27_p1, %s25_s15), 0  ;;  %p152_p3 = pnand %p1533_p0, %p151_p2 }
   0x6   : > { %v1973_v0 = vld [vmem:[%s2470_s1 + $0x40] sm:$0xff] (!%p152_p3)   ;;  %p179_p4 = scmp.lt.s32.totalorder (!%p152_p3), %s2073_s12, 1  ;;  %v1975_v2 = vld [vmem:[%s2470_s1 + $0x48] sm:$0xff] (!%p152_p3)   ;;  %v1977_v4 = vld [vmem:[%s2470_s1 + $0x50] sm:$0xff] (!%p152_p3)   ;;  %vm245_vm0 = vsmask.f32 (!%p152_p3), 7424 }
   0x7   : > { %155 = sbr.rel (%p152_p3) target bundleno = 392 (0x188), region = 32  ;;  %v1974_v1 = vld [vmem:[%s2470_s1 + $0x100] sm:$0xff] (!%p152_p3)   ;;  %1736 = vmatprep.subr.bf16.mxu1 (!%p152_p3), %v1973_v0  ;;  %v1976_v3 = vld [vmem:[%s2470_s1 + $0x108] sm:$0xff] (!%p152_p3)   ;;  %v1978_v5 = vld [vmem:[%s2470_s1 + $0x110] sm:$0xff] (!%p152_p3)   ;;  %vm746_vm1 = vsmask.f32 (!%p152_p3), 4352 }
   0x8   : > { %1816 = vmatprep.subr.bf16.mxu0 (!%p152_p3), %v1974_v1  ;;  %1737 = vmatpush3.bf16.msra.mxu1 (!%p152_p3), %v1973_v0  ;;  %v1979_v6 = vld [vmem:[%s2470_s1 + $0x58] sm:$0xff] (!%p152_p3)   ;;  %v1981_v8 = vld [vmem:[%s2470_s1 + $0x60] sm:$0xff] (!%p152_p3)   ;;  %v1983_v10 = vld [vmem:[%s2470_s1 + $0x68] sm:$0xff] (!%p152_p3)   ;;  %vm617_vm2 = vcmask (!%p152_p3), 1044480   ;;  %vm484_vm3 = vcmask (!%p152_p3), 1046528   ;;  %vm1026_vm4 = vcmask (!%p152_p3), 1045504  }
   0x9   : > { %1817 = vmatpush3.bf16.msra.mxu0 (!%p152_p3), %v1974_v1  ;;  %1738 = vmatprep.subr.bf16.mxu1 (!%p152_p3), %v1975_v2  ;;  %v1980_v7 = vld [vmem:[%s2470_s1 + $0x118] sm:$0xff] (!%p152_p3)   ;;  %v1982_v9 = vld [vmem:[%s2470_s1 + $0x120] sm:$0xff] (!%p152_p3)   ;;  %v1984_v14 = vld [vmem:[%s2470_s1 + $0x128] sm:$0xff] (!%p152_p3)   ;;  %vm1155_vm5 = vsmask.f32 (!%p152_p3), 5376 }
   0xa   : > { %1818 = vmatprep.subr.bf16.mxu0 (!%p152_p3), %v1976_v3  ;;  %v1985_v17 = vld [vmem:[%s2470_s1 + $0x70] sm:$0xff] (!%p152_p3)   ;;  %v1987_v29 = vld [vmem:[%s2470_s1 + $0x78] sm:$0xff] (!%p152_p3)   ;;  %v1991_v49 = vld [vmem:[%s2470_s1] sm:$0xff] (!%p152_p3)  }
   0xb   : > { %v1986_v25 = vld [vmem:[%s2470_s1 + $0x130] sm:$0xff] (!%p152_p3)   ;;  %v1988_v38 = vld [vmem:[%s2470_s1 + $0x138] sm:$0xff] (!%p152_p3)   ;;  %v1993_v50 = vld [vmem:[%s2470_s1 + $0x140] sm:$0xff] (!%p152_p3)  }
   0xc   : > { %1739 = vmatpush3.bf16.msra.mxu1 (!%p152_p3), %v1975_v2  ;;  %v1996_v56 = vld [vmem:[%s2470_s1 + $0x8] sm:$0xff] (!%p152_p3)   ;;  %v1998_v62 = vld [vmem:[%s2470_s1 + $0x10] sm:$0xff] (!%p152_p3)   ;;  %v2000_v0 = vld [vmem:[%s2470_s1 + $0x18] sm:$0xff] (!%p152_p3)  }
   0xd   : > { %1819 = vmatpush3.bf16.msra.mxu0 (!%p152_p3), %v1976_v3  ;;  %1740 = vmatprep.subr.bf16.mxu1 (!%p152_p3), %v1977_v4  ;;  %v1997_v58 = vld [vmem:[%s2470_s1 + $0x148] sm:$0xff] (!%p152_p3)   ;;  %v1999_v63 = vld [vmem:[%s2470_s1 + $0x150] sm:$0xff] (!%p152_p3)   ;;  %v2001_v1 = vld [vmem:[%s2470_s1 + $0x158] sm:$0xff] (!%p152_p3)  }
   0xe   : > { %s2478_s12 = smov (!%p179_p4, %s2073_s12), 1  ;;  %1820 = vmatprep.subr.bf16.mxu0 %v1978_v5  ;;  %v2002_v2 = vld [vmem:[%s2470_s1 + $0x20] sm:$0xff]  }
   0xf   : > { %s1948_s5 = smul.u32 24, %s2478_s12  ;;  %v2003_v3 = vld [vmem:[%s2470_s1 + $0x160] sm:$0xff]  }
  0x10   : > { %1741 = vmatpush3.bf16.msra.mxu1 %v1977_v4  ;;  %v2004_v4 = vld [vmem:[%s2470_s1 + $0x28] sm:$0xff]  }
  0x11   : > { %1821 = vmatpush3.bf16.msra.mxu0 %v1978_v5  ;;  %1742 = vmatprep.subr.bf16.mxu1 %v1979_v6  ;;  %s2157_s16 = scalar_lea.vmem %s2469_s0, %s1948_s5  ;;  %v2005_v5 = vld [vmem:[%s2470_s1 + $0x168] sm:$0xff]   ;;  %s1630_s5 = sshll.u32 %s2478_s12, 4 }
  0x12   : > { %1822 = vmatprep.subr.bf16.mxu0 %v1980_v7  ;;  %v195_v11 = vld [vmem:[%s2157_s16] sm:$0xf]  ;;  %v2164_v12 = vld [vmem:[%s2157_s16 + $0x4] sm:$0xf]  ;;  %v2167_v13 = vld [vmem:[%s2157_s16 + $0x8] sm:$0xf]  ;;  %s192_s8 = scalar_lea.vmem %s2472_s3, %s1630_s5 }
  0x13   : > { %v2173_v15 = vld [vmem:[%s2157_s16 + $0xc] sm:$0xf]  ;;  %v2176_v16 = vcombine.low %v195_v11, %v2164_v12  ;;  %v593_v19 = vld [vmem:[%s2157_s16] sm:$0x8]  ;;  %v2205_v37 = vld [vmem:[%s2157_s16 + $0x10] sm:$0xf]  ;;  %v1584_v60 = vcombine.low %v2164_v12, %v2167_v13 }
  0x14   : > { %1743 = vmatpush3.bf16.msra.mxu1 %v1979_v6  ;;  %v2183_v18 = vcombine.low %v2167_v13, %v2173_v15  ;;  %v2189_v22 = vcombine.low %v593_v19, %v2164_v12  ;;  %v2202_v33 = vld [vmem:[%s2157_s16 + $0x10] ss:$0 sps:$4 sm:$0x11]   ;;  %v1575_v41 = vcombine.low %v2205_v37, %v2205_v37  ;;  %v2275_v11 = vld [vmem:[%s2157_s16 + $0x8] sm:$0xf]  ;;  %v2009_v13 = vld [vmem:[%s2470_s1 + $0x178] sm:$0xff]  }
  0x15   : > { %1823 = vmatpush3.bf16.msra.mxu0 %v1980_v7  ;;  %1744 = vmatprep.subr.bf16.mxu1 %v1981_v8  ;;  %v247_v20 = vshrl.u32 %v2176_v16, 16  ;;  %v249_v21 = vshll.u32 %v2176_v16, 16  ;;  %v262_v40 = vshll.u32 %v2202_v33, 16  ;;  %v2006_v6 = vld [vmem:[%s2470_s1 + $0x30] sm:$0xff]   ;;  %v2010_v19 = vld [vmem:[%s2470_s1 + $0x80] sm:$0xff]  }
  0x16   : > { %1824 = vmatprep.subr.bf16.mxu0 %v1982_v9  ;;  %v254_v23 = vshll.u32 %v2183_v18, 16  ;;  %v258_v24 = vshrl.u32 %v2183_v18, 16  ;;  %v748_v27 = vshrl.u32 %v2189_v22, 16  ;;  %v751_v28 = vshll.u32 %v2189_v22, 16  ;;  %v2007_v7 = vld [vmem:[%s2470_s1 + $0x170] sm:$0xff]  }
  0x17   : > { %v251_v26 = vrot.slane %v249_v21, 1  ;;  %v264_v44 = vrot.slane %v262_v40, 1  ;;  %v760_v45 = vshrl.u32 %v1575_v41, 16  ;;  %v763_v46 = vshll.u32 %v1575_v41, 16 }
  0x18   : > { %1745 = vmatpush3.bf16.msra.mxu1 %v1981_v8  ;;  %v256_v30 = vrot.slane %v254_v23, 1  ;;  %v755_v31 = vrot.slane %v258_v24, 3  ;;  %v756_v32 = vrot.slane %v254_v23, 4  ;;  %v750_v35 = vrot.slane %v748_v27, 3  ;;  %v2008_v8 = vld [vmem:[%s2470_s1 + $0x38] sm:$0xff]  }
  0x19   : > { %1825 = vmatpush3.bf16.msra.mxu0 %v1982_v9  ;;  %1746 = vmatprep.subr.bf16.mxu1 %v1983_v10  ;;  %v252_v34 = vor.u32 %v251_v26, %v247_v20  ;;  %v753_v36 = vrot.slane %v751_v28, 4  ;;  %v762_v51 = vrot.slane %v760_v45, 3  ;;  %v765_v52 = vrot.slane %v763_v46, 4  ;;  %v464_v9 = vld [vmem:[%s2157_s16] sm:$0xe]  ;;  %v2015_v26 = vld [vmem:[%s2470_s1 + $0x188] sm:$0xff]  }
  0x1a   : > { %1826 = vmatprep.subr.bf16.mxu0 %v1984_v14  ;;  %v757_v39 = vor.u32 %v756_v32, %v755_v31  ;;  %v260_v48 = vor.u32 %v258_v24, %v256_v30  ;;  %v618_v57 = vrot.slane %v2189_v22, 3  ;;  %v619_v59 = vrot.slane %v2183_v18, 3  ;;  %v2012_v20 = vld [vmem:[%s2470_s1 + $0x180] sm:$0xff]   ;;  %v2016_v28 = vld [vmem:[%s2470_s1 + $0x90] sm:$0xff]   ;;  %v2019_v31 = vld [vmem:[%s2470_s1 + $0x198] sm:$0xff]  }
  0x1b   : > { %v257_v42 = vsel %vm245_vm0, %v252_v34, %v256_v30  ;;  %v754_v43 = vor.u32 %v753_v36, %v750_v35  ;;  %v766_v53 = vor.u32 %v765_v52, %v762_v51  ;;  %v1585_v22 = vcombine.low %v2173_v15, %v2205_v37  ;;  %v2018_v30 = vld [vmem:[%s2470_s1 + $0x98] sm:$0xff]   ;;  %v2020_v32 = vld [vmem:[%s2470_s1 + $0xa0] sm:$0xff]   ;;  %v2022_v35 = vld [vmem:[%s2470_s1 + $0xa8] sm:$0xff]  }
  0x1c   : > { %1747 = vmatpush3.bf16.msra.mxu1 %v1983_v10  ;;  %1752 = vmatprep.mubr.bf16.mxu1 %v257_v42  ;;  %v265_v54 = vsel %vm245_vm0, %v260_v48, %v264_v44  ;;  %v2236_v61 = vsel %vm617_vm2, %v618_v57, %v619_v59  ;;  %v992_v10 = vld [vmem:[%s2157_s16 + $0x4] sm:$0xc]  ;;  %v2023_v36 = vld [vmem:[%s2470_s1 + $0x1a8] sm:$0xff]   ;;  %v2024_v37 = vld [vmem:[%s2470_s1 + $0xb0] sm:$0xff]   ;;  %v488_v46 = vrot.slane %v2202_v33, 1 }
  0x1d   : > { %1827 = vmatpush3.bf16.msra.mxu0 %v1984_v14  ;;  %1748 = vmatprep.subr.bf16.mxu1 %v1985_v17  ;;  %v758_v47 = vsel %vm746_vm1, %v754_v43, %v757_v39  ;;  %v767_v55 = vsel %vm746_vm1, %v757_v39, %v766_v53  ;;  %v1556_v14 = vcombine.low %v464_v9, %v2164_v12  ;;  %v486_v12 = vrot.slane %v2183_v18, 1  ;;  %v2021_v34 = vld [vmem:[%s2470_s1 + $0x1a0] sm:$0xff]   ;;  %v2026_v43 = vld [vmem:[%s2470_s1 + $0xb8] sm:$0xff]   ;;  %v2033_v44 = vld [vmem:[%s2157_s16 + $0x14] ss:$0 sps:$4 sm:$0x33]  }
  0x1e   : > { %1828 = vmatprep.subr.bf16.mxu0 %v1986_v25  ;;  %1832 = vmatprep.mubr.bf16.mxu0 %v758_v47  ;;  %v2027_v45 = vld [vmem:[%s2470_s1 + $0x1b8] sm:$0xff]   ;;  %v2029_v51 = vld [vmem:[%s2470_s1 + $0xc0] sm:$0xff]   ;;  %v1030_v52 = vrot.slane %v2033_v44, 2  ;;  %v2034_v57 = vld [vmem:[%s2470_s1 + $0xc8] sm:$0xff]  }
  0x1f   : > { %v485_v21 = vrot.slane %v1556_v14, 1  ;;  %v2032_v53 = vld [vmem:[%s2470_s1 + $0x1c0] sm:$0xff]   ;;  %v489_v33 = vsel %vm484_vm3, %v486_v12, %v488_v46  ;;  %v2045_v9 = vld [vmem:[%s2470_s1 + $0x1f0] sm:$0xff]   ;;  %v2046_v14 = vld [vmem:[%s2470_s1 + $0xf8] sm:$0xff]  }
  0x20   : > { %1749 = vmatpush3.bf16.msra.mxu1 %v1985_v17  ;;  %v2285_v17 = vld [vmem:[%s2157_s16 + $0xc] sm:$0xff]  }
  0x21   : > { %1829 = vmatpush3.bf16.msra.mxu0 %v1986_v25  ;;  %1750 = vmatprep.subr.bf16.mxu1 %v1987_v29  ;;  %v1028_v24 = vrot.slane %v2285_v17, 2  ;;  %v2014_v25 = vld [vmem:[%s2470_s1 + $0x88] sm:$0xff]   ;;  %v487_v15 = vsel %vm484_vm3, %v485_v21, %v486_v12  ;;  %v1165_v41 = vshrl.u32 %v2285_v17, 16  ;;  %v1168_v42 = vshll.u32 %v2285_v17, 16 }
  0x22   : > { %1830 = vmatprep.subr.bf16.mxu0 %v1988_v38 }
  0x24   : > { %1751 = vmatpush3.bf16.msra.mxu1 %v1987_v29  ;;  %v2017_v29 = vld [vmem:[%s2470_s1 + $0x190] sm:$0xff]  }
  0x25   : > { %1831 = vmatpush3.bf16.msra.mxu0 %v1988_v38  ;;  %1756 = vmatprep.subr.bf16.mxu1 %v1991_v49  ;;  %v2025_v38 = vld [vmem:[%s2470_s1 + $0x1b0] sm:$0xff]  }
  0x26   : > { %1836 = vmatprep.subr.bf16.mxu0 %v1993_v50 }
  0x27   : > { %1753 = vmatmul.mubr.bf16.vlgmr.msra.gmra.mrb[0].mxu1 %v265_v54 }
  0x28   : > { %1757 = vmatpush3.bf16.msra.mxu1 %v1991_v49  ;;  %1833 = vmatmul.mubr.bf16.vlgmr.msra.gmra.mrb[0].mxu0 %v767_v55  ;;  %v1167_v49 = vrot.slane %v1165_v41, 2 }
  0x29   : > { %1837 = vmatpush3.bf16.msra.mxu0 %v1993_v50  ;;  %1758 = vmatprep.subr.bf16.mxu1 %v1996_v56  ;;  %v1170_v50 = vrot.slane %v1168_v42, 3 }
  0x2a   : > { %1838 = vmatprep.subr.bf16.mxu0 %v1997_v58  ;;  %1772 = vmatprep.mubr.bf16.mxu1 %v2176_v16  ;;  %v2282_v16 = vcombine.low %v992_v10, %v2275_v11  ;;  %v1285_v10 = vld [vmem:[%s2157_s16 + $0x4] sm:$0x8] }
  0x2b   : > { %1852 = vmatprep.mubr.bf16.mxu0 %v1584_v60  ;;  %v2362_v55 = vor.u32 %v1170_v50, %v1167_v49  ;;  %v1614_v21 = vcombine.low %v1285_v10, %v2275_v11 }
  0x2c   : > { %1759 = vmatpush3.bf16.msra.mxu1 %v1996_v56  ;;  %v1027_v23 = vrot.slane %v2282_v16, 2  ;;  %v1157_v39 = vshrl.u32 %v2282_v16, 16  ;;  %v1160_v40 = vshll.u32 %v2282_v16, 16  ;;  %v1031_v56 = vsel %vm1026_vm4, %v1028_v24, %v1030_v52 }
  0x2d   : > { %1839 = vmatpush3.bf16.msra.mxu0 %v1997_v58  ;;  %1760 = vmatprep.subr.bf16.mxu1 %v1998_v62  ;;  %v2035_v58 = vld [vmem:[%s2470_s1 + $0x1c8] sm:$0xff]  }
  0x2e   : > { %1840 = vmatprep.subr.bf16.mxu0 %v1999_v63  ;;  %v1029_v27 = vsel %vm1026_vm4, %v1027_v23, %v1028_v24  ;;  %v1159_v47 = vrot.slane %v1157_v39, 2  ;;  %v1162_v48 = vrot.slane %v1160_v40, 3  ;;  %v2049_v23 = vld [vmem:[%s2470_s1 + $0x200] sm:$0xff]   ;;  %v1305_v24 = vrot.slane %v1614_v21, 3 }
  0x2f   : > { %v1623_v39 = vld [vmem:[%s2471_s2] ss:$0 sm:$0xff] }
  0x30   : > { %1761 = vmatpush3.bf16.msra.mxu1 %v1998_v62  ;;  %v1163_v54 = vor.u32 %v1162_v48, %v1159_v47  ;;  %v2036_v62 = vld [vmem:[%s2470_s1 + $0xd0] sm:$0xff]  }
  0x31   : > { %1841 = vmatpush3.bf16.msra.mxu0 %v1999_v63  ;;  %1762 = vmatprep.subr.bf16.mxu1 %v2000_v0  ;;  %v2037_v63 = vld [vmem:[%s2470_s1 + $0x1d0] sm:$0xff]  }
  0x32   : > { %1842 = vmatprep.subr.bf16.mxu0 %v2001_v1  ;;  %v1172_v60 = vsel %vm1155_vm5, %v1163_v54, %v2362_v55 }
  0x34   : > { %1763 = vmatpush3.bf16.msra.mxu1 %v2000_v0  ;;  %v2038_v0 = vld [vmem:[%s2470_s1 + $0xd8] sm:$0xff]  }
  0x35   : > { %1843 = vmatpush3.bf16.msra.mxu0 %v2001_v1  ;;  %1764 = vmatprep.subr.bf16.mxu1 %v2002_v2  ;;  %v2039_v1 = vld [vmem:[%s2470_s1 + $0x1d8] sm:$0xff]  }
  0x36   : > { %1844 = vmatprep.subr.bf16.mxu0 %v2003_v3 }
  0x38   : > { %1765 = vmatpush3.bf16.msra.mxu1 %v2002_v2  ;;  %v2041_v2 = vld [vmem:[%s2470_s1 + $0x1e0] sm:$0xff]  }
  0x39   : > { %1845 = vmatpush3.bf16.msra.mxu0 %v2003_v3  ;;  %1766 = vmatprep.subr.bf16.mxu1 %v2004_v4  ;;  %v2042_v3 = vld [vmem:[%s2470_s1 + $0xe8] sm:$0xff]  }
  0x3a   : > { %1846 = vmatprep.subr.bf16.mxu0 %v2005_v5 }
  0x3c   : > { %1767 = vmatpush3.bf16.msra.mxu1 %v2004_v4  ;;  %v2398_v4 = vld [vmem:[%s2157_s16 + $0x14] ss:$0 sps:$4 sm:$0x77]  }
  0x3d   : > { %1847 = vmatpush3.bf16.msra.mxu0 %v2005_v5  ;;  %1768 = vmatprep.subr.bf16.mxu1 %v2006_v6  ;;  %v2043_v5 = vld [vmem:[%s2470_s1 + $0x1e8] sm:$0xff]  }
  0x3e   : > { %1848 = vmatprep.subr.bf16.mxu0 %v2007_v7 }
  0x40   : > { %1769 = vmatpush3.bf16.msra.mxu1 %v2006_v6  ;;  %v2044_v6 = vld [vmem:[%s2470_s1 + $0xf0] sm:$0xff]  }
  0x41   : > { %1849 = vmatpush3.bf16.msra.mxu0 %v2007_v7  ;;  %1770 = vmatprep.subr.bf16.mxu1 %v2008_v8  ;;  %v1174_v7 = vshrl.u32 %v2398_v4, 16 }
  0x42   : > { %1850 = vmatprep.subr.bf16.mxu0 %v2009_v13 }
  0x43   : > { %v1176_v16 = vrot.slane %v1174_v7, 2 }
  0x44   : > { %1771 = vmatpush3.bf16.msra.mxu1 %v2008_v8  ;;  %v1177_v8 = vshll.u32 %v2398_v4, 16 }
  0x45   : > { %1851 = vmatpush3.bf16.msra.mxu0 %v2009_v13  ;;  %1776 = vmatprep.subr.bf16.mxu1 %v2010_v19  ;;  %v2048_v13 = vld [vmem:[%s2157_s16 + $0x10] ss:$0 sps:$4 sm:$0x77]  }
  0x46   : > { %1856 = vmatprep.subr.bf16.mxu0 %v2012_v20  ;;  %v621_v12 = vrot.slane %v2048_v13, 3 }
  0x47   : > { %1773 = vmatmul.mubr.bf16.vlgmr.msra.gmra.mrb[0].mxu1 %v2183_v18  ;;  %v2052_v18 = vld [vmem:[%s2470_s1 + $0x210] sm:$0xff]  }
  0x48   : > { %1777 = vmatpush3.bf16.msra.mxu1 %v2010_v19  ;;  %1853 = vmatmul.mubr.bf16.vlgmr.msra.gmra.mrb[0].mxu0 %v1585_v22  ;;  %v1179_v19 = vrot.slane %v1177_v8, 3 }
  0x49   : > { %1857 = vmatpush3.bf16.msra.mxu0 %v2012_v20  ;;  %1778 = vmatprep.subr.bf16.mxu1 %v2014_v25  ;;  %v2047_v20 = vld [vmem:[%s2470_s1 + $0x1f8] sm:$0xff]  }
  0x4a   : > { %1858 = vmatprep.subr.bf16.mxu0 %v2015_v26  ;;  %1792 = vmatprep.mubr.bf16.mxu1 %v487_v15  ;;  %v1180_v22 = vor.u32 %v1179_v19, %v1176_v16  ;;  %v2051_v15 = vld [vmem:[%s2470_s1 + $0x208] sm:$0xff]  }
  0x4b   : > { %1872 = vmatprep.mubr.bf16.mxu0 %v1029_v27 }
  0x4c   : > { %1779 = vmatpush3.bf16.msra.mxu1 %v2014_v25  ;;  %v1306_v25 = vrot.slane %v2285_v17, 3  ;;  %v1181_v11 = vsel %vm1155_vm5, %v2362_v55, %v1180_v22  ;;  %v2054_v17 = vld [vmem:[%s2470_s1 + $0x220] sm:$0xff]  }
  0x4d   : > { %1859 = vmatpush3.bf16.msra.mxu0 %v2015_v26  ;;  %1780 = vmatprep.subr.bf16.mxu1 %v2016_v28  ;;  %v622_v26 = vsel %vm617_vm2, %v619_v59, %v621_v12  ;;  %v2053_v59 = vld [vmem:[%s2470_s1 + $0x218] sm:$0xff]  }
  0x4e   : > { %1860 = vmatprep.subr.bf16.mxu0 %v2017_v29  ;;  %v1307_v27 = vsel %vm617_vm2, %v1305_v24, %v1306_v25 }
  0x50   : > { %1781 = vmatpush3.bf16.msra.mxu1 %v2016_v28  ;;  %v2055_v28 = vld [vmem:[%s2470_s1 + $0x228] sm:$0xff]  }
  0x51   : > { %1861 = vmatpush3.bf16.msra.mxu0 %v2017_v29  ;;  %1782 = vmatprep.subr.bf16.mxu1 %v2018_v30  ;;  %v2056_v29 = vld [vmem:[%s2470_s1 + $0x230] sm:$0xff]  }
  0x52   : > { %1862 = vmatprep.subr.bf16.mxu0 %v2019_v31 }
  0x54   : > { %1783 = vmatpush3.bf16.msra.mxu1 %v2018_v30  ;;  %v2057_v30 = vld [vmem:[%s2470_s1 + $0x238] sm:$0xff]  }
  0x55   : > { %1863 = vmatpush3.bf16.msra.mxu0 %v2019_v31  ;;  %1784 = vmatprep.subr.bf16.mxu1 %v2020_v32  ;;  %v1308_v31 = vrot.slane %v2398_v4, 3 }
  0x56   : > { %1864 = vmatprep.subr.bf16.mxu0 %v2021_v34 }
  0x58   : > { %1785 = vmatpush3.bf16.msra.mxu1 %v2020_v32  ;;  %v1309_v32 = vsel %vm617_vm2, %v1306_v25, %v1308_v31 }
  0x59   : > { %1865 = vmatpush3.bf16.msra.mxu0 %v2021_v34  ;;  %1786 = vmatprep.subr.bf16.mxu1 %v2022_v35 }
  0x5a   : > { %1866 = vmatprep.subr.bf16.mxu0 %v2023_v36 }
  0x5c   : > { %1787 = vmatpush3.bf16.msra.mxu1 %v2022_v35 }
  0x5d   : > { %1867 = vmatpush3.bf16.msra.mxu0 %v2023_v36  ;;  %1788 = vmatprep.subr.bf16.mxu1 %v2024_v37 }
  0x5e   : > { %1868 = vmatprep.subr.bf16.mxu0 %v2025_v38 }
  0x60   : > { %1789 = vmatpush3.bf16.msra.mxu1 %v2024_v37 }
  0x61   : > { %1869 = vmatpush3.bf16.msra.mxu0 %v2025_v38  ;;  %1790 = vmatprep.subr.bf16.mxu1 %v2026_v43 }
  0x62   : > { %1870 = vmatprep.subr.bf16.mxu0 %v2027_v45 }
  0x64   : > { %1791 = vmatpush3.bf16.msra.mxu1 %v2026_v43 }
  0x65   : > { %1871 = vmatpush3.bf16.msra.mxu0 %v2027_v45  ;;  %1796 = vmatprep.subr.bf16.mxu1 %v2029_v51 }
  0x66   : > { %1876 = vmatprep.subr.bf16.mxu0 %v2032_v53 }
  0x67   : > { %1793 = vmatmul.mubr.bf16.vlgmr.msra.gmra.mrb[0].mxu1 %v489_v33 }
  0x68   : > { %1797 = vmatpush3.bf16.msra.mxu1 %v2029_v51  ;;  %1873 = vmatmul.mubr.bf16.vlgmr.msra.gmra.mrb[0].mxu0 %v1031_v56 }
  0x69   : > { %1877 = vmatpush3.bf16.msra.mxu0 %v2032_v53  ;;  %1798 = vmatprep.subr.bf16.mxu1 %v2034_v57 }
  0x6a   : > { %1878 = vmatprep.subr.bf16.mxu0 %v2035_v58  ;;  %1812 = vmatprep.mubr.bf16.mxu1 %v2236_v61  ;;  %v2040_v61 = vld [vmem:[%s2470_s1 + $0xe0] sm:$0xff]  }
  0x6b   : > { %1892 = vmatprep.mubr.bf16.mxu0 %v1172_v60 }
  0x6c   : > { %1799 = vmatpush3.bf16.msra.mxu1 %v2034_v57 }
  0x6d   : > { %1879 = vmatpush3.bf16.msra.mxu0 %v2035_v58  ;;  %1800 = vmatprep.subr.bf16.mxu1 %v2036_v62 }
  0x6e   : > { %1880 = vmatprep.subr.bf16.mxu0 %v2037_v63 }
  0x70   : > { %1801 = vmatpush3.bf16.msra.mxu1 %v2036_v62 }
  0x71   : > { %1881 = vmatpush3.bf16.msra.mxu0 %v2037_v63  ;;  %1802 = vmatprep.subr.bf16.mxu1 %v2038_v0 }
  0x72   : > { %1882 = vmatprep.subr.bf16.mxu0 %v2039_v1 }
  0x74   : > { %1803 = vmatpush3.bf16.msra.mxu1 %v2038_v0 }
  0x75   : > { %1883 = vmatpush3.bf16.msra.mxu0 %v2039_v1  ;;  %1804 = vmatprep.subr.bf16.mxu1 %v2040_v61 }
  0x76   : > { %1884 = vmatprep.subr.bf16.mxu0 %v2041_v2 }
  0x78   : > { %1805 = vmatpush3.bf16.msra.mxu1 %v2040_v61 }
  0x79   : > { %1885 = vmatpush3.bf16.msra.mxu0 %v2041_v2  ;;  %1806 = vmatprep.subr.bf16.mxu1 %v2042_v3 }
  0x7a   : > { %1886 = vmatprep.subr.bf16.mxu0 %v2043_v5 }
  0x7c   : > { %1807 = vmatpush3.bf16.msra.mxu1 %v2042_v3 }
  0x7d   : > { %1887 = vmatpush3.bf16.msra.mxu0 %v2043_v5  ;;  %1808 = vmatprep.subr.bf16.mxu1 %v2044_v6 }
  0x7e   : > { %1888 = vmatprep.subr.bf16.mxu0 %v2045_v9 }
  0x80   : > { %1809 = vmatpush3.bf16.msra.mxu1 %v2044_v6 }
  0x81   : > { %1889 = vmatpush3.bf16.msra.mxu0 %v2045_v9  ;;  %1810 = vmatprep.subr.bf16.mxu1 %v2046_v14 }
  0x82   : > { %1890 = vmatprep.subr.bf16.mxu0 %v2047_v20 }
  0x84   : > { %1811 = vmatpush3.bf16.msra.mxu1 %v2046_v14 }
  0x85   : > { %1891 = vmatpush3.bf16.msra.mxu0 %v2047_v20 }
  0x86   : > { %1896 = vmatprep.subr.bf16.mxu0 %v2049_v23 }
  0x87   : > { %1813 = vmatmul.mubr.bf16.vlgmr.msra.gmra.mrb[0].mxu1 %v622_v26 }
  0x88   : > { %1893 = vmatmul.mubr.bf16.vlgmr.msra.gmra.mrb[0].mxu0 %v1181_v11 }
  0x89   : > { %1897 = vmatpush3.bf16.msra.mxu0 %v2049_v23  ;;  %1912 = vmatprep.mubr.bf16.mxu0 %v1307_v27 }
  0x8a   : > { %1898 = vmatprep.subr.bf16.mxu0 %v2051_v15 }
  0x8d   : > { %1899 = vmatpush3.bf16.msra.mxu0 %v2051_v15 }
  0x8e   : > { %1900 = vmatprep.subr.bf16.mxu0 %v2052_v18 }
  0x91   : > { %1901 = vmatpush3.bf16.msra.mxu0 %v2052_v18 }
  0x92   : > { %1902 = vmatprep.subr.bf16.mxu0 %v2053_v59 }
  0x95   : > { %1903 = vmatpush3.bf16.msra.mxu0 %v2053_v59 }
  0x96   : > { %1904 = vmatprep.subr.bf16.mxu0 %v2054_v17 }
  0x99   : > { %1905 = vmatpush3.bf16.msra.mxu0 %v2054_v17 }
  0x9a   : > { %1906 = vmatprep.subr.bf16.mxu0 %v2055_v28 }
  0x9d   : > { %1907 = vmatpush3.bf16.msra.mxu0 %v2055_v28 }
  0x9e   : > { %1908 = vmatprep.subr.bf16.mxu0 %v2056_v29 }
  0xa1   : > { %1909 = vmatpush3.bf16.msra.mxu0 %v2056_v29 }
  0xa2   : > { %1910 = vmatprep.subr.bf16.mxu0 %v2057_v30 }
  0xa5   : > { %1911 = vmatpush3.bf16.msra.mxu0 %v2057_v30 }
  0xa8   : > { %1913 = vmatmul.mubr.bf16.vlgmr.msra.gmra.mrb[0].mxu0 %v1309_v32 }
 0x15a   : > { %v1814_v34 = vpop.f32.mrb[0].mxu1 }
 0x15b   : > { %v707_v35 = vpop.f32.mrb[1].mxu1 }
 0x15c   : > { %v1815_v36 = vpop.f32.mrb[2].mxu1 }
 0x15d   : > { %v710_v37 = vpop.f32.mrb[3].mxu1 }
 0x17b   : > { %v1914_v38 = vpop.f32.mrb[0].mxu0 }
 0x17c   : > { %v1916_v40 = vadd.f32 %v1914_v38, %v1814_v34  ;;  %v1394_v41 = vpop.f32.mrb[1].mxu0 }
 0x17d   : > { %v1917_v42 = vadd.f32 %v1394_v41, %v707_v35  ;;  %v1915_v43 = vpop.f32.mrb[2].mxu0 }
 0x17e   : > { %v1422_v44 = vadd.f32 %v1916_v40, %v1623_v39  ;;  %v1918_v45 = vadd.f32 %v1915_v43, %v1815_v36  ;;  %v1397_v46 = vpop.f32.mrb[3].mxu0 }
 0x17f   : > { %v1420_v47 = vadd.f32 %v1917_v42, %v1623_v39  ;;  %v1919_v48 = vadd.f32 %v1397_v46, %v710_v37 }
 0x180   : > { %v1423_v49 = vadd.f32 %v1918_v45, %v1623_v39  ;;  %v1426_v51 = vmax.f32 %v1422_v44, 0.0 }
 0x181   : > { %v1421_v50 = vadd.f32 %v1919_v48, %v1623_v39  ;;  %v1424_v53 = vmax.f32 %v1420_v47, 0.0 }
 0x182   : > { %v1427_v52 = vmax.f32 %v1423_v49, 0.0 }
 0x183   : > { %v1425_v33 = vmax.f32 %v1421_v50, 0.0 }
 0x184   : > { %v1643_v54 = vpack.c.bf16 %v1427_v52, %v1426_v51 }
 0x185   : > { %v1638_v55 = vpack.c.bf16 %v1425_v33, %v1424_v53 }
 0x186   : > { %1645 = vst [vmem:[%s192_s8 + $0x8] sm:$0xff] %v1643_v54  }
 0x187   : > { %1639 = vst [vmem:[%s192_s8] sm:$0xff] %v1638_v55  }
 0x188 PF: > { %s13_s14 = sadd.s32 1, %s2081_s14   ;;  %s2473_s12 = smov %s2077_s13 }
 0x189   : > { %p10_p5 = scmp.ge.s32.totalorder %s13_s14, 4   ;;  %s2474_s13 = smov %s2476_s15 }
 0x18b   :  { %12 = sbr.rel (!%p10_p5) target bundleno = 2 (0x2), region = 62 }

// kernel: pretrained_image_encoding_forward.21
= control target key start
LH: loop header
LB: loop body
LE: loop exit
PB: predicated region body
PF: predicated region fallthrough
CT: control target
= control target key end

     0   :  { %s2178_s15 = smov 0   ;;  %s2180_s16 = smov 0   ;;  %s2548_s0 = inlined_call_operand.vmem [shape: bf16[2,46,128], index: 0, kind: input, shape index: {}]   ;;  %s2549_s1 = inlined_call_operand.vmem [shape: bf16[1152,128], index: 1, kind: input, shape index: {}]   ;;  %s2550_s2 = inlined_call_operand.vmem [shape: f32[1,128], index: 2, kind: input, shape index: {}]   ;;  %s2551_s3 = inlined_call_operand.vmem [shape: bf16[2,32,128], index: 3, kind: input, shape index: {}]   ;;  %s2552_s4 = inlined_call_operand.vmem [shape: f32[2,32,128], index: 4, kind: output, shape index: {}]  }
   0x1   :  { %s2182_s17 = smov 0  }
   0x2 LB: > { %s26_s18 = sadd.s32 1, %s2147_s16  ;;  %p1610_p0 = scmp.ge.s32.totalorder %s2151_s17, 1  ;;  %s2151_s17 = sphi %s2182_s17, %s14_s17   ;;  %s2147_s16 = sphi %s2180_s16, %s2554_s16   ;;  %s2143_s15 = sphi %s2178_s15, %s2553_s15  }
   0x3   : > { %p28_p1 = scmp.ge.s32.totalorder %s26_s18, 2  ;;  %p193_p2 = scmp.lt.s32.totalorder %s2151_s17, 3 }
   0x5   : > { %s2556_s18 = smov (%p28_p1, %s26_s18), 0  ;;  %p194_p3 = pnand %p1610_p0, %p193_p2 }
   0x6   : > { %v2043_v0 = vld [vmem:[%s2549_s1 + $0x40] sm:$0xff] (!%p194_p3)   ;;  %p232_p4 = scmp.lt.s32.totalorder (!%p194_p3), %s2143_s15, 1  ;;  %v2045_v2 = vld [vmem:[%s2549_s1 + $0x48] sm:$0xff] (!%p194_p3)   ;;  %v2047_v4 = vld [vmem:[%s2549_s1 + $0x50] sm:$0xff] (!%p194_p3)   ;;  %vm308_vm0 = vsmask.f32 (!%p194_p3), 7424 }
   0x7   : > { %197 = sbr.rel (%p194_p3) target bundleno = 392 (0x188), region = 36  ;;  %v2044_v1 = vld [vmem:[%s2549_s1 + $0x100] sm:$0xff] (!%p194_p3)   ;;  %1806 = vmatprep.subr.bf16.mxu1 (!%p194_p3), %v2043_v0  ;;  %v2046_v3 = vld [vmem:[%s2549_s1 + $0x108] sm:$0xff] (!%p194_p3)   ;;  %v2048_v5 = vld [vmem:[%s2549_s1 + $0x110] sm:$0xff] (!%p194_p3)   ;;  %vm809_vm1 = vsmask.f32 (!%p194_p3), 4352 }
   0x8   : > { %1886 = vmatprep.subr.bf16.mxu0 (!%p194_p3), %v2044_v1  ;;  %1807 = vmatpush3.bf16.msra.mxu1 (!%p194_p3), %v2043_v0  ;;  %v2049_v6 = vld [vmem:[%s2549_s1 + $0x58] sm:$0xff] (!%p194_p3)   ;;  %v2051_v8 = vld [vmem:[%s2549_s1 + $0x60] sm:$0xff] (!%p194_p3)   ;;  %v2053_v10 = vld [vmem:[%s2549_s1 + $0x68] sm:$0xff] (!%p194_p3)   ;;  %vm680_vm2 = vcmask (!%p194_p3), 1044480   ;;  %vm547_vm3 = vcmask (!%p194_p3), 1046528   ;;  %vm1089_vm4 = vcmask (!%p194_p3), 1045504  }
   0x9   : > { %1887 = vmatpush3.bf16.msra.mxu0 (!%p194_p3), %v2044_v1  ;;  %1808 = vmatprep.subr.bf16.mxu1 (!%p194_p3), %v2045_v2  ;;  %v2050_v7 = vld [vmem:[%s2549_s1 + $0x118] sm:$0xff] (!%p194_p3)   ;;  %v2052_v9 = vld [vmem:[%s2549_s1 + $0x120] sm:$0xff] (!%p194_p3)   ;;  %v2054_v14 = vld [vmem:[%s2549_s1 + $0x128] sm:$0xff] (!%p194_p3)   ;;  %vm1218_vm5 = vsmask.f32 (!%p194_p3), 5376 }
   0xa   : > { %1888 = vmatprep.subr.bf16.mxu0 (!%p194_p3), %v2046_v3  ;;  %v2055_v17 = vld [vmem:[%s2549_s1 + $0x70] sm:$0xff] (!%p194_p3)   ;;  %v2057_v29 = vld [vmem:[%s2549_s1 + $0x78] sm:$0xff] (!%p194_p3)   ;;  %v2061_v49 = vld [vmem:[%s2549_s1] sm:$0xff] (!%p194_p3)  }
   0xb   : > { %v2056_v25 = vld [vmem:[%s2549_s1 + $0x130] sm:$0xff] (!%p194_p3)   ;;  %v2058_v38 = vld [vmem:[%s2549_s1 + $0x138] sm:$0xff] (!%p194_p3)   ;;  %v2063_v50 = vld [vmem:[%s2549_s1 + $0x140] sm:$0xff] (!%p194_p3)  }
   0xc   : > { %1809 = vmatpush3.bf16.msra.mxu1 (!%p194_p3), %v2045_v2  ;;  %v2066_v56 = vld [vmem:[%s2549_s1 + $0x8] sm:$0xff] (!%p194_p3)   ;;  %v2068_v62 = vld [vmem:[%s2549_s1 + $0x10] sm:$0xff] (!%p194_p3)   ;;  %v2070_v0 = vld [vmem:[%s2549_s1 + $0x18] sm:$0xff] (!%p194_p3)  }
   0xd   : > { %1889 = vmatpush3.bf16.msra.mxu0 (!%p194_p3), %v2046_v3  ;;  %1810 = vmatprep.subr.bf16.mxu1 (!%p194_p3), %v2047_v4  ;;  %v2067_v58 = vld [vmem:[%s2549_s1 + $0x148] sm:$0xff] (!%p194_p3)   ;;  %v2069_v63 = vld [vmem:[%s2549_s1 + $0x150] sm:$0xff] (!%p194_p3)   ;;  %v2071_v1 = vld [vmem:[%s2549_s1 + $0x158] sm:$0xff] (!%p194_p3)  }
   0xe   : > { %s2558_s15 = smov (!%p232_p4, %s2143_s15), 1  ;;  %1890 = vmatprep.subr.bf16.mxu0 %v2048_v5  ;;  %v2072_v2 = vld [vmem:[%s2549_s1 + $0x20] sm:$0xff]  }
   0xf   : > { %s2018_s9 = smul.u32 24, %s2558_s15  ;;  %v2073_v3 = vld [vmem:[%s2549_s1 + $0x160] sm:$0xff]   ;;  %s1705_s13 = sshll.u32 %s2558_s15, 4 }
  0x10   : > { %1811 = vmatpush3.bf16.msra.mxu1 %v2047_v4  ;;  %v2074_v4 = vld [vmem:[%s2549_s1 + $0x28] sm:$0xff]   ;;  %s245_s21 = scalar_lea.vmem %s2551_s3, %s1705_s13 }
  0x11   : > { %1891 = vmatpush3.bf16.msra.mxu0 %v2048_v5  ;;  %1812 = vmatprep.subr.bf16.mxu1 %v2049_v6  ;;  %s2232_s20 = scalar_lea.vmem %s2548_s0, %s2018_s9  ;;  %v2075_v5 = vld [vmem:[%s2549_s1 + $0x168] sm:$0xff]  }
  0x12   : > { %1892 = vmatprep.subr.bf16.mxu0 %v2050_v7  ;;  %v258_v11 = vld [vmem:[%s2232_s20] sm:$0xf]  ;;  %v2239_v12 = vld [vmem:[%s2232_s20 + $0x4] sm:$0xf]  ;;  %v2242_v13 = vld [vmem:[%s2232_s20 + $0x8] sm:$0xf] }
  0x13   : > { %v2248_v15 = vld [vmem:[%s2232_s20 + $0xc] sm:$0xf]  ;;  %v2251_v16 = vcombine.low %v258_v11, %v2239_v12  ;;  %v656_v19 = vld [vmem:[%s2232_s20] sm:$0x8]  ;;  %v2280_v37 = vld [vmem:[%s2232_s20 + $0x10] sm:$0xf]  ;;  %v1663_v60 = vcombine.low %v2239_v12, %v2242_v13 }
  0x14   : > { %1813 = vmatpush3.bf16.msra.mxu1 %v2049_v6  ;;  %v2258_v18 = vcombine.low %v2242_v13, %v2248_v15  ;;  %v2264_v22 = vcombine.low %v656_v19, %v2239_v12  ;;  %v2277_v33 = vld [vmem:[%s2232_s20 + $0x10] ss:$0 sps:$4 sm:$0x11]   ;;  %v1654_v41 = vcombine.low %v2280_v37, %v2280_v37  ;;  %v2350_v11 = vld [vmem:[%s2232_s20 + $0x8] sm:$0xf]  ;;  %v2079_v13 = vld [vmem:[%s2549_s1 + $0x178] sm:$0xff]  }
  0x15   : > { %1893 = vmatpush3.bf16.msra.mxu0 %v2050_v7  ;;  %1814 = vmatprep.subr.bf16.mxu1 %v2051_v8  ;;  %v310_v20 = vshrl.u32 %v2251_v16, 16  ;;  %v312_v21 = vshll.u32 %v2251_v16, 16  ;;  %v325_v40 = vshll.u32 %v2277_v33, 16  ;;  %v2076_v6 = vld [vmem:[%s2549_s1 + $0x30] sm:$0xff]   ;;  %v2080_v19 = vld [vmem:[%s2549_s1 + $0x80] sm:$0xff]  }
  0x16   : > { %1894 = vmatprep.subr.bf16.mxu0 %v2052_v9  ;;  %v317_v23 = vshll.u32 %v2258_v18, 16  ;;  %v321_v24 = vshrl.u32 %v2258_v18, 16  ;;  %v811_v27 = vshrl.u32 %v2264_v22, 16  ;;  %v814_v28 = vshll.u32 %v2264_v22, 16  ;;  %v2077_v7 = vld [vmem:[%s2549_s1 + $0x170] sm:$0xff]  }
  0x17   : > { %v314_v26 = vrot.slane %v312_v21, 1  ;;  %v327_v44 = vrot.slane %v325_v40, 1  ;;  %v823_v45 = vshrl.u32 %v1654_v41, 16  ;;  %v826_v46 = vshll.u32 %v1654_v41, 16 }
  0x18   : > { %1815 = vmatpush3.bf16.msra.mxu1 %v2051_v8  ;;  %v319_v30 = vrot.slane %v317_v23, 1  ;;  %v818_v31 = vrot.slane %v321_v24, 3  ;;  %v819_v32 = vrot.slane %v317_v23, 4  ;;  %v813_v35 = vrot.slane %v811_v27, 3  ;;  %v2078_v8 = vld [vmem:[%s2549_s1 + $0x38] sm:$0xff]  }
  0x19   : > { %1895 = vmatpush3.bf16.msra.mxu0 %v2052_v9  ;;  %1816 = vmatprep.subr.bf16.mxu1 %v2053_v10  ;;  %v315_v34 = vor.u32 %v314_v26, %v310_v20  ;;  %v816_v36 = vrot.slane %v814_v28, 4  ;;  %v825_v51 = vrot.slane %v823_v45, 3  ;;  %v828_v52 = vrot.slane %v826_v46, 4  ;;  %v527_v9 = vld [vmem:[%s2232_s20] sm:$0xe]  ;;  %v2085_v26 = vld [vmem:[%s2549_s1 + $0x188] sm:$0xff]  }
  0x1a   : > { %1896 = vmatprep.subr.bf16.mxu0 %v2054_v14  ;;  %v820_v39 = vor.u32 %v819_v32, %v818_v31  ;;  %v323_v48 = vor.u32 %v321_v24, %v319_v30  ;;  %v681_v57 = vrot.slane %v2264_v22, 3  ;;  %v682_v59 = vrot.slane %v2258_v18, 3  ;;  %v2082_v20 = vld [vmem:[%s2549_s1 + $0x180] sm:$0xff]   ;;  %v2086_v28 = vld [vmem:[%s2549_s1 + $0x90] sm:$0xff]   ;;  %v2089_v31 = vld [vmem:[%s2549_s1 + $0x198] sm:$0xff]  }
  0x1b   : > { %v320_v42 = vsel %vm308_vm0, %v315_v34, %v319_v30  ;;  %v817_v43 = vor.u32 %v816_v36, %v813_v35  ;;  %v829_v53 = vor.u32 %v828_v52, %v825_v51  ;;  %v1664_v22 = vcombine.low %v2248_v15, %v2280_v37  ;;  %v2088_v30 = vld [vmem:[%s2549_s1 + $0x98] sm:$0xff]   ;;  %v2090_v32 = vld [vmem:[%s2549_s1 + $0xa0] sm:$0xff]   ;;  %v2092_v35 = vld [vmem:[%s2549_s1 + $0xa8] sm:$0xff]  }
  0x1c   : > { %1817 = vmatpush3.bf16.msra.mxu1 %v2053_v10  ;;  %1822 = vmatprep.mubr.bf16.mxu1 %v320_v42  ;;  %v328_v54 = vsel %vm308_vm0, %v323_v48, %v327_v44  ;;  %v2311_v61 = vsel %vm680_vm2, %v681_v57, %v682_v59  ;;  %v1055_v10 = vld [vmem:[%s2232_s20 + $0x4] sm:$0xc]  ;;  %v2093_v36 = vld [vmem:[%s2549_s1 + $0x1a8] sm:$0xff]   ;;  %v2094_v37 = vld [vmem:[%s2549_s1 + $0xb0] sm:$0xff]   ;;  %v551_v46 = vrot.slane %v2277_v33, 1 }
  0x1d   : > { %1897 = vmatpush3.bf16.msra.mxu0 %v2054_v14  ;;  %1818 = vmatprep.subr.bf16.mxu1 %v2055_v17  ;;  %v821_v47 = vsel %vm809_vm1, %v817_v43, %v820_v39  ;;  %v830_v55 = vsel %vm809_vm1, %v820_v39, %v829_v53  ;;  %v1635_v14 = vcombine.low %v527_v9, %v2239_v12  ;;  %v549_v12 = vrot.slane %v2258_v18, 1  ;;  %v2091_v34 = vld [vmem:[%s2549_s1 + $0x1a0] sm:$0xff]   ;;  %v2096_v43 = vld [vmem:[%s2549_s1 + $0xb8] sm:$0xff]   ;;  %v2103_v44 = vld [vmem:[%s2232_s20 + $0x14] ss:$0 sps:$4 sm:$0x33]  }
  0x1e   : > { %1898 = vmatprep.subr.bf16.mxu0 %v2056_v25  ;;  %1902 = vmatprep.mubr.bf16.mxu0 %v821_v47  ;;  %v2097_v45 = vld [vmem:[%s2549_s1 + $0x1b8] sm:$0xff]   ;;  %v2099_v51 = vld [vmem:[%s2549_s1 + $0xc0] sm:$0xff]   ;;  %v1093_v52 = vrot.slane %v2103_v44, 2  ;;  %v2104_v57 = vld [vmem:[%s2549_s1 + $0xc8] sm:$0xff]  }
  0x1f   : > { %v548_v21 = vrot.slane %v1635_v14, 1  ;;  %v2102_v53 = vld [vmem:[%s2549_s1 + $0x1c0] sm:$0xff]   ;;  %v552_v33 = vsel %vm547_vm3, %v549_v12, %v551_v46  ;;  %v2115_v9 = vld [vmem:[%s2549_s1 + $0x1f0] sm:$0xff]   ;;  %v2116_v14 = vld [vmem:[%s2549_s1 + $0xf8] sm:$0xff]  }
  0x20   : > { %1819 = vmatpush3.bf16.msra.mxu1 %v2055_v17  ;;  %v2360_v17 = vld [vmem:[%s2232_s20 + $0xc] sm:$0xff]  }
  0x21   : > { %1899 = vmatpush3.bf16.msra.mxu0 %v2056_v25  ;;  %1820 = vmatprep.subr.bf16.mxu1 %v2057_v29  ;;  %v1091_v24 = vrot.slane %v2360_v17, 2  ;;  %v2084_v25 = vld [vmem:[%s2549_s1 + $0x88] sm:$0xff]   ;;  %v550_v15 = vsel %vm547_vm3, %v548_v21, %v549_v12  ;;  %v1228_v41 = vshrl.u32 %v2360_v17, 16  ;;  %v1231_v42 = vshll.u32 %v2360_v17, 16 }
  0x22   : > { %1900 = vmatprep.subr.bf16.mxu0 %v2058_v38 }
  0x24   : > { %1821 = vmatpush3.bf16.msra.mxu1 %v2057_v29  ;;  %v2087_v29 = vld [vmem:[%s2549_s1 + $0x190] sm:$0xff]  }
  0x25   : > { %1901 = vmatpush3.bf16.msra.mxu0 %v2058_v38  ;;  %1826 = vmatprep.subr.bf16.mxu1 %v2061_v49  ;;  %v2095_v38 = vld [vmem:[%s2549_s1 + $0x1b0] sm:$0xff]  }
  0x26   : > { %1906 = vmatprep.subr.bf16.mxu0 %v2063_v50 }
  0x27   : > { %1823 = vmatmul.mubr.bf16.vlgmr.msra.gmra.mrb[0].mxu1 %v328_v54 }
  0x28   : > { %1827 = vmatpush3.bf16.msra.mxu1 %v2061_v49  ;;  %1903 = vmatmul.mubr.bf16.vlgmr.msra.gmra.mrb[0].mxu0 %v830_v55  ;;  %v1230_v49 = vrot.slane %v1228_v41, 2  ;;  %v1702_v41 = vld [vmem:[%s2550_s2] ss:$0 sm:$0xff] }
  0x29   : > { %1907 = vmatpush3.bf16.msra.mxu0 %v2063_v50  ;;  %1828 = vmatprep.subr.bf16.mxu1 %v2066_v56  ;;  %v1233_v50 = vrot.slane %v1231_v42, 3 }
  0x2a   : > { %1908 = vmatprep.subr.bf16.mxu0 %v2067_v58  ;;  %1842 = vmatprep.mubr.bf16.mxu1 %v2251_v16  ;;  %v2357_v16 = vcombine.low %v1055_v10, %v2350_v11  ;;  %v1348_v10 = vld [vmem:[%s2232_s20 + $0x4] sm:$0x8] }
  0x2b   : > { %1922 = vmatprep.mubr.bf16.mxu0 %v1663_v60  ;;  %v2437_v55 = vor.u32 %v1233_v50, %v1230_v49  ;;  %v1693_v21 = vcombine.low %v1348_v10, %v2350_v11 }
  0x2c   : > { %1829 = vmatpush3.bf16.msra.mxu1 %v2066_v56  ;;  %v1090_v23 = vrot.slane %v2357_v16, 2  ;;  %v1220_v39 = vshrl.u32 %v2357_v16, 16  ;;  %v1223_v40 = vshll.u32 %v2357_v16, 16  ;;  %v1094_v56 = vsel %vm1089_vm4, %v1091_v24, %v1093_v52 }
  0x2d   : > { %1909 = vmatpush3.bf16.msra.mxu0 %v2067_v58  ;;  %1830 = vmatprep.subr.bf16.mxu1 %v2068_v62  ;;  %v2105_v58 = vld [vmem:[%s2549_s1 + $0x1c8] sm:$0xff]  }
  0x2e   : > { %1910 = vmatprep.subr.bf16.mxu0 %v2069_v63  ;;  %v1092_v27 = vsel %vm1089_vm4, %v1090_v23, %v1091_v24  ;;  %v1222_v47 = vrot.slane %v1220_v39, 2  ;;  %v1225_v48 = vrot.slane %v1223_v40, 3  ;;  %v2119_v23 = vld [vmem:[%s2549_s1 + $0x200] sm:$0xff]   ;;  %v1368_v24 = vrot.slane %v1693_v21, 3 }
  0x2f   : > { %v1708_v39 = vld [vmem:[%s245_s21] sm:$0xff]  }
  0x30   : > { %1831 = vmatpush3.bf16.msra.mxu1 %v2068_v62  ;;  %v1226_v54 = vor.u32 %v1225_v48, %v1222_v47  ;;  %v2106_v62 = vld [vmem:[%s2549_s1 + $0xd0] sm:$0xff]   ;;  %v1709_v46 = vunpack.c.l.bf16 %v1708_v39 }
  0x31   : > { %1911 = vmatpush3.bf16.msra.mxu0 %v2069_v63  ;;  %1832 = vmatprep.subr.bf16.mxu1 %v2070_v0  ;;  %v2107_v63 = vld [vmem:[%s2549_s1 + $0x1d0] sm:$0xff]  }
  0x32   : > { %1912 = vmatprep.subr.bf16.mxu0 %v2071_v1  ;;  %v1235_v60 = vsel %vm1218_vm5, %v1226_v54, %v2437_v55 }
  0x34   : > { %1833 = vmatpush3.bf16.msra.mxu1 %v2070_v0  ;;  %v2108_v0 = vld [vmem:[%s2549_s1 + $0xd8] sm:$0xff]  }
  0x35   : > { %1913 = vmatpush3.bf16.msra.mxu0 %v2071_v1  ;;  %1834 = vmatprep.subr.bf16.mxu1 %v2072_v2  ;;  %v2109_v1 = vld [vmem:[%s2549_s1 + $0x1d8] sm:$0xff]  }
  0x36   : > { %1914 = vmatprep.subr.bf16.mxu0 %v2073_v3 }
  0x38   : > { %1835 = vmatpush3.bf16.msra.mxu1 %v2072_v2  ;;  %v2111_v2 = vld [vmem:[%s2549_s1 + $0x1e0] sm:$0xff]  }
  0x39   : > { %1915 = vmatpush3.bf16.msra.mxu0 %v2073_v3  ;;  %1836 = vmatprep.subr.bf16.mxu1 %v2074_v4  ;;  %v2112_v3 = vld [vmem:[%s2549_s1 + $0xe8] sm:$0xff]  }
  0x3a   : > { %1916 = vmatprep.subr.bf16.mxu0 %v2075_v5 }
  0x3c   : > { %1837 = vmatpush3.bf16.msra.mxu1 %v2074_v4  ;;  %v2473_v4 = vld [vmem:[%s2232_s20 + $0x14] ss:$0 sps:$4 sm:$0x77]  }
  0x3d   : > { %1917 = vmatpush3.bf16.msra.mxu0 %v2075_v5  ;;  %1838 = vmatprep.subr.bf16.mxu1 %v2076_v6  ;;  %v2113_v5 = vld [vmem:[%s2549_s1 + $0x1e8] sm:$0xff]  }
  0x3e   : > { %1918 = vmatprep.subr.bf16.mxu0 %v2077_v7 }
  0x40   : > { %1839 = vmatpush3.bf16.msra.mxu1 %v2076_v6  ;;  %v2114_v6 = vld [vmem:[%s2549_s1 + $0xf0] sm:$0xff]  }
  0x41   : > { %1919 = vmatpush3.bf16.msra.mxu0 %v2077_v7  ;;  %1840 = vmatprep.subr.bf16.mxu1 %v2078_v8  ;;  %v1237_v7 = vshrl.u32 %v2473_v4, 16 }
  0x42   : > { %1920 = vmatprep.subr.bf16.mxu0 %v2079_v13 }
  0x43   : > { %v1239_v16 = vrot.slane %v1237_v7, 2 }
  0x44   : > { %1841 = vmatpush3.bf16.msra.mxu1 %v2078_v8  ;;  %v1240_v8 = vshll.u32 %v2473_v4, 16 }
  0x45   : > { %1921 = vmatpush3.bf16.msra.mxu0 %v2079_v13  ;;  %1846 = vmatprep.subr.bf16.mxu1 %v2080_v19  ;;  %v2118_v13 = vld [vmem:[%s2232_s20 + $0x10] ss:$0 sps:$4 sm:$0x77]   ;;  %s1706_s20 = sshll.u32 %s2558_s15, 5 }
  0x46   : > { %1926 = vmatprep.subr.bf16.mxu0 %v2082_v20  ;;  %v684_v12 = vrot.slane %v2118_v13, 3  ;;  %s255_s26 = scalar_lea.vmem %s2552_s4, %s1706_s20 }
  0x47   : > { %1843 = vmatmul.mubr.bf16.vlgmr.msra.gmra.mrb[0].mxu1 %v2258_v18  ;;  %v2122_v18 = vld [vmem:[%s2549_s1 + $0x210] sm:$0xff]  }
  0x48   : > { %1847 = vmatpush3.bf16.msra.mxu1 %v2080_v19  ;;  %1923 = vmatmul.mubr.bf16.vlgmr.msra.gmra.mrb[0].mxu0 %v1664_v22  ;;  %v1242_v19 = vrot.slane %v1240_v8, 3 }
  0x49   : > { %1927 = vmatpush3.bf16.msra.mxu0 %v2082_v20  ;;  %1848 = vmatprep.subr.bf16.mxu1 %v2084_v25  ;;  %v2117_v20 = vld [vmem:[%s2549_s1 + $0x1f8] sm:$0xff]  }
  0x4a   : > { %1928 = vmatprep.subr.bf16.mxu0 %v2085_v26  ;;  %1862 = vmatprep.mubr.bf16.mxu1 %v550_v15  ;;  %v1243_v22 = vor.u32 %v1242_v19, %v1239_v16  ;;  %v2121_v15 = vld [vmem:[%s2549_s1 + $0x208] sm:$0xff]  }
  0x4b   : > { %1942 = vmatprep.mubr.bf16.mxu0 %v1092_v27 }
  0x4c   : > { %1849 = vmatpush3.bf16.msra.mxu1 %v2084_v25  ;;  %v1369_v25 = vrot.slane %v2360_v17, 3  ;;  %v1244_v11 = vsel %vm1218_vm5, %v2437_v55, %v1243_v22  ;;  %v2124_v17 = vld [vmem:[%s2549_s1 + $0x220] sm:$0xff]  }
  0x4d   : > { %1929 = vmatpush3.bf16.msra.mxu0 %v2085_v26  ;;  %1850 = vmatprep.subr.bf16.mxu1 %v2086_v28  ;;  %v685_v26 = vsel %vm680_vm2, %v682_v59, %v684_v12  ;;  %v2123_v59 = vld [vmem:[%s2549_s1 + $0x218] sm:$0xff]  }
  0x4e   : > { %1930 = vmatprep.subr.bf16.mxu0 %v2087_v29  ;;  %v1370_v27 = vsel %vm680_vm2, %v1368_v24, %v1369_v25 }
  0x50   : > { %1851 = vmatpush3.bf16.msra.mxu1 %v2086_v28  ;;  %v2125_v28 = vld [vmem:[%s2549_s1 + $0x228] sm:$0xff]  }
  0x51   : > { %1931 = vmatpush3.bf16.msra.mxu0 %v2087_v29  ;;  %1852 = vmatprep.subr.bf16.mxu1 %v2088_v30  ;;  %v2126_v29 = vld [vmem:[%s2549_s1 + $0x230] sm:$0xff]  }
  0x52   : > { %1932 = vmatprep.subr.bf16.mxu0 %v2089_v31 }
  0x54   : > { %1853 = vmatpush3.bf16.msra.mxu1 %v2088_v30  ;;  %v2127_v30 = vld [vmem:[%s2549_s1 + $0x238] sm:$0xff]  }
  0x55   : > { %1933 = vmatpush3.bf16.msra.mxu0 %v2089_v31  ;;  %1854 = vmatprep.subr.bf16.mxu1 %v2090_v32  ;;  %v1371_v31 = vrot.slane %v2473_v4, 3 }
  0x56   : > { %1934 = vmatprep.subr.bf16.mxu0 %v2091_v34 }
  0x58   : > { %1855 = vmatpush3.bf16.msra.mxu1 %v2090_v32  ;;  %v1372_v32 = vsel %vm680_vm2, %v1369_v25, %v1371_v31 }
  0x59   : > { %1935 = vmatpush3.bf16.msra.mxu0 %v2091_v34  ;;  %1856 = vmatprep.subr.bf16.mxu1 %v2092_v35 }
  0x5a   : > { %1936 = vmatprep.subr.bf16.mxu0 %v2093_v36 }
  0x5c   : > { %1857 = vmatpush3.bf16.msra.mxu1 %v2092_v35 }
  0x5d   : > { %1937 = vmatpush3.bf16.msra.mxu0 %v2093_v36  ;;  %1858 = vmatprep.subr.bf16.mxu1 %v2094_v37 }
  0x5e   : > { %1938 = vmatprep.subr.bf16.mxu0 %v2095_v38 }
  0x60   : > { %1859 = vmatpush3.bf16.msra.mxu1 %v2094_v37 }
  0x61   : > { %1939 = vmatpush3.bf16.msra.mxu0 %v2095_v38  ;;  %1860 = vmatprep.subr.bf16.mxu1 %v2096_v43  ;;  %v1715_v38 = vld [vmem:[%s245_s21 + $0x8] sm:$0xff]  }
  0x62   : > { %1940 = vmatprep.subr.bf16.mxu0 %v2097_v45  ;;  %v1714_v50 = vunpack.c.h.bf16 %v1715_v38 }
  0x64   : > { %1861 = vmatpush3.bf16.msra.mxu1 %v2096_v43  ;;  %v1713_v43 = vunpack.c.l.bf16 %v1715_v38 }
  0x65   : > { %1941 = vmatpush3.bf16.msra.mxu0 %v2097_v45  ;;  %1866 = vmatprep.subr.bf16.mxu1 %v2099_v51 }
  0x66   : > { %1946 = vmatprep.subr.bf16.mxu0 %v2102_v53 }
  0x67   : > { %1863 = vmatmul.mubr.bf16.vlgmr.msra.gmra.mrb[0].mxu1 %v552_v33  ;;  %v1710_v33 = vunpack.c.h.bf16 %v1708_v39 }
  0x68   : > { %1867 = vmatpush3.bf16.msra.mxu1 %v2099_v51  ;;  %1943 = vmatmul.mubr.bf16.vlgmr.msra.gmra.mrb[0].mxu0 %v1094_v56 }
  0x69   : > { %1947 = vmatpush3.bf16.msra.mxu0 %v2102_v53  ;;  %1868 = vmatprep.subr.bf16.mxu1 %v2104_v57 }
  0x6a   : > { %1948 = vmatprep.subr.bf16.mxu0 %v2105_v58  ;;  %1882 = vmatprep.mubr.bf16.mxu1 %v2311_v61  ;;  %v2110_v61 = vld [vmem:[%s2549_s1 + $0xe0] sm:$0xff]  }
  0x6b   : > { %1962 = vmatprep.mubr.bf16.mxu0 %v1235_v60 }
  0x6c   : > { %1869 = vmatpush3.bf16.msra.mxu1 %v2104_v57 }
  0x6d   : > { %1949 = vmatpush3.bf16.msra.mxu0 %v2105_v58  ;;  %1870 = vmatprep.subr.bf16.mxu1 %v2106_v62 }
  0x6e   : > { %1950 = vmatprep.subr.bf16.mxu0 %v2107_v63 }
  0x70   : > { %1871 = vmatpush3.bf16.msra.mxu1 %v2106_v62 }
  0x71   : > { %1951 = vmatpush3.bf16.msra.mxu0 %v2107_v63  ;;  %1872 = vmatprep.subr.bf16.mxu1 %v2108_v0 }
  0x72   : > { %1952 = vmatprep.subr.bf16.mxu0 %v2109_v1 }
  0x74   : > { %1873 = vmatpush3.bf16.msra.mxu1 %v2108_v0 }
  0x75   : > { %1953 = vmatpush3.bf16.msra.mxu0 %v2109_v1  ;;  %1874 = vmatprep.subr.bf16.mxu1 %v2110_v61 }
  0x76   : > { %1954 = vmatprep.subr.bf16.mxu0 %v2111_v2 }
  0x78   : > { %1875 = vmatpush3.bf16.msra.mxu1 %v2110_v61 }
  0x79   : > { %1955 = vmatpush3.bf16.msra.mxu0 %v2111_v2  ;;  %1876 = vmatprep.subr.bf16.mxu1 %v2112_v3 }
  0x7a   : > { %1956 = vmatprep.subr.bf16.mxu0 %v2113_v5 }
  0x7c   : > { %1877 = vmatpush3.bf16.msra.mxu1 %v2112_v3 }
  0x7d   : > { %1957 = vmatpush3.bf16.msra.mxu0 %v2113_v5  ;;  %1878 = vmatprep.subr.bf16.mxu1 %v2114_v6 }
  0x7e   : > { %1958 = vmatprep.subr.bf16.mxu0 %v2115_v9 }
  0x80   : > { %1879 = vmatpush3.bf16.msra.mxu1 %v2114_v6 }
  0x81   : > { %1959 = vmatpush3.bf16.msra.mxu0 %v2115_v9  ;;  %1880 = vmatprep.subr.bf16.mxu1 %v2116_v14 }
  0x82   : > { %1960 = vmatprep.subr.bf16.mxu0 %v2117_v20 }
  0x84   : > { %1881 = vmatpush3.bf16.msra.mxu1 %v2116_v14 }
  0x85   : > { %1961 = vmatpush3.bf16.msra.mxu0 %v2117_v20 }
  0x86   : > { %1966 = vmatprep.subr.bf16.mxu0 %v2119_v23 }
  0x87   : > { %1883 = vmatmul.mubr.bf16.vlgmr.msra.gmra.mrb[0].mxu1 %v685_v26 }
  0x88   : > { %1963 = vmatmul.mubr.bf16.vlgmr.msra.gmra.mrb[0].mxu0 %v1244_v11 }
  0x89   : > { %1967 = vmatpush3.bf16.msra.mxu0 %v2119_v23  ;;  %1982 = vmatprep.mubr.bf16.mxu0 %v1370_v27 }
  0x8a   : > { %1968 = vmatprep.subr.bf16.mxu0 %v2121_v15 }
  0x8d   : > { %1969 = vmatpush3.bf16.msra.mxu0 %v2121_v15 }
  0x8e   : > { %1970 = vmatprep.subr.bf16.mxu0 %v2122_v18 }
  0x91   : > { %1971 = vmatpush3.bf16.msra.mxu0 %v2122_v18 }
  0x92   : > { %1972 = vmatprep.subr.bf16.mxu0 %v2123_v59 }
  0x95   : > { %1973 = vmatpush3.bf16.msra.mxu0 %v2123_v59 }
  0x96   : > { %1974 = vmatprep.subr.bf16.mxu0 %v2124_v17 }
  0x99   : > { %1975 = vmatpush3.bf16.msra.mxu0 %v2124_v17 }
  0x9a   : > { %1976 = vmatprep.subr.bf16.mxu0 %v2125_v28 }
  0x9d   : > { %1977 = vmatpush3.bf16.msra.mxu0 %v2125_v28 }
  0x9e   : > { %1978 = vmatprep.subr.bf16.mxu0 %v2126_v29 }
  0xa1   : > { %1979 = vmatpush3.bf16.msra.mxu0 %v2126_v29 }
  0xa2   : > { %1980 = vmatprep.subr.bf16.mxu0 %v2127_v30 }
  0xa5   : > { %1981 = vmatpush3.bf16.msra.mxu0 %v2127_v30 }
  0xa8   : > { %1983 = vmatmul.mubr.bf16.vlgmr.msra.gmra.mrb[0].mxu0 %v1372_v32 }
 0x15a   : > { %v1884_v34 = vpop.f32.mrb[0].mxu1 }
 0x15b   : > { %v770_v35 = vpop.f32.mrb[1].mxu1 }
 0x15c   : > { %v1885_v36 = vpop.f32.mrb[2].mxu1 }
 0x15d   : > { %v773_v37 = vpop.f32.mrb[3].mxu1 }
 0x17b   : > { %v1984_v40 = vpop.f32.mrb[0].mxu0 }
 0x17c   : > { %v1986_v42 = vadd.f32 %v1984_v40, %v1884_v34  ;;  %v1457_v44 = vpop.f32.mrb[1].mxu0 }
 0x17d   : > { %v1987_v45 = vadd.f32 %v1457_v44, %v770_v35  ;;  %v1985_v47 = vpop.f32.mrb[2].mxu0 }
 0x17e   : > { %v1485_v48 = vadd.f32 %v1986_v42, %v1702_v41  ;;  %v1988_v49 = vadd.f32 %v1985_v47, %v1885_v36  ;;  %v1460_v51 = vpop.f32.mrb[3].mxu0 }
 0x17f   : > { %v1483_v52 = vadd.f32 %v1987_v45, %v1702_v41  ;;  %v1989_v53 = vadd.f32 %v1460_v51, %v773_v37 }
 0x180   : > { %v1497_v54 = vadd.f32 %v1713_v43, %v1485_v48  ;;  %v1486_v55 = vadd.f32 %v1988_v49, %v1702_v41 }
 0x181   : > { %v1495_v56 = vadd.f32 %v1709_v46, %v1483_v52  ;;  %v1484_v57 = vadd.f32 %v1989_v53, %v1702_v41 }
 0x182   : > { %v1501_v58 = vmax.f32 %v1497_v54, 0.0  ;;  %v1498_v60 = vadd.f32 %v1714_v50, %v1486_v55 }
 0x183   : > { %v1499_v62 = vmax.f32 %v1495_v56, 0.0  ;;  %v1496_v63 = vadd.f32 %v1710_v33, %v1484_v57 }
 0x184   : > { %1505 = vst [vmem:[%s255_s26 + $0x10] sm:$0xff] %v1501_v58  ;;  %v1502_v0 = vmax.f32 %v1498_v60, 0.0 }
 0x185   : > { %1503 = vst [vmem:[%s255_s26] sm:$0xff] %v1499_v62  ;;  %v1500_v1 = vmax.f32 %v1496_v63, 0.0 }
 0x186   : > { %1506 = vst [vmem:[%s255_s26 + $0x18] sm:$0xff] %v1502_v0 }
 0x187   : > { %1504 = vst [vmem:[%s255_s26 + $0x8] sm:$0xff] %v1500_v1 }
 0x188 PF: > { %s14_s17 = sadd.s32 1, %s2151_s17   ;;  %s2553_s15 = smov %s2147_s16 }
 0x189   : > { %p11_p5 = scmp.ge.s32.totalorder %s14_s17, 4   ;;  %s2554_s16 = smov %s2556_s18 }
 0x18b   :  { %13 = sbr.rel (!%p11_p5) target bundleno = 2 (0x2), region = 69 }

</bundles_post_ra>
